<compile_context>
chip_gen: v6e
topology: v6e:2x2x1
jax: 0.10.0
libtpu: 0.0.40
codegen_flags: <defaults>
</compile_context>

<pallas_src>
import functools

import jax
import jax.numpy as jnp
from jax.experimental import pallas as pl
from jax.experimental.pallas import tpu as pltpu

# ------------------------- small synthetic config -------------------------
B = 2            # batch
IMG_SIZE = 16    # image H = W
PATCH = 8        # patch size -> 4 patches
IN_CH = 3
VIS_WIDTH = 32   # vision_cfg.width
VIS_LAYERS = 2
VIS_HEADS = 4
N_CAUSAL = 4     # vladapter_cfg.n_causal
D_MODEL = 32     # decoder.config.d_model
DEC_LAYERS = 2
DEC_HEADS = 4
MLP_RATIO = 4
VOCAB = 64
TEXT_LEN = 8

NEG_INF = -1e9
EPS = 1e-6


# ========================= in-kernel helper functions =========================
# These operate on jnp values inside a Pallas kernel body (traced once).

def _ln(x, w, b, eps):
    x = x.astype(jnp.float32)
    mu = jnp.mean(x, axis=-1, keepdims=True)
    var = jnp.mean((x - mu) ** 2, axis=-1, keepdims=True)
    return (x - mu) * jax.lax.rsqrt(var + eps) * w + b


def _rms(x, w, eps):
    x = x.astype(jnp.float32)
    ms = jnp.mean(x * x, axis=-1, keepdims=True)
    return x * jax.lax.rsqrt(ms + eps) * w


def _proj(x3, w, b=None):
    """(B, S, Din) @ (Din, Dout) [+ bias] -> (B, S, Dout) via a 2D MXU matmul."""
    Bq, S, Din = x3.shape
    y = jnp.dot(x3.reshape(Bq * S, Din), w, preferred_element_type=jnp.float32)
    if b is not None:
        y = y + b
    return y.reshape(Bq, S, w.shape[1])


def _mha_heads(q, k, v, bias, num_heads):
    """All batch x head attention in one kernel body.

    q: (B, Sq, D)  k, v: (B, Sk, D)  bias: None, (Sq, Sk) or (B, Sq, Sk) additive.
    Heads are static slices of the feature axis; softmax denom uses the EUP
    reciprocal; head loop is a static Python unroll (H is tiny).
    """
    D = q.shape[-1]
    Dh = D // num_heads
    scale = 1.0 / (Dh ** 0.5)
    outs = []
    for h in range(num_heads):
        sl = slice(h * Dh, (h + 1) * Dh)
        s = jnp.einsum("bqd,bkd->bqk", q[..., sl], k[..., sl],
                       preferred_element_type=jnp.float32) * scale
        if bias is not None:
            s = s + bias
        s = s - jnp.max(s, axis=-1, keepdims=True)
        p = jnp.exp(s)
        p = p * pl.reciprocal(jnp.sum(p, axis=-1, keepdims=True), approx=True)
        outs.append(jnp.einsum("bqk,bkd->bqd", p, v[..., sl],
                               preferred_element_type=jnp.float32))
    return jnp.concatenate(outs, axis=-1)


# =============================== Pallas kernels ===============================

def _vit_embed_kernel(p_ref, w_ref, b_ref, cls_ref, pos_ref, o_ref):
    """Patch-embed ("conv" as matmul) + cls token + positional embedding."""
    Bp, P, Cin = p_ref.shape
    D = w_ref.shape[1]
    x = jnp.dot(p_ref[...].reshape(Bp * P, Cin), w_ref[...],
                preferred_element_type=jnp.float32)
    x = x.reshape(Bp, P, D) + b_ref[...] + pos_ref[...]
    cls = jnp.broadcast_to(cls_ref[...][None], (Bp, 1, D))
    o_ref[...] = jnp.concatenate([cls, x], axis=1).astype(o_ref.dtype)


def _vit_block_kernel(x_ref, ln1_w, ln1_b, qkv_w, qkv_b, wo, bo,
                      ln2_w, ln2_b, fc1_w, fc1_b, fc2_w, fc2_b, o_ref,
                      *, num_heads, eps):
    """Fused pre-LN ViT block: LN -> fused QKV -> MHA -> out-proj -> +res -> LN -> GELU MLP -> +res."""
    x = x_ref[...].astype(jnp.float32)                    # (B, S, D)
    D = x.shape[-1]

    h = _ln(x, ln1_w[...], ln1_b[...], eps)
    qkv = _proj(h, qkv_w[...], qkv_b[...])                # (B, S, 3D)
    q, k, v = qkv[..., :D], qkv[..., D:2 * D], qkv[..., 2 * D:]
    attn = _mha_heads(q, k, v, None, num_heads)           # full (unmasked) attention
    x = x + _proj(attn, wo[...], bo[...])

    h = _ln(x, ln2_w[...], ln2_b[...], eps)
    h = jax.nn.gelu(_proj(h, fc1_w[...], fc1_b[...]), approximate=True)
    x = x + _proj(h, fc2_w[...], fc2_b[...])
    o_ref[...] = x.astype(o_ref.dtype)


def _layernorm_kernel(x_ref, w_ref, b_ref, o_ref, *, eps):
    o_ref[...] = _ln(x_ref[...], w_ref[...], b_ref[...], eps).astype(o_ref.dtype)


def _cformer_block_kernel(x_ref, kv_ref,
                          ln1_w, ln1_b, sa_qkv_w, sa_qkv_b, sa_wo, sa_bo,
                          lnc_w, lnc_b, ca_wq, ca_bq, ca_wkv, ca_bkv, ca_wo, ca_bo,
                          ln2_w, ln2_b, fc1_w, fc1_b, fc2_w, fc2_b, o_ref,
                          *, num_heads, eps):
    """Fused CausalFormer block: causal self-attn + cross-attn(image feats) + GELU MLP."""
    x = x_ref[...].astype(jnp.float32)                    # (B, nc, D)
    kv = kv_ref[...].astype(jnp.float32)                  # (B, Sk, D)
    nc = x.shape[1]
    D = x.shape[-1]

    # causal self-attention (mask generated in-kernel, never touches HBM)
    h = _ln(x, ln1_w[...], ln1_b[...], eps)
    qkv = _proj(h, sa_qkv_w[...], sa_qkv_b[...])
    q, k, v = qkv[..., :D], qkv[..., D:2 * D], qkv[..., 2 * D:]
    row = jax.lax.broadcasted_iota(jnp.int32, (nc, nc), 0)
    col = jax.lax.broadcasted_iota(jnp.int32, (nc, nc), 1)
    causal_bias = jnp.where(col <= row, 0.0, NEG_INF)     # (nc, nc)
    x = x + _proj(_mha_heads(q, k, v, causal_bias, num_heads), sa_wo[...], sa_bo[...])

    # cross-attention over image features (fused K/V projection)
    h = _ln(x, lnc_w[...], lnc_b[...], eps)
    qc = _proj(h, ca_wq[...], ca_bq[...])
    kvc = _proj(kv, ca_wkv[...], ca_bkv[...])             # (B, Sk, 2D)
    kc, vc = kvc[..., :D], kvc[..., D:]
    x = x + _proj(_mha_heads(qc, kc, vc, None, num_heads), ca_wo[...], ca_bo[...])

    # MLP
    h = _ln(x, ln2_w[...], ln2_b[...], eps)
    h = jax.nn.gelu(_proj(h, fc1_w[...], fc1_b[...]), approximate=True)
    x = x + _proj(h, fc2_w[...], fc2_b[...])
    o_ref[...] = x.astype(o_ref.dtype)


def _ln_proj_kernel(x_ref, ln_w, ln_b, w_ref, b_ref, o_ref, *, eps):
    """Fused final LayerNorm + projection to decoder d_model."""
    x = _ln(x_ref[...], ln_w[...], ln_b[...], eps)
    o_ref[...] = _proj(x, w_ref[...], b_ref[...]).astype(o_ref.dtype)


def _decoder_layer_kernel(h_ref, attend_ref, an_w, qkv_w, qkv_b, wo, bo,
                          mn_w, wgu, wd, o_ref, *, num_heads, eps):
    """Fused LLaMA-style layer: RMSNorm -> fused QKV -> causal+pad MHA -> +res -> RMSNorm -> fused SwiGLU -> +res."""
    x = h_ref[...].astype(jnp.float32)                    # (B, S, D)
    Bq, S, D = x.shape

    hn = _rms(x, an_w[...], eps)
    qkv = _proj(hn, qkv_w[...], qkv_b[...])
    q, k, v = qkv[..., :D], qkv[..., D:2 * D], qkv[..., 2 * D:]

    # causal + key-padding mask, generated in-kernel
    row = jax.lax.broadcasted_iota(jnp.int32, (S, S), 0)
    col = jax.lax.broadcasted_iota(jnp.int32, (S, S), 1)
    attend = attend_ref[...]                              # (B, S), 1.0 = attendable
    allowed = (col <= row)[None, :, :] & (attend[:, None, :] > 0.5)
    bias = jnp.where(allowed, 0.0, NEG_INF)               # (B, S, S)

    x = x + _proj(_mha_heads(q, k, v, bias, num_heads), wo[...], bo[...])

    hn = _rms(x, mn_w[...], eps)
    gu = _proj(hn, wgu[...])                              # (B, S, 2*Dff)  fused gate|up
    Dff = wd.shape[0]
    g, u = gu[..., :Dff], gu[..., Dff:]
    hmlp = (g * jax.nn.sigmoid(g)) * u                    # SiLU(gate) * up
    x = x + _proj(hmlp, wd[...])
    o_ref[...] = x.astype(o_ref.dtype)


def _decoder_loss_kernel(h_ref, fn_w, lm_w, lm_b, labels_ref, mask_ref, o_ref,
                         *, nc, eps):
    """Fused final RMSNorm + LM head + masked token NLL (per-row output)."""
    x = _rms(h_ref[...], fn_w[...], eps)                  # (B, S, D)
    Bq, S, D = x.shape
    T = S - nc
    xt = x[:, nc:, :].reshape(Bq * T, D)
    logits = jnp.dot(xt, lm_w[...], preferred_element_type=jnp.float32) + lm_b[...]
    V = logits.shape[-1]
    m = jnp.max(logits, axis=-1, keepdims=True)
    lse = m + jnp.log(jnp.sum(jnp.exp(logits - m), axis=-1, keepdims=True))
    iota = jax.lax.broadcasted_iota(jnp.int32, (Bq * T, V), 1)
    onehot = (iota == labels_ref[...]).astype(jnp.float32)
    tgt = jnp.sum(onehot * logits, axis=-1, keepdims=True)
    o_ref[...] = ((lse - tgt) * mask_ref[...]).astype(o_ref.dtype)


# ============================== model components ==============================

def patchify(image, ps):
    """NCHW image -> (B, num_patches, C*ps*ps), matching Conv2d(k=ps, stride=ps) unfolding."""
    Bi, C, H, W = image.shape
    x = image.reshape(Bi, C, H // ps, ps, W // ps, ps)
    x = x.transpose(0, 2, 4, 1, 3, 5)                     # B, gh, gw, C, ps, ps
    return x.reshape(Bi, (H // ps) * (W // ps), C * ps * ps)


def vision_forward(p, image):
    """self.visual.forward_features(image): ViT over patches + cls token."""
    patches = patchify(image, PATCH)                      # (B, P, C*ps*ps)
    Bi, P, _ = patches.shape
    cls_row = p["cls_token"] + p["pos_embed"][0:1]        # cls token + its pos emb
    pos_rest = p["pos_embed"][1:]
    x = pl.pallas_call(
        _vit_embed_kernel,
        out_shape=jax.ShapeDtypeStruct((Bi, P + 1, VIS_WIDTH), jnp.float32),
    )(patches, p["patch_w"], p["patch_b"], cls_row, pos_rest)

    for blk in p["blocks"]:
        x = pl.pallas_call(
            functools.partial(_vit_block_kernel, num_heads=VIS_HEADS, eps=EPS),
            out_shape=jax.ShapeDtypeStruct(x.shape, jnp.float32),
        )(x, blk["ln1_w"], blk["ln1_b"], blk["qkv_w"], blk["qkv_b"],
          blk["wo"], blk["bo"], blk["ln2_w"], blk["ln2_b"],
          blk["fc1_w"], blk["fc1_b"], blk["fc2_w"], blk["fc2_b"])
    return x                                              # (B, P+1, VIS_WIDTH)


def ln_visual(p, x):
    return pl.pallas_call(
        functools.partial(_layernorm_kernel, eps=1e-6),
        out_shape=jax.ShapeDtypeStruct(x.shape, jnp.float32),
    )(x, p["ln_visual_w"], p["ln_visual_b"])


def cformer_forward(p, image_features):
    """CausalFormer: n_causal learnable queries (causal self-attn + cross-attn) -> d_model."""
    Bi = image_features.shape[0]
    x = jnp.broadcast_to(p["queries"][None], (Bi, N_CAUSAL, VIS_WIDTH))
    for blk in p["blocks"]:
        x = pl.pallas_call(
            functools.partial(_cformer_block_kernel, num_heads=VIS_HEADS, eps=EPS),
            out_shape=jax.ShapeDtypeStruct((Bi, N_CAUSAL, VIS_WIDTH), jnp.float32),
        )(x, image_features,
          blk["ln1_w"], blk["ln1_b"], blk["sa_qkv_w"], blk["sa_qkv_b"],
          blk["sa_wo"], blk["sa_bo"], blk["lnc_w"], blk["lnc_b"],
          blk["ca_wq"], blk["ca_bq"], blk["ca_wkv"], blk["ca_bkv"],
          blk["ca_wo"], blk["ca_bo"], blk["ln2_w"], blk["ln2_b"],
          blk["fc1_w"], blk["fc1_b"], blk["fc2_w"], blk["fc2_b"])
    return pl.pallas_call(
        functools.partial(_ln_proj_kernel, eps=EPS),
        out_shape=jax.ShapeDtypeStruct((Bi, N_CAUSAL, D_MODEL), jnp.float32),
    )(x, p["ln_out_w"], p["ln_out_b"], p["proj_w"], p["proj_b"])


def decoder_forward(p, img_emb, text_input, input_mask, text_output, output_mask):
    """LLaMA-style decoder: [image tokens ; text tokens] causal LM, masked CE loss."""
    Bi, nc, d = img_emb.shape
    T = text_input.shape[1]
    text_emb = jnp.take(p["embed"], text_input, axis=0)   # (B, T, d) -- XLA gather
    h = jnp.concatenate([img_emb, text_emb], axis=1)      # (B, S, d)
    attend = jnp.concatenate([jnp.ones((Bi, nc), jnp.float32),
                              input_mask.astype(jnp.float32)], axis=1)   # (B, S)

    for layer in p["layers"]:
        h = pl.pallas_call(
            functools.partial(_decoder_layer_kernel, num_heads=DEC_HEADS, eps=EPS),
            out_shape=jax.ShapeDtypeStruct(h.shape, jnp.float32),
        )(h, attend, layer["attn_norm"], layer["qkv_w"], layer["qkv_b"],
          layer["wo"], layer["bo"], layer["mlp_norm"], layer["wgu"], layer["wd"])

    labels = text_output.reshape(-1, 1).astype(jnp.int32)
    mask = output_mask.reshape(-1, 1).astype(jnp.float32)
    nll = pl.pallas_call(
        functools.partial(_decoder_loss_kernel, nc=nc, eps=EPS),
        out_shape=jax.ShapeDtypeStruct((Bi * T, 1), jnp.float32),
    )(h, p["final_norm"], p["lm_head_w"], p["lm_head_b"], labels, mask)
    return jnp.sum(nll) / jnp.maximum(jnp.sum(mask), 1.0)


def emu_forward(params, image, text_input, input_mask, text_output, output_mask,
                image_latent=None, image_features=None):
    if image_latent is None or image_features is None:
        image_features = vision_forward(params["visual"], image)
    image_features = ln_visual(params, image_features)
    image_features = cformer_forward(params["cformer"], image_features)
    loss = decoder_forward(params["decoder"], image_features,
                           text_input, input_mask, text_output, output_mask)
    return loss


# ============================ deterministic init ==============================

def init_params(key):
    it = iter(jax.random.split(key, 256))
    nrm = lambda shape: jax.random.normal(next(it), shape, jnp.float32) * 0.02
    ones2 = lambda d: jnp.ones((1, d), jnp.float32)
    zeros2 = lambda d: jnp.zeros((1, d), jnp.float32)
    num_patches = (IMG_SIZE // PATCH) ** 2
    Dff_vis = VIS_WIDTH * MLP_RATIO
    Dff_dec = D_MODEL * MLP_RATIO

    def vis_block():
        return {"ln1_w": ones2(VIS_WIDTH), "ln1_b": zeros2(VIS_WIDTH),
                "qkv_w": nrm((VIS_WIDTH, 3 * VIS_WIDTH)), "qkv_b": zeros2(3 * VIS_WIDTH),
                "wo": nrm((VIS_WIDTH, VIS_WIDTH)), "bo": zeros2(VIS_WIDTH),
                "ln2_w": ones2(VIS_WIDTH), "ln2_b": zeros2(VIS_WIDTH),
                "fc1_w": nrm((VIS_WIDTH, Dff_vis)), "fc1_b": zeros2(Dff_vis),
                "fc2_w": nrm((Dff_vis, VIS_WIDTH)), "fc2_b": zeros2(VIS_WIDTH)}

    visual = {"patch_w": nrm((IN_CH * PATCH * PATCH, VIS_WIDTH)),
              "patch_b": zeros2(VIS_WIDTH),
              "cls_token": nrm((1, VIS_WIDTH)),
              "pos_embed": nrm((num_patches + 1, VIS_WIDTH)),
              "blocks": [vis_block() for _ in range(VIS_LAYERS)]}

    def cf_block():
        return {"ln1_w": ones2(VIS_WIDTH), "ln1_b": zeros2(VIS_WIDTH),
                "sa_qkv_w": nrm((VIS_WIDTH, 3 * VIS_WIDTH)), "sa_qkv_b": zeros2(3 * VIS_WIDTH),
                "sa_wo": nrm((VIS_WIDTH, VIS_WIDTH)), "sa_bo": zeros2(VIS_WIDTH),
                "lnc_w": ones2(VIS_WIDTH), "lnc_b": zeros2(VIS_WIDTH),
                "ca_wq": nrm((VIS_WIDTH, VIS_WIDTH)), "ca_bq": zeros2(VIS_WIDTH),
                "ca_wkv": nrm((VIS_WIDTH, 2 * VIS_WIDTH)), "ca_bkv": zeros2(2 * VIS_WIDTH),
                "ca_wo": nrm((VIS_WIDTH, VIS_WIDTH)), "ca_bo": zeros2(VIS_WIDTH),
                "ln2_w": ones2(VIS_WIDTH), "ln2_b": zeros2(VIS_WIDTH),
                "fc1_w": nrm((VIS_WIDTH, Dff_vis)), "fc1_b": zeros2(Dff_vis),
                "fc2_w": nrm((Dff_vis, VIS_WIDTH)), "fc2_b": zeros2(VIS_WIDTH)}

    cformer = {"queries": nrm((N_CAUSAL, VIS_WIDTH)),
               "blocks": [cf_block()],
               "ln_out_w": ones2(VIS_WIDTH), "ln_out_b": zeros2(VIS_WIDTH),
               "proj_w": nrm((VIS_WIDTH, D_MODEL)), "proj_b": zeros2(D_MODEL)}

    def dec_layer():
        return {"attn_norm": ones2(D_MODEL),
                "qkv_w": nrm((D_MODEL, 3 * D_MODEL)), "qkv_b": zeros2(3 * D_MODEL),
                "wo": nrm((D_MODEL, D_MODEL)), "bo": zeros2(D_MODEL),
                "mlp_norm": ones2(D_MODEL),
                "wgu": nrm((D_MODEL, 2 * Dff_dec)),        # fused gate|up
                "wd": nrm((Dff_dec, D_MODEL))}

    decoder = {"embed": nrm((VOCAB, D_MODEL)),
               "layers": [dec_layer() for _ in range(DEC_LAYERS)],
               "final_norm": ones2(D_MODEL),
               "lm_head_w": nrm((D_MODEL, VOCAB)), "lm_head_b": zeros2(VOCAB)}

    # ln_visual: nn.init.constant_(weight, 1.0), constant_(bias, 0)
    return {"visual": visual,
            "ln_visual_w": ones2(VIS_WIDTH), "ln_visual_b": zeros2(VIS_WIDTH),
            "cformer": cformer,
            "decoder": decoder}


# ==================================== main ====================================

if __name__ == "__main__":
    key = jax.random.PRNGKey(0)
    kp, ki, kt, ko = jax.random.split(key, 4)
    params = init_params(kp)

    image = jax.random.normal(ki, (B, IN_CH, IMG_SIZE, IMG_SIZE), jnp.float32)
    text_input = jax.random.randint(kt, (B, TEXT_LEN), 0, VOCAB, dtype=jnp.int32)
    text_output = jax.random.randint(ko, (B, TEXT_LEN), 0, VOCAB, dtype=jnp.int32)
    input_mask = jnp.ones((B, TEXT_LEN), jnp.int32)
    output_mask = jnp.ones((B, TEXT_LEN), jnp.int32)

    loss = jax.jit(emu_forward)(params, image, text_input, input_mask,
                                text_output, output_mask)
    jax.block_until_ready(loss)
    assert loss.shape == () and jnp.isfinite(loss)
    print("KERNEL_OK")
</pallas_src>

<mosaic_0001>
module attributes {stable_mosaic.version = 11 : i64} {
  func.func @_vit_embed_kernel(%arg0: memref<2x4x192xf32, #tpu.memory_space<vmem>>, %arg1: memref<192x32xf32, #tpu.memory_space<vmem>>, %arg2: memref<1x32xf32, #tpu.memory_space<vmem>>, %arg3: memref<1x32xf32, #tpu.memory_space<vmem>>, %arg4: memref<4x32xf32, #tpu.memory_space<vmem>>, %arg5: memref<2x5x32xf32, #tpu.memory_space<vmem>>) attributes {dimension_semantics = [], scalar_prefetch = 0 : i64, scratch_operands = 0 : i64, tpu.core_type = #tpu.core_type<tc>} {
    %c0 = arith.constant 0 : index
    %c0_0 = arith.constant 0 : index
    %c0_1 = arith.constant 0 : index
    %0 = vector.load %arg0[%c0, %c0_0, %c0_1] : memref<2x4x192xf32, #tpu.memory_space<vmem>>, vector<2x4x192xf32>
    %1 = vector.shape_cast %0 : vector<2x4x192xf32> to vector<8x192xf32>
    %c0_2 = arith.constant 0 : index
    %c0_3 = arith.constant 0 : index
    %2 = vector.load %arg1[%c0_2, %c0_3] : memref<192x32xf32, #tpu.memory_space<vmem>>, vector<192x32xf32>
    %cst = arith.constant dense<0.000000e+00> : vector<8x32xf32>
    %3 = tpu.matmul %1, %2, %cst {dimension_numbers = #tpu.dot_dimension_numbers<[1], [0], [0], [1], [0, 0, 1, 1], [], []>} : vector<8x192xf32>, vector<192x32xf32>, vector<8x32xf32> -> vector<8x32xf32>
    %4 = vector.shape_cast %3 : vector<8x32xf32> to vector<2x4x32xf32>
    %c0_4 = arith.constant 0 : index
    %c0_5 = arith.constant 0 : index
    %5 = vector.load %arg2[%c0_4, %c0_5] : memref<1x32xf32, #tpu.memory_space<vmem>>, vector<1x32xf32>
    %6 = vector.shape_cast %5 : vector<1x32xf32> to vector<1x1x32xf32>
    %7 = vector.broadcast %6 : vector<1x1x32xf32> to vector<2x4x32xf32>
    %8 = arith.addf %4, %7 : vector<2x4x32xf32>
    %c0_6 = arith.constant 0 : index
    %c0_7 = arith.constant 0 : index
    %9 = vector.load %arg4[%c0_6, %c0_7] : memref<4x32xf32, #tpu.memory_space<vmem>>, vector<4x32xf32>
    %10 = vector.shape_cast %9 : vector<4x32xf32> to vector<1x4x32xf32>
    %11 = vector.broadcast %10 : vector<1x4x32xf32> to vector<2x4x32xf32>
    %12 = arith.addf %8, %11 : vector<2x4x32xf32>
    %c0_8 = arith.constant 0 : index
    %c0_9 = arith.constant 0 : index
    %13 = vector.load %arg3[%c0_8, %c0_9] : memref<1x32xf32, #tpu.memory_space<vmem>>, vector<1x32xf32>
    %14 = vector.shape_cast %13 : vector<1x32xf32> to vector<1x1x32xf32>
    %15 = vector.shape_cast %14 : vector<1x1x32xf32> to vector<1x1x32xf32>
    %16 = vector.broadcast %15 : vector<1x1x32xf32> to vector<2x1x32xf32>
    %17 = tpu.concatenate %16, %12 in 1 : vector<2x1x32xf32>, vector<2x4x32xf32> -> vector<2x5x32xf32>
    %c0_10 = arith.constant 0 : index
    %c0_11 = arith.constant 0 : index
    %c0_12 = arith.constant 0 : index
    %18 = vector.load %arg5[%c0_10, %c0_11, %c0_12] : memref<2x5x32xf32, #tpu.memory_space<vmem>>, vector<2x5x32xf32>
    tpu.vector_store %arg5[%c0_10, %c0_11, %c0_12], %17 {strides = array<i32>} : memref<2x5x32xf32, #tpu.memory_space<vmem>>, vector<2x5x32xf32>,
    return
  }
}

module attributes {stable_mosaic.version = 11 : i64} {
  func.func @_layernorm_kernel(%arg0: memref<2x5x32xf32, #tpu.memory_space<vmem>>, %arg1: memref<1x32xf32, #tpu.memory_space<vmem>>, %arg2: memref<1x32xf32, #tpu.memory_space<vmem>>, %arg3: memref<2x5x32xf32, #tpu.memory_space<vmem>>) attributes {dimension_semantics = [], scalar_prefetch = 0 : i64, scratch_operands = 0 : i64, tpu.core_type = #tpu.core_type<tc>} {
    %c0 = arith.constant 0 : index
    %c0_0 = arith.constant 0 : index
    %c0_1 = arith.constant 0 : index
    %0 = vector.load %arg0[%c0, %c0_0, %c0_1] : memref<2x5x32xf32, #tpu.memory_space<vmem>>, vector<2x5x32xf32>
    %c0_2 = arith.constant 0 : index
    %c0_3 = arith.constant 0 : index
    %1 = vector.load %arg1[%c0_2, %c0_3] : memref<1x32xf32, #tpu.memory_space<vmem>>, vector<1x32xf32>
    %c0_4 = arith.constant 0 : index
    %c0_5 = arith.constant 0 : index
    %2 = vector.load %arg2[%c0_4, %c0_5] : memref<1x32xf32, #tpu.memory_space<vmem>>, vector<1x32xf32>
    %cst = arith.constant dense<0.000000e+00> : vector<2x5xf32>
    %3 = vector.multi_reduction <add>, %0, %cst [2] : vector<2x5x32xf32> to vector<2x5xf32>
    %4 = vector.shape_cast %3 : vector<2x5xf32> to vector<2x5x1xf32>
    %cst_6 = arith.constant 3.200000e+01 : f32
    %5 = vector.broadcast %cst_6 : f32 to vector<2x5x1xf32>
    %6 = arith.divf %4, %5 : vector<2x5x1xf32>
    %7 = vector.broadcast %6 : vector<2x5x1xf32> to vector<2x5x32xf32>
    %8 = arith.subf %0, %7 : vector<2x5x32xf32>
    %9 = arith.mulf %8, %8 : vector<2x5x32xf32>
    %cst_7 = arith.constant dense<0.000000e+00> : vector<2x5xf32>
    %10 = vector.multi_reduction <add>, %9, %cst_7 [2] : vector<2x5x32xf32> to vector<2x5xf32>
    %11 = vector.shape_cast %10 : vector<2x5xf32> to vector<2x5x1xf32>
    %cst_8 = arith.constant 3.200000e+01 : f32
    %12 = vector.broadcast %cst_8 : f32 to vector<2x5x1xf32>
    %13 = arith.divf %11, %12 : vector<2x5x1xf32>
    %14 = vector.broadcast %6 : vector<2x5x1xf32> to vector<2x5x32xf32>
    %15 = arith.subf %0, %14 : vector<2x5x32xf32>
    %cst_9 = arith.constant 9.99999997E-7 : f32
    %16 = vector.broadcast %cst_9 : f32 to vector<2x5x1xf32>
    %17 = arith.addf %13, %16 : vector<2x5x1xf32>
    %18 = math.rsqrt %17 : vector<2x5x1xf32>
    %19 = vector.broadcast %18 : vector<2x5x1xf32> to vector<2x5x32xf32>
    %20 = arith.mulf %15, %19 : vector<2x5x32xf32>
    %21 = vector.shape_cast %1 : vector<1x32xf32> to vector<1x1x32xf32>
    %22 = vector.broadcast %21 : vector<1x1x32xf32> to vector<2x5x32xf32>
    %23 = arith.mulf %20, %22 : vector<2x5x32xf32>
    %24 = vector.shape_cast %2 : vector<1x32xf32> to vector<1x1x32xf32>
    %25 = vector.broadcast %24 : vector<1x1x32xf32> to vector<2x5x32xf32>
    %26 = arith.addf %23, %25 : vector<2x5x32xf32>
    %c0_10 = arith.constant 0 : index
    %c0_11 = arith.constant 0 : index
    %c0_12 = arith.constant 0 : index
    %27 = vector.load %arg3[%c0_10, %c0_11, %c0_12] : memref<2x5x32xf32, #tpu.memory_space<vmem>>, vector<2x5x32xf32>
    tpu.vector_store %arg3[%c0_10, %c0_11, %c0_12], %26 {strides = array<i32>} : memref<2x5x32xf32, #tpu.memory_space<vmem>>, vector<2x5x32xf32>,
    return
  }
}

module attributes {stable_mosaic.version = 11 : i64} {
  func.func @_vit_block_kernel(%arg0: memref<2x5x32xf32, #tpu.memory_space<vmem>>, %arg1: memref<1x32xf32, #tpu.memory_space<vmem>>, %arg2: memref<1x32xf32, #tpu.memory_space<vmem>>, %arg3: memref<32x96xf32, #tpu.memory_space<vmem>>, %arg4: memref<1x96xf32, #tpu.memory_space<vmem>>, %arg5: memref<32x32xf32, #tpu.memory_space<vmem>>, %arg6: memref<1x32xf32, #tpu.memory_space<vmem>>, %arg7: memref<1x32xf32, #tpu.memory_space<vmem>>, %arg8: memref<1x32xf32, #tpu.memory_space<vmem>>, %arg9: memref<32x128xf32, #tpu.memory_space<vmem>>, %arg10: memref<1x128xf32, #tpu.memory_space<vmem>>, %arg11: memref<128x32xf32, #tpu.memory_space<vmem>>, %arg12: memref<1x32xf32, #tpu.memory_space<vmem>>, %arg13: memref<2x5x32xf32, #tpu.memory_space<vmem>>) attributes {dimension_semantics = [], scalar_prefetch = 0 : i64, scratch_operands = 0 : i64, tpu.core_type = #tpu.core_type<tc>} {
    %c0 = arith.constant 0 : index
    %c0_0 = arith.constant 0 : index
    %c0_1 = arith.constant 0 : index
    %0 = vector.load %arg0[%c0, %c0_0, %c0_1] : memref<2x5x32xf32, #tpu.memory_space<vmem>>, vector<2x5x32xf32>
    %c0_2 = arith.constant 0 : index
    %c0_3 = arith.constant 0 : index
    %1 = vector.load %arg1[%c0_2, %c0_3] : memref<1x32xf32, #tpu.memory_space<vmem>>, vector<1x32xf32>
    %c0_4 = arith.constant 0 : index
    %c0_5 = arith.constant 0 : index
    %2 = vector.load %arg2[%c0_4, %c0_5] : memref<1x32xf32, #tpu.memory_space<vmem>>, vector<1x32xf32>
    %cst = arith.constant dense<0.000000e+00> : vector<2x5xf32>
    %3 = vector.multi_reduction <add>, %0, %cst [2] : vector<2x5x32xf32> to vector<2x5xf32>
    %4 = vector.shape_cast %3 : vector<2x5xf32> to vector<2x5x1xf32>
    %cst_6 = arith.constant 3.200000e+01 : f32
    %5 = vector.broadcast %cst_6 : f32 to vector<2x5x1xf32>
    %6 = arith.divf %4, %5 : vector<2x5x1xf32>
    %7 = vector.broadcast %6 : vector<2x5x1xf32> to vector<2x5x32xf32>
    %8 = arith.subf %0, %7 : vector<2x5x32xf32>
    %9 = arith.mulf %8, %8 : vector<2x5x32xf32>
    %cst_7 = arith.constant dense<0.000000e+00> : vector<2x5xf32>
    %10 = vector.multi_reduction <add>, %9, %cst_7 [2] : vector<2x5x32xf32> to vector<2x5xf32>
    %11 = vector.shape_cast %10 : vector<2x5xf32> to vector<2x5x1xf32>
    %cst_8 = arith.constant 3.200000e+01 : f32
    %12 = vector.broadcast %cst_8 : f32 to vector<2x5x1xf32>
    %13 = arith.divf %11, %12 : vector<2x5x1xf32>
    %14 = vector.broadcast %6 : vector<2x5x1xf32> to vector<2x5x32xf32>
    %15 = arith.subf %0, %14 : vector<2x5x32xf32>
    %cst_9 = arith.constant 9.99999997E-7 : f32
    %16 = vector.broadcast %cst_9 : f32 to vector<2x5x1xf32>
    %17 = arith.addf %13, %16 : vector<2x5x1xf32>
    %18 = math.rsqrt %17 : vector<2x5x1xf32>
    %19 = vector.broadcast %18 : vector<2x5x1xf32> to vector<2x5x32xf32>
    %20 = arith.mulf %15, %19 : vector<2x5x32xf32>
    %21 = vector.shape_cast %1 : vector<1x32xf32> to vector<1x1x32xf32>
    %22 = vector.broadcast %21 : vector<1x1x32xf32> to vector<2x5x32xf32>
    %23 = arith.mulf %20, %22 : vector<2x5x32xf32>
    %24 = vector.shape_cast %2 : vector<1x32xf32> to vector<1x1x32xf32>
    %25 = vector.broadcast %24 : vector<1x1x32xf32> to vector<2x5x32xf32>
    %26 = arith.addf %23, %25 : vector<2x5x32xf32>
    %c0_10 = arith.constant 0 : index
    %c0_11 = arith.constant 0 : index
    %27 = vector.load %arg3[%c0_10, %c0_11] : memref<32x96xf32, #tpu.memory_space<vmem>>, vector<32x96xf32>
    %c0_12 = arith.constant 0 : index
    %c0_13 = arith.constant 0 : index
    %28 = vector.load %arg4[%c0_12, %c0_13] : memref<1x96xf32, #tpu.memory_space<vmem>>, vector<1x96xf32>
    %29 = vector.shape_cast %26 : vector<2x5x32xf32> to vector<10x32xf32>
    %cst_14 = arith.constant dense<0.000000e+00> : vector<10x96xf32>
    %30 = tpu.matmul %29, %27, %cst_14 {dimension_numbers = #tpu.dot_dimension_numbers<[1], [0], [0], [1], [0, 0, 1, 1], [], []>} : vector<10x32xf32>, vector<32x96xf32>, vector<10x96xf32> -> vector<10x96xf32>
    %31 = vector.broadcast %28 : vector<1x96xf32> to vector<10x96xf32>
    %32 = arith.addf %30, %31 : vector<10x96xf32>
    %33 = vector.shape_cast %32 : vector<10x96xf32> to vector<2x5x96xf32>
    %34 = vector.extract_strided_slice %33 {offsets = [0, 0, 0], sizes = [2, 5, 32], strides = [1, 1, 1]} : vector<2x5x96xf32> to vector<2x5x32xf32>
    %35 = vector.extract_strided_slice %33 {offsets = [0, 0, 32], sizes = [2, 5, 32], strides = [1, 1, 1]} : vector<2x5x96xf32> to vector<2x5x32xf32>
    %36 = vector.extract_strided_slice %33 {offsets = [0, 0, 64], sizes = [2, 5, 32], strides = [1, 1, 1]} : vector<2x5x96xf32> to vector<2x5x32xf32>
    %37 = vector.extract_strided_slice %34 {offsets = [0, 0, 0], sizes = [2, 5, 8], strides = [1, 1, 1]} : vector<2x5x32xf32> to vector<2x5x8xf32>
    %38 = vector.extract_strided_slice %35 {offsets = [0, 0, 0], sizes = [2, 5, 8], strides = [1, 1, 1]} : vector<2x5x32xf32> to vector<2x5x8xf32>
    "tpu.trace_start"() <{level = 10 : i32, message = "bqd,bkd->bqk"}> : () -> ()
    %cst_15 = arith.constant dense<0.000000e+00> : vector<2x5x5xf32>
    %39 = tpu.matmul %37, %38, %cst_15 {dimension_numbers = #tpu.dot_dimension_numbers<[2], [2], [1], [1], [0, 0, 0, 1, 1, 1], [0], [0]>} : vector<2x5x8xf32>, vector<2x5x8xf32>, vector<2x5x5xf32> -> vector<2x5x5xf32>
    "tpu.trace_stop"() : () -> ()
    %cst_16 = arith.constant 0.353553385 : f32
    %40 = vector.broadcast %cst_16 : f32 to vector<2x5x5xf32>
    %41 = arith.mulf %39, %40 : vector<2x5x5xf32>
    %cst_17 = arith.constant dense<0xFF800000> : vector<2x5xf32>
    %42 = vector.multi_reduction <maximumf>, %41, %cst_17 [2] : vector<2x5x5xf32> to vector<2x5xf32>
    %43 = vector.shape_cast %42 : vector<2x5xf32> to vector<2x5x1xf32>
    %44 = vector.broadcast %43 : vector<2x5x1xf32> to vector<2x5x5xf32>
    %45 = arith.subf %41, %44 : vector<2x5x5xf32>
    %46 = math.exp %45 : vector<2x5x5xf32>
    %cst_18 = arith.constant dense<0.000000e+00> : vector<2x5xf32>
    %47 = vector.multi_reduction <add>, %46, %cst_18 [2] : vector<2x5x5xf32> to vector<2x5xf32>
    %48 = vector.shape_cast %47 : vector<2x5xf32> to vector<2x5x1xf32>
    %49 = tpu.reciprocal %48 {approx = true} : vector<2x5x1xf32> -> vector<2x5x1xf32>
    %50 = vector.broadcast %49 : vector<2x5x1xf32> to vector<2x5x5xf32>
    %51 = arith.mulf %46, %50 : vector<2x5x5xf32>
    %52 = vector.extract_strided_slice %36 {offsets = [0, 0, 0], sizes = [2, 5, 8], strides = [1, 1, 1]} : vector<2x5x32xf32> to vector<2x5x8xf32>
    "tpu.trace_start"() <{level = 10 : i32, message = "bqk,bkd->bqd"}> : () -> ()
    %cst_19 = arith.constant dense<0.000000e+00> : vector<2x5x8xf32>
    %53 = tpu.matmul %51, %52, %cst_19 {dimension_numbers = #tpu.dot_dimension_numbers<[2], [1], [1], [2], [0, 0, 0, 1, 1, 2], [0], [0]>} : vector<2x5x5xf32>, vector<2x5x8xf32>, vector<2x5x8xf32> -> vector<2x5x8xf32>
    "tpu.trace_stop"() : () -> ()
    %54 = vector.extract_strided_slice %34 {offsets = [0, 0, 8], sizes = [2, 5, 8], strides = [1, 1, 1]} : vector<2x5x32xf32> to vector<2x5x8xf32>
    %55 = vector.extract_strided_slice %35 {offsets = [0, 0, 8], sizes = [2, 5, 8], strides = [1, 1, 1]} : vector<2x5x32xf32> to vector<2x5x8xf32>
    "tpu.trace_start"() <{level = 10 : i32, message = "bqd,bkd->bqk"}> : () -> ()
    %cst_20 = arith.constant dense<0.000000e+00> : vector<2x5x5xf32>
    %56 = tpu.matmul %54, %55, %cst_20 {dimension_numbers = #tpu.dot_dimension_numbers<[2], [2], [1], [1], [0, 0, 0, 1, 1, 1], [0], [0]>} : vector<2x5x8xf32>, vector<2x5x8xf32>, vector<2x5x5xf32> -> vector<2x5x5xf32>
    "tpu.trace_stop"() : () -> ()
    %cst_21 = arith.constant 0.353553385 : f32
    %57 = vector.broadcast %cst_21 : f32 to vector<2x5x5xf32>
    %58 = arith.mulf %56, %57 : vector<2x5x5xf32>
    %cst_22 = arith.constant dense<0xFF800000> : vector<2x5xf32>
    %59 = vector.multi_reduction <maximumf>, %58, %cst_22 [2] : vector<2x5x5xf32> to vector<2x5xf32>
    %60 = vector.shape_cast %59 : vector<2x5xf32> to vector<2x5x1xf32>
    %61 = vector.broadcast %60 : vector<2x5x1xf32> to vector<2x5x5xf32>
    %62 = arith.subf %58, %61 : vector<2x5x5xf32>
    %63 = math.exp %62 : vector<2x5x5xf32>
    %cst_23 = arith.constant dense<0.000000e+00> : vector<2x5xf32>
    %64 = vector.multi_reduction <add>, %63, %cst_23 [2] : vector<2x5x5xf32> to vector<2x5xf32>
    %65 = vector.shape_cast %64 : vector<2x5xf32> to vector<2x5x1xf32>
    %66 = tpu.reciprocal %65 {approx = true} : vector<2x5x1xf32> -> vector<2x5x1xf32>
    %67 = vector.broadcast %66 : vector<2x5x1xf32> to vector<2x5x5xf32>
    %68 = arith.mulf %63, %67 : vector<2x5x5xf32>
    %69 = vector.extract_strided_slice %36 {offsets = [0, 0, 8], sizes = [2, 5, 8], strides = [1, 1, 1]} : vector<2x5x32xf32> to vector<2x5x8xf32>
    "tpu.trace_start"() <{level = 10 : i32, message = "bqk,bkd->bqd"}> : () -> ()
    %cst_24 = arith.constant dense<0.000000e+00> : vector<2x5x8xf32>
    %70 = tpu.matmul %68, %69, %cst_24 {dimension_numbers = #tpu.dot_dimension_numbers<[2], [1], [1], [2], [0, 0, 0, 1, 1, 2], [0], [0]>} : vector<2x5x5xf32>, vector<2x5x8xf32>, vector<2x5x8xf32> -> vector<2x5x8xf32>
    "tpu.trace_stop"() : () -> ()
    %71 = vector.extract_strided_slice %34 {offsets = [0, 0, 16], sizes = [2, 5, 8], strides = [1, 1, 1]} : vector<2x5x32xf32> to vector<2x5x8xf32>
    %72 = vector.extract_strided_slice %35 {offsets = [0, 0, 16], sizes = [2, 5, 8], strides = [1, 1, 1]} : vector<2x5x32xf32> to vector<2x5x8xf32>
    "tpu.trace_start"() <{level = 10 : i32, message = "bqd,bkd->bqk"}> : () -> ()
    %cst_25 = arith.constant dense<0.000000e+00> : vector<2x5x5xf32>
    %73 = tpu.matmul %71, %72, %cst_25 {dimension_numbers = #tpu.dot_dimension_numbers<[2], [2], [1], [1], [0, 0, 0, 1, 1, 1], [0], [0]>} : vector<2x5x8xf32>, vector<2x5x8xf32>, vector<2x5x5xf32> -> vector<2x5x5xf32>
    "tpu.trace_stop"() : () -> ()
    %cst_26 = arith.constant 0.353553385 : f32
    %74 = vector.broadcast %cst_26 : f32 to vector<2x5x5xf32>
    %75 = arith.mulf %73, %74 : vector<2x5x5xf32>
    %cst_27 = arith.constant dense<0xFF800000> : vector<2x5xf32>
    %76 = vector.multi_reduction <maximumf>, %75, %cst_27 [2] : vector<2x5x5xf32> to vector<2x5xf32>
    %77 = vector.shape_cast %76 : vector<2x5xf32> to vector<2x5x1xf32>
    %78 = vector.broadcast %77 : vector<2x5x1xf32> to vector<2x5x5xf32>
    %79 = arith.subf %75, %78 : vector<2x5x5xf32>
    %80 = math.exp %79 : vector<2x5x5xf32>
    %cst_28 = arith.constant dense<0.000000e+00> : vector<2x5xf32>
    %81 = vector.multi_reduction <add>, %80, %cst_28 [2] : vector<2x5x5xf32> to vector<2x5xf32>
    %82 = vector.shape_cast %81 : vector<2x5xf32> to vector<2x5x1xf32>
    %83 = tpu.reciprocal %82 {approx = true} : vector<2x5x1xf32> -> vector<2x5x1xf32>
    %84 = vector.broadcast %83 : vector<2x5x1xf32> to vector<2x5x5xf32>
    %85 = arith.mulf %80, %84 : vector<2x5x5xf32>
    %86 = vector.extract_strided_slice %36 {offsets = [0, 0, 16], sizes = [2, 5, 8], strides = [1, 1, 1]} : vector<2x5x32xf32> to vector<2x5x8xf32>
    "tpu.trace_start"() <{level = 10 : i32, message = "bqk,bkd->bqd"}> : () -> ()
    %cst_29 = arith.constant dense<0.000000e+00> : vector<2x5x8xf32>
    %87 = tpu.matmul %85, %86, %cst_29 {dimension_numbers = #tpu.dot_dimension_numbers<[2], [1], [1], [2], [0, 0, 0, 1, 1, 2], [0], [0]>} : vector<2x5x5xf32>, vector<2x5x8xf32>, vector<2x5x8xf32> -> vector<2x5x8xf32>
    "tpu.trace_stop"() : () -> ()
    %88 = vector.extract_strided_slice %34 {offsets = [0, 0, 24], sizes = [2, 5, 8], strides = [1, 1, 1]} : vector<2x5x32xf32> to vector<2x5x8xf32>
    %89 = vector.extract_strided_slice %35 {offsets = [0, 0, 24], sizes = [2, 5, 8], strides = [1, 1, 1]} : vector<2x5x32xf32> to vector<2x5x8xf32>
    "tpu.trace_start"() <{level = 10 : i32, message = "bqd,bkd->bqk"}> : () -> ()
    %cst_30 = arith.constant dense<0.000000e+00> : vector<2x5x5xf32>
    %90 = tpu.matmul %88, %89, %cst_30 {dimension_numbers = #tpu.dot_dimension_numbers<[2], [2], [1], [1], [0, 0, 0, 1, 1, 1], [0], [0]>} : vector<2x5x8xf32>, vector<2x5x8xf32>, vector<2x5x5xf32> -> vector<2x5x5xf32>
    "tpu.trace_stop"() : () -> ()
    %cst_31 = arith.constant 0.353553385 : f32
    %91 = vector.broadcast %cst_31 : f32 to vector<2x5x5xf32>
    %92 = arith.mulf %90, %91 : vector<2x5x5xf32>
    %cst_32 = arith.constant dense<0xFF800000> : vector<2x5xf32>
    %93 = vector.multi_reduction <maximumf>, %92, %cst_32 [2] : vector<2x5x5xf32> to vector<2x5xf32>
    %94 = vector.shape_cast %93 : vector<2x5xf32> to vector<2x5x1xf32>
    %95 = vector.broadcast %94 : vector<2x5x1xf32> to vector<2x5x5xf32>
    %96 = arith.subf %92, %95 : vector<2x5x5xf32>
    %97 = math.exp %96 : vector<2x5x5xf32>
    %cst_33 = arith.constant dense<0.000000e+00> : vector<2x5xf32>
    %98 = vector.multi_reduction <add>, %97, %cst_33 [2] : vector<2x5x5xf32> to vector<2x5xf32>
    %99 = vector.shape_cast %98 : vector<2x5xf32> to vector<2x5x1xf32>
    %100 = tpu.reciprocal %99 {approx = true} : vector<2x5x1xf32> -> vector<2x5x1xf32>
    %101 = vector.broadcast %100 : vector<2x5x1xf32> to vector<2x5x5xf32>
    %102 = arith.mulf %97, %101 : vector<2x5x5xf32>
    %103 = vector.extract_strided_slice %36 {offsets = [0, 0, 24], sizes = [2, 5, 8], strides = [1, 1, 1]} : vector<2x5x32xf32> to vector<2x5x8xf32>
    "tpu.trace_start"() <{level = 10 : i32, message = "bqk,bkd->bqd"}> : () -> ()
    %cst_34 = arith.constant dense<0.000000e+00> : vector<2x5x8xf32>
    %104 = tpu.matmul %102, %103, %cst_34 {dimension_numbers = #tpu.dot_dimension_numbers<[2], [1], [1], [2], [0, 0, 0, 1, 1, 2], [0], [0]>} : vector<2x5x5xf32>, vector<2x5x8xf32>, vector<2x5x8xf32> -> vector<2x5x8xf32>
    "tpu.trace_stop"() : () -> ()
    %105 = tpu.concatenate %53, %70, %87, %104 in 2 : vector<2x5x8xf32>, vector<2x5x8xf32>, vector<2x5x8xf32>, vector<2x5x8xf32> -> vector<2x5x32xf32>
    %c0_35 = arith.constant 0 : index
    %c0_36 = arith.constant 0 : index
    %106 = vector.load %arg5[%c0_35, %c0_36] : memref<32x32xf32, #tpu.memory_space<vmem>>, vector<32x32xf32>
    %c0_37 = arith.constant 0 : index
    %c0_38 = arith.constant 0 : index
    %107 = vector.load %arg6[%c0_37, %c0_38] : memref<1x32xf32, #tpu.memory_space<vmem>>, vector<1x32xf32>
    %108 = vector.shape_cast %105 : vector<2x5x32xf32> to vector<10x32xf32>
    %cst_39 = arith.constant dense<0.000000e+00> : vector<10x32xf32>
    %109 = tpu.matmul %108, %106, %cst_39 {dimension_numbers = #tpu.dot_dimension_numbers<[1], [0], [0], [1], [0, 0, 1, 1], [], []>} : vector<10x32xf32>, vector<32x32xf32>, vector<10x32xf32> -> vector<10x32xf32>
    %110 = vector.broadcast %107 : vector<1x32xf32> to vector<10x32xf32>
    %111 = arith.addf %109, %110 : vector<10x32xf32>
    %112 = vector.shape_cast %111 : vector<10x32xf32> to vector<2x5x32xf32>
    %113 = arith.addf %0, %112 : vector<2x5x32xf32>
    %c0_40 = arith.constant 0 : index
    %c0_41 = arith.constant 0 : index
    %114 = vector.load %arg7[%c0_40, %c0_41] : memref<1x32xf32, #tpu.memory_space<vmem>>, vector<1x32xf32>
    %c0_42 = arith.constant 0 : index
    %c0_43 = arith.constant 0 : index
    %115 = vector.load %arg8[%c0_42, %c0_43] : memref<1x32xf32, #tpu.memory_space<vmem>>, vector<1x32xf32>
    %cst_44 = arith.constant dense<0.000000e+00> : vector<2x5xf32>
    %116 = vector.multi_reduction <add>, %113, %cst_44 [2] : vector<2x5x32xf32> to vector<2x5xf32>
    %117 = vector.shape_cast %116 : vector<2x5xf32> to vector<2x5x1xf32>
    %cst_45 = arith.constant 3.200000e+01 : f32
    %118 = vector.broadcast %cst_45 : f32 to vector<2x5x1xf32>
    %119 = arith.divf %117, %118 : vector<2x5x1xf32>
    %120 = vector.broadcast %119 : vector<2x5x1xf32> to vector<2x5x32xf32>
    %121 = arith.subf %113, %120 : vector<2x5x32xf32>
    %122 = arith.mulf %121, %121 : vector<2x5x32xf32>
    %cst_46 = arith.constant dense<0.000000e+00> : vector<2x5xf32>
    %123 = vector.multi_reduction <add>, %122, %cst_46 [2] : vector<2x5x32xf32> to vector<2x5xf32>
    %124 = vector.shape_cast %123 : vector<2x5xf32> to vector<2x5x1xf32>
    %cst_47 = arith.constant 3.200000e+01 : f32
    %125 = vector.broadcast %cst_47 : f32 to vector<2x5x1xf32>
    %126 = arith.divf %124, %125 : vector<2x5x1xf32>
    %127 = vector.broadcast %119 : vector<2x5x1xf32> to vector<2x5x32xf32>
    %128 = arith.subf %113, %127 : vector<2x5x32xf32>
    %cst_48 = arith.constant 9.99999997E-7 : f32
    %129 = vector.broadcast %cst_48 : f32 to vector<2x5x1xf32>
    %130 = arith.addf %126, %129 : vector<2x5x1xf32>
    %131 = math.rsqrt %130 : vector<2x5x1xf32>
    %132 = vector.broadcast %131 : vector<2x5x1xf32> to vector<2x5x32xf32>
    %133 = arith.mulf %128, %132 : vector<2x5x32xf32>
    %134 = vector.shape_cast %114 : vector<1x32xf32> to vector<1x1x32xf32>
    %135 = vector.broadcast %134 : vector<1x1x32xf32> to vector<2x5x32xf32>
    %136 = arith.mulf %133, %135 : vector<2x5x32xf32>
    %137 = vector.shape_cast %115 : vector<1x32xf32> to vector<1x1x32xf32>
    %138 = vector.broadcast %137 : vector<1x1x32xf32> to vector<2x5x32xf32>
    %139 = arith.addf %136, %138 : vector<2x5x32xf32>
    %c0_49 = arith.constant 0 : index
    %c0_50 = arith.constant 0 : index
    %140 = vector.load %arg9[%c0_49, %c0_50] : memref<32x128xf32, #tpu.memory_space<vmem>>, vector<32x128xf32>
    %c0_51 = arith.constant 0 : index
    %c0_52 = arith.constant 0 : index
    %141 = vector.load %arg10[%c0_51, %c0_52] : memref<1x128xf32, #tpu.memory_space<vmem>>, vector<1x128xf32>
    %142 = vector.shape_cast %139 : vector<2x5x32xf32> to vector<10x32xf32>
    %cst_53 = arith.constant dense<0.000000e+00> : vector<10x128xf32>
    %143 = tpu.matmul %142, %140, %cst_53 {dimension_numbers = #tpu.dot_dimension_numbers<[1], [0], [0], [1], [0, 0, 1, 1], [], []>} : vector<10x32xf32>, vector<32x128xf32>, vector<10x128xf32> -> vector<10x128xf32>
    %144 = vector.broadcast %141 : vector<1x128xf32> to vector<10x128xf32>
    %145 = arith.addf %143, %144 : vector<10x128xf32>
    %146 = vector.shape_cast %145 : vector<10x128xf32> to vector<2x5x128xf32>
    %147 = arith.mulf %146, %146 : vector<2x5x128xf32>
    %148 = arith.mulf %146, %147 : vector<2x5x128xf32>
    %cst_54 = arith.constant 4.471500e-02 : f32
    %149 = vector.broadcast %cst_54 : f32 to vector<2x5x128xf32>
    %150 = arith.mulf %149, %148 : vector<2x5x128xf32>
    %151 = arith.addf %146, %150 : vector<2x5x128xf32>
    %cst_55 = arith.constant 0.797884583 : f32
    %152 = vector.broadcast %cst_55 : f32 to vector<2x5x128xf32>
    %153 = arith.mulf %152, %151 : vector<2x5x128xf32>
    %154 = math.tanh %153 : vector<2x5x128xf32>
    %cst_56 = arith.constant 1.000000e+00 : f32
    %155 = vector.broadcast %cst_56 : f32 to vector<2x5x128xf32>
    %156 = arith.addf %155, %154 : vector<2x5x128xf32>
    %cst_57 = arith.constant 5.000000e-01 : f32
    %157 = vector.broadcast %cst_57 : f32 to vector<2x5x128xf32>
    %158 = arith.mulf %157, %156 : vector<2x5x128xf32>
    %159 = arith.mulf %146, %158 : vector<2x5x128xf32>
    %c0_58 = arith.constant 0 : index
    %c0_59 = arith.constant 0 : index
    %160 = vector.load %arg11[%c0_58, %c0_59] : memref<128x32xf32, #tpu.memory_space<vmem>>, vector<128x32xf32>
    %c0_60 = arith.constant 0 : index
    %c0_61 = arith.constant 0 : index
    %161 = vector.load %arg12[%c0_60, %c0_61] : memref<1x32xf32, #tpu.memory_space<vmem>>, vector<1x32xf32>
    %162 = vector.shape_cast %159 : vector<2x5x128xf32> to vector<10x128xf32>
    %cst_62 = arith.constant dense<0.000000e+00> : vector<10x32xf32>
    %163 = tpu.matmul %162, %160, %cst_62 {dimension_numbers = #tpu.dot_dimension_numbers<[1], [0], [0], [1], [0, 0, 1, 1], [], []>} : vector<10x128xf32>, vector<128x32xf32>, vector<10x32xf32> -> vector<10x32xf32>
    %164 = vector.broadcast %161 : vector<1x32xf32> to vector<10x32xf32>
    %165 = arith.addf %163, %164 : vector<10x32xf32>
    %166 = vector.shape_cast %165 : vector<10x32xf32> to vector<2x5x32xf32>
    %167 = arith.addf %113, %166 : vector<2x5x32xf32>
    %c0_63 = arith.constant 0 : index
    %c0_64 = arith.constant 0 : index
    %c0_65 = arith.constant 0 : index
    %168 = vector.load %arg13[%c0_63, %c0_64, %c0_65] : memref<2x5x32xf32, #tpu.memory_space<vmem>>, vector<2x5x32xf32>
    tpu.vector_store %arg13[%c0_63, %c0_64, %c0_65], %167 {strides = array<i32>} : memref<2x5x32xf32, #tpu.memory_space<vmem>>, vector<2x5x32xf32>,
    return
  }
}

module attributes {stable_mosaic.version = 11 : i64} {
  func.func @_cformer_block_kernel(%arg0: memref<2x4x32xf32, #tpu.memory_space<vmem>>, %arg1: memref<2x5x32xf32, #tpu.memory_space<vmem>>, %arg2: memref<1x32xf32, #tpu.memory_space<vmem>>, %arg3: memref<1x32xf32, #tpu.memory_space<vmem>>, %arg4: memref<32x96xf32, #tpu.memory_space<vmem>>, %arg5: memref<1x96xf32, #tpu.memory_space<vmem>>, %arg6: memref<32x32xf32, #tpu.memory_space<vmem>>, %arg7: memref<1x32xf32, #tpu.memory_space<vmem>>, %arg8: memref<1x32xf32, #tpu.memory_space<vmem>>, %arg9: memref<1x32xf32, #tpu.memory_space<vmem>>, %arg10: memref<32x32xf32, #tpu.memory_space<vmem>>, %arg11: memref<1x32xf32, #tpu.memory_space<vmem>>, %arg12: memref<32x64xf32, #tpu.memory_space<vmem>>, %arg13: memref<1x64xf32, #tpu.memory_space<vmem>>, %arg14: memref<32x32xf32, #tpu.memory_space<vmem>>, %arg15: memref<1x32xf32, #tpu.memory_space<vmem>>, %arg16: memref<1x32xf32, #tpu.memory_space<vmem>>, %arg17: memref<1x32xf32, #tpu.memory_space<vmem>>, %arg18: memref<32x128xf32, #tpu.memory_space<vmem>>, %arg19: memref<1x128xf32, #tpu.memory_space<vmem>>, %arg20: memref<128x32xf32, #tpu.memory_space<vmem>>, %arg21: memref<1x32xf32, #tpu.memory_space<vmem>>, %arg22: memref<2x4x32xf32, #tpu.memory_space<vmem>>) attributes {dimension_semantics = [], scalar_prefetch = 0 : i64, scratch_operands = 0 : i64, tpu.core_type = #tpu.core_type<tc>} {
    %c0 = arith.constant 0 : index
    %c0_0 = arith.constant 0 : index
    %c0_1 = arith.constant 0 : index
    %0 = vector.load %arg0[%c0, %c0_0, %c0_1] : memref<2x4x32xf32, #tpu.memory_space<vmem>>, vector<2x4x32xf32>
    %c0_2 = arith.constant 0 : index
    %c0_3 = arith.constant 0 : index
    %c0_4 = arith.constant 0 : index
    %1 = vector.load %arg1[%c0_2, %c0_3, %c0_4] : memref<2x5x32xf32, #tpu.memory_space<vmem>>, vector<2x5x32xf32>
    %c0_5 = arith.constant 0 : index
    %c0_6 = arith.constant 0 : index
    %2 = vector.load %arg2[%c0_5, %c0_6] : memref<1x32xf32, #tpu.memory_space<vmem>>, vector<1x32xf32>
    %c0_7 = arith.constant 0 : index
    %c0_8 = arith.constant 0 : index
    %3 = vector.load %arg3[%c0_7, %c0_8] : memref<1x32xf32, #tpu.memory_space<vmem>>, vector<1x32xf32>
    %cst = arith.constant dense<0.000000e+00> : vector<2x4xf32>
    %4 = vector.multi_reduction <add>, %0, %cst [2] : vector<2x4x32xf32> to vector<2x4xf32>
    %5 = vector.shape_cast %4 : vector<2x4xf32> to vector<2x4x1xf32>
    %cst_9 = arith.constant 3.200000e+01 : f32
    %6 = vector.broadcast %cst_9 : f32 to vector<2x4x1xf32>
    %7 = arith.divf %5, %6 : vector<2x4x1xf32>
    %8 = vector.broadcast %7 : vector<2x4x1xf32> to vector<2x4x32xf32>
    %9 = arith.subf %0, %8 : vector<2x4x32xf32>
    %10 = arith.mulf %9, %9 : vector<2x4x32xf32>
    %cst_10 = arith.constant dense<0.000000e+00> : vector<2x4xf32>
    %11 = vector.multi_reduction <add>, %10, %cst_10 [2] : vector<2x4x32xf32> to vector<2x4xf32>
    %12 = vector.shape_cast %11 : vector<2x4xf32> to vector<2x4x1xf32>
    %cst_11 = arith.constant 3.200000e+01 : f32
    %13 = vector.broadcast %cst_11 : f32 to vector<2x4x1xf32>
    %14 = arith.divf %12, %13 : vector<2x4x1xf32>
    %15 = vector.broadcast %7 : vector<2x4x1xf32> to vector<2x4x32xf32>
    %16 = arith.subf %0, %15 : vector<2x4x32xf32>
    %cst_12 = arith.constant 9.99999997E-7 : f32
    %17 = vector.broadcast %cst_12 : f32 to vector<2x4x1xf32>
    %18 = arith.addf %14, %17 : vector<2x4x1xf32>
    %19 = math.rsqrt %18 : vector<2x4x1xf32>
    %20 = vector.broadcast %19 : vector<2x4x1xf32> to vector<2x4x32xf32>
    %21 = arith.mulf %16, %20 : vector<2x4x32xf32>
    %22 = vector.shape_cast %2 : vector<1x32xf32> to vector<1x1x32xf32>
    %23 = vector.broadcast %22 : vector<1x1x32xf32> to vector<2x4x32xf32>
    %24 = arith.mulf %21, %23 : vector<2x4x32xf32>
    %25 = vector.shape_cast %3 : vector<1x32xf32> to vector<1x1x32xf32>
    %26 = vector.broadcast %25 : vector<1x1x32xf32> to vector<2x4x32xf32>
    %27 = arith.addf %24, %26 : vector<2x4x32xf32>
    %c0_13 = arith.constant 0 : index
    %c0_14 = arith.constant 0 : index
    %28 = vector.load %arg4[%c0_13, %c0_14] : memref<32x96xf32, #tpu.memory_space<vmem>>, vector<32x96xf32>
    %c0_15 = arith.constant 0 : index
    %c0_16 = arith.constant 0 : index
    %29 = vector.load %arg5[%c0_15, %c0_16] : memref<1x96xf32, #tpu.memory_space<vmem>>, vector<1x96xf32>
    %30 = vector.shape_cast %27 : vector<2x4x32xf32> to vector<8x32xf32>
    %cst_17 = arith.constant dense<0.000000e+00> : vector<8x96xf32>
    %31 = tpu.matmul %30, %28, %cst_17 {dimension_numbers = #tpu.dot_dimension_numbers<[1], [0], [0], [1], [0, 0, 1, 1], [], []>} : vector<8x32xf32>, vector<32x96xf32>, vector<8x96xf32> -> vector<8x96xf32>
    %32 = vector.broadcast %29 : vector<1x96xf32> to vector<8x96xf32>
    %33 = arith.addf %31, %32 : vector<8x96xf32>
    %34 = vector.shape_cast %33 : vector<8x96xf32> to vector<2x4x96xf32>
    %35 = vector.extract_strided_slice %34 {offsets = [0, 0, 0], sizes = [2, 4, 32], strides = [1, 1, 1]} : vector<2x4x96xf32> to vector<2x4x32xf32>
    %36 = vector.extract_strided_slice %34 {offsets = [0, 0, 32], sizes = [2, 4, 32], strides = [1, 1, 1]} : vector<2x4x96xf32> to vector<2x4x32xf32>
    %37 = vector.extract_strided_slice %34 {offsets = [0, 0, 64], sizes = [2, 4, 32], strides = [1, 1, 1]} : vector<2x4x96xf32> to vector<2x4x32xf32>
    %38 = tpu.iota {dimensions = array<i32: 0>} : vector<4x4xi32>
    %39 = tpu.iota {dimensions = array<i32: 1>} : vector<4x4xi32>
    %40 = arith.cmpi sle, %39, %38 : vector<4x4xi32>
    %cst_18 = arith.constant 0.000000e+00 : f32
    %cst_19 = arith.constant -1.000000e+09 : f32
    %41 = vector.broadcast %cst_18 : f32 to vector<4x4xf32>
    %42 = vector.broadcast %cst_19 : f32 to vector<4x4xf32>
    %43 = arith.select %40, %41, %42 : vector<4x4xi1>, vector<4x4xf32>
    %44 = vector.extract_strided_slice %35 {offsets = [0, 0, 0], sizes = [2, 4, 8], strides = [1, 1, 1]} : vector<2x4x32xf32> to vector<2x4x8xf32>
    %45 = vector.extract_strided_slice %36 {offsets = [0, 0, 0], sizes = [2, 4, 8], strides = [1, 1, 1]} : vector<2x4x32xf32> to vector<2x4x8xf32>
    "tpu.trace_start"() <{level = 10 : i32, message = "bqd,bkd->bqk"}> : () -> ()
    %cst_20 = arith.constant dense<0.000000e+00> : vector<2x4x4xf32>
    %46 = tpu.matmul %44, %45, %cst_20 {dimension_numbers = #tpu.dot_dimension_numbers<[2], [2], [1], [1], [0, 0, 0, 1, 1, 1], [0], [0]>} : vector<2x4x8xf32>, vector<2x4x8xf32>, vector<2x4x4xf32> -> vector<2x4x4xf32>
    "tpu.trace_stop"() : () -> ()
    %cst_21 = arith.constant 0.353553385 : f32
    %47 = vector.broadcast %cst_21 : f32 to vector<2x4x4xf32>
    %48 = arith.mulf %46, %47 : vector<2x4x4xf32>
    %49 = vector.shape_cast %43 : vector<4x4xf32> to vector<1x4x4xf32>
    %50 = vector.broadcast %49 : vector<1x4x4xf32> to vector<2x4x4xf32>
    %51 = arith.addf %48, %50 : vector<2x4x4xf32>
    %cst_22 = arith.constant dense<0xFF800000> : vector<2x4xf32>
    %52 = vector.multi_reduction <maximumf>, %51, %cst_22 [2] : vector<2x4x4xf32> to vector<2x4xf32>
    %53 = vector.shape_cast %52 : vector<2x4xf32> to vector<2x4x1xf32>
    %54 = vector.broadcast %53 : vector<2x4x1xf32> to vector<2x4x4xf32>
    %55 = arith.subf %51, %54 : vector<2x4x4xf32>
    %56 = math.exp %55 : vector<2x4x4xf32>
    %cst_23 = arith.constant dense<0.000000e+00> : vector<2x4xf32>
    %57 = vector.multi_reduction <add>, %56, %cst_23 [2] : vector<2x4x4xf32> to vector<2x4xf32>
    %58 = vector.shape_cast %57 : vector<2x4xf32> to vector<2x4x1xf32>
    %59 = tpu.reciprocal %58 {approx = true} : vector<2x4x1xf32> -> vector<2x4x1xf32>
    %60 = vector.broadcast %59 : vector<2x4x1xf32> to vector<2x4x4xf32>
    %61 = arith.mulf %56, %60 : vector<2x4x4xf32>
    %62 = vector.extract_strided_slice %37 {offsets = [0, 0, 0], sizes = [2, 4, 8], strides = [1, 1, 1]} : vector<2x4x32xf32> to vector<2x4x8xf32>
    "tpu.trace_start"() <{level = 10 : i32, message = "bqk,bkd->bqd"}> : () -> ()
    %cst_24 = arith.constant dense<0.000000e+00> : vector<2x4x8xf32>
    %63 = tpu.matmul %61, %62, %cst_24 {dimension_numbers = #tpu.dot_dimension_numbers<[2], [1], [1], [2], [0, 0, 0, 1, 1, 2], [0], [0]>} : vector<2x4x4xf32>, vector<2x4x8xf32>, vector<2x4x8xf32> -> vector<2x4x8xf32>
    "tpu.trace_stop"() : () -> ()
    %64 = vector.extract_strided_slice %35 {offsets = [0, 0, 8], sizes = [2, 4, 8], strides = [1, 1, 1]} : vector<2x4x32xf32> to vector<2x4x8xf32>
    %65 = vector.extract_strided_slice %36 {offsets = [0, 0, 8], sizes = [2, 4, 8], strides = [1, 1, 1]} : vector<2x4x32xf32> to vector<2x4x8xf32>
    "tpu.trace_start"() <{level = 10 : i32, message = "bqd,bkd->bqk"}> : () -> ()
    %cst_25 = arith.constant dense<0.000000e+00> : vector<2x4x4xf32>
    %66 = tpu.matmul %64, %65, %cst_25 {dimension_numbers = #tpu.dot_dimension_numbers<[2], [2], [1], [1], [0, 0, 0, 1, 1, 1], [0], [0]>} : vector<2x4x8xf32>, vector<2x4x8xf32>, vector<2x4x4xf32> -> vector<2x4x4xf32>
    "tpu.trace_stop"() : () -> ()
    %cst_26 = arith.constant 0.353553385 : f32
    %67 = vector.broadcast %cst_26 : f32 to vector<2x4x4xf32>
    %68 = arith.mulf %66, %67 : vector<2x4x4xf32>
    %69 = vector.shape_cast %43 : vector<4x4xf32> to vector<1x4x4xf32>
    %70 = vector.broadcast %69 : vector<1x4x4xf32> to vector<2x4x4xf32>
    %71 = arith.addf %68, %70 : vector<2x4x4xf32>
    %cst_27 = arith.constant dense<0xFF800000> : vector<2x4xf32>
    %72 = vector.multi_reduction <maximumf>, %71, %cst_27 [2] : vector<2x4x4xf32> to vector<2x4xf32>
    %73 = vector.shape_cast %72 : vector<2x4xf32> to vector<2x4x1xf32>
    %74 = vector.broadcast %73 : vector<2x4x1xf32> to vector<2x4x4xf32>
    %75 = arith.subf %71, %74 : vector<2x4x4xf32>
    %76 = math.exp %75 : vector<2x4x4xf32>
    %cst_28 = arith.constant dense<0.000000e+00> : vector<2x4xf32>
    %77 = vector.multi_reduction <add>, %76, %cst_28 [2] : vector<2x4x4xf32> to vector<2x4xf32>
    %78 = vector.shape_cast %77 : vector<2x4xf32> to vector<2x4x1xf32>
    %79 = tpu.reciprocal %78 {approx = true} : vector<2x4x1xf32> -> vector<2x4x1xf32>
    %80 = vector.broadcast %79 : vector<2x4x1xf32> to vector<2x4x4xf32>
    %81 = arith.mulf %76, %80 : vector<2x4x4xf32>
    %82 = vector.extract_strided_slice %37 {offsets = [0, 0, 8], sizes = [2, 4, 8], strides = [1, 1, 1]} : vector<2x4x32xf32> to vector<2x4x8xf32>
    "tpu.trace_start"() <{level = 10 : i32, message = "bqk,bkd->bqd"}> : () -> ()
    %cst_29 = arith.constant dense<0.000000e+00> : vector<2x4x8xf32>
    %83 = tpu.matmul %81, %82, %cst_29 {dimension_numbers = #tpu.dot_dimension_numbers<[2], [1], [1], [2], [0, 0, 0, 1, 1, 2], [0], [0]>} : vector<2x4x4xf32>, vector<2x4x8xf32>, vector<2x4x8xf32> -> vector<2x4x8xf32>
    "tpu.trace_stop"() : () -> ()
    %84 = vector.extract_strided_slice %35 {offsets = [0, 0, 16], sizes = [2, 4, 8], strides = [1, 1, 1]} : vector<2x4x32xf32> to vector<2x4x8xf32>
    %85 = vector.extract_strided_slice %36 {offsets = [0, 0, 16], sizes = [2, 4, 8], strides = [1, 1, 1]} : vector<2x4x32xf32> to vector<2x4x8xf32>
    "tpu.trace_start"() <{level = 10 : i32, message = "bqd,bkd->bqk"}> : () -> ()
    %cst_30 = arith.constant dense<0.000000e+00> : vector<2x4x4xf32>
    %86 = tpu.matmul %84, %85, %cst_30 {dimension_numbers = #tpu.dot_dimension_numbers<[2], [2], [1], [1], [0, 0, 0, 1, 1, 1], [0], [0]>} : vector<2x4x8xf32>, vector<2x4x8xf32>, vector<2x4x4xf32> -> vector<2x4x4xf32>
    "tpu.trace_stop"() : () -> ()
    %cst_31 = arith.constant 0.353553385 : f32
    %87 = vector.broadcast %cst_31 : f32 to vector<2x4x4xf32>
    %88 = arith.mulf %86, %87 : vector<2x4x4xf32>
    %89 = vector.shape_cast %43 : vector<4x4xf32> to vector<1x4x4xf32>
    %90 = vector.broadcast %89 : vector<1x4x4xf32> to vector<2x4x4xf32>
    %91 = arith.addf %88, %90 : vector<2x4x4xf32>
    %cst_32 = arith.constant dense<0xFF800000> : vector<2x4xf32>
    %92 = vector.multi_reduction <maximumf>, %91, %cst_32 [2] : vector<2x4x4xf32> to vector<2x4xf32>
    %93 = vector.shape_cast %92 : vector<2x4xf32> to vector<2x4x1xf32>
    %94 = vector.broadcast %93 : vector<2x4x1xf32> to vector<2x4x4xf32>
    %95 = arith.subf %91, %94 : vector<2x4x4xf32>
    %96 = math.exp %95 : vector<2x4x4xf32>
    %cst_33 = arith.constant dense<0.000000e+00> : vector<2x4xf32>
    %97 = vector.multi_reduction <add>, %96, %cst_33 [2] : vector<2x4x4xf32> to vector<2x4xf32>
    %98 = vector.shape_cast %97 : vector<2x4xf32> to vector<2x4x1xf32>
    %99 = tpu.reciprocal %98 {approx = true} : vector<2x4x1xf32> -> vector<2x4x1xf32>
    %100 = vector.broadcast %99 : vector<2x4x1xf32> to vector<2x4x4xf32>
    %101 = arith.mulf %96, %100 : vector<2x4x4xf32>
    %102 = vector.extract_strided_slice %37 {offsets = [0, 0, 16], sizes = [2, 4, 8], strides = [1, 1, 1]} : vector<2x4x32xf32> to vector<2x4x8xf32>
    "tpu.trace_start"() <{level = 10 : i32, message = "bqk,bkd->bqd"}> : () -> ()
    %cst_34 = arith.constant dense<0.000000e+00> : vector<2x4x8xf32>
    %103 = tpu.matmul %101, %102, %cst_34 {dimension_numbers = #tpu.dot_dimension_numbers<[2], [1], [1], [2], [0, 0, 0, 1, 1, 2], [0], [0]>} : vector<2x4x4xf32>, vector<2x4x8xf32>, vector<2x4x8xf32> -> vector<2x4x8xf32>
    "tpu.trace_stop"() : () -> ()
    %104 = vector.extract_strided_slice %35 {offsets = [0, 0, 24], sizes = [2, 4, 8], strides = [1, 1, 1]} : vector<2x4x32xf32> to vector<2x4x8xf32>
    %105 = vector.extract_strided_slice %36 {offsets = [0, 0, 24], sizes = [2, 4, 8], strides = [1, 1, 1]} : vector<2x4x32xf32> to vector<2x4x8xf32>
    "tpu.trace_start"() <{level = 10 : i32, message = "bqd,bkd->bqk"}> : () -> ()
    %cst_35 = arith.constant dense<0.000000e+00> : vector<2x4x4xf32>
    %106 = tpu.matmul %104, %105, %cst_35 {dimension_numbers = #tpu.dot_dimension_numbers<[2], [2], [1], [1], [0, 0, 0, 1, 1, 1], [0], [0]>} : vector<2x4x8xf32>, vector<2x4x8xf32>, vector<2x4x4xf32> -> vector<2x4x4xf32>
    "tpu.trace_stop"() : () -> ()
    %cst_36 = arith.constant 0.353553385 : f32
    %107 = vector.broadcast %cst_36 : f32 to vector<2x4x4xf32>
    %108 = arith.mulf %106, %107 : vector<2x4x4xf32>
    %109 = vector.shape_cast %43 : vector<4x4xf32> to vector<1x4x4xf32>
    %110 = vector.broadcast %109 : vector<1x4x4xf32> to vector<2x4x4xf32>
    %111 = arith.addf %108, %110 : vector<2x4x4xf32>
    %cst_37 = arith.constant dense<0xFF800000> : vector<2x4xf32>
    %112 = vector.multi_reduction <maximumf>, %111, %cst_37 [2] : vector<2x4x4xf32> to vector<2x4xf32>
    %113 = vector.shape_cast %112 : vector<2x4xf32> to vector<2x4x1xf32>
    %114 = vector.broadcast %113 : vector<2x4x1xf32> to vector<2x4x4xf32>
    %115 = arith.subf %111, %114 : vector<2x4x4xf32>
    %116 = math.exp %115 : vector<2x4x4xf32>
    %cst_38 = arith.constant dense<0.000000e+00> : vector<2x4xf32>
    %117 = vector.multi_reduction <add>, %116, %cst_38 [2] : vector<2x4x4xf32> to vector<2x4xf32>
    %118 = vector.shape_cast %117 : vector<2x4xf32> to vector<2x4x1xf32>
    %119 = tpu.reciprocal %118 {approx = true} : vector<2x4x1xf32> -> vector<2x4x1xf32>
    %120 = vector.broadcast %119 : vector<2x4x1xf32> to vector<2x4x4xf32>
    %121 = arith.mulf %116, %120 : vector<2x4x4xf32>
    %122 = vector.extract_strided_slice %37 {offsets = [0, 0, 24], sizes = [2, 4, 8], strides = [1, 1, 1]} : vector<2x4x32xf32> to vector<2x4x8xf32>
    "tpu.trace_start"() <{level = 10 : i32, message = "bqk,bkd->bqd"}> : () -> ()
    %cst_39 = arith.constant dense<0.000000e+00> : vector<2x4x8xf32>
    %123 = tpu.matmul %121, %122, %cst_39 {dimension_numbers = #tpu.dot_dimension_numbers<[2], [1], [1], [2], [0, 0, 0, 1, 1, 2], [0], [0]>} : vector<2x4x4xf32>, vector<2x4x8xf32>, vector<2x4x8xf32> -> vector<2x4x8xf32>
    "tpu.trace_stop"() : () -> ()
    %124 = tpu.concatenate %63, %83, %103, %123 in 2 : vector<2x4x8xf32>, vector<2x4x8xf32>, vector<2x4x8xf32>, vector<2x4x8xf32> -> vector<2x4x32xf32>
    %c0_40 = arith.constant 0 : index
    %c0_41 = arith.constant 0 : index
    %125 = vector.load %arg6[%c0_40, %c0_41] : memref<32x32xf32, #tpu.memory_space<vmem>>, vector<32x32xf32>
    %c0_42 = arith.constant 0 : index
    %c0_43 = arith.constant 0 : index
    %126 = vector.load %arg7[%c0_42, %c0_43] : memref<1x32xf32, #tpu.memory_space<vmem>>, vector<1x32xf32>
    %127 = vector.shape_cast %124 : vector<2x4x32xf32> to vector<8x32xf32>
    %cst_44 = arith.constant dense<0.000000e+00> : vector<8x32xf32>
    %128 = tpu.matmul %127, %125, %cst_44 {dimension_numbers = #tpu.dot_dimension_numbers<[1], [0], [0], [1], [0, 0, 1, 1], [], []>} : vector<8x32xf32>, vector<32x32xf32>, vector<8x32xf32> -> vector<8x32xf32>
    %129 = vector.broadcast %126 : vector<1x32xf32> to vector<8x32xf32>
    %130 = arith.addf %128, %129 : vector<8x32xf32>
    %131 = vector.shape_cast %130 : vector<8x32xf32> to vector<2x4x32xf32>
    %132 = arith.addf %0, %131 : vector<2x4x32xf32>
    %c0_45 = arith.constant 0 : index
    %c0_46 = arith.constant 0 : index
    %133 = vector.load %arg8[%c0_45, %c0_46] : memref<1x32xf32, #tpu.memory_space<vmem>>, vector<1x32xf32>
    %c0_47 = arith.constant 0 : index
    %c0_48 = arith.constant 0 : index
    %134 = vector.load %arg9[%c0_47, %c0_48] : memref<1x32xf32, #tpu.memory_space<vmem>>, vector<1x32xf32>
    %cst_49 = arith.constant dense<0.000000e+00> : vector<2x4xf32>
    %135 = vector.multi_reduction <add>, %132, %cst_49 [2] : vector<2x4x32xf32> to vector<2x4xf32>
    %136 = vector.shape_cast %135 : vector<2x4xf32> to vector<2x4x1xf32>
    %cst_50 = arith.constant 3.200000e+01 : f32
    %137 = vector.broadcast %cst_50 : f32 to vector<2x4x1xf32>
    %138 = arith.divf %136, %137 : vector<2x4x1xf32>
    %139 = vector.broadcast %138 : vector<2x4x1xf32> to vector<2x4x32xf32>
    %140 = arith.subf %132, %139 : vector<2x4x32xf32>
    %141 = arith.mulf %140, %140 : vector<2x4x32xf32>
    %cst_51 = arith.constant dense<0.000000e+00> : vector<2x4xf32>
    %142 = vector.multi_reduction <add>, %141, %cst_51 [2] : vector<2x4x32xf32> to vector<2x4xf32>
    %143 = vector.shape_cast %142 : vector<2x4xf32> to vector<2x4x1xf32>
    %cst_52 = arith.constant 3.200000e+01 : f32
    %144 = vector.broadcast %cst_52 : f32 to vector<2x4x1xf32>
    %145 = arith.divf %143, %144 : vector<2x4x1xf32>
    %146 = vector.broadcast %138 : vector<2x4x1xf32> to vector<2x4x32xf32>
    %147 = arith.subf %132, %146 : vector<2x4x32xf32>
    %cst_53 = arith.constant 9.99999997E-7 : f32
    %148 = vector.broadcast %cst_53 : f32 to vector<2x4x1xf32>
    %149 = arith.addf %145, %148 : vector<2x4x1xf32>
    %150 = math.rsqrt %149 : vector<2x4x1xf32>
    %151 = vector.broadcast %150 : vector<2x4x1xf32> to vector<2x4x32xf32>
    %152 = arith.mulf %147, %151 : vector<2x4x32xf32>
    %153 = vector.shape_cast %133 : vector<1x32xf32> to vector<1x1x32xf32>
    %154 = vector.broadcast %153 : vector<1x1x32xf32> to vector<2x4x32xf32>
    %155 = arith.mulf %152, %154 : vector<2x4x32xf32>
    %156 = vector.shape_cast %134 : vector<1x32xf32> to vector<1x1x32xf32>
    %157 = vector.broadcast %156 : vector<1x1x32xf32> to vector<2x4x32xf32>
    %158 = arith.addf %155, %157 : vector<2x4x32xf32>
    %c0_54 = arith.constant 0 : index
    %c0_55 = arith.constant 0 : index
    %159 = vector.load %arg10[%c0_54, %c0_55] : memref<32x32xf32, #tpu.memory_space<vmem>>, vector<32x32xf32>
    %c0_56 = arith.constant 0 : index
    %c0_57 = arith.constant 0 : index
    %160 = vector.load %arg11[%c0_56, %c0_57] : memref<1x32xf32, #tpu.memory_space<vmem>>, vector<1x32xf32>
    %161 = vector.shape_cast %158 : vector<2x4x32xf32> to vector<8x32xf32>
    %cst_58 = arith.constant dense<0.000000e+00> : vector<8x32xf32>
    %162 = tpu.matmul %161, %159, %cst_58 {dimension_numbers = #tpu.dot_dimension_numbers<[1], [0], [0], [1], [0, 0, 1, 1], [], []>} : vector<8x32xf32>, vector<32x32xf32>, vector<8x32xf32> -> vector<8x32xf32>
    %163 = vector.broadcast %160 : vector<1x32xf32> to vector<8x32xf32>
    %164 = arith.addf %162, %163 : vector<8x32xf32>
    %165 = vector.shape_cast %164 : vector<8x32xf32> to vector<2x4x32xf32>
    %c0_59 = arith.constant 0 : index
    %c0_60 = arith.constant 0 : index
    %166 = vector.load %arg12[%c0_59, %c0_60] : memref<32x64xf32, #tpu.memory_space<vmem>>, vector<32x64xf32>
    %c0_61 = arith.constant 0 : index
    %c0_62 = arith.constant 0 : index
    %167 = vector.load %arg13[%c0_61, %c0_62] : memref<1x64xf32, #tpu.memory_space<vmem>>, vector<1x64xf32>
    %168 = vector.shape_cast %1 : vector<2x5x32xf32> to vector<10x32xf32>
    %cst_63 = arith.constant dense<0.000000e+00> : vector<10x64xf32>
    %169 = tpu.matmul %168, %166, %cst_63 {dimension_numbers = #tpu.dot_dimension_numbers<[1], [0], [0], [1], [0, 0, 1, 1], [], []>} : vector<10x32xf32>, vector<32x64xf32>, vector<10x64xf32> -> vector<10x64xf32>
    %170 = vector.broadcast %167 : vector<1x64xf32> to vector<10x64xf32>
    %171 = arith.addf %169, %170 : vector<10x64xf32>
    %172 = vector.shape_cast %171 : vector<10x64xf32> to vector<2x5x64xf32>
    %173 = vector.extract_strided_slice %172 {offsets = [0, 0, 0], sizes = [2, 5, 32], strides = [1, 1, 1]} : vector<2x5x64xf32> to vector<2x5x32xf32>
    %174 = vector.extract_strided_slice %172 {offsets = [0, 0, 32], sizes = [2, 5, 32], strides = [1, 1, 1]} : vector<2x5x64xf32> to vector<2x5x32xf32>
    %175 = vector.extract_strided_slice %165 {offsets = [0, 0, 0], sizes = [2, 4, 8], strides = [1, 1, 1]} : vector<2x4x32xf32> to vector<2x4x8xf32>
    %176 = vector.extract_strided_slice %173 {offsets = [0, 0, 0], sizes = [2, 5, 8], strides = [1, 1, 1]} : vector<2x5x32xf32> to vector<2x5x8xf32>
    "tpu.trace_start"() <{level = 10 : i32, message = "bqd,bkd->bqk"}> : () -> ()
    %cst_64 = arith.constant dense<0.000000e+00> : vector<2x4x5xf32>
    %177 = tpu.matmul %175, %176, %cst_64 {dimension_numbers = #tpu.dot_dimension_numbers<[2], [2], [1], [1], [0, 0, 0, 1, 1, 1], [0], [0]>} : vector<2x4x8xf32>, vector<2x5x8xf32>, vector<2x4x5xf32> -> vector<2x4x5xf32>
    "tpu.trace_stop"() : () -> ()
    %cst_65 = arith.constant 0.353553385 : f32
    %178 = vector.broadcast %cst_65 : f32 to vector<2x4x5xf32>
    %179 = arith.mulf %177, %178 : vector<2x4x5xf32>
    %cst_66 = arith.constant dense<0xFF800000> : vector<2x4xf32>
    %180 = vector.multi_reduction <maximumf>, %179, %cst_66 [2] : vector<2x4x5xf32> to vector<2x4xf32>
    %181 = vector.shape_cast %180 : vector<2x4xf32> to vector<2x4x1xf32>
    %182 = vector.broadcast %181 : vector<2x4x1xf32> to vector<2x4x5xf32>
    %183 = arith.subf %179, %182 : vector<2x4x5xf32>
    %184 = math.exp %183 : vector<2x4x5xf32>
    %cst_67 = arith.constant dense<0.000000e+00> : vector<2x4xf32>
    %185 = vector.multi_reduction <add>, %184, %cst_67 [2] : vector<2x4x5xf32> to vector<2x4xf32>
    %186 = vector.shape_cast %185 : vector<2x4xf32> to vector<2x4x1xf32>
    %187 = tpu.reciprocal %186 {approx = true} : vector<2x4x1xf32> -> vector<2x4x1xf32>
    %188 = vector.broadcast %187 : vector<2x4x1xf32> to vector<2x4x5xf32>
    %189 = arith.mulf %184, %188 : vector<2x4x5xf32>
    %190 = vector.extract_strided_slice %174 {offsets = [0, 0, 0], sizes = [2, 5, 8], strides = [1, 1, 1]} : vector<2x5x32xf32> to vector<2x5x8xf32>
    "tpu.trace_start"() <{level = 10 : i32, message = "bqk,bkd->bqd"}> : () -> ()
    %cst_68 = arith.constant dense<0.000000e+00> : vector<2x4x8xf32>
    %191 = tpu.matmul %189, %190, %cst_68 {dimension_numbers = #tpu.dot_dimension_numbers<[2], [1], [1], [2], [0, 0, 0, 1, 1, 2], [0], [0]>} : vector<2x4x5xf32>, vector<2x5x8xf32>, vector<2x4x8xf32> -> vector<2x4x8xf32>
    "tpu.trace_stop"() : () -> ()
    %192 = vector.extract_strided_slice %165 {offsets = [0, 0, 8], sizes = [2, 4, 8], strides = [1, 1, 1]} : vector<2x4x32xf32> to vector<2x4x8xf32>
    %193 = vector.extract_strided_slice %173 {offsets = [0, 0, 8], sizes = [2, 5, 8], strides = [1, 1, 1]} : vector<2x5x32xf32> to vector<2x5x8xf32>
    "tpu.trace_start"() <{level = 10 : i32, message = "bqd,bkd->bqk"}> : () -> ()
    %cst_69 = arith.constant dense<0.000000e+00> : vector<2x4x5xf32>
    %194 = tpu.matmul %192, %193, %cst_69 {dimension_numbers = #tpu.dot_dimension_numbers<[2], [2], [1], [1], [0, 0, 0, 1, 1, 1], [0], [0]>} : vector<2x4x8xf32>, vector<2x5x8xf32>, vector<2x4x5xf32> -> vector<2x4x5xf32>
    "tpu.trace_stop"() : () -> ()
    %cst_70 = arith.constant 0.353553385 : f32
    %195 = vector.broadcast %cst_70 : f32 to vector<2x4x5xf32>
    %196 = arith.mulf %194, %195 : vector<2x4x5xf32>
    %cst_71 = arith.constant dense<0xFF800000> : vector<2x4xf32>
    %197 = vector.multi_reduction <maximumf>, %196, %cst_71 [2] : vector<2x4x5xf32> to vector<2x4xf32>
    %198 = vector.shape_cast %197 : vector<2x4xf32> to vector<2x4x1xf32>
    %199 = vector.broadcast %198 : vector<2x4x1xf32> to vector<2x4x5xf32>
    %200 = arith.subf %196, %199 : vector<2x4x5xf32>
    %201 = math.exp %200 : vector<2x4x5xf32>
    %cst_72 = arith.constant dense<0.000000e+00> : vector<2x4xf32>
    %202 = vector.multi_reduction <add>, %201, %cst_72 [2] : vector<2x4x5xf32> to vector<2x4xf32>
    %203 = vector.shape_cast %202 : vector<2x4xf32> to vector<2x4x1xf32>
    %204 = tpu.reciprocal %203 {approx = true} : vector<2x4x1xf32> -> vector<2x4x1xf32>
    %205 = vector.broadcast %204 : vector<2x4x1xf32> to vector<2x4x5xf32>
    %206 = arith.mulf %201, %205 : vector<2x4x5xf32>
    %207 = vector.extract_strided_slice %174 {offsets = [0, 0, 8], sizes = [2, 5, 8], strides = [1, 1, 1]} : vector<2x5x32xf32> to vector<2x5x8xf32>
    "tpu.trace_start"() <{level = 10 : i32, message = "bqk,bkd->bqd"}> : () -> ()
    %cst_73 = arith.constant dense<0.000000e+00> : vector<2x4x8xf32>
    %208 = tpu.matmul %206, %207, %cst_73 {dimension_numbers = #tpu.dot_dimension_numbers<[2], [1], [1], [2], [0, 0, 0, 1, 1, 2], [0], [0]>} : vector<2x4x5xf32>, vector<2x5x8xf32>, vector<2x4x8xf32> -> vector<2x4x8xf32>
    "tpu.trace_stop"() : () -> ()
    %209 = vector.extract_strided_slice %165 {offsets = [0, 0, 16], sizes = [2, 4, 8], strides = [1, 1, 1]} : vector<2x4x32xf32> to vector<2x4x8xf32>
    %210 = vector.extract_strided_slice %173 {offsets = [0, 0, 16], sizes = [2, 5, 8], strides = [1, 1, 1]} : vector<2x5x32xf32> to vector<2x5x8xf32>
    "tpu.trace_start"() <{level = 10 : i32, message = "bqd,bkd->bqk"}> : () -> ()
    %cst_74 = arith.constant dense<0.000000e+00> : vector<2x4x5xf32>
    %211 = tpu.matmul %209, %210, %cst_74 {dimension_numbers = #tpu.dot_dimension_numbers<[2], [2], [1], [1], [0, 0, 0, 1, 1, 1], [0], [0]>} : vector<2x4x8xf32>, vector<2x5x8xf32>, vector<2x4x5xf32> -> vector<2x4x5xf32>
    "tpu.trace_stop"() : () -> ()
    %cst_75 = arith.constant 0.353553385 : f32
    %212 = vector.broadcast %cst_75 : f32 to vector<2x4x5xf32>
    %213 = arith.mulf %211, %212 : vector<2x4x5xf32>
    %cst_76 = arith.constant dense<0xFF800000> : vector<2x4xf32>
    %214 = vector.multi_reduction <maximumf>, %213, %cst_76 [2] : vector<2x4x5xf32> to vector<2x4xf32>
    %215 = vector.shape_cast %214 : vector<2x4xf32> to vector<2x4x1xf32>
    %216 = vector.broadcast %215 : vector<2x4x1xf32> to vector<2x4x5xf32>
    %217 = arith.subf %213, %216 : vector<2x4x5xf32>
    %218 = math.exp %217 : vector<2x4x5xf32>
    %cst_77 = arith.constant dense<0.000000e+00> : vector<2x4xf32>
    %219 = vector.multi_reduction <add>, %218, %cst_77 [2] : vector<2x4x5xf32> to vector<2x4xf32>
    %220 = vector.shape_cast %219 : vector<2x4xf32> to vector<2x4x1xf32>
    %221 = tpu.reciprocal %220 {approx = true} : vector<2x4x1xf32> -> vector<2x4x1xf32>
    %222 = vector.broadcast %221 : vector<2x4x1xf32> to vector<2x4x5xf32>
    %223 = arith.mulf %218, %222 : vector<2x4x5xf32>
    %224 = vector.extract_strided_slice %174 {offsets = [0, 0, 16], sizes = [2, 5, 8], strides = [1, 1, 1]} : vector<2x5x32xf32> to vector<2x5x8xf32>
    "tpu.trace_start"() <{level = 10 : i32, message = "bqk,bkd->bqd"}> : () -> ()
    %cst_78 = arith.constant dense<0.000000e+00> : vector<2x4x8xf32>
    %225 = tpu.matmul %223, %224, %cst_78 {dimension_numbers = #tpu.dot_dimension_numbers<[2], [1], [1], [2], [0, 0, 0, 1, 1, 2], [0], [0]>} : vector<2x4x5xf32>, vector<2x5x8xf32>, vector<2x4x8xf32> -> vector<2x4x8xf32>
    "tpu.trace_stop"() : () -> ()
    %226 = vector.extract_strided_slice %165 {offsets = [0, 0, 24], sizes = [2, 4, 8], strides = [1, 1, 1]} : vector<2x4x32xf32> to vector<2x4x8xf32>
    %227 = vector.extract_strided_slice %173 {offsets = [0, 0, 24], sizes = [2, 5, 8], strides = [1, 1, 1]} : vector<2x5x32xf32> to vector<2x5x8xf32>
    "tpu.trace_start"() <{level = 10 : i32, message = "bqd,bkd->bqk"}> : () -> ()
    %cst_79 = arith.constant dense<0.000000e+00> : vector<2x4x5xf32>
    %228 = tpu.matmul %226, %227, %cst_79 {dimension_numbers = #tpu.dot_dimension_numbers<[2], [2], [1], [1], [0, 0, 0, 1, 1, 1], [0], [0]>} : vector<2x4x8xf32>, vector<2x5x8xf32>, vector<2x4x5xf32> -> vector<2x4x5xf32>
    "tpu.trace_stop"() : () -> ()
    %cst_80 = arith.constant 0.353553385 : f32
    %229 = vector.broadcast %cst_80 : f32 to vector<2x4x5xf32>
    %230 = arith.mulf %228, %229 : vector<2x4x5xf32>
    %cst_81 = arith.constant dense<0xFF800000> : vector<2x4xf32>
    %231 = vector.multi_reduction <maximumf>, %230, %cst_81 [2] : vector<2x4x5xf32> to vector<2x4xf32>
    %232 = vector.shape_cast %231 : vector<2x4xf32> to vector<2x4x1xf32>
    %233 = vector.broadcast %232 : vector<2x4x1xf32> to vector<2x4x5xf32>
    %234 = arith.subf %230, %233 : vector<2x4x5xf32>
    %235 = math.exp %234 : vector<2x4x5xf32>
    %cst_82 = arith.constant dense<0.000000e+00> : vector<2x4xf32>
    %236 = vector.multi_reduction <add>, %235, %cst_82 [2] : vector<2x4x5xf32> to vector<2x4xf32>
    %237 = vector.shape_cast %236 : vector<2x4xf32> to vector<2x4x1xf32>
    %238 = tpu.reciprocal %237 {approx = true} : vector<2x4x1xf32> -> vector<2x4x1xf32>
    %239 = vector.broadcast %238 : vector<2x4x1xf32> to vector<2x4x5xf32>
    %240 = arith.mulf %235, %239 : vector<2x4x5xf32>
    %241 = vector.extract_strided_slice %174 {offsets = [0, 0, 24], sizes = [2, 5, 8], strides = [1, 1, 1]} : vector<2x5x32xf32> to vector<2x5x8xf32>
    "tpu.trace_start"() <{level = 10 : i32, message = "bqk,bkd->bqd"}> : () -> ()
    %cst_83 = arith.constant dense<0.000000e+00> : vector<2x4x8xf32>
    %242 = tpu.matmul %240, %241, %cst_83 {dimension_numbers = #tpu.dot_dimension_numbers<[2], [1], [1], [2], [0, 0, 0, 1, 1, 2], [0], [0]>} : vector<2x4x5xf32>, vector<2x5x8xf32>, vector<2x4x8xf32> -> vector<2x4x8xf32>
    "tpu.trace_stop"() : () -> ()
    %243 = tpu.concatenate %191, %208, %225, %242 in 2 : vector<2x4x8xf32>, vector<2x4x8xf32>, vector<2x4x8xf32>, vector<2x4x8xf32> -> vector<2x4x32xf32>
    %c0_84 = arith.constant 0 : index
    %c0_85 = arith.constant 0 : index
    %244 = vector.load %arg14[%c0_84, %c0_85] : memref<32x32xf32, #tpu.memory_space<vmem>>, vector<32x32xf32>
    %c0_86 = arith.constant 0 : index
    %c0_87 = arith.constant 0 : index
    %245 = vector.load %arg15[%c0_86, %c0_87] : memref<1x32xf32, #tpu.memory_space<vmem>>, vector<1x32xf32>
    %246 = vector.shape_cast %243 : vector<2x4x32xf32> to vector<8x32xf32>
    %cst_88 = arith.constant dense<0.000000e+00> : vector<8x32xf32>
    %247 = tpu.matmul %246, %244, %cst_88 {dimension_numbers = #tpu.dot_dimension_numbers<[1], [0], [0], [1], [0, 0, 1, 1], [], []>} : vector<8x32xf32>, vector<32x32xf32>, vector<8x32xf32> -> vector<8x32xf32>
    %248 = vector.broadcast %245 : vector<1x32xf32> to vector<8x32xf32>
    %249 = arith.addf %247, %248 : vector<8x32xf32>
    %250 = vector.shape_cast %249 : vector<8x32xf32> to vector<2x4x32xf32>
    %251 = arith.addf %132, %250 : vector<2x4x32xf32>
    %c0_89 = arith.constant 0 : index
    %c0_90 = arith.constant 0 : index
    %252 = vector.load %arg16[%c0_89, %c0_90] : memref<1x32xf32, #tpu.memory_space<vmem>>, vector<1x32xf32>
    %c0_91 = arith.constant 0 : index
    %c0_92 = arith.constant 0 : index
    %253 = vector.load %arg17[%c0_91, %c0_92] : memref<1x32xf32, #tpu.memory_space<vmem>>, vector<1x32xf32>
    %cst_93 = arith.constant dense<0.000000e+00> : vector<2x4xf32>
    %254 = vector.multi_reduction <add>, %251, %cst_93 [2] : vector<2x4x32xf32> to vector<2x4xf32>
    %255 = vector.shape_cast %254 : vector<2x4xf32> to vector<2x4x1xf32>
    %cst_94 = arith.constant 3.200000e+01 : f32
    %256 = vector.broadcast %cst_94 : f32 to vector<2x4x1xf32>
    %257 = arith.divf %255, %256 : vector<2x4x1xf32>
    %258 = vector.broadcast %257 : vector<2x4x1xf32> to vector<2x4x32xf32>
    %259 = arith.subf %251, %258 : vector<2x4x32xf32>
    %260 = arith.mulf %259, %259 : vector<2x4x32xf32>
    %cst_95 = arith.constant dense<0.000000e+00> : vector<2x4xf32>
    %261 = vector.multi_reduction <add>, %260, %cst_95 [2] : vector<2x4x32xf32> to vector<2x4xf32>
    %262 = vector.shape_cast %261 : vector<2x4xf32> to vector<2x4x1xf32>
    %cst_96 = arith.constant 3.200000e+01 : f32
    %263 = vector.broadcast %cst_96 : f32 to vector<2x4x1xf32>
    %264 = arith.divf %262, %263 : vector<2x4x1xf32>
    %265 = vector.broadcast %257 : vector<2x4x1xf32> to vector<2x4x32xf32>
    %266 = arith.subf %251, %265 : vector<2x4x32xf32>
    %cst_97 = arith.constant 9.99999997E-7 : f32
    %267 = vector.broadcast %cst_97 : f32 to vector<2x4x1xf32>
    %268 = arith.addf %264, %267 : vector<2x4x1xf32>
    %269 = math.rsqrt %268 : vector<2x4x1xf32>
    %270 = vector.broadcast %269 : vector<2x4x1xf32> to vector<2x4x32xf32>
    %271 = arith.mulf %266, %270 : vector<2x4x32xf32>
    %272 = vector.shape_cast %252 : vector<1x32xf32> to vector<1x1x32xf32>
    %273 = vector.broadcast %272 : vector<1x1x32xf32> to vector<2x4x32xf32>
    %274 = arith.mulf %271, %273 : vector<2x4x32xf32>
    %275 = vector.shape_cast %253 : vector<1x32xf32> to vector<1x1x32xf32>
    %276 = vector.broadcast %275 : vector<1x1x32xf32> to vector<2x4x32xf32>
    %277 = arith.addf %274, %276 : vector<2x4x32xf32>
    %c0_98 = arith.constant 0 : index
    %c0_99 = arith.constant 0 : index
    %278 = vector.load %arg18[%c0_98, %c0_99] : memref<32x128xf32, #tpu.memory_space<vmem>>, vector<32x128xf32>
    %c0_100 = arith.constant 0 : index
    %c0_101 = arith.constant 0 : index
    %279 = vector.load %arg19[%c0_100, %c0_101] : memref<1x128xf32, #tpu.memory_space<vmem>>, vector<1x128xf32>
    %280 = vector.shape_cast %277 : vector<2x4x32xf32> to vector<8x32xf32>
    %cst_102 = arith.constant dense<0.000000e+00> : vector<8x128xf32>
    %281 = tpu.matmul %280, %278, %cst_102 {dimension_numbers = #tpu.dot_dimension_numbers<[1], [0], [0], [1], [0, 0, 1, 1], [], []>} : vector<8x32xf32>, vector<32x128xf32>, vector<8x128xf32> -> vector<8x128xf32>
    %282 = vector.broadcast %279 : vector<1x128xf32> to vector<8x128xf32>
    %283 = arith.addf %281, %282 : vector<8x128xf32>
    %284 = vector.shape_cast %283 : vector<8x128xf32> to vector<2x4x128xf32>
    %285 = arith.mulf %284, %284 : vector<2x4x128xf32>
    %286 = arith.mulf %284, %285 : vector<2x4x128xf32>
    %cst_103 = arith.constant 4.471500e-02 : f32
    %287 = vector.broadcast %cst_103 : f32 to vector<2x4x128xf32>
    %288 = arith.mulf %287, %286 : vector<2x4x128xf32>
    %289 = arith.addf %284, %288 : vector<2x4x128xf32>
    %cst_104 = arith.constant 0.797884583 : f32
    %290 = vector.broadcast %cst_104 : f32 to vector<2x4x128xf32>
    %291 = arith.mulf %290, %289 : vector<2x4x128xf32>
    %292 = math.tanh %291 : vector<2x4x128xf32>
    %cst_105 = arith.constant 1.000000e+00 : f32
    %293 = vector.broadcast %cst_105 : f32 to vector<2x4x128xf32>
    %294 = arith.addf %293, %292 : vector<2x4x128xf32>
    %cst_106 = arith.constant 5.000000e-01 : f32
    %295 = vector.broadcast %cst_106 : f32 to vector<2x4x128xf32>
    %296 = arith.mulf %295, %294 : vector<2x4x128xf32>
    %297 = arith.mulf %284, %296 : vector<2x4x128xf32>
    %c0_107 = arith.constant 0 : index
    %c0_108 = arith.constant 0 : index
    %298 = vector.load %arg20[%c0_107, %c0_108] : memref<128x32xf32, #tpu.memory_space<vmem>>, vector<128x32xf32>
    %c0_109 = arith.constant 0 : index
    %c0_110 = arith.constant 0 : index
    %299 = vector.load %arg21[%c0_109, %c0_110] : memref<1x32xf32, #tpu.memory_space<vmem>>, vector<1x32xf32>
    %300 = vector.shape_cast %297 : vector<2x4x128xf32> to vector<8x128xf32>
    %cst_111 = arith.constant dense<0.000000e+00> : vector<8x32xf32>
    %301 = tpu.matmul %300, %298, %cst_111 {dimension_numbers = #tpu.dot_dimension_numbers<[1], [0], [0], [1], [0, 0, 1, 1], [], []>} : vector<8x128xf32>, vector<128x32xf32>, vector<8x32xf32> -> vector<8x32xf32>
    %302 = vector.broadcast %299 : vector<1x32xf32> to vector<8x32xf32>
    %303 = arith.addf %301, %302 : vector<8x32xf32>
    %304 = vector.shape_cast %303 : vector<8x32xf32> to vector<2x4x32xf32>
    %305 = arith.addf %251, %304 : vector<2x4x32xf32>
    %c0_112 = arith.constant 0 : index
    %c0_113 = arith.constant 0 : index
    %c0_114 = arith.constant 0 : index
    %306 = vector.load %arg22[%c0_112, %c0_113, %c0_114] : memref<2x4x32xf32, #tpu.memory_space<vmem>>, vector<2x4x32xf32>
    tpu.vector_store %arg22[%c0_112, %c0_113, %c0_114], %305 {strides = array<i32>} : memref<2x4x32xf32, #tpu.memory_space<vmem>>, vector<2x4x32xf32>,
    return
  }
}

module attributes {stable_mosaic.version = 11 : i64} {
  func.func @_ln_proj_kernel(%arg0: memref<2x4x32xf32, #tpu.memory_space<vmem>>, %arg1: memref<1x32xf32, #tpu.memory_space<vmem>>, %arg2: memref<1x32xf32, #tpu.memory_space<vmem>>, %arg3: memref<32x32xf32, #tpu.memory_space<vmem>>, %arg4: memref<1x32xf32, #tpu.memory_space<vmem>>, %arg5: memref<2x4x32xf32, #tpu.memory_space<vmem>>) attributes {dimension_semantics = [], scalar_prefetch = 0 : i64, scratch_operands = 0 : i64, tpu.core_type = #tpu.core_type<tc>} {
    %c0 = arith.constant 0 : index
    %c0_0 = arith.constant 0 : index
    %c0_1 = arith.constant 0 : index
    %0 = vector.load %arg0[%c0, %c0_0, %c0_1] : memref<2x4x32xf32, #tpu.memory_space<vmem>>, vector<2x4x32xf32>
    %c0_2 = arith.constant 0 : index
    %c0_3 = arith.constant 0 : index
    %1 = vector.load %arg1[%c0_2, %c0_3] : memref<1x32xf32, #tpu.memory_space<vmem>>, vector<1x32xf32>
    %c0_4 = arith.constant 0 : index
    %c0_5 = arith.constant 0 : index
    %2 = vector.load %arg2[%c0_4, %c0_5] : memref<1x32xf32, #tpu.memory_space<vmem>>, vector<1x32xf32>
    %cst = arith.constant dense<0.000000e+00> : vector<2x4xf32>
    %3 = vector.multi_reduction <add>, %0, %cst [2] : vector<2x4x32xf32> to vector<2x4xf32>
    %4 = vector.shape_cast %3 : vector<2x4xf32> to vector<2x4x1xf32>
    %cst_6 = arith.constant 3.200000e+01 : f32
    %5 = vector.broadcast %cst_6 : f32 to vector<2x4x1xf32>
    %6 = arith.divf %4, %5 : vector<2x4x1xf32>
    %7 = vector.broadcast %6 : vector<2x4x1xf32> to vector<2x4x32xf32>
    %8 = arith.subf %0, %7 : vector<2x4x32xf32>
    %9 = arith.mulf %8, %8 : vector<2x4x32xf32>
    %cst_7 = arith.constant dense<0.000000e+00> : vector<2x4xf32>
    %10 = vector.multi_reduction <add>, %9, %cst_7 [2] : vector<2x4x32xf32> to vector<2x4xf32>
    %11 = vector.shape_cast %10 : vector<2x4xf32> to vector<2x4x1xf32>
    %cst_8 = arith.constant 3.200000e+01 : f32
    %12 = vector.broadcast %cst_8 : f32 to vector<2x4x1xf32>
    %13 = arith.divf %11, %12 : vector<2x4x1xf32>
    %14 = vector.broadcast %6 : vector<2x4x1xf32> to vector<2x4x32xf32>
    %15 = arith.subf %0, %14 : vector<2x4x32xf32>
    %cst_9 = arith.constant 9.99999997E-7 : f32
    %16 = vector.broadcast %cst_9 : f32 to vector<2x4x1xf32>
    %17 = arith.addf %13, %16 : vector<2x4x1xf32>
    %18 = math.rsqrt %17 : vector<2x4x1xf32>
    %19 = vector.broadcast %18 : vector<2x4x1xf32> to vector<2x4x32xf32>
    %20 = arith.mulf %15, %19 : vector<2x4x32xf32>
    %21 = vector.shape_cast %1 : vector<1x32xf32> to vector<1x1x32xf32>
    %22 = vector.broadcast %21 : vector<1x1x32xf32> to vector<2x4x32xf32>
    %23 = arith.mulf %20, %22 : vector<2x4x32xf32>
    %24 = vector.shape_cast %2 : vector<1x32xf32> to vector<1x1x32xf32>
    %25 = vector.broadcast %24 : vector<1x1x32xf32> to vector<2x4x32xf32>
    %26 = arith.addf %23, %25 : vector<2x4x32xf32>
    %c0_10 = arith.constant 0 : index
    %c0_11 = arith.constant 0 : index
    %27 = vector.load %arg3[%c0_10, %c0_11] : memref<32x32xf32, #tpu.memory_space<vmem>>, vector<32x32xf32>
    %c0_12 = arith.constant 0 : index
    %c0_13 = arith.constant 0 : index
    %28 = vector.load %arg4[%c0_12, %c0_13] : memref<1x32xf32, #tpu.memory_space<vmem>>, vector<1x32xf32>
    %29 = vector.shape_cast %26 : vector<2x4x32xf32> to vector<8x32xf32>
    %cst_14 = arith.constant dense<0.000000e+00> : vector<8x32xf32>
    %30 = tpu.matmul %29, %27, %cst_14 {dimension_numbers = #tpu.dot_dimension_numbers<[1], [0], [0], [1], [0, 0, 1, 1], [], []>} : vector<8x32xf32>, vector<32x32xf32>, vector<8x32xf32> -> vector<8x32xf32>
    %31 = vector.broadcast %28 : vector<1x32xf32> to vector<8x32xf32>
    %32 = arith.addf %30, %31 : vector<8x32xf32>
    %33 = vector.shape_cast %32 : vector<8x32xf32> to vector<2x4x32xf32>
    %c0_15 = arith.constant 0 : index
    %c0_16 = arith.constant 0 : index
    %c0_17 = arith.constant 0 : index
    %34 = vector.load %arg5[%c0_15, %c0_16, %c0_17] : memref<2x4x32xf32, #tpu.memory_space<vmem>>, vector<2x4x32xf32>
    tpu.vector_store %arg5[%c0_15, %c0_16, %c0_17], %33 {strides = array<i32>} : memref<2x4x32xf32, #tpu.memory_space<vmem>>, vector<2x4x32xf32>,
    return
  }
}

module attributes {stable_mosaic.version = 11 : i64} {
  func.func @_decoder_loss_kernel(%arg0: memref<2x12x32xf32, #tpu.memory_space<vmem>>, %arg1: memref<1x32xf32, #tpu.memory_space<vmem>>, %arg2: memref<32x64xf32, #tpu.memory_space<vmem>>, %arg3: memref<1x64xf32, #tpu.memory_space<vmem>>, %arg4: memref<16x1xi32, #tpu.memory_space<vmem>>, %arg5: memref<16x1xf32, #tpu.memory_space<vmem>>, %arg6: memref<16x1xf32, #tpu.memory_space<vmem>>) attributes {dimension_semantics = [], scalar_prefetch = 0 : i64, scratch_operands = 0 : i64, tpu.core_type = #tpu.core_type<tc>} {
    %c0 = arith.constant 0 : index
    %c0_0 = arith.constant 0 : index
    %c0_1 = arith.constant 0 : index
    %0 = vector.load %arg0[%c0, %c0_0, %c0_1] : memref<2x12x32xf32, #tpu.memory_space<vmem>>, vector<2x12x32xf32>
    %c0_2 = arith.constant 0 : index
    %c0_3 = arith.constant 0 : index
    %1 = vector.load %arg1[%c0_2, %c0_3] : memref<1x32xf32, #tpu.memory_space<vmem>>, vector<1x32xf32>
    %2 = arith.mulf %0, %0 : vector<2x12x32xf32>
    %cst = arith.constant dense<0.000000e+00> : vector<2x12xf32>
    %3 = vector.multi_reduction <add>, %2, %cst [2] : vector<2x12x32xf32> to vector<2x12xf32>
    %4 = vector.shape_cast %3 : vector<2x12xf32> to vector<2x12x1xf32>
    %cst_4 = arith.constant 3.200000e+01 : f32
    %5 = vector.broadcast %cst_4 : f32 to vector<2x12x1xf32>
    %6 = arith.divf %4, %5 : vector<2x12x1xf32>
    %cst_5 = arith.constant 9.99999997E-7 : f32
    %7 = vector.broadcast %cst_5 : f32 to vector<2x12x1xf32>
    %8 = arith.addf %6, %7 : vector<2x12x1xf32>
    %9 = math.rsqrt %8 : vector<2x12x1xf32>
    %10 = vector.broadcast %9 : vector<2x12x1xf32> to vector<2x12x32xf32>
    %11 = arith.mulf %0, %10 : vector<2x12x32xf32>
    %12 = vector.shape_cast %1 : vector<1x32xf32> to vector<1x1x32xf32>
    %13 = vector.broadcast %12 : vector<1x1x32xf32> to vector<2x12x32xf32>
    %14 = arith.mulf %11, %13 : vector<2x12x32xf32>
    %15 = vector.extract_strided_slice %14 {offsets = [0, 4, 0], sizes = [2, 8, 32], strides = [1, 1, 1]} : vector<2x12x32xf32> to vector<2x8x32xf32>
    %16 = vector.shape_cast %15 : vector<2x8x32xf32> to vector<16x32xf32>
    %c0_6 = arith.constant 0 : index
    %c0_7 = arith.constant 0 : index
    %17 = vector.load %arg2[%c0_6, %c0_7] : memref<32x64xf32, #tpu.memory_space<vmem>>, vector<32x64xf32>
    %cst_8 = arith.constant dense<0.000000e+00> : vector<16x64xf32>
    %18 = tpu.matmul %16, %17, %cst_8 {dimension_numbers = #tpu.dot_dimension_numbers<[1], [0], [0], [1], [0, 0, 1, 1], [], []>} : vector<16x32xf32>, vector<32x64xf32>, vector<16x64xf32> -> vector<16x64xf32>
    %c0_9 = arith.constant 0 : index
    %c0_10 = arith.constant 0 : index
    %19 = vector.load %arg3[%c0_9, %c0_10] : memref<1x64xf32, #tpu.memory_space<vmem>>, vector<1x64xf32>
    %20 = vector.broadcast %19 : vector<1x64xf32> to vector<16x64xf32>
    %21 = arith.addf %18, %20 : vector<16x64xf32>
    %cst_11 = arith.constant dense<0xFF800000> : vector<16xf32>
    %22 = vector.multi_reduction <maximumf>, %21, %cst_11 [1] : vector<16x64xf32> to vector<16xf32>
    %23 = vector.shape_cast %22 : vector<16xf32> to vector<16x1xf32>
    %24 = vector.broadcast %23 : vector<16x1xf32> to vector<16x64xf32>
    %25 = arith.subf %21, %24 : vector<16x64xf32>
    %26 = math.exp %25 : vector<16x64xf32>
    %cst_12 = arith.constant dense<0.000000e+00> : vector<16xf32>
    %27 = vector.multi_reduction <add>, %26, %cst_12 [1] : vector<16x64xf32> to vector<16xf32>
    %28 = vector.shape_cast %27 : vector<16xf32> to vector<16x1xf32>
    %29 = math.log %28 : vector<16x1xf32>
    %30 = arith.addf %23, %29 : vector<16x1xf32>
    %31 = tpu.iota {dimensions = array<i32: 1>} : vector<16x64xi32>
    %c0_13 = arith.constant 0 : index
    %c0_14 = arith.constant 0 : index
    %32 = vector.load %arg4[%c0_13, %c0_14] : memref<16x1xi32, #tpu.memory_space<vmem>>, vector<16x1xi32>
    %33 = vector.broadcast %32 : vector<16x1xi32> to vector<16x64xi32>
    %34 = arith.cmpi eq, %31, %33 : vector<16x64xi32>
    %35 = arith.extui %34 : vector<16x64xi1> to vector<16x64xi32>
    %36 = arith.sitofp %35 : vector<16x64xi32> to vector<16x64xf32>
    %37 = arith.mulf %36, %21 : vector<16x64xf32>
    %cst_15 = arith.constant dense<0.000000e+00> : vector<16xf32>
    %38 = vector.multi_reduction <add>, %37, %cst_15 [1] : vector<16x64xf32> to vector<16xf32>
    %39 = vector.shape_cast %38 : vector<16xf32> to vector<16x1xf32>
    %40 = arith.subf %30, %39 : vector<16x1xf32>
    %c0_16 = arith.constant 0 : index
    %c0_17 = arith.constant 0 : index
    %41 = vector.load %arg5[%c0_16, %c0_17] : memref<16x1xf32, #tpu.memory_space<vmem>>, vector<16x1xf32>
    %42 = arith.mulf %40, %41 : vector<16x1xf32>
    %c0_18 = arith.constant 0 : index
    %c0_19 = arith.constant 0 : index
    %43 = vector.load %arg6[%c0_18, %c0_19] : memref<16x1xf32, #tpu.memory_space<vmem>>, vector<16x1xf32>
    tpu.vector_store %arg6[%c0_18, %c0_19], %42 {strides = array<i32>} : memref<16x1xf32, #tpu.memory_space<vmem>>, vector<16x1xf32>,
    return
  }
}

module attributes {stable_mosaic.version = 11 : i64} {
  func.func @_decoder_layer_kernel(%arg0: memref<2x12x32xf32, #tpu.memory_space<vmem>>, %arg1: memref<2x12xf32, #tpu.memory_space<vmem>>, %arg2: memref<1x32xf32, #tpu.memory_space<vmem>>, %arg3: memref<32x96xf32, #tpu.memory_space<vmem>>, %arg4: memref<1x96xf32, #tpu.memory_space<vmem>>, %arg5: memref<32x32xf32, #tpu.memory_space<vmem>>, %arg6: memref<1x32xf32, #tpu.memory_space<vmem>>, %arg7: memref<1x32xf32, #tpu.memory_space<vmem>>, %arg8: memref<32x256xf32, #tpu.memory_space<vmem>>, %arg9: memref<128x32xf32, #tpu.memory_space<vmem>>, %arg10: memref<2x12x32xf32, #tpu.memory_space<vmem>>) attributes {dimension_semantics = [], scalar_prefetch = 0 : i64, scratch_operands = 0 : i64, tpu.core_type = #tpu.core_type<tc>} {
    %c0 = arith.constant 0 : index
    %c0_0 = arith.constant 0 : index
    %c0_1 = arith.constant 0 : index
    %0 = vector.load %arg0[%c0, %c0_0, %c0_1] : memref<2x12x32xf32, #tpu.memory_space<vmem>>, vector<2x12x32xf32>
    %c0_2 = arith.constant 0 : index
    %c0_3 = arith.constant 0 : index
    %1 = vector.load %arg2[%c0_2, %c0_3] : memref<1x32xf32, #tpu.memory_space<vmem>>, vector<1x32xf32>
    %2 = arith.mulf %0, %0 : vector<2x12x32xf32>
    %cst = arith.constant dense<0.000000e+00> : vector<2x12xf32>
    %3 = vector.multi_reduction <add>, %2, %cst [2] : vector<2x12x32xf32> to vector<2x12xf32>
    %4 = vector.shape_cast %3 : vector<2x12xf32> to vector<2x12x1xf32>
    %cst_4 = arith.constant 3.200000e+01 : f32
    %5 = vector.broadcast %cst_4 : f32 to vector<2x12x1xf32>
    %6 = arith.divf %4, %5 : vector<2x12x1xf32>
    %cst_5 = arith.constant 9.99999997E-7 : f32
    %7 = vector.broadcast %cst_5 : f32 to vector<2x12x1xf32>
    %8 = arith.addf %6, %7 : vector<2x12x1xf32>
    %9 = math.rsqrt %8 : vector<2x12x1xf32>
    %10 = vector.broadcast %9 : vector<2x12x1xf32> to vector<2x12x32xf32>
    %11 = arith.mulf %0, %10 : vector<2x12x32xf32>
    %12 = vector.shape_cast %1 : vector<1x32xf32> to vector<1x1x32xf32>
    %13 = vector.broadcast %12 : vector<1x1x32xf32> to vector<2x12x32xf32>
    %14 = arith.mulf %11, %13 : vector<2x12x32xf32>
    %c0_6 = arith.constant 0 : index
    %c0_7 = arith.constant 0 : index
    %15 = vector.load %arg3[%c0_6, %c0_7] : memref<32x96xf32, #tpu.memory_space<vmem>>, vector<32x96xf32>
    %c0_8 = arith.constant 0 : index
    %c0_9 = arith.constant 0 : index
    %16 = vector.load %arg4[%c0_8, %c0_9] : memref<1x96xf32, #tpu.memory_space<vmem>>, vector<1x96xf32>
    %17 = vector.shape_cast %14 : vector<2x12x32xf32> to vector<24x32xf32>
    %cst_10 = arith.constant dense<0.000000e+00> : vector<24x96xf32>
    %18 = tpu.matmul %17, %15, %cst_10 {dimension_numbers = #tpu.dot_dimension_numbers<[1], [0], [0], [1], [0, 0, 1, 1], [], []>} : vector<24x32xf32>, vector<32x96xf32>, vector<24x96xf32> -> vector<24x96xf32>
    %19 = vector.broadcast %16 : vector<1x96xf32> to vector<24x96xf32>
    %20 = arith.addf %18, %19 : vector<24x96xf32>
    %21 = vector.shape_cast %20 : vector<24x96xf32> to vector<2x12x96xf32>
    %22 = vector.extract_strided_slice %21 {offsets = [0, 0, 0], sizes = [2, 12, 32], strides = [1, 1, 1]} : vector<2x12x96xf32> to vector<2x12x32xf32>
    %23 = vector.extract_strided_slice %21 {offsets = [0, 0, 32], sizes = [2, 12, 32], strides = [1, 1, 1]} : vector<2x12x96xf32> to vector<2x12x32xf32>
    %24 = vector.extract_strided_slice %21 {offsets = [0, 0, 64], sizes = [2, 12, 32], strides = [1, 1, 1]} : vector<2x12x96xf32> to vector<2x12x32xf32>
    %25 = tpu.iota {dimensions = array<i32: 0>} : vector<12x12xi32>
    %26 = tpu.iota {dimensions = array<i32: 1>} : vector<12x12xi32>
    %c0_11 = arith.constant 0 : index
    %c0_12 = arith.constant 0 : index
    %27 = vector.load %arg1[%c0_11, %c0_12] : memref<2x12xf32, #tpu.memory_space<vmem>>, vector<2x12xf32>
    %28 = arith.cmpi sle, %26, %25 : vector<12x12xi32>
    %29 = vector.shape_cast %28 : vector<12x12xi1> to vector<1x12x12xi1>
    %30 = vector.shape_cast %27 : vector<2x12xf32> to vector<2x1x12xf32>
    %cst_13 = arith.constant 5.000000e-01 : f32
    %31 = vector.broadcast %cst_13 : f32 to vector<2x1x12xf32>
    %32 = arith.cmpf ogt, %30, %31 : vector<2x1x12xf32>
    %33 = vector.broadcast %29 : vector<1x12x12xi1> to vector<2x12x12xi1>
    %34 = vector.broadcast %32 : vector<2x1x12xi1> to vector<2x12x12xi1>
    %35 = arith.andi %33, %34 : vector<2x12x12xi1>
    %cst_14 = arith.constant 0.000000e+00 : f32
    %cst_15 = arith.constant -1.000000e+09 : f32
    %36 = vector.broadcast %cst_14 : f32 to vector<2x12x12xf32>
    %37 = vector.broadcast %cst_15 : f32 to vector<2x12x12xf32>
    %38 = arith.select %35, %36, %37 : vector<2x12x12xi1>, vector<2x12x12xf32>
    %39 = vector.extract_strided_slice %22 {offsets = [0, 0, 0], sizes = [2, 12, 8], strides = [1, 1, 1]} : vector<2x12x32xf32> to vector<2x12x8xf32>
    %40 = vector.extract_strided_slice %23 {offsets = [0, 0, 0], sizes = [2, 12, 8], strides = [1, 1, 1]} : vector<2x12x32xf32> to vector<2x12x8xf32>
    "tpu.trace_start"() <{level = 10 : i32, message = "bqd,bkd->bqk"}> : () -> ()
    %cst_16 = arith.constant dense<0.000000e+00> : vector<2x12x12xf32>
    %41 = tpu.matmul %39, %40, %cst_16 {dimension_numbers = #tpu.dot_dimension_numbers<[2], [2], [1], [1], [0, 0, 0, 1, 1, 1], [0], [0]>} : vector<2x12x8xf32>, vector<2x12x8xf32>, vector<2x12x12xf32> -> vector<2x12x12xf32>
    "tpu.trace_stop"() : () -> ()
    %cst_17 = arith.constant 0.353553385 : f32
    %42 = vector.broadcast %cst_17 : f32 to vector<2x12x12xf32>
    %43 = arith.mulf %41, %42 : vector<2x12x12xf32>
    %44 = arith.addf %43, %38 : vector<2x12x12xf32>
    %cst_18 = arith.constant dense<0xFF800000> : vector<2x12xf32>
    %45 = vector.multi_reduction <maximumf>, %44, %cst_18 [2] : vector<2x12x12xf32> to vector<2x12xf32>
    %46 = vector.shape_cast %45 : vector<2x12xf32> to vector<2x12x1xf32>
    %47 = vector.broadcast %46 : vector<2x12x1xf32> to vector<2x12x12xf32>
    %48 = arith.subf %44, %47 : vector<2x12x12xf32>
    %49 = math.exp %48 : vector<2x12x12xf32>
    %cst_19 = arith.constant dense<0.000000e+00> : vector<2x12xf32>
    %50 = vector.multi_reduction <add>, %49, %cst_19 [2] : vector<2x12x12xf32> to vector<2x12xf32>
    %51 = vector.shape_cast %50 : vector<2x12xf32> to vector<2x12x1xf32>
    %52 = tpu.reciprocal %51 {approx = true} : vector<2x12x1xf32> -> vector<2x12x1xf32>
    %53 = vector.broadcast %52 : vector<2x12x1xf32> to vector<2x12x12xf32>
    %54 = arith.mulf %49, %53 : vector<2x12x12xf32>
    %55 = vector.extract_strided_slice %24 {offsets = [0, 0, 0], sizes = [2, 12, 8], strides = [1, 1, 1]} : vector<2x12x32xf32> to vector<2x12x8xf32>
    "tpu.trace_start"() <{level = 10 : i32, message = "bqk,bkd->bqd"}> : () -> ()
    %cst_20 = arith.constant dense<0.000000e+00> : vector<2x12x8xf32>
    %56 = tpu.matmul %54, %55, %cst_20 {dimension_numbers = #tpu.dot_dimension_numbers<[2], [1], [1], [2], [0, 0, 0, 1, 1, 2], [0], [0]>} : vector<2x12x12xf32>, vector<2x12x8xf32>, vector<2x12x8xf32> -> vector<2x12x8xf32>
    "tpu.trace_stop"() : () -> ()
    %57 = vector.extract_strided_slice %22 {offsets = [0, 0, 8], sizes = [2, 12, 8], strides = [1, 1, 1]} : vector<2x12x32xf32> to vector<2x12x8xf32>
    %58 = vector.extract_strided_slice %23 {offsets = [0, 0, 8], sizes = [2, 12, 8], strides = [1, 1, 1]} : vector<2x12x32xf32> to vector<2x12x8xf32>
    "tpu.trace_start"() <{level = 10 : i32, message = "bqd,bkd->bqk"}> : () -> ()
    %cst_21 = arith.constant dense<0.000000e+00> : vector<2x12x12xf32>
    %59 = tpu.matmul %57, %58, %cst_21 {dimension_numbers = #tpu.dot_dimension_numbers<[2], [2], [1], [1], [0, 0, 0, 1, 1, 1], [0], [0]>} : vector<2x12x8xf32>, vector<2x12x8xf32>, vector<2x12x12xf32> -> vector<2x12x12xf32>
    "tpu.trace_stop"() : () -> ()
    %cst_22 = arith.constant 0.353553385 : f32
    %60 = vector.broadcast %cst_22 : f32 to vector<2x12x12xf32>
    %61 = arith.mulf %59, %60 : vector<2x12x12xf32>
    %62 = arith.addf %61, %38 : vector<2x12x12xf32>
    %cst_23 = arith.constant dense<0xFF800000> : vector<2x12xf32>
    %63 = vector.multi_reduction <maximumf>, %62, %cst_23 [2] : vector<2x12x12xf32> to vector<2x12xf32>
    %64 = vector.shape_cast %63 : vector<2x12xf32> to vector<2x12x1xf32>
    %65 = vector.broadcast %64 : vector<2x12x1xf32> to vector<2x12x12xf32>
    %66 = arith.subf %62, %65 : vector<2x12x12xf32>
    %67 = math.exp %66 : vector<2x12x12xf32>
    %cst_24 = arith.constant dense<0.000000e+00> : vector<2x12xf32>
    %68 = vector.multi_reduction <add>, %67, %cst_24 [2] : vector<2x12x12xf32> to vector<2x12xf32>
    %69 = vector.shape_cast %68 : vector<2x12xf32> to vector<2x12x1xf32>
    %70 = tpu.reciprocal %69 {approx = true} : vector<2x12x1xf32> -> vector<2x12x1xf32>
    %71 = vector.broadcast %70 : vector<2x12x1xf32> to vector<2x12x12xf32>
    %72 = arith.mulf %67, %71 : vector<2x12x12xf32>
    %73 = vector.extract_strided_slice %24 {offsets = [0, 0, 8], sizes = [2, 12, 8], strides = [1, 1, 1]} : vector<2x12x32xf32> to vector<2x12x8xf32>
    "tpu.trace_start"() <{level = 10 : i32, message = "bqk,bkd->bqd"}> : () -> ()
    %cst_25 = arith.constant dense<0.000000e+00> : vector<2x12x8xf32>
    %74 = tpu.matmul %72, %73, %cst_25 {dimension_numbers = #tpu.dot_dimension_numbers<[2], [1], [1], [2], [0, 0, 0, 1, 1, 2], [0], [0]>} : vector<2x12x12xf32>, vector<2x12x8xf32>, vector<2x12x8xf32> -> vector<2x12x8xf32>
    "tpu.trace_stop"() : () -> ()
    %75 = vector.extract_strided_slice %22 {offsets = [0, 0, 16], sizes = [2, 12, 8], strides = [1, 1, 1]} : vector<2x12x32xf32> to vector<2x12x8xf32>
    %76 = vector.extract_strided_slice %23 {offsets = [0, 0, 16], sizes = [2, 12, 8], strides = [1, 1, 1]} : vector<2x12x32xf32> to vector<2x12x8xf32>
    "tpu.trace_start"() <{level = 10 : i32, message = "bqd,bkd->bqk"}> : () -> ()
    %cst_26 = arith.constant dense<0.000000e+00> : vector<2x12x12xf32>
    %77 = tpu.matmul %75, %76, %cst_26 {dimension_numbers = #tpu.dot_dimension_numbers<[2], [2], [1], [1], [0, 0, 0, 1, 1, 1], [0], [0]>} : vector<2x12x8xf32>, vector<2x12x8xf32>, vector<2x12x12xf32> -> vector<2x12x12xf32>
    "tpu.trace_stop"() : () -> ()
    %cst_27 = arith.constant 0.353553385 : f32
    %78 = vector.broadcast %cst_27 : f32 to vector<2x12x12xf32>
    %79 = arith.mulf %77, %78 : vector<2x12x12xf32>
    %80 = arith.addf %79, %38 : vector<2x12x12xf32>
    %cst_28 = arith.constant dense<0xFF800000> : vector<2x12xf32>
    %81 = vector.multi_reduction <maximumf>, %80, %cst_28 [2] : vector<2x12x12xf32> to vector<2x12xf32>
    %82 = vector.shape_cast %81 : vector<2x12xf32> to vector<2x12x1xf32>
    %83 = vector.broadcast %82 : vector<2x12x1xf32> to vector<2x12x12xf32>
    %84 = arith.subf %80, %83 : vector<2x12x12xf32>
    %85 = math.exp %84 : vector<2x12x12xf32>
    %cst_29 = arith.constant dense<0.000000e+00> : vector<2x12xf32>
    %86 = vector.multi_reduction <add>, %85, %cst_29 [2] : vector<2x12x12xf32> to vector<2x12xf32>
    %87 = vector.shape_cast %86 : vector<2x12xf32> to vector<2x12x1xf32>
    %88 = tpu.reciprocal %87 {approx = true} : vector<2x12x1xf32> -> vector<2x12x1xf32>
    %89 = vector.broadcast %88 : vector<2x12x1xf32> to vector<2x12x12xf32>
    %90 = arith.mulf %85, %89 : vector<2x12x12xf32>
    %91 = vector.extract_strided_slice %24 {offsets = [0, 0, 16], sizes = [2, 12, 8], strides = [1, 1, 1]} : vector<2x12x32xf32> to vector<2x12x8xf32>
    "tpu.trace_start"() <{level = 10 : i32, message = "bqk,bkd->bqd"}> : () -> ()
    %cst_30 = arith.constant dense<0.000000e+00> : vector<2x12x8xf32>
    %92 = tpu.matmul %90, %91, %cst_30 {dimension_numbers = #tpu.dot_dimension_numbers<[2], [1], [1], [2], [0, 0, 0, 1, 1, 2], [0], [0]>} : vector<2x12x12xf32>, vector<2x12x8xf32>, vector<2x12x8xf32> -> vector<2x12x8xf32>
    "tpu.trace_stop"() : () -> ()
    %93 = vector.extract_strided_slice %22 {offsets = [0, 0, 24], sizes = [2, 12, 8], strides = [1, 1, 1]} : vector<2x12x32xf32> to vector<2x12x8xf32>
    %94 = vector.extract_strided_slice %23 {offsets = [0, 0, 24], sizes = [2, 12, 8], strides = [1, 1, 1]} : vector<2x12x32xf32> to vector<2x12x8xf32>
    "tpu.trace_start"() <{level = 10 : i32, message = "bqd,bkd->bqk"}> : () -> ()
    %cst_31 = arith.constant dense<0.000000e+00> : vector<2x12x12xf32>
    %95 = tpu.matmul %93, %94, %cst_31 {dimension_numbers = #tpu.dot_dimension_numbers<[2], [2], [1], [1], [0, 0, 0, 1, 1, 1], [0], [0]>} : vector<2x12x8xf32>, vector<2x12x8xf32>, vector<2x12x12xf32> -> vector<2x12x12xf32>
    "tpu.trace_stop"() : () -> ()
    %cst_32 = arith.constant 0.353553385 : f32
    %96 = vector.broadcast %cst_32 : f32 to vector<2x12x12xf32>
    %97 = arith.mulf %95, %96 : vector<2x12x12xf32>
    %98 = arith.addf %97, %38 : vector<2x12x12xf32>
    %cst_33 = arith.constant dense<0xFF800000> : vector<2x12xf32>
    %99 = vector.multi_reduction <maximumf>, %98, %cst_33 [2] : vector<2x12x12xf32> to vector<2x12xf32>
    %100 = vector.shape_cast %99 : vector<2x12xf32> to vector<2x12x1xf32>
    %101 = vector.broadcast %100 : vector<2x12x1xf32> to vector<2x12x12xf32>
    %102 = arith.subf %98, %101 : vector<2x12x12xf32>
    %103 = math.exp %102 : vector<2x12x12xf32>
    %cst_34 = arith.constant dense<0.000000e+00> : vector<2x12xf32>
    %104 = vector.multi_reduction <add>, %103, %cst_34 [2] : vector<2x12x12xf32> to vector<2x12xf32>
    %105 = vector.shape_cast %104 : vector<2x12xf32> to vector<2x12x1xf32>
    %106 = tpu.reciprocal %105 {approx = true} : vector<2x12x1xf32> -> vector<2x12x1xf32>
    %107 = vector.broadcast %106 : vector<2x12x1xf32> to vector<2x12x12xf32>
    %108 = arith.mulf %103, %107 : vector<2x12x12xf32>
    %109 = vector.extract_strided_slice %24 {offsets = [0, 0, 24], sizes = [2, 12, 8], strides = [1, 1, 1]} : vector<2x12x32xf32> to vector<2x12x8xf32>
    "tpu.trace_start"() <{level = 10 : i32, message = "bqk,bkd->bqd"}> : () -> ()
    %cst_35 = arith.constant dense<0.000000e+00> : vector<2x12x8xf32>
    %110 = tpu.matmul %108, %109, %cst_35 {dimension_numbers = #tpu.dot_dimension_numbers<[2], [1], [1], [2], [0, 0, 0, 1, 1, 2], [0], [0]>} : vector<2x12x12xf32>, vector<2x12x8xf32>, vector<2x12x8xf32> -> vector<2x12x8xf32>
    "tpu.trace_stop"() : () -> ()
    %111 = tpu.concatenate %56, %74, %92, %110 in 2 : vector<2x12x8xf32>, vector<2x12x8xf32>, vector<2x12x8xf32>, vector<2x12x8xf32> -> vector<2x12x32xf32>
    %c0_36 = arith.constant 0 : index
    %c0_37 = arith.constant 0 : index
    %112 = vector.load %arg5[%c0_36, %c0_37] : memref<32x32xf32, #tpu.memory_space<vmem>>, vector<32x32xf32>
    %c0_38 = arith.constant 0 : index
    %c0_39 = arith.constant 0 : index
    %113 = vector.load %arg6[%c0_38, %c0_39] : memref<1x32xf32, #tpu.memory_space<vmem>>, vector<1x32xf32>
    %114 = vector.shape_cast %111 : vector<2x12x32xf32> to vector<24x32xf32>
    %cst_40 = arith.constant dense<0.000000e+00> : vector<24x32xf32>
    %115 = tpu.matmul %114, %112, %cst_40 {dimension_numbers = #tpu.dot_dimension_numbers<[1], [0], [0], [1], [0, 0, 1, 1], [], []>} : vector<24x32xf32>, vector<32x32xf32>, vector<24x32xf32> -> vector<24x32xf32>
    %116 = vector.broadcast %113 : vector<1x32xf32> to vector<24x32xf32>
    %117 = arith.addf %115, %116 : vector<24x32xf32>
    %118 = vector.shape_cast %117 : vector<24x32xf32> to vector<2x12x32xf32>
    %119 = arith.addf %0, %118 : vector<2x12x32xf32>
    %c0_41 = arith.constant 0 : index
    %c0_42 = arith.constant 0 : index
    %120 = vector.load %arg7[%c0_41, %c0_42] : memref<1x32xf32, #tpu.memory_space<vmem>>, vector<1x32xf32>
    %121 = arith.mulf %119, %119 : vector<2x12x32xf32>
    %cst_43 = arith.constant dense<0.000000e+00> : vector<2x12xf32>
    %122 = vector.multi_reduction <add>, %121, %cst_43 [2] : vector<2x12x32xf32> to vector<2x12xf32>
    %123 = vector.shape_cast %122 : vector<2x12xf32> to vector<2x12x1xf32>
    %cst_44 = arith.constant 3.200000e+01 : f32
    %124 = vector.broadcast %cst_44 : f32 to vector<2x12x1xf32>
    %125 = arith.divf %123, %124 : vector<2x12x1xf32>
    %cst_45 = arith.constant 9.99999997E-7 : f32
    %126 = vector.broadcast %cst_45 : f32 to vector<2x12x1xf32>
    %127 = arith.addf %125, %126 : vector<2x12x1xf32>
    %128 = math.rsqrt %127 : vector<2x12x1xf32>
    %129 = vector.broadcast %128 : vector<2x12x1xf32> to vector<2x12x32xf32>
    %130 = arith.mulf %119, %129 : vector<2x12x32xf32>
    %131 = vector.shape_cast %120 : vector<1x32xf32> to vector<1x1x32xf32>
    %132 = vector.broadcast %131 : vector<1x1x32xf32> to vector<2x12x32xf32>
    %133 = arith.mulf %130, %132 : vector<2x12x32xf32>
    %c0_46 = arith.constant 0 : index
    %c0_47 = arith.constant 0 : index
    %134 = vector.load %arg8[%c0_46, %c0_47] : memref<32x256xf32, #tpu.memory_space<vmem>>, vector<32x256xf32>
    %135 = vector.shape_cast %133 : vector<2x12x32xf32> to vector<24x32xf32>
    %cst_48 = arith.constant dense<0.000000e+00> : vector<24x256xf32>
    %136 = tpu.matmul %135, %134, %cst_48 {dimension_numbers = #tpu.dot_dimension_numbers<[1], [0], [0], [1], [0, 0, 1, 1], [], []>} : vector<24x32xf32>, vector<32x256xf32>, vector<24x256xf32> -> vector<24x256xf32>
    %137 = vector.shape_cast %136 : vector<24x256xf32> to vector<2x12x256xf32>
    %138 = vector.extract_strided_slice %137 {offsets = [0, 0, 0], sizes = [2, 12, 128], strides = [1, 1, 1]} : vector<2x12x256xf32> to vector<2x12x128xf32>
    %139 = vector.extract_strided_slice %137 {offsets = [0, 0, 128], sizes = [2, 12, 128], strides = [1, 1, 1]} : vector<2x12x256xf32> to vector<2x12x128xf32>
    %140 = arith.negf %138 : vector<2x12x128xf32>
    %141 = math.exp %140 : vector<2x12x128xf32>
    %cst_49 = arith.constant 1.000000e+00 : f32
    %142 = vector.broadcast %cst_49 : f32 to vector<2x12x128xf32>
    %143 = arith.addf %142, %141 : vector<2x12x128xf32>
    %144 = arith.divf %142, %143 : vector<2x12x128xf32>
    %145 = arith.mulf %138, %144 : vector<2x12x128xf32>
    %146 = arith.mulf %145, %139 : vector<2x12x128xf32>
    %c0_50 = arith.constant 0 : index
    %c0_51 = arith.constant 0 : index
    %147 = vector.load %arg9[%c0_50, %c0_51] : memref<128x32xf32, #tpu.memory_space<vmem>>, vector<128x32xf32>
    %148 = vector.shape_cast %146 : vector<2x12x128xf32> to vector<24x128xf32>
    %cst_52 = arith.constant dense<0.000000e+00> : vector<24x32xf32>
    %149 = tpu.matmul %148, %147, %cst_52 {dimension_numbers = #tpu.dot_dimension_numbers<[1], [0], [0], [1], [0, 0, 1, 1], [], []>} : vector<24x128xf32>, vector<128x32xf32>, vector<24x32xf32> -> vector<24x32xf32>
    %150 = vector.shape_cast %149 : vector<24x32xf32> to vector<2x12x32xf32>
    %151 = arith.addf %119, %150 : vector<2x12x32xf32>
    %c0_53 = arith.constant 0 : index
    %c0_54 = arith.constant 0 : index
    %c0_55 = arith.constant 0 : index
    %152 = vector.load %arg10[%c0_53, %c0_54, %c0_55] : memref<2x12x32xf32, #tpu.memory_space<vmem>>, vector<2x12x32xf32>
    tpu.vector_store %arg10[%c0_53, %c0_54, %c0_55], %151 {strides = array<i32>} : memref<2x12x32xf32, #tpu.memory_space<vmem>>, vector<2x12x32xf32>,
    return
  }
}

</mosaic_0001>

<bundles_post_ra>
// kernel: emu_forward.9
= control target key start
LH: loop header
LB: loop body
LE: loop exit
PB: predicated region body
PF: predicated region fallthrough
CT: control target
= control target key end

     0   :  { %v162_v0 = vmov 0.0   ;;  %vm51_vm0 = vcmask 523264   ;;  %vm146_vm1 = vcmask 1040384   ;;  %vm149_vm2 = vcmask 258048   ;;  %s310_s1 = inlined_call_operand.vmem [shape: f32[192,32], index: 1, kind: input, shape index: {}]   ;;  %s311_s0 = inlined_call_operand.vmem [shape: f32[2,4,192], index: 0, kind: input, shape index: {}]   ;;  %s312_s2 = inlined_call_operand.vmem [shape: f32[1,32], index: 2, kind: input, shape index: {}]   ;;  %s313_s4 = inlined_call_operand.vmem [shape: f32[4,32], index: 4, kind: input, shape index: {}]   ;;  %s314_s3 = inlined_call_operand.vmem [shape: f32[1,32], index: 3, kind: input, shape index: {}]   ;;  %s315_s5 = inlined_call_operand.vmem [shape: f32[2,5,32], index: 5, kind: output, shape index: {}]  }
   0x1   :  { %54 = vmatprep.subr.mxu0 %v162_v0  ;;  %v37_v1 = vld [vmem:[%s310_s1 + $0x78] sm:$0xff]  ;;  %v36_v2 = vld [vmem:[%s310_s1 + $0x70] sm:$0xff]  ;;  %v35_v3 = vld [vmem:[%s310_s1 + $0x68] sm:$0xff] }
   0x2   :  { %55 = vmatpush1.msra.mxu0 %v37_v1  ;;  %v34_v4 = vld [vmem:[%s310_s1 + $0x60] sm:$0xff]  ;;  %v33_v5 = vld [vmem:[%s310_s1 + $0x58] sm:$0xff]  ;;  %v32_v6 = vld [vmem:[%s310_s1 + $0x50] sm:$0xff] }
   0x3   :  { %56 = vmatprep.subr.mxu0 %v162_v0  ;;  %v161_v7 = vld [vmem:[%s311_s0 + $0x4] ss:$8 sps:$4 sm:$0xff]   ;;  %v29_v10 = vld [vmem:[%s310_s1 + $0x38] sm:$0xff]  ;;  %v28_v11 = vld [vmem:[%s310_s1 + $0x30] sm:$0xff] }
   0x4   :  { %57 = vmatpush1.msra.mxu0 %v36_v2  ;;  %v31_v8 = vld [vmem:[%s310_s1 + $0x48] sm:$0xff]  ;;  %156 = vmatprep.mubr.msk.f32.mxu0 %vm51_vm0, %v161_v7  ;;  %v30_v9 = vld [vmem:[%s310_s1 + $0x40] sm:$0xff]  ;;  %v25_v14 = vld [vmem:[%s310_s1 + $0x18] sm:$0xff] }
   0x5   :  { %58 = vmatprep.subr.mxu0 %v162_v0  ;;  %v27_v12 = vld [vmem:[%s310_s1 + $0x28] sm:$0xff]  ;;  %v26_v13 = vld [vmem:[%s310_s1 + $0x20] sm:$0xff]  ;;  %v24_v15 = vld [vmem:[%s310_s1 + $0x10] sm:$0xff] }
   0x6   :  { %59 = vmatpush1.msra.mxu0 %v35_v3  ;;  %v23_v16 = vld [vmem:[%s310_s1 + $0x8] sm:$0xff]  ;;  %v22_v17 = vld [vmem:[%s310_s1] sm:$0xff]  ;;  %v45_v18 = vld [vmem:[%s310_s1 + $0xb8] sm:$0xff] }
   0x7   :  { %60 = vmatprep.subr.mxu0 %v162_v0  ;;  %v44_v19 = vld [vmem:[%s310_s1 + $0xb0] sm:$0xff]  ;;  %v43_v20 = vld [vmem:[%s310_s1 + $0xa8] sm:$0xff]  ;;  %v42_v21 = vld [vmem:[%s310_s1 + $0xa0] sm:$0xff] }
   0x8   :  { %61 = vmatpush1.msra.mxu0 %v34_v4  ;;  %v41_v22 = vld [vmem:[%s310_s1 + $0x98] sm:$0xff]  ;;  %v40_v23 = vld [vmem:[%s310_s1 + $0x90] sm:$0xff]  ;;  %v39_v24 = vld [vmem:[%s310_s1 + $0x88] sm:$0xff] }
   0x9   :  { %62 = vmatprep.subr.mxu0 %v162_v0  ;;  %v38_v25 = vld [vmem:[%s310_s1 + $0x80] sm:$0xff] }
   0xa   :  { %63 = vmatpush1.msra.mxu0 %v33_v5  ;;  %v159_v26 = vld [vmem:[%s311_s0] ss:$8 sps:$4 sm:$0xff]  }
   0xb   :  { %64 = vmatprep.subr.mxu0 %v162_v0  ;;  %v157_v27 = vld [vmem:[%s312_s2] ss:$0 sm:$0xff] }
   0xc   :  { %65 = vmatpush1.msra.mxu0 %v32_v6  ;;  %v136_v29 = vld [vmem:[%s313_s4] sm:$0xf] }
   0xd   :  { %66 = vmatprep.subr.mxu0 %v162_v0  ;;  %v139_v35 = vld [vmem:[%s314_s3] sm:$0x1] }
   0xe   :  { %67 = vmatpush1.msra.mxu0 %v31_v8 }
   0xf   :  { %68 = vmatprep.subr.mxu0 %v162_v0 }
  0x10   :  { %69 = vmatpush1.msra.mxu0 %v30_v9 }
  0x11   :  { %70 = vmatprep.subr.mxu0 %v162_v0 }
  0x12   :  { %71 = vmatpush1.msra.mxu0 %v29_v10 }
  0x13   :  { %72 = vmatprep.subr.mxu0 %v162_v0 }
  0x14   :  { %73 = vmatpush1.msra.mxu0 %v28_v11 }
  0x15   :  { %74 = vmatprep.subr.mxu0 %v162_v0 }
  0x16   :  { %75 = vmatpush1.msra.mxu0 %v27_v12 }
  0x17   :  { %76 = vmatprep.subr.mxu0 %v162_v0 }
  0x18   :  { %77 = vmatpush1.msra.mxu0 %v26_v13 }
  0x19   :  { %78 = vmatprep.subr.mxu0 %v162_v0 }
  0x1a   :  { %79 = vmatpush1.msra.mxu0 %v25_v14 }
  0x1b   :  { %80 = vmatprep.subr.mxu0 %v162_v0 }
  0x1c   :  { %81 = vmatpush1.msra.mxu0 %v24_v15 }
  0x1d   :  { %82 = vmatprep.subr.mxu0 %v162_v0 }
  0x1e   :  { %83 = vmatpush1.msra.mxu0 %v23_v16 }
  0x1f   :  { %84 = vmatprep.subr.mxu0 %v162_v0 }
  0x20   :  { %85 = vmatpush1.msra.mxu0 %v22_v17 }
  0x21   :  { %102 = vmatprep.subr.mxu0 %v162_v0 }
  0x22   :  { %103 = vmatpush2.msra.mxu0 %v45_v18 }
  0x23   :  { %104 = vmatprep.subr.mxu0 %v162_v0 }
  0x24   :  { %105 = vmatpush2.msra.mxu0 %v44_v19 }
  0x25   :  { %106 = vmatprep.subr.mxu0 %v162_v0 }
  0x26   :  { %107 = vmatpush2.msra.mxu0 %v43_v20 }
  0x27   :  { %108 = vmatprep.subr.mxu0 %v162_v0 }
  0x28   :  { %109 = vmatpush2.msra.mxu0 %v42_v21 }
  0x29   :  { %110 = vmatprep.subr.mxu0 %v162_v0 }
  0x2a   :  { %111 = vmatpush2.msra.mxu0 %v41_v22 }
  0x2b   :  { %112 = vmatprep.subr.mxu0 %v162_v0 }
  0x2c   :  { %113 = vmatpush2.msra.mxu0 %v40_v23 }
  0x2d   :  { %114 = vmatprep.subr.mxu0 %v162_v0 }
  0x2e   :  { %115 = vmatpush2.msra.mxu0 %v39_v24 }
  0x2f   :  { %116 = vmatprep.subr.mxu0 %v162_v0 }
  0x30   :  { %117 = vmatpush2.msra.mxu0 %v38_v25 }
  0x31   :  { %119 = vmatmul.mubr.f32.vlgmr.msra.gmra.mxu0 %v159_v26 }
  0xf1   :  { %v120_v28 = vpop.f32.mrf.mxu0 }
  0xf2   :  { %v125_v30 = vcombine.high %v120_v28, %v120_v28  ;;  %v134_v31 = vadd.f32 %v157_v27, %v120_v28 }
  0xf3   :  { %v122_v32 = vpop.f32.mrf.mxu0 }
  0xf4   :  { %v135_v33 = vadd.f32 %v157_v27, %v125_v30  ;;  %v137_v34 = vadd.f32 %v136_v29, %v134_v31 }
  0xf6   :  { %v138_v36 = vadd.f32 %v136_v29, %v135_v33  ;;  %v142_v37 = vrot.slane %v137_v34, 7 }
  0xf8   :  { %v143_v38 = vrot.slane %v138_v36, 7  ;;  %v147_v39 = vsel %vm146_vm1, %v139_v35, %v142_v37 }
  0xf9   :  { %150 = vst.msk [vmem:[%s315_s5] sm:$0x1f] %vm149_vm2, %v147_v39 }
  0xfa   :  { %v148_v40 = vsel %vm146_vm1, %v139_v35, %v143_v38 }
  0xfb   :  { %151 = vst.msk [vmem:[%s315_s5 + $0x8] sm:$0x1f] %vm149_vm2, %v148_v40 }

// kernel: emu_forward.12
= control target key start
LH: loop header
LB: loop body
LE: loop exit
PB: predicated region body
PF: predicated region fallthrough
CT: control target
= control target key end

     0   :  { %vm18_vm0 = vcmask 258048   ;;  %s118_s0 = inlined_call_operand.vmem [shape: f32[2,5,32], index: 0, kind: input, shape index: {}]   ;;  %s119_s1 = inlined_call_operand.vmem [shape: f32[1,32], index: 1, kind: input, shape index: {}]   ;;  %s120_s2 = inlined_call_operand.vmem [shape: f32[1,32], index: 2, kind: input, shape index: {}]   ;;  %s121_s3 = inlined_call_operand.vmem [shape: f32[2,5,32], index: 3, kind: output, shape index: {}]  }
   0x1   :  { %v14_v0 = vld [vmem:[%s118_s0] sm:$0x1f]  ;;  %v15_v1 = vld [vmem:[%s118_s0 + $0x8] sm:$0x1f] }
   0x2   :  { %v19_v2 = vsel %vm18_vm0, %v14_v0, 0.0  ;;  %v22_v3 = vsel %vm18_vm0, %v15_v1, 0.0  ;;  %v68_v21 = vld [vmem:[%s119_s1] ss:$0 sm:$0xff] }
   0x3   :  { %20 = vadd.xlane.f32.xlu0 %v19_v2  ;;  %v69_v23 = vld [vmem:[%s120_s2] ss:$0 sm:$0xff] }
   0x7   :  { %23 = vadd.xlane.f32.xlu0 %v22_v3 }
  0x8c   :  { %v21_v4 = vpop.xlane.xlu0 %20 }
  0x8d   :  { %v26_v5 = vmul.f32 0.03125, %v21_v4 }
  0x8f   :  { %v28_v6 = vsub.f32 %v14_v0, %v26_v5 }
  0x90   :  { %v24_v7 = vpop.xlane.xlu0 %23 }
  0x91   :  { %v27_v8 = vmul.f32 0.03125, %v24_v7  ;;  %v30_v9 = vmul.f32 %v28_v6, %v28_v6 }
  0x93   :  { %v29_v10 = vsub.f32 %v15_v1, %v27_v8  ;;  %v32_v11 = vsel %vm18_vm0, %v30_v9, 0.0 }
  0x94   :  { %33 = vadd.xlane.f32.xlu1 %v32_v11 }
  0x95   :  { %v31_v12 = vmul.f32 %v29_v10, %v29_v10 }
  0x97   :  { %v35_v13 = vsel %vm18_vm0, %v31_v12, 0.0 }
  0x98   :  { %36 = vadd.xlane.f32.xlu1 %v35_v13 }
 0x11d   :  { %v34_v14 = vpop.xlane.xlu1 %33 }
 0x11e   :  { %v38_v15 = vmul.f32 0.03125, %v34_v14 }
 0x120   :  { %v40_v16 = vadd.f32 1e-06, %v38_v15 }
 0x121   :  { %v37_v17 = vpop.xlane.xlu1 %36 }
 0x122   :  { %70 = vrsqrt.f32 %v40_v16  ;;  %v39_v18 = vmul.f32 0.03125, %v37_v17 }
 0x124   :  { %v41_v19 = vadd.f32 1e-06, %v39_v18 }
 0x126   :  { %72 = vrsqrt.f32 %v41_v19 }
 0x12f   :  { %v71_v20 = vpop.eup %70 }
 0x130   :  { %v44_v22 = vmul.f32 %v71_v20, %v28_v6 }
 0x132   :  { %v52_v24 = vmul.f32 %v68_v21, %v44_v22 }
 0x133   :  { %v73_v25 = vpop.eup %72 }
 0x134   :  { %v60_v26 = vadd.f32 %v69_v23, %v52_v24  ;;  %v45_v27 = vmul.f32 %v73_v25, %v29_v10 }
 0x136   :  { %62 = vst.msk [vmem:[%s121_s3] sm:$0x1f] %vm18_vm0, %v60_v26  ;;  %v53_v28 = vmul.f32 %v68_v21, %v45_v27 }
 0x138   :  { %v61_v29 = vadd.f32 %v69_v23, %v53_v28 }
 0x13a   :  { %63 = vst.msk [vmem:[%s121_s3 + $0x8] sm:$0x1f] %vm18_vm0, %v61_v29 }

// kernel: emu_forward.14
= control target key start
LH: loop header
LB: loop body
LE: loop exit
PB: predicated region body
PF: predicated region fallthrough
CT: control target
= control target key end

     0   :  { %vm24_vm0 = vcmask 257024   ;;  %v190_v14 = vmov 0.0   ;;  %vm191_vm1 = vmmov 0   ;;  %vm82_vm2 = vcmask 261120   ;;  %s261_s0 = inlined_call_operand.vmem [shape: f32[2,4,32], index: 0, kind: input, shape index: {}]   ;;  %s262_s3 = inlined_call_operand.vmem [shape: f32[32,32], index: 3, kind: input, shape index: {}]   ;;  %s263_s1 = inlined_call_operand.vmem [shape: f32[1,32], index: 1, kind: input, shape index: {}]   ;;  %s264_s2 = inlined_call_operand.vmem [shape: f32[1,32], index: 2, kind: input, shape index: {}]   ;;  %s265_s4 = inlined_call_operand.vmem [shape: f32[1,32], index: 4, kind: input, shape index: {}]   ;;  %s266_s5 = inlined_call_operand.vmem [shape: f32[2,4,32], index: 5, kind: output, shape index: {}]  }
   0x1   :  { %v20_v0 = vld [vmem:[%s261_s0] sm:$0xf]  ;;  %v21_v1 = vld [vmem:[%s261_s0 + $0x4] sm:$0xf]  ;;  %173 = vmatprep.subr.mxu0 %v190_v14  ;;  %v71_v15 = vld [vmem:[%s262_s3 + $0x18] sm:$0xff]  ;;  %181 = vmatprep.mubr.msk.f32.mxu0 %vm191_vm1, %v190_v14 }
   0x2   :  { %v25_v2 = vsel %vm24_vm0, %v20_v0, 0.0  ;;  %v28_v3 = vsel %vm24_vm0, %v21_v1, 0.0  ;;  %v70_v16 = vld [vmem:[%s262_s3 + $0x10] sm:$0xff]  ;;  %174 = vmatpush3.msra.mxu0 %v71_v15  ;;  %v69_v17 = vld [vmem:[%s262_s3 + $0x8] sm:$0xff]  ;;  %v68_v18 = vld [vmem:[%s262_s3] sm:$0xff] }
   0x3   :  { %26 = vadd.xlane.f32.xlu0 %v25_v2  ;;  %175 = vmatprep.subr.mxu0 %v190_v14  ;;  %v164_v27 = vld [vmem:[%s263_s1] ss:$0 sm:$0xff] }
   0x4   :  { %176 = vmatpush3.msra.mxu0 %v70_v16  ;;  %v165_v31 = vld [vmem:[%s264_s2] ss:$0 sm:$0xff] }
   0x5   :  { %177 = vmatprep.subr.mxu0 %v190_v14  ;;  %v166_v36 = vld [vmem:[%s265_s4] ss:$0 sm:$0xff] }
   0x6   :  { %178 = vmatpush3.msra.mxu0 %v69_v17 }
   0x7   :  { %29 = vadd.xlane.f32.xlu0 %v28_v3  ;;  %179 = vmatprep.subr.mxu0 %v190_v14 }
   0x8   :  { %180 = vmatpush3.msra.mxu0 %v68_v18 }
  0x8c   :  { %v27_v4 = vpop.xlane.xlu0 %26 }
  0x8d   :  { %v32_v5 = vmul.f32 0.03125, %v27_v4 }
  0x8f   :  { %v34_v6 = vsub.f32 %v20_v0, %v32_v5 }
  0x90   :  { %v30_v7 = vpop.xlane.xlu0 %29 }
  0x91   :  { %v33_v8 = vmul.f32 0.03125, %v30_v7  ;;  %v36_v9 = vmul.f32 %v34_v6, %v34_v6 }
  0x93   :  { %v35_v10 = vsub.f32 %v21_v1, %v33_v8  ;;  %v38_v11 = vsel %vm24_vm0, %v36_v9, 0.0 }
  0x94   :  { %39 = vadd.xlane.f32.xlu1 %v38_v11 }
  0x95   :  { %v37_v12 = vmul.f32 %v35_v10, %v35_v10 }
  0x97   :  { %v41_v13 = vsel %vm24_vm0, %v37_v12, 0.0 }
  0x98   :  { %42 = vadd.xlane.f32.xlu1 %v41_v13 }
 0x11d   :  { %v40_v19 = vpop.xlane.xlu1 %39 }
 0x11e   :  { %v44_v20 = vmul.f32 0.03125, %v40_v19 }
 0x120   :  { %v46_v21 = vadd.f32 1e-06, %v44_v20 }
 0x121   :  { %v43_v22 = vpop.xlane.xlu1 %42 }
 0x122   :  { %186 = vrsqrt.f32 %v46_v21  ;;  %v45_v23 = vmul.f32 0.03125, %v43_v22 }
 0x124   :  { %v47_v24 = vadd.f32 1e-06, %v45_v23 }
 0x126   :  { %188 = vrsqrt.f32 %v47_v24 }
 0x12f   :  { %v187_v25 = vpop.eup %186 }
 0x130   :  { %v50_v26 = vmul.f32 %v187_v25, %v34_v6 }
 0x132   :  { %v58_v30 = vmul.f32 %v164_v27, %v50_v26 }
 0x133   :  { %v189_v28 = vpop.eup %188 }
 0x134   :  { %v51_v29 = vmul.f32 %v189_v28, %v35_v10  ;;  %v66_v33 = vadd.f32 %v165_v31, %v58_v30 }
 0x136   :  { %v59_v32 = vmul.f32 %v164_v27, %v51_v29 }
 0x138   :  { %v67_v34 = vadd.f32 %v165_v31, %v59_v32 }
 0x13a   :  { %v81_v35 = vcombine.low %v66_v33, %v67_v34 }
 0x13c   :  { %182 = vmatmul.mubr.msk.f32.vlgmr.msra.gmra.mxu0 %vm82_vm2, %v81_v35 }
 0x1fc   :  { %v151_v37 = vpop.f32.mrf.mxu0 }
 0x1fd   :  { %v152_v38 = vadd.f32 %v166_v36, %v151_v37 }
 0x1fe   :  { %v183_v39 = vpop.f32.mrf.mxu0 }
 0x1ff   :  { %v156_v40 = vcombine.high %v152_v38, %v152_v38  ;;  %158 = vst.msk [vmem:[%s266_s5] sm:$0xf] %vm24_vm0, %v152_v38 }
 0x201   :  { %159 = vst.msk [vmem:[%s266_s5 + $0x4] sm:$0xf] %vm24_vm0, %v156_v40 }

// kernel: emu_forward.10
= control target key start
LH: loop header
LB: loop body
LE: loop exit
PB: predicated region body
PF: predicated region fallthrough
CT: control target
= control target key end

     0   :  { %vm48_vm0 = vcmask 258048   ;;  %v3366_v24 = vmov 1966171168   ;;  %v103_v26 = vlaneseq  ;;  %vm247_vm1 = vcmask 261120   ;;  %s3370_s22 = smov 64   ;;  %s3371_s23 = smov 88   ;;  %s3955_s0 = inlined_call_operand.vmem [shape: f32[2,5,32], index: 0, kind: input, shape index: {}]   ;;  %s3956_s3 = inlined_call_operand.vmem [shape: f32[32,96], index: 3, kind: input, shape index: {}]   ;;  %s3957_s1 = inlined_call_operand.vmem [shape: f32[1,32], index: 1, kind: input, shape index: {}]   ;;  %s3958_s2 = inlined_call_operand.vmem [shape: f32[1,32], index: 2, kind: input, shape index: {}]   ;;  %s3959_s4 = inlined_call_operand.vmem [shape: f32[1,96], index: 4, kind: input, shape index: {}]   ;;  %s3960_s5 = inlined_call_operand.vmem [shape: f32[32,32], index: 5, kind: input, shape index: {}]   ;;  %s3961_s6 = inlined_call_operand.vmem [shape: f32[1,32], index: 6, kind: input, shape index: {}]   ;;  %s3962_s9 = inlined_call_operand.vmem [shape: f32[32,128], index: 9, kind: input, shape index: {}]   ;;  %s3963_s7 = inlined_call_operand.vmem [shape: f32[1,32], index: 7, kind: input, shape index: {}]   ;;  %s3964_s8 = inlined_call_operand.vmem [shape: f32[1,32], index: 8, kind: input, shape index: {}]   ;;  %s3965_s11 = inlined_call_operand.vmem [shape: f32[128,32], index: 11, kind: input, shape index: {}]   ;;  %s3966_s10 = inlined_call_operand.vmem [shape: f32[1,128], index: 10, kind: input, shape index: {}]   ;;  %s3967_s12 = inlined_call_operand.vmem [shape: f32[1,32], index: 12, kind: input, shape index: {}]   ;;  %s3968_s13 = inlined_call_operand.vmem [shape: f32[2,5,32], index: 13, kind: output, shape index: {}]  }
   0x1   :  { %v3456_v0 = vld [vmem:[%s3955_s0] sm:$0x1f]  ;;  %v3461_v1 = vld [vmem:[%s3955_s0 + $0x8] sm:$0x1f]  ;;  %v95_v14 = vld [vmem:[%s3956_s3 + $0x18] sm:$0xff]  ;;  %v101_v25 = vunpack.c.l.s4 %v3366_v24  ;;  %vm3368_vm2 = vmmov 0  }
   0x2   :  { %v49_v2 = vsel %vm48_vm0, %v3456_v0, 0.0  ;;  %v52_v3 = vsel %vm48_vm0, %v3461_v1, 0.0  ;;  %v94_v15 = vld [vmem:[%s3956_s3 + $0x10] sm:$0xff]  ;;  %3141 = vmatprep.subr.mxu1 %v95_v14  ;;  %v93_v16 = vld [vmem:[%s3956_s3 + $0x8] sm:$0xff]  ;;  %v92_v17 = vld [vmem:[%s3956_s3] sm:$0xff]  ;;  %v104_v28 = vshrl.u32 %v103_v26, 7 }
   0x3   :  { %50 = vadd.xlane.f32.xlu0 %v49_v2  ;;  %3142 = vmatpush3.msra.mxu1 %v95_v14  ;;  %v102_v27 = vunpack.c.0.s8 %v101_v25  ;;  %v3021_v30 = vld [vmem:[%s3957_s1] ss:$0 sm:$0xff]  ;;  %vm441_vm3 = vcmask 64512   ;;  %vm633_vm4 = vcmask 36864   ;;  %vm662_vm5 = vcmask 1044480   ;;  %s3372_s24 = smov 120  }
   0x4   :  { %3143 = vmatprep.subr.mxu1 %v94_v15  ;;  %v3022_v32 = vld [vmem:[%s3958_s2] ss:$0 sm:$0xff]  ;;  %vm658_vm6 = vcmask 39936   ;;  %s3373_s25 = smov 56   ;;  %s3374_s26 = smov 80   ;;  %vm1843_vm7 = vcmask 195584  }
   0x5   :  { %3144 = vmatpush3.msra.mxu1 %v94_v15  ;;  %v3489_v34 = vsub.s32 %v102_v27, %v104_v28  ;;  %s3375_s27 = smov 112   ;;  %s3376_s28 = smov 48   ;;  %vm1840_vm8 = vcmask 130048  }
   0x6   :  { %3145 = vmatprep.subr.mxu1 %v93_v16  ;;  %s3377_s0 = smov 72   ;;  %s3378_s29 = smov 104  }
   0x7   :  { %53 = vadd.xlane.f32.xlu0 %v52_v3  ;;  %3146 = vmatpush3.msra.mxu1 %v93_v16  ;;  %s3379_s30 = smov 40   ;;  %s3380_s14 = smov 8  }
   0x8   :  { %3147 = vmatprep.subr.mxu1 %v92_v17  ;;  %s3381_s15 = smov 16   ;;  %s3382_s16 = smov 24  }
   0x9   :  { %3148 = vmatpush3.msra.mxu1 %v92_v17 }
  0x8c   :  { %v51_v4 = vpop.xlane.xlu0 %50 }
  0x8d   :  { %v56_v5 = vmul.f32 0.03125, %v51_v4 }
  0x8f   :  { %v58_v6 = vsub.f32 %v3456_v0, %v56_v5 }
  0x90   :  { %v54_v7 = vpop.xlane.xlu0 %53 }
  0x91   :  { %v57_v8 = vmul.f32 0.03125, %v54_v7  ;;  %v60_v9 = vmul.f32 %v58_v6, %v58_v6 }
  0x93   :  { %v59_v10 = vsub.f32 %v3461_v1, %v57_v8  ;;  %v62_v11 = vsel %vm48_vm0, %v60_v9, 0.0 }
  0x94   :  { %63 = vadd.xlane.f32.xlu1 %v62_v11  ;;  %v3023_v11 = vld [vmem:[%s3959_s4] ss:$0 sm:$0xff]  ;;  %s3369_s4 = smov 96  }
  0x95   :  { %v61_v12 = vmul.f32 %v59_v10, %v59_v10 }
  0x97   :  { %v65_v13 = vsel %vm48_vm0, %v61_v12, 0.0 }
  0x98   :  { %66 = vadd.xlane.f32.xlu1 %v65_v13 }
 0x11d   :  { %v64_v18 = vpop.xlane.xlu1 %63 }
 0x11e   :  { %v68_v19 = vmul.f32 0.03125, %v64_v18 }
 0x120   :  { %v70_v20 = vadd.f32 1e-06, %v68_v19 }
 0x121   :  { %v67_v21 = vpop.xlane.xlu1 %66 }
 0x122   :  { %3306 = vrsqrt.f32 %v70_v20  ;;  %v69_v22 = vmul.f32 0.03125, %v67_v21 }
 0x124   :  { %v71_v23 = vadd.f32 1e-06, %v69_v22 }
 0x126   :  { %3308 = vrsqrt.f32 %v71_v23 }
 0x12f   :  { %v3307_v29 = vpop.eup %3306 }
 0x130   :  { %v74_v31 = vmul.f32 %v3307_v29, %v58_v6 }
 0x132   :  { %v82_v33 = vmul.f32 %v3021_v30, %v74_v31 }
 0x133   :  { %v3309_v35 = vpop.eup %3308 }
 0x134   :  { %v75_v36 = vmul.f32 %v3309_v35, %v59_v10  ;;  %v90_v37 = vadd.f32 %v3022_v32, %v82_v33  ;;  %v3367_v10 = vmov 0.0  }
 0x135   :  { %3152 = vmatprep.subr.mxu1 %v3367_v10  ;;  %3162 = vmatprep.subr.mxu0 %v3367_v10 }
 0x136   :  { %v83_v38 = vmul.f32 %v3021_v30, %v75_v36  ;;  %v99_v39 = vcombine.high %v90_v37, %v90_v37  ;;  %v106_v40 = vrot.slane %v90_v37, %v3489_v34  ;;  %3164 = vmatprep.mubr.msk.f32.mxu0 %vm3368_vm2, %v3367_v10 }
 0x138   :  { %v91_v41 = vadd.f32 %v3022_v32, %v83_v38  ;;  %v113_v42 = vrot.slane %v99_v39, %v3489_v34  ;;  %v114_v43 = vcombine.high %v106_v40, %v106_v40  ;;  %v121_v44 = vrot.slane %v106_v40, %v3489_v34 }
 0x13a   :  { %v135_v45 = vrot.slane %v114_v43, %v3489_v34  ;;  %v145_v46 = vrot.slane %v91_v41, %v3489_v34  ;;  %v138_v47 = vcombine.high %v91_v41, %v91_v41  ;;  %v128_v48 = vrot.slane %v113_v42, %v3489_v34 }
 0x13c   :  { %v153_v49 = vcombine.high %v145_v46, %v145_v46  ;;  %v160_v50 = vrot.slane %v145_v46, %v3489_v34  ;;  %v183_v51 = vcombine.low %v121_v44, %v135_v45  ;;  %v3024_v52 = vcombine.high %v121_v44, %v135_v45 }
 0x13d   :  { %v152_v53 = vrot.slane %v138_v47, %v3489_v34 }
 0x13e   :  { %v174_v54 = vrot.slane %v153_v49, %v3489_v34  ;;  %v175_v55 = vcombine.high %v160_v50, %v160_v50  ;;  %v185_v56 = vcombine.low %v128_v48, %v160_v50  ;;  %v193_v57 = vrot.slane %v183_v51, %v3489_v34 }
 0x13f   :  { %v200_v58 = vrot.slane %v3024_v52, %v3489_v34  ;;  %v167_v60 = vrot.slane %v152_v53, %v3489_v34 }
 0x140   :  { %v186_v59 = vcombine.low %v174_v54, %v175_v55  ;;  %v176_v61 = vcombine.high %v174_v54, %v174_v54  ;;  %v207_v62 = vrot.slane %v185_v56, %v3489_v34 }
 0x141   :  { %v215_v2 = vcombine.low %v193_v57, %v200_v58 }
 0x142   :  { %v214_v63 = vrot.slane %v186_v59, %v3489_v34  ;;  %v232_v3 = vcombine.low %v176_v61, %v167_v60 }
 0x143   :  { %v223_v6 = vrot.slane %v215_v2, %v3489_v34 }
 0x144   :  { %v216_v4 = vcombine.low %v207_v62, %v214_v63  ;;  %v239_v5 = vrot.slane %v232_v3, %v3489_v34 }
 0x146   :  { %v230_v7 = vrot.slane %v216_v4, %v3489_v34  ;;  %v246_v9 = vrot.slane %v239_v5, %v3489_v34 }
 0x148   :  { %v231_v8 = vcombine.low %v223_v6, %v230_v7 }
 0x14a   :  { %3149 = vmatprep.mubr.msk.f32.mxu1 %vm247_vm1, %v231_v8 }
 0x14b   :  { %3150 = vmatmul.mubr.msk.f32.vlgmr.msra.gmra.mxu1 %vm247_vm1, %v246_v9 }
 0x14c   :  { %3154 = vmatprep.mubr.msk.f32.mxu1 %vm3368_vm2, %v3367_v10 }
 0x20b   :  { %v3151_v12 = vpop.f32.mrf.mxu1 }
 0x20c   :  { %v324_v13 = vadd.f32 %v3151_v12, %v3023_v11 }
 0x20d   :  { %v318_v14 = vpop.f32.mrf.mxu1 }
 0x20e   :  { %v319_v15 = vadd.f32 %v3023_v11, %v318_v14  ;;  %v384_v16 = vrot.slane %v324_v13, %v3489_v34 }
 0x210   :  { %v329_v17 = vcombine.high %v319_v15, %v319_v15  ;;  %v336_v18 = vrot.slane %v319_v15, %v3489_v34  ;;  %v385_v21 = vcombine.high %v384_v16, %v384_v16  ;;  %v392_v29 = vrot.slane %v384_v16, %v3489_v34 }
 0x212   :  { %v343_v19 = vrot.slane %v329_v17, %v3489_v34  ;;  %v344_v20 = vcombine.high %v336_v18, %v336_v18  ;;  %v352_v23 = vrot.slane %v336_v18, %v3489_v34  ;;  %v399_v31 = vrot.slane %v385_v21, %v3489_v34 }
 0x214   :  { %v345_v22 = vcombine.high %v343_v19, %v343_v19  ;;  %v359_v24 = vrot.slane %v343_v19, %v3489_v34  ;;  %v366_v25 = vrot.slane %v344_v20, %v3489_v34  ;;  %v538_v40 = vrot.slane %v399_v31, %v3489_v34 }
 0x216   :  { %v373_v26 = vrot.slane %v345_v22, %v3489_v34  ;;  %v375_v27 = vcombine.high %v359_v24, %v359_v24  ;;  %v400_v28 = vcombine.low %v352_v23, %v366_v25  ;;  %v3027_v30 = vcombine.high %v352_v23, %v366_v25 }
 0x217   :  { %v422_v37 = vrot.slane %v359_v24, %v3489_v34  ;;  %v553_v47 = vrot.slane %v538_v40, %v3489_v34 }
 0x218   :  { %v377_v32 = vcombine.high %v373_v26, %v373_v26  ;;  %v408_v33 = vrot.slane %v400_v28, %v3489_v34  ;;  %v516_v35 = vcombine.low %v373_v26, %v375_v27  ;;  %v415_v36 = vrot.slane %v3027_v30, %v3489_v34 }
 0x219   :  { %v437_v44 = vrot.slane %v422_v37, %v3489_v34 }
 0x21a   :  { %v517_v38 = vcombine.low %v377_v32, %v392_v29  ;;  %v423_v39 = vcombine.low %v408_v33, %v415_v36  ;;  %v524_v41 = vrot.slane %v516_v35, %v3489_v34 }
 0x21c   :  { %v531_v42 = vrot.slane %v517_v38, %v3489_v34  ;;  %v430_v43 = vrot.slane %v423_v39, %v3489_v34 }
 0x21e   :  { %v539_v45 = vcombine.low %v524_v41, %v531_v42  ;;  %v3537_v46 = vcombine.low %v430_v43, %v437_v44 }
 0x220   :  { %v546_v48 = vrot.slane %v539_v45, %v3489_v34  ;;  %439 = vrot.lane.b32.xlu0 %v3537_v46, %s3369_s4 }
 0x222   :  { %v3542_v49 = vcombine.low %v546_v48, %v553_v47 }
 0x224   :  { %555 = vrot.lane.b32.xlu1 %v3542_v49, %s3369_s4 }
 0x292   :  { %v440_v50 = vpop.permute.xlu0 %439 }
 0x293   :  { %3153 = vmatpush3.xpose.msk.msra.mxu1 %vm441_vm3, %v440_v50 }
 0x294   :  { %3157 = vmatprep.subr.mxu1 %v3367_v10 }
 0x296   :  { %v556_v51 = vpop.permute.xlu1 %555  ;;  %3155 = vmatmul.mubr.msk.f32.vlgmr.msra.gmra.mxu1 %vm441_vm3, %v3537_v46 }
 0x297   :  { %3158 = vmatpush3.xpose.msk.msra.mxu1 %vm441_vm3, %v556_v51  ;;  %3159 = vmatprep.mubr.msk.f32.mxu1 %vm3368_vm2, %v3367_v10 }
 0x298   :  { %3167 = vmatprep.subr.mxu1 %v3367_v10 }
 0x29a   :  { %3160 = vmatmul.mubr.msk.f32.vlgmr.msra.gmra.mxu1 %vm441_vm3, %v3542_v49 }
 0x29b   :  { %3169 = vmatprep.mubr.msk.f32.mxu1 %vm3368_vm2, %v3367_v10 }
 0x356   :  { %v512_v52 = vpop.f32.mrf.mxu1 }
 0x357   :  { %v631_v53 = vmul.f32 0.35355338, %v512_v52 }
 0x358   :  { %v3156_v54 = vpop.f32.mrf.mxu1 }
 0x359   :  { %v634_v55 = vsel %vm633_vm4, %v631_v53, -inf }
 0x35a   :  { %635 = vmax.xlane.f32.xlu1 %v634_v55  ;;  %v627_v56 = vpop.f32.mrf.mxu1 }
 0x35b   :  { %v632_v57 = vmul.f32 0.35355338, %v627_v56 }
 0x35c   :  { %v3161_v58 = vpop.f32.mrf.mxu1 }
 0x35d   :  { %v637_v59 = vsel %vm633_vm4, %v632_v57, -inf }
 0x35e   :  { %638 = vmax.xlane.f32.xlu0 %v637_v59 }
 0x36b   :  { %735 = vrot.lane.b32.xlu1 %v3542_v49, %s3370_s22 }
 0x36f   :  { %814 = vrot.lane.b32.xlu1 %v3537_v46, %s3371_s23 }
 0x373   :  { %892 = vrot.lane.b32.xlu1 %v3542_v49, %s3371_s23 }
 0x3e3   :  { %v636_v60 = vpop.xlane.xlu1 %635 }
 0x3e4   :  { %v640_v61 = vsub.f32 %v631_v53, %v636_v60 }
 0x3e6   :  { %v642_v62 = vmul.f32 1.442695, %v640_v61 }
 0x3e7   :  { %v639_v63 = vpop.xlane.xlu0 %638  ;;  %v736_v2 = vpop.permute.xlu1 %735 }
 0x3e8   :  { %3310 = vpow2.f32 %v642_v62  ;;  %v641_v3 = vsub.f32 %v632_v57, %v639_v63  ;;  %3168 = vmatpush3.msk.msra.mxu1 %vm662_vm5, %v736_v2 }
 0x3e9   :  { %3177 = vmatprep.subr.mxu1 %v3367_v10 }
 0x3ea   :  { %v644_v4 = vmul.f32 1.442695, %v641_v3 }
 0x3eb   :  { %v815_v9 = vpop.permute.xlu1 %814 }
 0x3ec   :  { %3312 = vpow2.f32 %v644_v4 }
 0x3ef   :  { %v893_v11 = vpop.permute.xlu1 %892 }
 0x3f5   :  { %v3311_v5 = vpop.eup %3310 }
 0x3f6   :  { %v646_v6 = vsel %vm633_vm4, %v3311_v5, 0.0 }
 0x3f7   :  { %647 = vadd.xlane.f32.xlu0 %v646_v6 }
 0x3f9   :  { %v3313_v7 = vpop.eup %3312 }
 0x3fa   :  { %v649_v8 = vsel %vm633_vm4, %v3313_v7, 0.0 }
 0x3fb   :  { %650 = vadd.xlane.f32.xlu1 %v649_v8 }
 0x40c   :  { %890 = vrot.lane.b32.xlu1 %v3542_v49, %s3372_s24 }
 0x40d   :  { %656 = vrot.lane.b32.xlu0 %v3537_v46, %s3370_s22 }
 0x411   :  { %812 = vrot.lane.b32.xlu0 %v3537_v46, %s3372_s24 }
 0x480   :  { %v648_v12 = vpop.xlane.xlu0 %647 }
 0x481   :  { %3314 = vrcp.f32 %v648_v12 }
 0x484   :  { %v657_v13 = vpop.permute.xlu0 %656  ;;  %v651_v14 = vpop.xlane.xlu1 %650 }
 0x485   :  { %3316 = vrcp.f32 %v651_v14  ;;  %3163 = vmatpush3.msk.msra.mxu0 %vm662_vm5, %v657_v13 }
 0x486   :  { %3172 = vmatprep.subr.mxu0 %v3367_v10 }
 0x488   :  { %v813_v19 = vpop.permute.xlu0 %812  ;;  %v891_v20 = vpop.permute.xlu1 %890 }
 0x48e   :  { %v3315_v15 = vpop.eup %3314 }
 0x48f   :  { %v654_v16 = vmul.f32 %v3315_v15, %v3311_v5 }
 0x491   :  { %3165 = vmatmul.mubr.msk.f32.vlgmr.msra.gmra.mxu0 %vm658_vm6, %v654_v16 }
 0x492   :  { %v3317_v17 = vpop.eup %3316  ;;  %3173 = vmatpush3.xpose.msk.msra.mxu0 %vm441_vm3, %v815_v9  ;;  %3174 = vmatprep.mubr.msk.f32.mxu0 %vm3368_vm2, %v3367_v10 }
 0x493   :  { %v655_v18 = vmul.f32 %v3317_v17, %v3313_v7  ;;  %3182 = vmatprep.subr.mxu0 %v3367_v10 }
 0x495   :  { %3170 = vmatmul.mubr.msk.f32.vlgmr.msra.gmra.mxu1 %vm658_vm6, %v655_v18  ;;  %3175 = vmatmul.mubr.msk.f32.vlgmr.msra.gmra.mxu0 %vm441_vm3, %v813_v19 }
 0x496   :  { %3178 = vmatpush3.xpose.msk.msra.mxu1 %vm441_vm3, %v893_v11  ;;  %3179 = vmatprep.mubr.msk.f32.mxu1 %vm3368_vm2, %v3367_v10 }
 0x497   :  { %3187 = vmatprep.subr.mxu1 %v3367_v10  ;;  %3184 = vmatprep.mubr.msk.f32.mxu0 %vm3368_vm2, %v3367_v10 }
 0x499   :  { %3180 = vmatmul.mubr.msk.f32.vlgmr.msra.gmra.mxu1 %vm441_vm3, %v891_v20 }
 0x49a   :  { %3189 = vmatprep.mubr.msk.f32.mxu1 %vm3368_vm2, %v3367_v10 }
 0x551   :  { %v3587_v21 = vpop.f32.mrf.mxu0 }
 0x553   :  { %v3166_v22 = vpop.f32.mrf.mxu0 }
 0x555   :  { %v3589_v23 = vpop.f32.mrf.mxu1  ;;  %v886_v24 = vpop.f32.mrf.mxu0 }
 0x556   :  { %v968_v25 = vmul.f32 0.35355338, %v886_v24 }
 0x557   :  { %v3171_v26 = vpop.f32.mrf.mxu1  ;;  %v3176_v27 = vpop.f32.mrf.mxu0 }
 0x558   :  { %v970_v28 = vsel %vm633_vm4, %v968_v25, -inf }
 0x559   :  { %971 = vmax.xlane.f32.xlu0 %v970_v28  ;;  %v964_v29 = vpop.f32.mrf.mxu1 }
 0x55a   :  { %v969_v30 = vmul.f32 0.35355338, %v964_v29 }
 0x55b   :  { %v3181_v31 = vpop.f32.mrf.mxu1 }
 0x55c   :  { %v973_v32 = vsel %vm633_vm4, %v969_v30, -inf }
 0x55d   :  { %974 = vmax.xlane.f32.xlu1 %v973_v32 }
 0x56e   :  { %1069 = vrot.lane.b32.xlu1 %v3542_v49, %s3373_s25 }
 0x572   :  { %1148 = vrot.lane.b32.xlu1 %v3537_v46, %s3374_s26 }
 0x576   :  { %1226 = vrot.lane.b32.xlu1 %v3542_v49, %s3374_s26 }
 0x57a   :  { %1224 = vrot.lane.b32.xlu1 %v3542_v49, %s3375_s27 }
 0x5e2   :  { %v972_v33 = vpop.xlane.xlu0 %971 }
 0x5e3   :  { %v976_v35 = vsub.f32 %v968_v25, %v972_v33 }
 0x5e5   :  { %v978_v36 = vmul.f32 1.442695, %v976_v35 }
 0x5e6   :  { %v975_v37 = vpop.xlane.xlu1 %974 }
 0x5e7   :  { %3318 = vpow2.f32 %v978_v36  ;;  %v977_v38 = vsub.f32 %v969_v30, %v975_v37 }
 0x5e9   :  { %v980_v39 = vmul.f32 1.442695, %v977_v38 }
 0x5ea   :  { %v1070_v40 = vpop.permute.xlu1 %1069 }
 0x5eb   :  { %3320 = vpow2.f32 %v980_v39  ;;  %3188 = vmatpush3.msk.msra.mxu1 %vm662_vm5, %v1070_v40 }
 0x5ec   :  { %3197 = vmatprep.subr.mxu1 %v3367_v10 }
 0x5ee   :  { %v1149_v50 = vpop.permute.xlu1 %1148 }
 0x5f2   :  { %v1227_v54 = vpop.permute.xlu1 %1226 }
 0x5f4   :  { %v3319_v41 = vpop.eup %3318 }
 0x5f5   :  { %v982_v42 = vsel %vm633_vm4, %v3319_v41, 0.0 }
 0x5f6   :  { %983 = vadd.xlane.f32.xlu0 %v982_v42  ;;  %v1225_v57 = vpop.permute.xlu1 %1224 }
 0x5f8   :  { %v3321_v43 = vpop.eup %3320 }
 0x5f9   :  { %v985_v44 = vsel %vm633_vm4, %v3321_v43, 0.0 }
 0x5fa   :  { %986 = vadd.xlane.f32.xlu0 %v985_v44 }
 0x610   :  { %992 = vrot.lane.b32.xlu0 %v3537_v46, %s3373_s25 }
 0x614   :  { %1146 = vrot.lane.b32.xlu0 %v3537_v46, %s3375_s27 }
 0x67f   :  { %v984_v45 = vpop.xlane.xlu0 %983 }
 0x680   :  { %3322 = vrcp.f32 %v984_v45 }
 0x683   :  { %v987_v47 = vpop.xlane.xlu0 %986 }
 0x684   :  { %3324 = vrcp.f32 %v987_v47 }
 0x687   :  { %v993_v48 = vpop.permute.xlu0 %992 }
 0x688   :  { %3183 = vmatpush3.msk.msra.mxu0 %vm662_vm5, %v993_v48 }
 0x689   :  { %3192 = vmatprep.subr.mxu0 %v3367_v10 }
 0x68b   :  { %v1147_v56 = vpop.permute.xlu0 %1146 }
 0x68d   :  { %v3323_v51 = vpop.eup %3322 }
 0x68e   :  { %v990_v52 = vmul.f32 %v3323_v51, %v3319_v41 }
 0x690   :  { %3185 = vmatmul.mubr.msk.f32.vlgmr.msra.gmra.mxu0 %vm658_vm6, %v990_v52 }
 0x691   :  { %v3325_v53 = vpop.eup %3324  ;;  %3193 = vmatpush3.xpose.msk.msra.mxu0 %vm441_vm3, %v1149_v50  ;;  %3194 = vmatprep.mubr.msk.f32.mxu0 %vm3368_vm2, %v3367_v10 }
 0x692   :  { %v991_v55 = vmul.f32 %v3325_v53, %v3321_v43  ;;  %3202 = vmatprep.subr.mxu0 %v3367_v10 }
 0x694   :  { %3190 = vmatmul.mubr.msk.f32.vlgmr.msra.gmra.mxu1 %vm658_vm6, %v991_v55  ;;  %3195 = vmatmul.mubr.msk.f32.vlgmr.msra.gmra.mxu0 %vm441_vm3, %v1147_v56 }
 0x695   :  { %3198 = vmatpush3.xpose.msk.msra.mxu1 %vm441_vm3, %v1227_v54  ;;  %3199 = vmatprep.mubr.msk.f32.mxu1 %vm3368_vm2, %v3367_v10 }
 0x696   :  { %3207 = vmatprep.subr.mxu1 %v3367_v10  ;;  %3204 = vmatprep.mubr.msk.f32.mxu0 %vm3368_vm2, %v3367_v10 }
 0x698   :  { %3200 = vmatmul.mubr.msk.f32.vlgmr.msra.gmra.mxu1 %vm441_vm3, %v1225_v57 }
 0x699   :  { %3209 = vmatprep.mubr.msk.f32.mxu1 %vm3368_vm2, %v3367_v10 }
 0x750   :  { %v3621_v58 = vpop.f32.mrf.mxu0 }
 0x752   :  { %v3186_v59 = vpop.f32.mrf.mxu0 }
 0x754   :  { %v3623_v60 = vpop.f32.mrf.mxu1  ;;  %v1220_v61 = vpop.f32.mrf.mxu0 }
 0x755   :  { %v1302_v62 = vmul.f32 0.35355338, %v1220_v61 }
 0x756   :  { %v3191_v63 = vpop.f32.mrf.mxu1  ;;  %v3196_v2 = vpop.f32.mrf.mxu0 }
 0x757   :  { %v1304_v3 = vsel %vm633_vm4, %v1302_v62, -inf }
 0x758   :  { %1305 = vmax.xlane.f32.xlu0 %v1304_v3  ;;  %v1298_v4 = vpop.f32.mrf.mxu1  ;;  %v1849_v3 = vld [vmem:[%s3960_s5 + $0x18] sm:$0xff] }
 0x759   :  { %v1303_v5 = vmul.f32 0.35355338, %v1298_v4 }
 0x75a   :  { %v3201_v6 = vpop.f32.mrf.mxu1 }
 0x75b   :  { %v1307_v7 = vsel %vm633_vm4, %v1303_v5, -inf  ;;  %v1847_v6 = vld [vmem:[%s3960_s5 + $0x8] sm:$0xff] }
 0x75c   :  { %1308 = vmax.xlane.f32.xlu1 %v1307_v7 }
 0x76d   :  { %1403 = vrot.lane.b32.xlu1 %v3542_v49, %s3376_s28 }
 0x771   :  { %1482 = vrot.lane.b32.xlu1 %v3537_v46, %s3377_s0 }
 0x775   :  { %1560 = vrot.lane.b32.xlu1 %v3542_v49, %s3377_s0 }
 0x779   :  { %1558 = vrot.lane.b32.xlu1 %v3542_v49, %s3378_s29 }
 0x7e1   :  { %v1306_v8 = vpop.xlane.xlu0 %1305 }
 0x7e2   :  { %v1310_v9 = vsub.f32 %v1302_v62, %v1306_v8  ;;  %v1846_v8 = vld [vmem:[%s3960_s5] sm:$0xff] }
 0x7e4   :  { %v1312_v11 = vmul.f32 1.442695, %v1310_v9 }
 0x7e5   :  { %v1309_v12 = vpop.xlane.xlu1 %1308 }
 0x7e6   :  { %3326 = vpow2.f32 %v1312_v11  ;;  %v1311_v13 = vsub.f32 %v1303_v5, %v1309_v12  ;;  %v1848_v5 = vld [vmem:[%s3960_s5 + $0x10] sm:$0xff] }
 0x7e8   :  { %v1314_v14 = vmul.f32 1.442695, %v1311_v13 }
 0x7e9   :  { %v1404_v15 = vpop.permute.xlu1 %1403 }
 0x7ea   :  { %3328 = vpow2.f32 %v1314_v14  ;;  %3208 = vmatpush3.msk.msra.mxu1 %vm662_vm5, %v1404_v15 }
 0x7eb   :  { %3217 = vmatprep.subr.mxu1 %v3367_v10 }
 0x7ed   :  { %v1483_v25 = vpop.permute.xlu1 %1482 }
 0x7f1   :  { %v1561_v29 = vpop.permute.xlu1 %1560 }
 0x7f3   :  { %v3327_v16 = vpop.eup %3326 }
 0x7f4   :  { %v1316_v17 = vsel %vm633_vm4, %v3327_v16, 0.0 }
 0x7f5   :  { %1317 = vadd.xlane.f32.xlu0 %v1316_v17  ;;  %v1559_v32 = vpop.permute.xlu1 %1558 }
 0x7f7   :  { %v3329_v18 = vpop.eup %3328 }
 0x7f8   :  { %v1319_v19 = vsel %vm633_vm4, %v3329_v18, 0.0 }
 0x7f9   :  { %1320 = vadd.xlane.f32.xlu0 %v1319_v19 }
 0x80f   :  { %1326 = vrot.lane.b32.xlu0 %v3537_v46, %s3376_s28 }
 0x813   :  { %1480 = vrot.lane.b32.xlu0 %v3537_v46, %s3378_s29 }
 0x87e   :  { %v1318_v20 = vpop.xlane.xlu0 %1317 }
 0x87f   :  { %3330 = vrcp.f32 %v1318_v20 }
 0x882   :  { %v1321_v22 = vpop.xlane.xlu0 %1320 }
 0x883   :  { %3332 = vrcp.f32 %v1321_v22 }
 0x886   :  { %v1327_v24 = vpop.permute.xlu0 %1326 }
 0x887   :  { %3203 = vmatpush3.msk.msra.mxu0 %vm662_vm5, %v1327_v24 }
 0x888   :  { %3212 = vmatprep.subr.mxu0 %v3367_v10 }
 0x88a   :  { %v1481_v31 = vpop.permute.xlu0 %1480 }
 0x88c   :  { %v3331_v26 = vpop.eup %3330 }
 0x88d   :  { %v1324_v27 = vmul.f32 %v3331_v26, %v3327_v16 }
 0x88f   :  { %3205 = vmatmul.mubr.msk.f32.vlgmr.msra.gmra.mxu0 %vm658_vm6, %v1324_v27 }
 0x890   :  { %v3333_v28 = vpop.eup %3332  ;;  %3213 = vmatpush3.xpose.msk.msra.mxu0 %vm441_vm3, %v1483_v25  ;;  %3214 = vmatprep.mubr.msk.f32.mxu0 %vm3368_vm2, %v3367_v10 }
 0x891   :  { %v1325_v30 = vmul.f32 %v3333_v28, %v3329_v18  ;;  %3222 = vmatprep.subr.mxu0 %v3367_v10 }
 0x893   :  { %3210 = vmatmul.mubr.msk.f32.vlgmr.msra.gmra.mxu1 %vm658_vm6, %v1325_v30  ;;  %3215 = vmatmul.mubr.msk.f32.vlgmr.msra.gmra.mxu0 %vm441_vm3, %v1481_v31 }
 0x894   :  { %3218 = vmatpush3.xpose.msk.msra.mxu1 %vm441_vm3, %v1561_v29  ;;  %3219 = vmatprep.mubr.msk.f32.mxu1 %vm3368_vm2, %v3367_v10 }
 0x895   :  { %3227 = vmatprep.subr.mxu1 %v3367_v10  ;;  %3224 = vmatprep.mubr.msk.f32.mxu0 %vm3368_vm2, %v3367_v10 }
 0x897   :  { %3220 = vmatmul.mubr.msk.f32.vlgmr.msra.gmra.mxu1 %vm441_vm3, %v1559_v32 }
 0x898   :  { %3229 = vmatprep.mubr.msk.f32.mxu1 %vm3368_vm2, %v3367_v10 }
 0x94f   :  { %v1399_v33 = vpop.f32.mrf.mxu0 }
 0x951   :  { %v3206_v35 = vpop.f32.mrf.mxu0 }
 0x953   :  { %v1476_v36 = vpop.f32.mrf.mxu1  ;;  %v1554_v37 = vpop.f32.mrf.mxu0 }
 0x954   :  { %v1636_v38 = vmul.f32 0.35355338, %v1554_v37 }
 0x955   :  { %v3211_v39 = vpop.f32.mrf.mxu1  ;;  %v3216_v40 = vpop.f32.mrf.mxu0 }
 0x956   :  { %v1638_v41 = vsel %vm633_vm4, %v1636_v38, -inf }
 0x957   :  { %1639 = vmax.xlane.f32.xlu0 %v1638_v41  ;;  %v1632_v42 = vpop.f32.mrf.mxu1 }
 0x958   :  { %v1637_v43 = vmul.f32 0.35355338, %v1632_v42 }
 0x959   :  { %v3221_v44 = vpop.f32.mrf.mxu1 }
 0x95a   :  { %v1641_v45 = vsel %vm633_vm4, %v1637_v43, -inf }
 0x95b   :  { %1642 = vmax.xlane.f32.xlu1 %v1641_v45 }
 0x96c   :  { %1737 = vrot.lane.b32.xlu1 %v3542_v49, %s3379_s30 }
 0x970   :  { %1816 = vrot.lane.b32.xlu1 %v3621_v58, %s3380_s14 }
 0x974   :  { %1818 = vrot.lane.b32.xlu1 %v3623_v60, %s3380_s14 }
 0x978   :  { %1826 = vrot.lane.b32.xlu1 %v1476_v36, %s3381_s15 }
 0x9e0   :  { %v1640_v10 = vpop.xlane.xlu0 %1639 }
 0x9e1   :  { %v1644_v47 = vsub.f32 %v1636_v38, %v1640_v10 }
 0x9e3   :  { %v1646_v48 = vmul.f32 1.442695, %v1644_v47 }
 0x9e4   :  { %v1643_v50 = vpop.xlane.xlu1 %1642 }
 0x9e5   :  { %3334 = vpow2.f32 %v1646_v48  ;;  %v1645_v51 = vsub.f32 %v1637_v43, %v1643_v50 }
 0x9e7   :  { %v1648_v52 = vmul.f32 1.442695, %v1645_v51 }
 0x9e8   :  { %v1738_v53 = vpop.permute.xlu1 %1737 }
 0x9e9   :  { %3336 = vpow2.f32 %v1648_v52  ;;  %3228 = vmatpush3.msk.msra.mxu1 %vm662_vm5, %v1738_v53 }
 0x9ea   :  { %3232 = vmatprep.subr.mxu1 %v1849_v3 }
 0x9ec   :  { %v1817_v9 = vpop.permute.xlu1 %1816 }
 0x9ed   :  { %v1838_v13 = vsel %vm441_vm3, %v3587_v21, %v1817_v9 }
 0x9f0   :  { %v1819_v11 = vpop.permute.xlu1 %1818 }
 0x9f1   :  { %v1839_v20 = vsel %vm441_vm3, %v3589_v23, %v1819_v11 }
 0x9f2   :  { %v3335_v54 = vpop.eup %3334 }
 0x9f3   :  { %v1650_v49 = vsel %vm633_vm4, %v3335_v54, 0.0 }
 0x9f4   :  { %1651 = vadd.xlane.f32.xlu0 %v1650_v49  ;;  %v1827_v14 = vpop.permute.xlu1 %1826 }
 0x9f5   :  { %v1842_v22 = vsel %vm1840_vm8, %v1839_v20, %v1827_v14 }
 0x9f6   :  { %v3337_v55 = vpop.eup %3336 }
 0x9f7   :  { %v1653_v56 = vsel %vm633_vm4, %v3337_v55, 0.0 }
 0x9f8   :  { %1654 = vadd.xlane.f32.xlu0 %v1653_v56 }
 0xa0e   :  { %1660 = vrot.lane.b32.xlu0 %v3537_v46, %s3379_s30 }
 0xa12   :  { %1824 = vrot.lane.b32.xlu0 %v1399_v33, %s3381_s15 }
 0xa7d   :  { %v1652_v57 = vpop.xlane.xlu0 %1651 }
 0xa7e   :  { %3338 = vrcp.f32 %v1652_v57 }
 0xa81   :  { %v1655_v58 = vpop.xlane.xlu0 %1654 }
 0xa82   :  { %3340 = vrcp.f32 %v1655_v58 }
 0xa85   :  { %v1661_v59 = vpop.permute.xlu0 %1660 }
 0xa86   :  { %3223 = vmatpush3.msk.msra.mxu0 %vm662_vm5, %v1661_v59 }
 0xa89   :  { %v1825_v12 = vpop.permute.xlu0 %1824 }
 0xa8a   :  { %v1841_v15 = vsel %vm1840_vm8, %v1838_v13, %v1825_v12 }
 0xa8b   :  { %v3339_v60 = vpop.eup %3338 }
 0xa8c   :  { %v1658_v61 = vmul.f32 %v3339_v60, %v3335_v54 }
 0xa8e   :  { %3225 = vmatmul.mubr.msk.f32.vlgmr.msra.gmra.mxu0 %vm658_vm6, %v1658_v61 }
 0xa8f   :  { %v3341_v62 = vpop.eup %3340 }
 0xa90   :  { %v1659_v63 = vmul.f32 %v3341_v62, %v3337_v55  ;;  %v3060_v55 = vld [vmem:[%s3961_s6] ss:$0 sm:$0xff] }
 0xa92   :  { %3230 = vmatmul.mubr.msk.f32.vlgmr.msra.gmra.mxu1 %vm658_vm6, %v1659_v63 }
 0xa93   :  { %3233 = vmatpush3.msra.mxu1 %v1849_v3 }
 0xa94   :  { %3234 = vmatprep.subr.mxu1 %v1848_v5 }
 0xa95   :  { %3235 = vmatpush3.msra.mxu1 %v1848_v5 }
 0xa96   :  { %3236 = vmatprep.subr.mxu1 %v1847_v6 }
 0xa97   :  { %3237 = vmatpush3.msra.mxu1 %v1847_v6 }
 0xa98   :  { %3238 = vmatprep.subr.mxu1 %v1846_v8 }
 0xa99   :  { %3239 = vmatpush3.msra.mxu1 %v1846_v8 }
 0xb4e   :  { %v1733_v2 = vpop.f32.mrf.mxu0 }
 0xb4f   :  { %1832 = vrot.lane.b32.xlu0 %v1733_v2, %s3382_s16 }
 0xb50   :  { %v3226_v46 = vpop.f32.mrf.mxu0 }
 0xb52   :  { %v1810_v4 = vpop.f32.mrf.mxu1 }
 0xb53   :  { %1834 = vrot.lane.b32.xlu1 %v1810_v4, %s3382_s16 }
 0xb54   :  { %v3231_v7 = vpop.f32.mrf.mxu1 }
 0xbc1   :  { %v1833_v16 = vpop.permute.xlu0 %1832 }
 0xbc2   :  { %v1844_v17 = vsel %vm1843_vm7, %v1841_v15, %v1833_v16 }
 0xbc3   :  { %v1853_v18 = vcombine.high %v1844_v17, %v1844_v17  ;;  %v1860_v19 = vrot.slane %v1844_v17, %v3489_v34 }
 0xbc5   :  { %v1868_v24 = vcombine.high %v1860_v19, %v1860_v19  ;;  %v1835_v25 = vpop.permute.xlu1 %1834  ;;  %v1867_v26 = vrot.slane %v1853_v18, %v3489_v34  ;;  %v1875_v28 = vrot.slane %v1860_v19, %v3489_v34 }
 0xbc6   :  { %v1845_v27 = vsel %vm1843_vm7, %v1842_v22, %v1835_v25 }
 0xbc7   :  { %v1889_v21 = vrot.slane %v1868_v24, %v3489_v34  ;;  %v1892_v29 = vcombine.high %v1845_v27, %v1845_v27  ;;  %v1899_v30 = vrot.slane %v1845_v27, %v3489_v34  ;;  %v1882_v23 = vrot.slane %v1867_v26, %v3489_v34 }
 0xbc9   :  { %v1937_v31 = vcombine.low %v1875_v28, %v1889_v21  ;;  %v3061_v32 = vcombine.high %v1875_v28, %v1889_v21  ;;  %v1906_v33 = vrot.slane %v1892_v29, %v3489_v34  ;;  %v1907_v35 = vcombine.high %v1899_v30, %v1899_v30 }
 0xbca   :  { %v1914_v36 = vrot.slane %v1899_v30, %v3489_v34 }
 0xbcb   :  { %v1928_v37 = vrot.slane %v1907_v35, %v3489_v34  ;;  %v1947_v38 = vrot.slane %v1937_v31, %v3489_v34  ;;  %v1954_v39 = vrot.slane %v3061_v32, %v3489_v34  ;;  %v1921_v42 = vrot.slane %v1906_v33, %v3489_v34 }
 0xbcc   :  { %v1929_v40 = vcombine.high %v1914_v36, %v1914_v36  ;;  %v1939_v41 = vcombine.low %v1882_v23, %v1914_v36 }
 0xbcd   :  { %v1930_v43 = vcombine.high %v1928_v37, %v1928_v37  ;;  %v1969_v10 = vcombine.low %v1947_v38, %v1954_v39 }
 0xbce   :  { %v1940_v44 = vcombine.low %v1928_v37, %v1929_v40  ;;  %v1961_v47 = vrot.slane %v1939_v41, %v3489_v34 }
 0xbcf   :  { %v1986_v45 = vcombine.low %v1930_v43, %v1921_v42  ;;  %v1977_v52 = vrot.slane %v1969_v10, %v3489_v34  ;;  %v2280_v10 = vld [vmem:[%s3962_s9 + $0x8] sm:$0xff] }
 0xbd0   :  { %v1968_v48 = vrot.slane %v1940_v44, %v3489_v34  ;;  %v2282_v44 = vld [vmem:[%s3962_s9 + $0x18] sm:$0xff] }
 0xbd1   :  { %v1993_v51 = vrot.slane %v1986_v45, %v3489_v34  ;;  %v2281_v45 = vld [vmem:[%s3962_s9 + $0x10] sm:$0xff]  ;;  %3243 = vmatprep.subr.mxu1 %v2282_v44 }
 0xbd2   :  { %v1970_v50 = vcombine.low %v1961_v47, %v1968_v48  ;;  %v2279_v47 = vld [vmem:[%s3962_s9] sm:$0xff] }
 0xbd3   :  { %v2000_v49 = vrot.slane %v1993_v51, %v3489_v34 }
 0xbd4   :  { %v1984_v53 = vrot.slane %v1970_v50, %v3489_v34 }
 0xbd6   :  { %v1985_v54 = vcombine.low %v1977_v52, %v1984_v53 }
 0xbd8   :  { %3240 = vmatprep.mubr.msk.f32.mxu1 %vm247_vm1, %v1985_v54 }
 0xbd9   :  { %3241 = vmatmul.mubr.msk.f32.vlgmr.msra.gmra.mxu1 %vm247_vm1, %v2000_v49 }
 0xbda   :  { %3244 = vmatpush3.msra.mxu1 %v2282_v44  ;;  %v2692_v44 = vld [vmem:[%s3965_s11 + $0x30] sm:$0xff] }
 0xbdb   :  { %3245 = vmatprep.subr.mxu1 %v2281_v45 }
 0xbdc   :  { %3246 = vmatpush3.msra.mxu1 %v2281_v45  ;;  %v2691_v45 = vld [vmem:[%s3965_s11 + $0x28] sm:$0xff] }
 0xbdd   :  { %3247 = vmatprep.subr.mxu1 %v2280_v10 }
 0xbde   :  { %3248 = vmatpush3.msra.mxu1 %v2280_v10  ;;  %v2690_v10 = vld [vmem:[%s3965_s11 + $0x20] sm:$0xff] }
 0xbdf   :  { %3249 = vmatprep.subr.mxu1 %v2279_v47 }
 0xbe0   :  { %3250 = vmatpush3.msra.mxu1 %v2279_v47  ;;  %v2689_v47 = vld [vmem:[%s3965_s11 + $0x18] sm:$0xff] }
 0xc99   :  { %v3242_v56 = vpop.f32.mrf.mxu1 }
 0xc9a   :  { %v2077_v57 = vadd.f32 %v3242_v56, %v3060_v55 }
 0xc9b   :  { %v2071_v58 = vpop.f32.mrf.mxu1 }
 0xc9c   :  { %v2072_v59 = vadd.f32 %v3060_v55, %v2071_v58  ;;  %v2137_v60 = vrot.slane %v2077_v57, %v3489_v34  ;;  %v3065_v55 = vld [vmem:[%s3963_s7] ss:$0 sm:$0xff] }
 0xc9d   :  { %v3066_v57 = vld [vmem:[%s3964_s8] ss:$0 sm:$0xff] }
 0xc9e   :  { %v2082_v61 = vcombine.high %v2072_v59, %v2072_v59  ;;  %v2089_v62 = vrot.slane %v2072_v59, %v3489_v34  ;;  %v2138_v46 = vcombine.high %v2137_v60, %v2137_v60  ;;  %v2145_v12 = vrot.slane %v2137_v60, %v3489_v34 }
 0xca0   :  { %v2096_v63 = vrot.slane %v2082_v61, %v3489_v34  ;;  %v2097_v2 = vcombine.high %v2089_v62, %v2089_v62  ;;  %v2105_v4 = vrot.slane %v2089_v62, %v3489_v34  ;;  %v2152_v13 = vrot.slane %v2138_v46, %v3489_v34 }
 0xca2   :  { %v2098_v3 = vcombine.high %v2096_v63, %v2096_v63  ;;  %v2112_v5 = vrot.slane %v2096_v63, %v3489_v34  ;;  %v2119_v6 = vrot.slane %v2097_v2, %v3489_v34  ;;  %v2214_v22 = vrot.slane %v2152_v13, %v3489_v34 }
 0xca4   :  { %v2126_v7 = vrot.slane %v2098_v3, %v3489_v34  ;;  %v2128_v8 = vcombine.high %v2112_v5, %v2112_v5  ;;  %v2153_v9 = vcombine.low %v2105_v4, %v2119_v6  ;;  %v3064_v11 = vcombine.high %v2105_v4, %v2119_v6 }
 0xca5   :  { %v2175_v14 = vrot.slane %v2112_v5, %v3489_v34  ;;  %v2229_v31 = vrot.slane %v2214_v22, %v3489_v34 }
 0xca6   :  { %v2130_v15 = vcombine.high %v2126_v7, %v2126_v7  ;;  %v2161_v16 = vrot.slane %v2153_v9, %v3489_v34  ;;  %v2168_v17 = vrot.slane %v3064_v11, %v3489_v34  ;;  %v2192_v18 = vcombine.low %v2126_v7, %v2128_v8 }
 0xca7   :  { %v2190_v26 = vrot.slane %v2175_v14, %v3489_v34 }
 0xca8   :  { %v2176_v19 = vcombine.low %v2161_v16, %v2168_v17  ;;  %v2193_v20 = vcombine.low %v2130_v15, %v2145_v12  ;;  %v2200_v24 = vrot.slane %v2192_v18, %v3489_v34 }
 0xcaa   :  { %v2183_v25 = vrot.slane %v2176_v19, %v3489_v34  ;;  %v2207_v27 = vrot.slane %v2193_v20, %v3489_v34 }
 0xcac   :  { %v2191_v28 = vcombine.low %v2183_v25, %v2190_v26  ;;  %v2215_v21 = vcombine.low %v2200_v24, %v2207_v27 }
 0xcae   :  { %v3724_v29 = vadd.f32 %v2191_v28, %v3456_v0  ;;  %v2222_v30 = vrot.slane %v2215_v21, %v3489_v34 }
 0xcb0   :  { %v2237_v32 = vsel %vm48_vm0, %v3724_v29, 0.0  ;;  %v2230_v33 = vcombine.low %v2222_v30, %v2229_v31 }
 0xcb1   :  { %2238 = vadd.xlane.f32.xlu0 %v2237_v32 }
 0xcb2   :  { %v3731_v35 = vadd.f32 %v2230_v33, %v3461_v1 }
 0xcb4   :  { %v2240_v23 = vsel %vm48_vm0, %v3731_v35, 0.0 }
 0xcb5   :  { %2241 = vadd.xlane.f32.xlu1 %v2240_v23 }
 0xd3a   :  { %v2239_v36 = vpop.xlane.xlu0 %2238 }
 0xd3b   :  { %v2243_v37 = vmul.f32 0.03125, %v2239_v36 }
 0xd3d   :  { %v2245_v0 = vsub.f32 %v3724_v29, %v2243_v37  ;;  %v2701_v37 = vld [vmem:[%s3965_s11 + $0x78] sm:$0xff] }
 0xd3e   :  { %v2242_v38 = vpop.xlane.xlu1 %2241  ;;  %3254 = vmatprep.subr.mxu0 %v2701_v37 }
 0xd3f   :  { %v2244_v39 = vmul.f32 0.03125, %v2242_v38  ;;  %v2247_v40 = vmul.f32 %v2245_v0, %v2245_v0  ;;  %3255 = vmatpush3.msra.mxu0 %v2701_v37  ;;  %v2699_v38 = vld [vmem:[%s3965_s11 + $0x68] sm:$0xff] }
 0xd41   :  { %v2246_v41 = vsub.f32 %v3731_v35, %v2244_v39  ;;  %v2249_v42 = vsel %vm48_vm0, %v2247_v40, 0.0  ;;  %v2698_v39 = vld [vmem:[%s3965_s11 + $0x60] sm:$0xff]  ;;  %v2697_v40 = vld [vmem:[%s3965_s11 + $0x58] sm:$0xff] }
 0xd42   :  { %2250 = vadd.xlane.f32.xlu0 %v2249_v42  ;;  %v2695_v42 = vld [vmem:[%s3965_s11 + $0x48] sm:$0xff] }
 0xd43   :  { %v2248_v43 = vmul.f32 %v2246_v41, %v2246_v41 }
 0xd45   :  { %v2252_v1 = vsel %vm48_vm0, %v2248_v43, 0.0  ;;  %v2694_v43 = vld [vmem:[%s3965_s11 + $0x40] sm:$0xff] }
 0xd46   :  { %2253 = vadd.xlane.f32.xlu0 %v2252_v1  ;;  %v2693_v1 = vld [vmem:[%s3965_s11 + $0x38] sm:$0xff] }
 0xdcb   :  { %v2251_v48 = vpop.xlane.xlu0 %2250 }
 0xdcc   :  { %v2255_v50 = vmul.f32 0.03125, %v2251_v48  ;;  %v2688_v48 = vld [vmem:[%s3965_s11 + $0x10] sm:$0xff] }
 0xdce   :  { %v2257_v51 = vadd.f32 1e-06, %v2255_v50  ;;  %v2687_v50 = vld [vmem:[%s3965_s11 + $0x8] sm:$0xff] }
 0xdcf   :  { %v2254_v52 = vpop.xlane.xlu0 %2253 }
 0xdd0   :  { %3342 = vrsqrt.f32 %v2257_v51  ;;  %v2256_v53 = vmul.f32 0.03125, %v2254_v52  ;;  %v2686_v51 = vld [vmem:[%s3965_s11] sm:$0xff] }
 0xdd1   :  { %v3067_v52 = vld [vmem:[%s3966_s10] ss:$0 sm:$0xff] }
 0xdd2   :  { %v2258_v54 = vadd.f32 1e-06, %v2256_v53 }
 0xdd4   :  { %3344 = vrsqrt.f32 %v2258_v54 }
 0xddd   :  { %v3343_v49 = vpop.eup %3342 }
 0xdde   :  { %v2261_v56 = vmul.f32 %v3343_v49, %v2245_v0  ;;  %v2700_v0 = vld [vmem:[%s3965_s11 + $0x70] sm:$0xff] }
 0xddf   :  { %3256 = vmatprep.subr.mxu0 %v2700_v0 }
 0xde0   :  { %v2269_v58 = vmul.f32 %v3065_v55, %v2261_v56  ;;  %3257 = vmatpush3.msra.mxu0 %v2700_v0 }
 0xde1   :  { %v3345_v59 = vpop.eup %3344  ;;  %3258 = vmatprep.subr.mxu0 %v2699_v38 }
 0xde2   :  { %v2277_v60 = vadd.f32 %v3066_v57, %v2269_v58  ;;  %v2262_v61 = vmul.f32 %v3345_v59, %v2246_v41  ;;  %3259 = vmatpush3.msra.mxu0 %v2699_v38  ;;  %v2696_v41 = vld [vmem:[%s3965_s11 + $0x50] sm:$0xff] }
 0xde3   :  { %3260 = vmatprep.subr.mxu0 %v2698_v39 }
 0xde4   :  { %v2270_v62 = vmul.f32 %v3065_v55, %v2262_v61  ;;  %v2286_v63 = vcombine.high %v2277_v60, %v2277_v60  ;;  %v2293_v2 = vrot.slane %v2277_v60, %v3489_v34  ;;  %3261 = vmatpush3.msra.mxu0 %v2698_v39 }
 0xde5   :  { %3262 = vmatprep.subr.mxu0 %v2697_v40 }
 0xde6   :  { %v2278_v46 = vadd.f32 %v3066_v57, %v2270_v62  ;;  %v2300_v3 = vrot.slane %v2286_v63, %v3489_v34  ;;  %v2301_v4 = vcombine.high %v2293_v2, %v2293_v2  ;;  %v2308_v6 = vrot.slane %v2293_v2, %v3489_v34  ;;  %3263 = vmatpush3.msra.mxu0 %v2697_v40 }
 0xde7   :  { %3264 = vmatprep.subr.mxu0 %v2696_v41 }
 0xde8   :  { %v2325_v5 = vcombine.high %v2278_v46, %v2278_v46  ;;  %v2322_v7 = vrot.slane %v2301_v4, %v3489_v34  ;;  %v2332_v8 = vrot.slane %v2278_v46, %v3489_v34  ;;  %v2315_v9 = vrot.slane %v2300_v3, %v3489_v34  ;;  %3265 = vmatpush3.msra.mxu0 %v2696_v41 }
 0xde9   :  { %3266 = vmatprep.subr.mxu0 %v2695_v42 }
 0xdea   :  { %v2340_v11 = vcombine.high %v2332_v8, %v2332_v8  ;;  %v2347_v12 = vrot.slane %v2332_v8, %v3489_v34  ;;  %v2370_v13 = vcombine.low %v2308_v6, %v2322_v7  ;;  %v3068_v14 = vcombine.high %v2308_v6, %v2322_v7  ;;  %3267 = vmatpush3.msra.mxu0 %v2695_v42 }
 0xdeb   :  { %v2339_v15 = vrot.slane %v2325_v5, %v3489_v34  ;;  %3268 = vmatprep.subr.mxu0 %v2694_v43 }
 0xdec   :  { %v2361_v16 = vrot.slane %v2340_v11, %v3489_v34  ;;  %v2362_v17 = vcombine.high %v2347_v12, %v2347_v12  ;;  %v2372_v18 = vcombine.low %v2315_v9, %v2347_v12  ;;  %v2380_v19 = vrot.slane %v2370_v13, %v3489_v34  ;;  %3269 = vmatpush3.msra.mxu0 %v2694_v43 }
 0xded   :  { %v2387_v20 = vrot.slane %v3068_v14, %v3489_v34  ;;  %v2354_v24 = vrot.slane %v2339_v15, %v3489_v34  ;;  %3270 = vmatprep.subr.mxu0 %v2693_v1 }
 0xdee   :  { %v2373_v22 = vcombine.low %v2361_v16, %v2362_v17  ;;  %v2363_v25 = vcombine.high %v2361_v16, %v2361_v16  ;;  %v2394_v26 = vrot.slane %v2372_v18, %v3489_v34  ;;  %3271 = vmatpush3.msra.mxu0 %v2693_v1 }
 0xdef   :  { %v2402_v28 = vcombine.low %v2380_v19, %v2387_v20  ;;  %3272 = vmatprep.subr.mxu0 %v2692_v44 }
 0xdf0   :  { %v2401_v27 = vrot.slane %v2373_v22, %v3489_v34  ;;  %v2419_v21 = vcombine.low %v2363_v25, %v2354_v24  ;;  %3273 = vmatpush3.msra.mxu0 %v2692_v44 }
 0xdf1   :  { %v2410_v32 = vrot.slane %v2402_v28, %v3489_v34  ;;  %3274 = vmatprep.subr.mxu0 %v2691_v45 }
 0xdf2   :  { %v2403_v30 = vcombine.low %v2394_v26, %v2401_v27  ;;  %v2426_v31 = vrot.slane %v2419_v21, %v3489_v34  ;;  %3275 = vmatpush3.msra.mxu0 %v2691_v45 }
 0xdf3   :  { %3276 = vmatprep.subr.mxu0 %v2690_v10 }
 0xdf4   :  { %v2417_v33 = vrot.slane %v2403_v30, %v3489_v34  ;;  %v2433_v36 = vrot.slane %v2426_v31, %v3489_v34  ;;  %3277 = vmatpush3.msra.mxu0 %v2690_v10 }
 0xdf5   :  { %3278 = vmatprep.subr.mxu0 %v2689_v47 }
 0xdf6   :  { %v2418_v23 = vcombine.low %v2410_v32, %v2417_v33  ;;  %3279 = vmatpush3.msra.mxu0 %v2689_v47 }
 0xdf7   :  { %3280 = vmatprep.subr.mxu0 %v2688_v48 }
 0xdf8   :  { %3251 = vmatprep.mubr.msk.f32.mxu1 %vm247_vm1, %v2418_v23  ;;  %3281 = vmatpush3.msra.mxu0 %v2688_v48 }
 0xdf9   :  { %3252 = vmatmul.mubr.msk.f32.vlgmr.msra.gmra.mxu1 %vm247_vm1, %v2433_v36  ;;  %3282 = vmatprep.subr.mxu0 %v2687_v50 }
 0xdfa   :  { %3283 = vmatpush3.msra.mxu0 %v2687_v50 }
 0xdfb   :  { %3284 = vmatprep.subr.mxu0 %v2686_v51 }
 0xdfc   :  { %3285 = vmatpush3.msra.mxu0 %v2686_v51 }
 0xeb9   :  { %v3253_v53 = vpop.f32.mrf.mxu1 }
 0xeba   :  { %v2510_v54 = vadd.f32 %v3253_v53, %v3067_v52 }
 0xebb   :  { %v2504_v49 = vpop.f32.mrf.mxu1 }
 0xebc   :  { %v2570_v55 = vrot.slane %v2510_v54, %v3489_v34  ;;  %v2505_v56 = vadd.f32 %v3067_v52, %v2504_v49 }
 0xebe   :  { %v2571_v57 = vcombine.high %v2570_v55, %v2570_v55  ;;  %v3830_v58 = vrot.slane %v2570_v55, %v3489_v34  ;;  %v2515_v59 = vcombine.high %v2505_v56, %v2505_v56  ;;  %v2522_v60 = vrot.slane %v2505_v56, %v3489_v34 }
 0xec0   :  { %v3834_v61 = vrot.slane %v2571_v57, %v3489_v34  ;;  %v2604_v62 = vmul.f32 %v3830_v58, %v3830_v58  ;;  %v2529_v63 = vrot.slane %v2515_v59, %v3489_v34  ;;  %v2530_v2 = vcombine.high %v2522_v60, %v2522_v60 }
 0xec1   :  { %v3840_v46 = vrot.slane %v2522_v60, %v3489_v34 }
 0xec2   :  { %v2605_v3 = vmul.f32 %v3834_v61, %v3834_v61  ;;  %v2614_v4 = vmul.f32 %v2604_v62, %v3830_v58  ;;  %v2531_v5 = vcombine.high %v2529_v63, %v2529_v63  ;;  %v3846_v6 = vrot.slane %v2529_v63, %v3489_v34 }
 0xec3   :  { %v3849_v7 = vrot.slane %v2530_v2, %v3489_v34  ;;  %v3853_v8 = vcombine.high %v3840_v46, %v3840_v46  ;;  %v2596_v9 = vmul.f32 %v3840_v46, %v3840_v46 }
 0xec4   :  { %v2615_v11 = vmul.f32 %v2605_v3, %v3834_v61  ;;  %v2624_v12 = vmul.f32 0.044715, %v2614_v4  ;;  %v3859_v13 = vrot.slane %v2531_v5, %v3489_v34  ;;  %v3863_v14 = vcombine.high %v3846_v6, %v3846_v6 }
 0xec5   :  { %v3867_v15 = vcombine.high %v3849_v7, %v3849_v7  ;;  %v2597_v16 = vmul.f32 %v3849_v7, %v3849_v7  ;;  %v2598_v17 = vmul.f32 %v3853_v8, %v3853_v8  ;;  %v2600_v18 = vmul.f32 %v3846_v6, %v3846_v6 }
 0xec6   :  { %v2625_v19 = vmul.f32 0.044715, %v2615_v11  ;;  %v2634_v20 = vadd.f32 %v2624_v12, %v3830_v58  ;;  %v3878_v22 = vcombine.high %v3859_v13, %v3859_v13  ;;  %v2601_v24 = vmul.f32 %v3859_v13, %v3859_v13 }
 0xec7   :  { %v2606_v25 = vmul.f32 %v2596_v9, %v3840_v46  ;;  %v2607_v26 = vmul.f32 %v2597_v16, %v3849_v7  ;;  %v2610_v27 = vmul.f32 %v2600_v18, %v3846_v6  ;;  %v2599_v28 = vmul.f32 %v3867_v15, %v3867_v15 }
 0xec8   :  { %v2635_v21 = vadd.f32 %v2625_v19, %v3834_v61  ;;  %v2644_v30 = vmul.f32 0.7978846, %v2634_v20  ;;  %v2611_v31 = vmul.f32 %v2601_v24, %v3859_v13  ;;  %v2602_v32 = vmul.f32 %v3863_v14, %v3863_v14 }
 0xec9   :  { %v2616_v33 = vmul.f32 0.044715, %v2606_v25  ;;  %v2617_v23 = vmul.f32 0.044715, %v2607_v26  ;;  %v2620_v36 = vmul.f32 0.044715, %v2610_v27  ;;  %v2603_v37 = vmul.f32 %v3878_v22, %v3878_v22 }
 0xeca   :  { %v2645_v0 = vmul.f32 0.7978846, %v2635_v21  ;;  %v2621_v38 = vmul.f32 0.044715, %v2611_v31  ;;  %v2608_v39 = vmul.f32 %v2598_v17, %v3853_v8  ;;  %v2609_v43 = vmul.f32 %v2599_v28, %v3867_v15 }
 0xecb   :  { %v2626_v40 = vadd.f32 %v2616_v33, %v3840_v46  ;;  %v2627_v41 = vadd.f32 %v2617_v23, %v3849_v7  ;;  %v2630_v42 = vadd.f32 %v2620_v36, %v3846_v6  ;;  %3346 = vtanh.f32 %v2644_v30 }
 0xecc   :  { %v2612_v1 = vmul.f32 %v2602_v32, %v3863_v14  ;;  %v2613_v44 = vmul.f32 %v2603_v37, %v3878_v22  ;;  %v2618_v45 = vmul.f32 0.044715, %v2608_v39  ;;  %3348 = vtanh.f32 %v2645_v0 }
 0xecd   :  { %v2636_v10 = vmul.f32 0.7978846, %v2626_v40  ;;  %v2637_v47 = vmul.f32 0.7978846, %v2627_v41  ;;  %v2631_v48 = vadd.f32 %v2621_v38, %v3859_v13  ;;  %v2619_v50 = vmul.f32 0.044715, %v2609_v43 }
 0xece   :  { %v2622_v51 = vmul.f32 0.044715, %v2612_v1  ;;  %v2623_v52 = vmul.f32 0.044715, %v2613_v44  ;;  %v2628_v53 = vadd.f32 %v2618_v45, %v3853_v8  ;;  %v2640_v54 = vmul.f32 0.7978846, %v2630_v42 }
 0xecf   :  { %3350 = vtanh.f32 %v2636_v10  ;;  %v2629_v49 = vadd.f32 %v2619_v50, %v3867_v15  ;;  %v2641_v59 = vmul.f32 0.7978846, %v2631_v48 }
 0xed0   :  { %v2632_v55 = vadd.f32 %v2622_v51, %v3863_v14  ;;  %v2633_v56 = vadd.f32 %v2623_v52, %v3878_v22  ;;  %v2638_v57 = vmul.f32 0.7978846, %v2628_v53  ;;  %3352 = vtanh.f32 %v2637_v47 }
 0xed1   :  { %v2639_v60 = vmul.f32 0.7978846, %v2629_v49 }
 0xed2   :  { %v2642_v62 = vmul.f32 0.7978846, %v2632_v55  ;;  %3354 = vtanh.f32 %v2638_v57  ;;  %v2643_v63 = vmul.f32 0.7978846, %v2633_v56  ;;  %v3071_v57 = vld [vmem:[%s3967_s12] ss:$0 sm:$0xff] }
 0xed3   :  { %3356 = vtanh.f32 %v2640_v54 }
 0xed4   :  { %3358 = vtanh.f32 %v2639_v60 }
 0xed5   :  { %3360 = vtanh.f32 %v2641_v59 }
 0xed6   :  { %3362 = vtanh.f32 %v2642_v62 }
 0xed7   :  { %3364 = vtanh.f32 %v2643_v63 }
 0xed8   :  { %v3347_v2 = vpop.eup %3346 }
 0xed9   :  { %v3349_v3 = vpop.eup %3348  ;;  %v2664_v27 = vadd.f32 1.0, %v3347_v2 }
 0xeda   :  { %v2665_v18 = vadd.f32 1.0, %v3349_v3 }
 0xedb   :  { %v2674_v41 = vmul.f32 0.5, %v2664_v27 }
 0xedc   :  { %v3351_v4 = vpop.eup %3350  ;;  %v2675_v0 = vmul.f32 0.5, %v2665_v18 }
 0xedd   :  { %v2656_v5 = vadd.f32 1.0, %v3351_v4  ;;  %v3353_v9 = vpop.eup %3352  ;;  %v2684_v52 = vmul.f32 %v2674_v41, %v3830_v58 }
 0xede   :  { %v2657_v12 = vadd.f32 1.0, %v3353_v9  ;;  %v2685_v48 = vmul.f32 %v2675_v0, %v3834_v61 }
 0xedf   :  { %v3355_v11 = vpop.eup %3354  ;;  %v2666_v24 = vmul.f32 0.5, %v2656_v5 }
 0xee0   :  { %v3357_v16 = vpop.eup %3356  ;;  %v2658_v17 = vadd.f32 1.0, %v3355_v11  ;;  %v2667_v25 = vmul.f32 0.5, %v2657_v12  ;;  %v2768_v54 = vcombine.low %v2684_v52, %v2685_v48 }
 0xee1   :  { %v3359_v19 = vpop.eup %3358  ;;  %v2660_v20 = vadd.f32 1.0, %v3357_v16  ;;  %v2676_v40 = vmul.f32 %v2666_v24, %v3840_v46 }
 0xee2   :  { %v3361_v26 = vpop.eup %3360  ;;  %v2659_v28 = vadd.f32 1.0, %v3359_v19  ;;  %v2668_v21 = vmul.f32 0.5, %v2658_v17  ;;  %v2677_v33 = vmul.f32 %v2667_v25, %v3849_v7  ;;  %v2775_v61 = vrot.slane %v2768_v54, %v3489_v34 }
 0xee3   :  { %v3363_v30 = vpop.eup %3362  ;;  %v2661_v31 = vadd.f32 1.0, %v3361_v26  ;;  %v2670_v32 = vmul.f32 0.5, %v2660_v20 }
 0xee4   :  { %v3365_v23 = vpop.eup %3364  ;;  %v2662_v36 = vadd.f32 1.0, %v3363_v30  ;;  %v2669_v37 = vmul.f32 0.5, %v2659_v28  ;;  %v2678_v43 = vmul.f32 %v2668_v21, %v3853_v8  ;;  %v2719_v7 = vcombine.low %v2676_v40, %v2677_v33 }
 0xee5   :  { %v2663_v38 = vadd.f32 1.0, %v3365_v23  ;;  %v2671_v39 = vmul.f32 0.5, %v2661_v31  ;;  %v2680_v45 = vmul.f32 %v2670_v32, %v3846_v6  ;;  %v2782_v58 = vrot.slane %v2775_v61, %v3489_v34 }
 0xee6   :  { %v2672_v42 = vmul.f32 0.5, %v2662_v36  ;;  %v2679_v1 = vmul.f32 %v2669_v37, %v3867_v15  ;;  %v2729_v15 = vrot.slane %v2719_v7, %v3489_v34 }
 0xee7   :  { %v2673_v44 = vmul.f32 0.5, %v2663_v38  ;;  %v2681_v10 = vmul.f32 %v2671_v39, %v3859_v13 }
 0xee8   :  { %v2720_v47 = vcombine.low %v2678_v43, %v2679_v1  ;;  %v2682_v50 = vmul.f32 %v2672_v42, %v3863_v14 }
 0xee9   :  { %v2683_v51 = vmul.f32 %v2673_v44, %v3878_v22  ;;  %v2721_v46 = vcombine.low %v2680_v45, %v2681_v10 }
 0xeea   :  { %v2736_v8 = vrot.slane %v2720_v47, %v3489_v34 }
 0xeeb   :  { %v2722_v53 = vcombine.low %v2682_v50, %v2683_v51  ;;  %v2743_v6 = vrot.slane %v2721_v46, %v3489_v34 }
 0xeec   :  { %v2751_v49 = vcombine.low %v2729_v15, %v2736_v8 }
 0xeed   :  { %v2750_v13 = vrot.slane %v2722_v53, %v3489_v34 }
 0xeee   :  { %v2759_v14 = vrot.slane %v2751_v49, %v3489_v34 }
 0xeef   :  { %v2752_v55 = vcombine.low %v2743_v6, %v2750_v13 }
 0xef1   :  { %v2766_v22 = vrot.slane %v2752_v55, %v3489_v34 }
 0xef3   :  { %v2767_v56 = vcombine.low %v2759_v14, %v2766_v22 }
 0xef5   :  { %3286 = vmatprep.mubr.f32.mxu0 %v2767_v56 }
 0xef6   :  { %3287 = vmatmul.mubr.f32.vlgmr.msra.gmra.mxu0 %v2782_v58 }
 0xfb6   :  { %v3288_v59 = vpop.f32.mrf.mxu0 }
 0xfb7   :  { %v2857_v60 = vadd.f32 %v3288_v59, %v3071_v57 }
 0xfb8   :  { %v2851_v62 = vpop.f32.mrf.mxu0 }
 0xfb9   :  { %v2852_v63 = vadd.f32 %v3071_v57, %v2851_v62  ;;  %v2917_v2 = vrot.slane %v2857_v60, %v3489_v34 }
 0xfbb   :  { %v2862_v3 = vcombine.high %v2852_v63, %v2852_v63  ;;  %v2869_v4 = vrot.slane %v2852_v63, %v3489_v34  ;;  %v2918_v11 = vcombine.high %v2917_v2, %v2917_v2  ;;  %v2925_v25 = vrot.slane %v2917_v2, %v3489_v34 }
 0xfbd   :  { %v2876_v5 = vrot.slane %v2862_v3, %v3489_v34  ;;  %v2877_v9 = vcombine.high %v2869_v4, %v2869_v4  ;;  %v2885_v16 = vrot.slane %v2869_v4, %v3489_v34  ;;  %v2932_v27 = vrot.slane %v2918_v11, %v3489_v34 }
 0xfbf   :  { %v2878_v12 = vcombine.high %v2876_v5, %v2876_v5  ;;  %v2892_v17 = vrot.slane %v2876_v5, %v3489_v34  ;;  %v2899_v18 = vrot.slane %v2877_v9, %v3489_v34  ;;  %v2994_v36 = vrot.slane %v2932_v27, %v3489_v34 }
 0xfc1   :  { %v2906_v19 = vrot.slane %v2878_v12, %v3489_v34  ;;  %v2908_v20 = vcombine.high %v2892_v17, %v2892_v17  ;;  %v2933_v24 = vcombine.low %v2885_v16, %v2899_v18  ;;  %v3072_v26 = vcombine.high %v2885_v16, %v2899_v18 }
 0xfc2   :  { %v2955_v32 = vrot.slane %v2892_v17, %v3489_v34  ;;  %v3009_v42 = vrot.slane %v2994_v36, %v3489_v34 }
 0xfc3   :  { %v2910_v28 = vcombine.high %v2906_v19, %v2906_v19  ;;  %v2941_v21 = vrot.slane %v2933_v24, %v3489_v34  ;;  %v2972_v30 = vcombine.low %v2906_v19, %v2908_v20  ;;  %v2948_v31 = vrot.slane %v3072_v26, %v3489_v34 }
 0xfc4   :  { %v2970_v39 = vrot.slane %v2955_v32, %v3489_v34 }
 0xfc5   :  { %v2973_v33 = vcombine.low %v2910_v28, %v2925_v25  ;;  %v2956_v23 = vcombine.low %v2941_v21, %v2948_v31  ;;  %v2980_v37 = vrot.slane %v2972_v30, %v3489_v34 }
 0xfc7   :  { %v2987_v0 = vrot.slane %v2973_v33, %v3489_v34  ;;  %v2963_v38 = vrot.slane %v2956_v23, %v3489_v34 }
 0xfc9   :  { %v2995_v40 = vcombine.low %v2980_v37, %v2987_v0  ;;  %v2971_v41 = vcombine.low %v2963_v38, %v2970_v39 }
 0xfcb   :  { %v3002_v43 = vrot.slane %v2995_v40, %v3489_v34  ;;  %v3013_v1 = vadd.f32 %v2971_v41, %v3724_v29 }
 0xfcd   :  { %v3010_v44 = vcombine.low %v3002_v43, %v3009_v42  ;;  %3015 = vst.msk [vmem:[%s3968_s13] sm:$0x1f] %vm48_vm0, %v3013_v1 }
 0xfcf   :  { %v3014_v45 = vadd.f32 %v3010_v44, %v3731_v35 }
 0xfd1   :  { %3016 = vst.msk [vmem:[%s3968_s13 + $0x8] sm:$0x1f] %vm48_vm0, %v3014_v45 }

// kernel: emu_forward.17
= control target key start
LH: loop header
LB: loop body
LE: loop exit
PB: predicated region body
PF: predicated region fallthrough
CT: control target
= control target key end

     0   :  { %vm32_vm0 = vcmask 261120   ;;  %vm36_vm1 = vcmask 257024   ;;  %vm77_vm2 = vcmask 1043456   ;;  %v279_v47 = vmov 0   ;;  %s374_s0 = inlined_call_operand.vmem [shape: f32[2,12,32], index: 0, kind: input, shape index: {}]   ;;  %s375_s2 = inlined_call_operand.vmem [shape: f32[32,64], index: 2, kind: input, shape index: {}]   ;;  %s376_s1 = inlined_call_operand.vmem [shape: f32[1,32], index: 1, kind: input, shape index: {}]   ;;  %s377_s3 = inlined_call_operand.vmem [shape: f32[1,64], index: 3, kind: input, shape index: {}]   ;;  %s378_s4 = inlined_call_operand.vmem [shape: s32[16,1], index: 4, kind: input, shape index: {}]   ;;  %s379_s5 = inlined_call_operand.vmem [shape: f32[16,1], index: 5, kind: input, shape index: {}]   ;;  %s380_s6 = inlined_call_operand.vmem [shape: f32[16,1], index: 6, kind: output, shape index: {}]  }
   0x1   :  { %v25_v0 = vld [vmem:[%s374_s0 + $0x10] sm:$0xff]  ;;  %v23_v1 = vld [vmem:[%s374_s0] sm:$0xff]  ;;  %v26_v2 = vld [vmem:[%s374_s0 + $0x18] sm:$0xf]  ;;  %262 = vset.pattern.permute.xlu1 %v279_v47  ;;  %261 = vset.pattern.permute.xlu0 %v279_v47  ;;  %vm174_vm3 = vcmask 523264   ;;  %v199_v63 = vlaneseq  ;;  %vm229_vm6 = vcmask 7168  }
   0x2   :  { %v30_v3 = vmul.f32 %v25_v0, %v25_v0  ;;  %v28_v4 = vmul.f32 %v23_v1, %v23_v1  ;;  %v31_v5 = vmul.f32 %v26_v2, %v26_v2  ;;  %v24_v6 = vld [vmem:[%s374_s0 + $0x8] sm:$0xf]  ;;  %v87_v12 = vld [vmem:[%s375_s2 + $0x18] sm:$0xff]  ;;  %v86_v13 = vld [vmem:[%s375_s2 + $0x10] sm:$0xff] }
   0x3   :  { %v29_v7 = vmul.f32 %v24_v6, %v24_v6  ;;  %248 = vmatprep.subr.mxu0 %v87_v12  ;;  %v85_v14 = vld [vmem:[%s375_s2 + $0x8] sm:$0xff]  ;;  %v84_v15 = vld [vmem:[%s375_s2] sm:$0xff] }
   0x4   :  { %v40_v8 = vsel %vm32_vm0, %v30_v3, 0.0  ;;  %v33_v9 = vsel %vm32_vm0, %v28_v4, 0.0  ;;  %v43_v10 = vsel %vm36_vm1, %v31_v5, 0.0  ;;  %249 = vmatpush3.msra.mxu0 %v87_v12  ;;  %v236_v31 = vld [vmem:[%s376_s1] ss:$0 sm:$0xff]  ;;  %v202_v55 = vld [vmem:[%s378_s4 + $0x8] sm:$0xff] }
   0x5   :  { %41 = vadd.xlane.f32.xlu1 %v40_v8  ;;  %34 = vadd.xlane.f32.xlu0 %v33_v9  ;;  %v37_v11 = vsel %vm36_vm1, %v29_v7, 0.0  ;;  %v237_v48 = vld [vmem:[%s377_s3] ss:$0 sm:$0xff]  ;;  %v280_v4 = vmov 0.0  }
   0x6   :  { %250 = vmatprep.subr.mxu0 %v86_v13  ;;  %v201_v56 = vld [vmem:[%s378_s4] sm:$0xff] }
   0x7   :  { %251 = vmatpush3.msra.mxu0 %v86_v13 }
   0x8   :  { %252 = vmatprep.subr.mxu0 %v85_v14 }
   0x9   :  { %44 = vadd.xlane.f32.xlu1 %v43_v10  ;;  %38 = vadd.xlane.f32.xlu0 %v37_v11 }
   0xa   :  { %253 = vmatpush3.msra.mxu0 %v85_v14 }
   0xb   :  { %254 = vmatprep.subr.mxu0 %v84_v15 }
   0xc   :  { %255 = vmatpush3.msra.mxu0 %v84_v15 }
  0x8e   :  { %v42_v16 = vpop.xlane.xlu1 %41  ;;  %v35_v17 = vpop.xlane.xlu0 %34 }
  0x8f   :  { %v49_v18 = vmul.f32 0.03125, %v42_v16  ;;  %v47_v19 = vmul.f32 0.03125, %v35_v17 }
  0x91   :  { %v53_v20 = vadd.f32 1e-06, %v49_v18  ;;  %v51_v21 = vadd.f32 1e-06, %v47_v19 }
  0x92   :  { %v45_v22 = vpop.xlane.xlu1 %44  ;;  %v39_v23 = vpop.xlane.xlu0 %38 }
  0x93   :  { %263 = vrsqrt.f32 %v53_v20  ;;  %v50_v24 = vmul.f32 0.03125, %v45_v22  ;;  %v48_v25 = vmul.f32 0.03125, %v39_v23  ;;  %v226_v22 = vld [vmem:[%s379_s5 + $0x8] sm:$0xff] }
  0x94   :  { %265 = vrsqrt.f32 %v51_v21 }
  0x95   :  { %v54_v26 = vadd.f32 1e-06, %v50_v24  ;;  %v52_v27 = vadd.f32 1e-06, %v48_v25 }
  0x97   :  { %267 = vrsqrt.f32 %v54_v26  ;;  %v225_v26 = vld [vmem:[%s379_s5] sm:$0xff] }
  0x98   :  { %269 = vrsqrt.f32 %v52_v27 }
  0xa0   :  { %v264_v28 = vpop.eup %263 }
  0xa1   :  { %v266_v29 = vpop.eup %265  ;;  %v61_v30 = vmul.f32 %v264_v28, %v25_v0 }
  0xa2   :  { %v59_v32 = vmul.f32 %v266_v29, %v23_v1  ;;  %v200_v1 = vand.u32 127, %v199_v63 }
  0xa3   :  { %v71_v36 = vmul.f32 %v236_v31, %v61_v30 }
  0xa4   :  { %v268_v33 = vpop.eup %267  ;;  %v69_v38 = vmul.f32 %v236_v31, %v59_v32 }
  0xa5   :  { %v270_v34 = vpop.eup %269  ;;  %v62_v35 = vmul.f32 %v268_v33, %v26_v2  ;;  %v81_v41 = vrot.slane %v71_v36, 4 }
  0xa6   :  { %v60_v37 = vmul.f32 %v270_v34, %v24_v6  ;;  %v78_v43 = vrot.slane %v69_v38, 4 }
  0xa7   :  { %v72_v39 = vmul.f32 %v236_v31, %v62_v35 }
  0xa8   :  { %v70_v40 = vmul.f32 %v236_v31, %v60_v37 }
  0xa9   :  { %v82_v42 = vrot.slane %v72_v39, 4 }
  0xaa   :  { %v79_v44 = vrot.slane %v70_v40, 4 }
  0xab   :  { %v83_v45 = vsel %vm77_vm2, %v81_v41, %v82_v42 }
  0xac   :  { %v80_v46 = vsel %vm77_vm2, %v78_v43, %v79_v44 }
  0xad   :  { %256 = vmatprep.mubr.msk.f32.mxu0 %vm32_vm0, %v80_v46 }
  0xae   :  { %257 = vmatmul.mubr.msk.f32.vlgmr.msra.gmra.mxu0 %vm32_vm0, %v83_v45 }
 0x16e   :  { %v258_v49 = vpop.f32.mrf.mxu0 }
 0x16f   :  { %v171_v50 = vadd.f32 %v258_v49, %v237_v48 }
 0x170   :  { %v165_v51 = vpop.f32.mrf.mxu0 }
 0x171   :  { %v166_v52 = vadd.f32 %v237_v48, %v165_v51  ;;  %v178_v53 = vsel %vm174_vm3, %v171_v50, -inf }
 0x172   :  { %179 = vmax.xlane.f32.xlu1 %v178_v53 }
 0x173   :  { %v175_v54 = vsel %vm174_vm3, %v166_v52, -inf }
 0x174   :  { %176 = vmax.xlane.f32.xlu0 %v175_v54 }
 0x183   :  { %207 = vperm.xlu1 %262, %v202_v55  }
 0x18a   :  { %204 = vperm.xlu0 %261, %v201_v56  }
 0x1fb   :  { %v180_v57 = vpop.xlane.xlu1 %179 }
 0x1fc   :  { %v182_v58 = vsub.f32 %v171_v50, %v180_v57 }
 0x1fd   :  { %v177_v59 = vpop.xlane.xlu0 %176 }
 0x1fe   :  { %v185_v60 = vmul.f32 1.442695, %v182_v58  ;;  %v181_v61 = vsub.f32 %v166_v52, %v177_v59 }
 0x1ff   :  { %v208_v2 = vpop.permute.xlu1 %207 }
 0x200   :  { %271 = vpow2.f32 %v185_v60  ;;  %v183_v62 = vmul.f32 1.442695, %v181_v61  ;;  %vm210_vm5 = vcmp.eq.s32.totalorder %v200_v1, %v208_v2 }
 0x201   :  { %v241_v10 = vsel %vm210_vm5, 1.0, %v280_v4 }
 0x202   :  { %273 = vpow2.f32 %v183_v62  ;;  %v216_v12 = vmul.f32 %v241_v10, %v171_v50 }
 0x204   :  { %v220_v13 = vsel %vm174_vm3, %v216_v12, 0.0 }
 0x205   :  { %v205_v0 = vpop.permute.xlu0 %204 }
 0x206   :  { %vm209_vm4 = vcmp.eq.s32.totalorder %v200_v1, %v205_v0 }
 0x207   :  { %v240_v5 = vsel %vm209_vm4, 1.0, %v280_v4 }
 0x208   :  { %v215_v9 = vmul.f32 %v240_v5, %v166_v52 }
 0x20a   :  { %v217_v11 = vsel %vm174_vm3, %v215_v9, 0.0 }
 0x20d   :  { %v272_v3 = vpop.eup %271 }
 0x20e   :  { %v190_v6 = vsel %vm174_vm3, %v272_v3, 0.0 }
 0x20f   :  { %v274_v7 = vpop.eup %273  ;;  %191 = vadd.xlane.f32.xlu0 %v190_v6 }
 0x210   :  { %v187_v8 = vsel %vm174_vm3, %v274_v7, 0.0 }
 0x211   :  { %188 = vadd.xlane.f32.xlu1 %v187_v8 }
 0x215   :  { %218 = vadd.xlane.f32.xlu1 %v217_v11 }
 0x219   :  { %221 = vadd.xlane.f32.xlu1 %v220_v13 }
 0x298   :  { %v192_v14 = vpop.xlane.xlu0 %191 }
 0x299   :  { %275 = vlog2.f32 %v192_v14 }
 0x29a   :  { %v189_v15 = vpop.xlane.xlu1 %188 }
 0x29b   :  { %277 = vlog2.f32 %v189_v15 }
 0x29e   :  { %v219_v16 = vpop.xlane.xlu1 %218 }
 0x2a2   :  { %v222_v23 = vpop.xlane.xlu1 %221 }
 0x2a6   :  { %v276_v17 = vpop.eup %275 }
 0x2a7   :  { %v196_v18 = vmul.f32 0.6931472, %v276_v17 }
 0x2a8   :  { %v278_v19 = vpop.eup %277 }
 0x2a9   :  { %v194_v20 = vmul.f32 0.6931472, %v278_v19  ;;  %v198_v21 = vadd.f32 %v196_v18, %v180_v57 }
 0x2ab   :  { %v197_v24 = vadd.f32 %v194_v20, %v177_v59  ;;  %v224_v25 = vsub.f32 %v198_v21, %v222_v23 }
 0x2ad   :  { %v223_v27 = vsub.f32 %v197_v24, %v219_v16  ;;  %v228_v28 = vmul.f32 %v226_v22, %v224_v25 }
 0x2af   :  { %v227_v29 = vmul.f32 %v225_v26, %v223_v27  ;;  %231 = vst.msk [vmem:[%s380_s6 + $0x8] sm:$0xff] %vm229_vm6, %v228_v28 }
 0x2b1   :  { %230 = vst.msk [vmem:[%s380_s6] sm:$0xff] %vm229_vm6, %v227_v29 }

// kernel: emu_forward.13
= control target key start
LH: loop header
LB: loop body
LE: loop exit
PB: predicated region body
PF: predicated region fallthrough
CT: control target
= control target key end

     0   :  { %vm77_vm0 = vcmask 257024   ;;  %v4470_v14 = vmov 0.0   ;;  %vm4471_vm1 = vmmov 0   ;;  %vm135_vm2 = vcmask 261120   ;;  %s4474_s24 = smov 64   ;;  %s4476_s25 = smov 120   ;;  %s5280_s0 = inlined_call_operand.vmem [shape: f32[2,4,32], index: 0, kind: input, shape index: {}]   ;;  %s5281_s4 = inlined_call_operand.vmem [shape: f32[32,96], index: 4, kind: input, shape index: {}]   ;;  %s5282_s2 = inlined_call_operand.vmem [shape: f32[1,32], index: 2, kind: input, shape index: {}]   ;;  %s5283_s3 = inlined_call_operand.vmem [shape: f32[1,32], index: 3, kind: input, shape index: {}]   ;;  %s5284_s5 = inlined_call_operand.vmem [shape: f32[1,96], index: 5, kind: input, shape index: {}]   ;;  %s5285_s6 = inlined_call_operand.vmem [shape: f32[32,32], index: 6, kind: input, shape index: {}]   ;;  %s5286_s7 = inlined_call_operand.vmem [shape: f32[1,32], index: 7, kind: input, shape index: {}]   ;;  %s5287_s12 = inlined_call_operand.vmem [shape: f32[32,64], index: 12, kind: input, shape index: {}]   ;;  %s5288_s1 = inlined_call_operand.vmem [shape: f32[2,5,32], index: 1, kind: input, shape index: {}]   ;;  %s5289_s10 = inlined_call_operand.vmem [shape: f32[32,32], index: 10, kind: input, shape index: {}]   ;;  %s5290_s13 = inlined_call_operand.vmem [shape: f32[1,64], index: 13, kind: input, shape index: {}]   ;;  %s5291_s8 = inlined_call_operand.vmem [shape: f32[1,32], index: 8, kind: input, shape index: {}]   ;;  %s5292_s9 = inlined_call_operand.vmem [shape: f32[1,32], index: 9, kind: input, shape index: {}]   ;;  %s5293_s11 = inlined_call_operand.vmem [shape: f32[1,32], index: 11, kind: input, shape index: {}]   ;;  %s5294_s14 = inlined_call_operand.vmem [shape: f32[32,32], index: 14, kind: input, shape index: {}]   ;;  %s5295_s15 = inlined_call_operand.vmem [shape: f32[1,32], index: 15, kind: input, shape index: {}]   ;;  %s5296_s18 = inlined_call_operand.vmem [shape: f32[32,128], index: 18, kind: input, shape index: {}]   ;;  %s5297_s16 = inlined_call_operand.vmem [shape: f32[1,32], index: 16, kind: input, shape index: {}]   ;;  %s5298_s17 = inlined_call_operand.vmem [shape: f32[1,32], index: 17, kind: input, shape index: {}]   ;;  %s5299_s20 = inlined_call_operand.vmem [shape: f32[128,32], index: 20, kind: input, shape index: {}]   ;;  %s5300_s19 = inlined_call_operand.vmem [shape: f32[1,128], index: 19, kind: input, shape index: {}]   ;;  %s5301_s21 = inlined_call_operand.vmem [shape: f32[1,32], index: 21, kind: input, shape index: {}]   ;;  %s5302_s22 = inlined_call_operand.vmem [shape: f32[2,4,32], index: 22, kind: output, shape index: {}]  }
   0x1   :  { %5316 = sst [smem:[#allocation2_spill]] %s5280_s0  ;;  %4109 = vmatprep.subr.mxu1 %v4470_v14  ;;  %4117 = vmatprep.mubr.msk.f32.mxu1 %vm4471_vm1, %v4470_v14  ;;  %vm218_vm3 = vcmask 64512   ;;  %v210_v43 = vlaneseq  ;;  %v4473_v47 = vmov -1e+09   ;;  %vm373_vm5 = vcmask 27648   ;;  %s4477_s26 = smov 56  }
   0x2   :  { %5317 = sst [smem:[#allocation3_spill]] %s5281_s4  ;;  %4130 = vmatprep.subr.mxu0 %v4470_v14  ;;  %4132 = vmatprep.mubr.msk.f32.mxu0 %vm4471_vm1, %v4470_v14  ;;  %vm402_vm6 = vcmask 1043456   ;;  %vm398_vm7 = vcmask 31744   ;;  %s4479_s27 = smov 112   ;;  %vm1586_vm8 = vcmask 130048   ;;  %vm1589_vm9 = vcmask 195584  }
   0x3   :  { %5318 = sst [smem:[#allocation4_spill]] %s5282_s2  ;;  %v4677_v44 = vshrl.u32 %v210_v43, 7  ;;  %v213_v45 = vand.u32 127, %v210_v43  ;;  %s4478_s2 = smov 80   ;;  %vm2350_vm10 = vcmask 35840   ;;  %vm2379_vm11 = vcmask 1044480  }
   0x4   :  { %5319 = sst [smem:[#allocation5_spill]] %s5283_s3  ;;  %s4480_s3 = smov 48   ;;  %vm2375_vm12 = vcmask 39936  }
   0x5   :  { %5320 = sst [smem:[#allocation6_spill]] %s5284_s5  ;;  %vm214_vm4 = vcmp.le.s32.totalorder %v213_v45, %v4677_v44  ;;  %s4483_s30 = smov 40  }
   0x6   :  { %5321 = sst [smem:[#allocation7_spill]] %s5285_s6  ;;  %s4472_s6 = smov 96   ;;  %v4680_v48 = vsel %vm214_vm4, 0.0, %v4473_v47 }
   0x7   :  { %5322 = sst [smem:[#allocation8_spill]] %s5286_s7  ;;  %s4475_s7 = smov 88  }
   0x8   :  { %s5323_s29 = sld [smem:[#allocation2_spill]]  ;;  %s5306_s0 = smov 16  }
   0x9   :  { %s5324_s4 = sld [smem:[#allocation3_spill]]  ;;  %s5312_s23 = smov 24  }
   0xa   :  { %s5325_s28 = sld [smem:[#allocation4_spill]] }
   0xb   :  { %s5326_s5 = sld [smem:[#allocation5_spill]] }
   0xe   :  { %v4606_v0 = vld [vmem:[%s5323_s29] sm:$0xf]  ;;  %v4611_v1 = vld [vmem:[%s5323_s29 + $0x4] sm:$0xf]  ;;  %s5314_s29 = smov 104  }
   0xf   :  { %v78_v2 = vsel %vm77_vm0, %v4606_v0, 0.0  ;;  %v81_v3 = vsel %vm77_vm0, %v4611_v1, 0.0  ;;  %v124_v15 = vld [vmem:[%s5324_s4 + $0x18] sm:$0xff]  ;;  %v123_v16 = vld [vmem:[%s5324_s4 + $0x10] sm:$0xff]  ;;  %v122_v17 = vld [vmem:[%s5324_s4 + $0x8] sm:$0xff] }
  0x10   :  { %79 = vadd.xlane.f32.xlu0 %v78_v2  ;;  %4110 = vmatpush3.msra.mxu1 %v124_v15  ;;  %v121_v18 = vld [vmem:[%s5324_s4] sm:$0xff]  ;;  %s5327_s4 = sld [smem:[#allocation6_spill]] }
  0x11   :  { %4111 = vmatprep.subr.mxu1 %v4470_v14  ;;  %v3911_v27 = vld [vmem:[%s5325_s28] ss:$0 sm:$0xff]  ;;  %s5310_s28 = smov 72  }
  0x12   :  { %4112 = vmatpush3.msra.mxu1 %v123_v16  ;;  %v3912_v31 = vld [vmem:[%s5326_s5] ss:$0 sm:$0xff]  ;;  %s5308_s5 = smov 8  }
  0x13   :  { %4113 = vmatprep.subr.mxu1 %v4470_v14 }
  0x14   :  { %82 = vadd.xlane.f32.xlu0 %v81_v3  ;;  %4114 = vmatpush3.msra.mxu1 %v122_v17 }
  0x15   :  { %4115 = vmatprep.subr.mxu1 %v4470_v14 }
  0x16   :  { %4116 = vmatpush3.msra.mxu1 %v121_v18  ;;  %v3913_v36 = vld [vmem:[%s5327_s4] ss:$0 sm:$0xff] }
  0x17   :  { %4120 = vmatprep.subr.mxu1 %v4470_v14 }
  0x99   :  { %v80_v4 = vpop.xlane.xlu0 %79 }
  0x9a   :  { %v85_v5 = vmul.f32 0.03125, %v80_v4 }
  0x9c   :  { %v87_v6 = vsub.f32 %v4606_v0, %v85_v5 }
  0x9d   :  { %v83_v7 = vpop.xlane.xlu0 %82 }
  0x9e   :  { %v86_v8 = vmul.f32 0.03125, %v83_v7  ;;  %v89_v9 = vmul.f32 %v87_v6, %v87_v6 }
  0xa0   :  { %v88_v10 = vsub.f32 %v4611_v1, %v86_v8  ;;  %v91_v11 = vsel %vm77_vm0, %v89_v9, 0.0 }
  0xa1   :  { %92 = vadd.xlane.f32.xlu1 %v91_v11 }
  0xa2   :  { %v90_v12 = vmul.f32 %v88_v10, %v88_v10 }
  0xa4   :  { %v94_v13 = vsel %vm77_vm0, %v90_v12, 0.0 }
  0xa5   :  { %95 = vadd.xlane.f32.xlu1 %v94_v13 }
 0x12a   :  { %v93_v19 = vpop.xlane.xlu1 %92 }
 0x12b   :  { %v97_v20 = vmul.f32 0.03125, %v93_v19 }
 0x12d   :  { %v99_v21 = vadd.f32 1e-06, %v97_v20 }
 0x12e   :  { %v96_v22 = vpop.xlane.xlu1 %95 }
 0x12f   :  { %4390 = vrsqrt.f32 %v99_v21  ;;  %v98_v23 = vmul.f32 0.03125, %v96_v22 }
 0x131   :  { %v100_v24 = vadd.f32 1e-06, %v98_v23 }
 0x133   :  { %4392 = vrsqrt.f32 %v100_v24 }
 0x13c   :  { %v4391_v25 = vpop.eup %4390 }
 0x13d   :  { %v103_v26 = vmul.f32 %v4391_v25, %v87_v6 }
 0x13f   :  { %v111_v30 = vmul.f32 %v3911_v27, %v103_v26 }
 0x140   :  { %v4393_v28 = vpop.eup %4392 }
 0x141   :  { %v104_v29 = vmul.f32 %v4393_v28, %v88_v10  ;;  %v119_v33 = vadd.f32 %v3912_v31, %v111_v30 }
 0x143   :  { %v112_v32 = vmul.f32 %v3911_v27, %v104_v29 }
 0x145   :  { %v120_v34 = vadd.f32 %v3912_v31, %v112_v32 }
 0x147   :  { %v134_v35 = vcombine.low %v119_v33, %v120_v34 }
 0x149   :  { %4118 = vmatmul.mubr.msk.f32.vlgmr.msra.gmra.mxu1 %vm135_vm2, %v134_v35 }
 0x14a   :  { %4122 = vmatprep.mubr.msk.f32.mxu1 %vm4471_vm1, %v4470_v14 }
 0x209   :  { %v204_v37 = vpop.f32.mrf.mxu1 }
 0x20a   :  { %v4655_v38 = vadd.f32 %v3913_v36, %v204_v37 }
 0x20b   :  { %v4119_v39 = vpop.f32.mrf.mxu1 }
 0x20c   :  { %216 = vrot.lane.b32.xlu0 %v4655_v38, %s4472_s6  ;;  %v4661_v40 = vcombine.high %v4655_v38, %v4655_v38 }
 0x20e   :  { %293 = vrot.lane.b32.xlu1 %v4661_v40, %s4472_s6 }
 0x27e   :  { %v217_v41 = vpop.permute.xlu0 %216 }
 0x27f   :  { %4121 = vmatpush3.xpose.msk.msra.mxu1 %vm218_vm3, %v217_v41 }
 0x280   :  { %4125 = vmatprep.subr.mxu1 %v4470_v14  ;;  %v294_v42 = vpop.permute.xlu1 %293 }
 0x282   :  { %4123 = vmatmul.mubr.msk.f32.vlgmr.msra.gmra.mxu1 %vm218_vm3, %v4655_v38 }
 0x283   :  { %4126 = vmatpush3.xpose.msk.msra.mxu1 %vm218_vm3, %v294_v42  ;;  %4127 = vmatprep.mubr.msk.f32.mxu1 %vm4471_vm1, %v4470_v14 }
 0x284   :  { %4135 = vmatprep.subr.mxu1 %v4470_v14 }
 0x286   :  { %4128 = vmatmul.mubr.msk.f32.vlgmr.msra.gmra.mxu1 %vm218_vm3, %v4661_v40 }
 0x287   :  { %4137 = vmatprep.mubr.msk.f32.mxu1 %vm4471_vm1, %v4470_v14 }
 0x342   :  { %v289_v46 = vpop.f32.mrf.mxu1 }
 0x343   :  { %v369_v49 = vmul.f32 0.35355338, %v289_v46 }
 0x344   :  { %v4124_v50 = vpop.f32.mrf.mxu1 }
 0x345   :  { %v371_v51 = vadd.f32 %v369_v49, %v4680_v48 }
 0x346   :  { %v365_v52 = vpop.f32.mrf.mxu1 }
 0x347   :  { %v370_v53 = vmul.f32 0.35355338, %v365_v52  ;;  %v374_v54 = vsel %vm373_vm5, %v371_v51, -inf }
 0x348   :  { %375 = vmax.xlane.f32.xlu1 %v374_v54  ;;  %v4129_v55 = vpop.f32.mrf.mxu1 }
 0x349   :  { %v372_v56 = vadd.f32 %v370_v53, %v4680_v48 }
 0x34b   :  { %v377_v57 = vsel %vm373_vm5, %v372_v56, -inf }
 0x34c   :  { %378 = vmax.xlane.f32.xlu0 %v377_v57 }
 0x359   :  { %475 = vrot.lane.b32.xlu1 %v4661_v40, %s4474_s24 }
 0x35d   :  { %554 = vrot.lane.b32.xlu1 %v4655_v38, %s4475_s7 }
 0x361   :  { %632 = vrot.lane.b32.xlu1 %v4661_v40, %s4475_s7 }
 0x3d1   :  { %v376_v58 = vpop.xlane.xlu1 %375 }
 0x3d2   :  { %v380_v59 = vsub.f32 %v371_v51, %v376_v58 }
 0x3d4   :  { %v382_v60 = vmul.f32 1.442695, %v380_v59 }
 0x3d5   :  { %v476_v61 = vpop.permute.xlu1 %475  ;;  %v379_v62 = vpop.xlane.xlu0 %378 }
 0x3d6   :  { %4394 = vpow2.f32 %v382_v60  ;;  %v381_v63 = vsub.f32 %v372_v56, %v379_v62  ;;  %4136 = vmatpush3.msk.msra.mxu1 %vm402_vm6, %v476_v61 }
 0x3d7   :  { %4145 = vmatprep.subr.mxu1 %v4470_v14 }
 0x3d8   :  { %v384_v2 = vmul.f32 1.442695, %v381_v63 }
 0x3d9   :  { %v555_v7 = vpop.permute.xlu1 %554 }
 0x3da   :  { %4396 = vpow2.f32 %v384_v2 }
 0x3dd   :  { %v633_v8 = vpop.permute.xlu1 %632 }
 0x3e3   :  { %v4395_v3 = vpop.eup %4394 }
 0x3e4   :  { %v386_v4 = vsel %vm373_vm5, %v4395_v3, 0.0 }
 0x3e5   :  { %387 = vadd.xlane.f32.xlu0 %v386_v4 }
 0x3e7   :  { %v4397_v5 = vpop.eup %4396 }
 0x3e8   :  { %v389_v6 = vsel %vm373_vm5, %v4397_v5, 0.0 }
 0x3e9   :  { %390 = vadd.xlane.f32.xlu1 %v389_v6 }
 0x3fa   :  { %630 = vrot.lane.b32.xlu1 %v4661_v40, %s4476_s25 }
 0x3fb   :  { %396 = vrot.lane.b32.xlu0 %v4655_v38, %s4474_s24  ;;  %s5328_s24 = sld [smem:[#allocation7_spill]] }
 0x3ff   :  { %552 = vrot.lane.b32.xlu0 %v4655_v38, %s4476_s25 }
 0x46e   :  { %v388_v9 = vpop.xlane.xlu0 %387 }
 0x46f   :  { %4398 = vrcp.f32 %v388_v9 }
 0x472   :  { %v391_v10 = vpop.xlane.xlu1 %390  ;;  %v397_v11 = vpop.permute.xlu0 %396 }
 0x473   :  { %4400 = vrcp.f32 %v391_v10  ;;  %4131 = vmatpush3.msk.msra.mxu0 %vm402_vm6, %v397_v11 }
 0x474   :  { %4140 = vmatprep.subr.mxu0 %v4470_v14 }
 0x476   :  { %v553_v17 = vpop.permute.xlu0 %552  ;;  %v631_v18 = vpop.permute.xlu1 %630 }
 0x47c   :  { %v4399_v12 = vpop.eup %4398 }
 0x47d   :  { %v394_v13 = vmul.f32 %v4399_v12, %v4395_v3 }
 0x47f   :  { %4133 = vmatmul.mubr.msk.f32.vlgmr.msra.gmra.mxu0 %vm398_vm7, %v394_v13 }
 0x480   :  { %v4401_v15 = vpop.eup %4400  ;;  %4141 = vmatpush3.xpose.msk.msra.mxu0 %vm218_vm3, %v555_v7  ;;  %4142 = vmatprep.mubr.msk.f32.mxu0 %vm4471_vm1, %v4470_v14 }
 0x481   :  { %v395_v16 = vmul.f32 %v4401_v15, %v4397_v5  ;;  %4150 = vmatprep.subr.mxu0 %v4470_v14 }
 0x483   :  { %4138 = vmatmul.mubr.msk.f32.vlgmr.msra.gmra.mxu1 %vm398_vm7, %v395_v16  ;;  %4143 = vmatmul.mubr.msk.f32.vlgmr.msra.gmra.mxu0 %vm218_vm3, %v553_v17 }
 0x484   :  { %4146 = vmatpush3.xpose.msk.msra.mxu1 %vm218_vm3, %v633_v8  ;;  %4147 = vmatprep.mubr.msk.f32.mxu1 %vm4471_vm1, %v4470_v14 }
 0x485   :  { %4155 = vmatprep.subr.mxu1 %v4470_v14  ;;  %4152 = vmatprep.mubr.msk.f32.mxu0 %vm4471_vm1, %v4470_v14 }
 0x487   :  { %4148 = vmatmul.mubr.msk.f32.vlgmr.msra.gmra.mxu1 %vm218_vm3, %v631_v18 }
 0x488   :  { %4157 = vmatprep.mubr.msk.f32.mxu1 %vm4471_vm1, %v4470_v14 }
 0x53f   :  { %v4718_v19 = vpop.f32.mrf.mxu0 }
 0x541   :  { %v4134_v20 = vpop.f32.mrf.mxu0 }
 0x543   :  { %v4720_v21 = vpop.f32.mrf.mxu1  ;;  %v626_v22 = vpop.f32.mrf.mxu0 }
 0x544   :  { %v708_v23 = vmul.f32 0.35355338, %v626_v22 }
 0x545   :  { %v4139_v24 = vpop.f32.mrf.mxu1  ;;  %v4144_v25 = vpop.f32.mrf.mxu0 }
 0x546   :  { %v710_v26 = vadd.f32 %v708_v23, %v4680_v48 }
 0x547   :  { %v704_v27 = vpop.f32.mrf.mxu1 }
 0x548   :  { %v709_v28 = vmul.f32 0.35355338, %v704_v27  ;;  %v712_v29 = vsel %vm373_vm5, %v710_v26, -inf }
 0x549   :  { %713 = vmax.xlane.f32.xlu0 %v712_v29  ;;  %v4149_v30 = vpop.f32.mrf.mxu1 }
 0x54a   :  { %v711_v31 = vadd.f32 %v709_v28, %v4680_v48 }
 0x54c   :  { %v715_v32 = vsel %vm373_vm5, %v711_v31, -inf }
 0x54d   :  { %716 = vmax.xlane.f32.xlu1 %v715_v32 }
 0x55e   :  { %811 = vrot.lane.b32.xlu1 %v4661_v40, %s4477_s26 }
 0x562   :  { %890 = vrot.lane.b32.xlu1 %v4655_v38, %s4478_s2 }
 0x566   :  { %968 = vrot.lane.b32.xlu1 %v4661_v40, %s4478_s2 }
 0x56a   :  { %966 = vrot.lane.b32.xlu1 %v4661_v40, %s4479_s27 }
 0x5d2   :  { %v714_v33 = vpop.xlane.xlu0 %713 }
 0x5d3   :  { %v718_v34 = vsub.f32 %v710_v26, %v714_v33 }
 0x5d5   :  { %v720_v35 = vmul.f32 1.442695, %v718_v34 }
 0x5d6   :  { %v717_v36 = vpop.xlane.xlu1 %716 }
 0x5d7   :  { %4402 = vpow2.f32 %v720_v35  ;;  %v719_v37 = vsub.f32 %v711_v31, %v717_v36 }
 0x5d9   :  { %v722_v39 = vmul.f32 1.442695, %v719_v37 }
 0x5da   :  { %v812_v41 = vpop.permute.xlu1 %811 }
 0x5db   :  { %4404 = vpow2.f32 %v722_v39  ;;  %4156 = vmatpush3.msk.msra.mxu1 %vm402_vm6, %v812_v41 }
 0x5dc   :  { %4165 = vmatprep.subr.mxu1 %v4470_v14 }
 0x5de   :  { %v891_v51 = vpop.permute.xlu1 %890 }
 0x5e2   :  { %v969_v55 = vpop.permute.xlu1 %968 }
 0x5e4   :  { %v4403_v42 = vpop.eup %4402 }
 0x5e5   :  { %v724_v43 = vsel %vm373_vm5, %v4403_v42, 0.0 }
 0x5e6   :  { %725 = vadd.xlane.f32.xlu0 %v724_v43  ;;  %v967_v58 = vpop.permute.xlu1 %966 }
 0x5e8   :  { %v4405_v45 = vpop.eup %4404 }
 0x5e9   :  { %v727_v46 = vsel %vm373_vm5, %v4405_v45, 0.0 }
 0x5ea   :  { %728 = vadd.xlane.f32.xlu0 %v727_v46 }
 0x600   :  { %734 = vrot.lane.b32.xlu0 %v4655_v38, %s4477_s26 }
 0x604   :  { %888 = vrot.lane.b32.xlu0 %v4655_v38, %s4479_s27 }
 0x66f   :  { %v726_v47 = vpop.xlane.xlu0 %725 }
 0x670   :  { %4406 = vrcp.f32 %v726_v47 }
 0x673   :  { %v729_v49 = vpop.xlane.xlu0 %728 }
 0x674   :  { %4408 = vrcp.f32 %v729_v49 }
 0x677   :  { %v735_v50 = vpop.permute.xlu0 %734 }
 0x678   :  { %4151 = vmatpush3.msk.msra.mxu0 %vm402_vm6, %v735_v50 }
 0x679   :  { %4160 = vmatprep.subr.mxu0 %v4470_v14 }
 0x67b   :  { %v889_v57 = vpop.permute.xlu0 %888 }
 0x67d   :  { %v4407_v52 = vpop.eup %4406 }
 0x67e   :  { %v732_v53 = vmul.f32 %v4407_v52, %v4403_v42 }
 0x680   :  { %4153 = vmatmul.mubr.msk.f32.vlgmr.msra.gmra.mxu0 %vm398_vm7, %v732_v53 }
 0x681   :  { %v4409_v54 = vpop.eup %4408  ;;  %4161 = vmatpush3.xpose.msk.msra.mxu0 %vm218_vm3, %v891_v51  ;;  %4162 = vmatprep.mubr.msk.f32.mxu0 %vm4471_vm1, %v4470_v14 }
 0x682   :  { %v733_v56 = vmul.f32 %v4409_v54, %v4405_v45  ;;  %4170 = vmatprep.subr.mxu0 %v4470_v14 }
 0x684   :  { %4158 = vmatmul.mubr.msk.f32.vlgmr.msra.gmra.mxu1 %vm398_vm7, %v733_v56  ;;  %4163 = vmatmul.mubr.msk.f32.vlgmr.msra.gmra.mxu0 %vm218_vm3, %v889_v57 }
 0x685   :  { %4166 = vmatpush3.xpose.msk.msra.mxu1 %vm218_vm3, %v969_v55  ;;  %4167 = vmatprep.mubr.msk.f32.mxu1 %vm4471_vm1, %v4470_v14 }
 0x686   :  { %4175 = vmatprep.subr.mxu1 %v4470_v14  ;;  %4172 = vmatprep.mubr.msk.f32.mxu0 %vm4471_vm1, %v4470_v14 }
 0x688   :  { %4168 = vmatmul.mubr.msk.f32.vlgmr.msra.gmra.mxu1 %vm218_vm3, %v967_v58 }
 0x689   :  { %4177 = vmatprep.mubr.msk.f32.mxu1 %vm4471_vm1, %v4470_v14 }
 0x740   :  { %v4758_v59 = vpop.f32.mrf.mxu0 }
 0x742   :  { %v4154_v60 = vpop.f32.mrf.mxu0 }
 0x744   :  { %v4760_v61 = vpop.f32.mrf.mxu1  ;;  %v962_v62 = vpop.f32.mrf.mxu0 }
 0x745   :  { %v1044_v63 = vmul.f32 0.35355338, %v962_v62 }
 0x746   :  { %v4159_v2 = vpop.f32.mrf.mxu1  ;;  %v4164_v3 = vpop.f32.mrf.mxu0 }
 0x747   :  { %v1046_v4 = vadd.f32 %v1044_v63, %v4680_v48 }
 0x748   :  { %v1040_v5 = vpop.f32.mrf.mxu1 }
 0x749   :  { %v1045_v6 = vmul.f32 0.35355338, %v1040_v5  ;;  %v1048_v7 = vsel %vm373_vm5, %v1046_v4, -inf }
 0x74a   :  { %1049 = vmax.xlane.f32.xlu0 %v1048_v7  ;;  %v4169_v8 = vpop.f32.mrf.mxu1 }
 0x74b   :  { %v1047_v9 = vadd.f32 %v1045_v6, %v4680_v48  ;;  %v1594_v8 = vld [vmem:[%s5328_s24 + $0x10] sm:$0xff] }
 0x74d   :  { %v1051_v10 = vsel %vm373_vm5, %v1047_v9, -inf }
 0x74e   :  { %1052 = vmax.xlane.f32.xlu1 %v1051_v10  ;;  %v1592_v10 = vld [vmem:[%s5328_s24] sm:$0xff] }
 0x75f   :  { %1147 = vrot.lane.b32.xlu1 %v4661_v40, %s4480_s3 }
 0x763   :  { %1226 = vrot.lane.b32.xlu1 %v4655_v38, %s5310_s28 }
 0x767   :  { %1304 = vrot.lane.b32.xlu1 %v4661_v40, %s5310_s28 }
 0x76b   :  { %1302 = vrot.lane.b32.xlu1 %v4661_v40, %s5314_s29 }
 0x7d3   :  { %v1050_v11 = vpop.xlane.xlu0 %1049 }
 0x7d4   :  { %v1054_v12 = vsub.f32 %v1046_v4, %v1050_v11 }
 0x7d6   :  { %v1056_v13 = vmul.f32 1.442695, %v1054_v12 }
 0x7d7   :  { %v1053_v15 = vpop.xlane.xlu1 %1052 }
 0x7d8   :  { %4410 = vpow2.f32 %v1056_v13  ;;  %v1055_v16 = vsub.f32 %v1047_v9, %v1053_v15  ;;  %v1593_v9 = vld [vmem:[%s5328_s24 + $0x8] sm:$0xff] }
 0x7da   :  { %v1058_v17 = vmul.f32 1.442695, %v1055_v16 }
 0x7db   :  { %v1148_v18 = vpop.permute.xlu1 %1147 }
 0x7dc   :  { %4412 = vpow2.f32 %v1058_v17  ;;  %4176 = vmatpush3.msk.msra.mxu1 %vm402_vm6, %v1148_v18 }
 0x7dd   :  { %4185 = vmatprep.subr.mxu1 %v4470_v14 }
 0x7df   :  { %v1227_v28 = vpop.permute.xlu1 %1226 }
 0x7e3   :  { %v1305_v32 = vpop.permute.xlu1 %1304 }
 0x7e5   :  { %v4411_v20 = vpop.eup %4410 }
 0x7e6   :  { %v1060_v22 = vsel %vm373_vm5, %v4411_v20, 0.0 }
 0x7e7   :  { %1061 = vadd.xlane.f32.xlu0 %v1060_v22  ;;  %v1303_v35 = vpop.permute.xlu1 %1302 }
 0x7e9   :  { %v4413_v23 = vpop.eup %4412 }
 0x7ea   :  { %v1063_v24 = vsel %vm373_vm5, %v4413_v23, 0.0 }
 0x7eb   :  { %1064 = vadd.xlane.f32.xlu0 %v1063_v24 }
 0x801   :  { %1070 = vrot.lane.b32.xlu0 %v4655_v38, %s4480_s3 }
 0x805   :  { %1224 = vrot.lane.b32.xlu0 %v4655_v38, %s5314_s29 }
 0x870   :  { %v1062_v25 = vpop.xlane.xlu0 %1061 }
 0x871   :  { %4414 = vrcp.f32 %v1062_v25 }
 0x874   :  { %v1065_v26 = vpop.xlane.xlu0 %1064 }
 0x875   :  { %4416 = vrcp.f32 %v1065_v26 }
 0x878   :  { %v1071_v27 = vpop.permute.xlu0 %1070 }
 0x879   :  { %4171 = vmatpush3.msk.msra.mxu0 %vm402_vm6, %v1071_v27 }
 0x87a   :  { %4180 = vmatprep.subr.mxu0 %v4470_v14 }
 0x87c   :  { %v1225_v34 = vpop.permute.xlu0 %1224 }
 0x87e   :  { %v4415_v29 = vpop.eup %4414 }
 0x87f   :  { %v1068_v30 = vmul.f32 %v4415_v29, %v4411_v20 }
 0x881   :  { %4173 = vmatmul.mubr.msk.f32.vlgmr.msra.gmra.mxu0 %vm398_vm7, %v1068_v30 }
 0x882   :  { %v4417_v31 = vpop.eup %4416  ;;  %4181 = vmatpush3.xpose.msk.msra.mxu0 %vm218_vm3, %v1227_v28  ;;  %4182 = vmatprep.mubr.msk.f32.mxu0 %vm4471_vm1, %v4470_v14 }
 0x883   :  { %v1069_v33 = vmul.f32 %v4417_v31, %v4413_v23  ;;  %4190 = vmatprep.subr.mxu0 %v4470_v14 }
 0x885   :  { %4178 = vmatmul.mubr.msk.f32.vlgmr.msra.gmra.mxu1 %vm398_vm7, %v1069_v33  ;;  %4183 = vmatmul.mubr.msk.f32.vlgmr.msra.gmra.mxu0 %vm218_vm3, %v1225_v34 }
 0x886   :  { %4186 = vmatpush3.xpose.msk.msra.mxu1 %vm218_vm3, %v1305_v32  ;;  %4187 = vmatprep.mubr.msk.f32.mxu1 %vm4471_vm1, %v4470_v14 }
 0x887   :  { %4195 = vmatprep.subr.mxu1 %v4470_v14  ;;  %4192 = vmatprep.mubr.msk.f32.mxu0 %vm4471_vm1, %v4470_v14 }
 0x889   :  { %4188 = vmatmul.mubr.msk.f32.vlgmr.msra.gmra.mxu1 %vm218_vm3, %v1303_v35 }
 0x88a   :  { %4197 = vmatprep.mubr.msk.f32.mxu1 %vm4471_vm1, %v4470_v14 }
 0x941   :  { %v1143_v36 = vpop.f32.mrf.mxu0 }
 0x943   :  { %v4174_v37 = vpop.f32.mrf.mxu0 }
 0x945   :  { %v1220_v39 = vpop.f32.mrf.mxu1  ;;  %v1298_v41 = vpop.f32.mrf.mxu0 }
 0x946   :  { %v1380_v42 = vmul.f32 0.35355338, %v1298_v41 }
 0x947   :  { %v4179_v43 = vpop.f32.mrf.mxu1  ;;  %v4184_v45 = vpop.f32.mrf.mxu0 }
 0x948   :  { %v1382_v46 = vadd.f32 %v1380_v42, %v4680_v48  ;;  %v73_v45 = vld [vmem:[%s5288_s1] sm:$0x1f] }
 0x949   :  { %v1376_v47 = vpop.f32.mrf.mxu1 }
 0x94a   :  { %v1381_v49 = vmul.f32 0.35355338, %v1376_v47  ;;  %v1384_v50 = vsel %vm373_vm5, %v1382_v46, -inf  ;;  %v1822_v47 = vcombine.high %v73_v45, %v73_v45 }
 0x94b   :  { %1385 = vmax.xlane.f32.xlu0 %v1384_v50  ;;  %v4189_v51 = vpop.f32.mrf.mxu1 }
 0x94c   :  { %v1383_v52 = vadd.f32 %v1381_v49, %v4680_v48 }
 0x94e   :  { %v1387_v53 = vsel %vm373_vm5, %v1383_v52, -inf }
 0x94f   :  { %1388 = vmax.xlane.f32.xlu1 %v1387_v53 }
 0x960   :  { %1483 = vrot.lane.b32.xlu1 %v4661_v40, %s4483_s30 }
 0x964   :  { %1562 = vrot.lane.b32.xlu1 %v4758_v59, %s5308_s5 }
 0x968   :  { %1564 = vrot.lane.b32.xlu1 %v4760_v61, %s5308_s5 }
 0x96c   :  { %1572 = vrot.lane.b32.xlu1 %v1220_v39, %s5306_s0  ;;  %v4487_v39 = vmov 1966171168  }
 0x96d   :  { %v1824_v41 = vunpack.c.l.s4 %v4487_v39 }
 0x96f   :  { %v1825_v42 = vunpack.c.0.s8 %v1824_v41 }
 0x971   :  { %v4862_v43 = vsub.s32 %v1825_v42, %v4677_v44  ;;  %v1816_v44 = vld [vmem:[%s5287_s12 + $0x8] sm:$0xff] }
 0x973   :  { %v1829_v49 = vrot.slane %v73_v45, %v4862_v43  ;;  %v1836_v53 = vrot.slane %v1822_v47, %v4862_v43 }
 0x9d4   :  { %v1386_v54 = vpop.xlane.xlu0 %1385 }
 0x9d5   :  { %v1390_v55 = vsub.f32 %v1382_v46, %v1386_v54  ;;  %v74_v46 = vld [vmem:[%s5288_s1 + $0x8] sm:$0x1f]  ;;  %v1837_v54 = vcombine.high %v1829_v49, %v1829_v49 }
 0x9d6   :  { %v1861_v50 = vcombine.high %v74_v46, %v74_v46  ;;  %v1868_v51 = vrot.slane %v74_v46, %v4862_v43 }
 0x9d7   :  { %v1392_v56 = vmul.f32 1.442695, %v1390_v55  ;;  %v1844_v55 = vrot.slane %v1829_v49, %v4862_v43 }
 0x9d8   :  { %v1389_v48 = vpop.xlane.xlu1 %1388 }
 0x9d9   :  { %4418 = vpow2.f32 %v1392_v56  ;;  %v1391_v57 = vsub.f32 %v1383_v52, %v1389_v48  ;;  %v1815_v52 = vld [vmem:[%s5287_s12] sm:$0xff]  ;;  %v1876_v56 = vcombine.high %v1868_v51, %v1868_v51  ;;  %v1883_v48 = vrot.slane %v1868_v51, %v4862_v43 }
 0x9db   :  { %v1394_v58 = vmul.f32 1.442695, %v1391_v57  ;;  %v1875_v57 = vrot.slane %v1861_v50, %v4862_v43 }
 0x9dc   :  { %v1484_v60 = vpop.permute.xlu1 %1483 }
 0x9dd   :  { %4420 = vpow2.f32 %v1394_v58  ;;  %4196 = vmatpush3.msk.msra.mxu1 %vm402_vm6, %v1484_v60  ;;  %v1851_v58 = vrot.slane %v1836_v53, %v4862_v43  ;;  %v1858_v60 = vrot.slane %v1837_v54, %v4862_v43 }
 0x9de   :  { %4200 = vmatprep.subr.mxu1 %v4470_v14 }
 0x9e0   :  { %v1563_v16 = vpop.permute.xlu1 %1562 }
 0x9e1   :  { %v1584_v23 = vsel %vm218_vm3, %v4718_v19, %v1563_v16 }
 0x9e4   :  { %v1565_v17 = vpop.permute.xlu1 %1564 }
 0x9e5   :  { %v1585_v24 = vsel %vm218_vm3, %v4720_v21, %v1565_v17 }
 0x9e6   :  { %v4419_v40 = vpop.eup %4418 }
 0x9e7   :  { %v1396_v59 = vsel %vm373_vm5, %v4419_v40, 0.0 }
 0x9e8   :  { %1397 = vadd.xlane.f32.xlu0 %v1396_v59  ;;  %v1573_v20 = vpop.permute.xlu1 %1572  ;;  %v1898_v59 = vcombine.high %v1883_v48, %v1883_v48 }
 0x9e9   :  { %v1588_v25 = vsel %vm1586_vm8, %v1585_v24, %v1573_v20 }
 0x9ea   :  { %v4421_v61 = vpop.eup %4420 }
 0x9eb   :  { %v1399_v62 = vsel %vm373_vm5, %v4421_v61, 0.0 }
 0x9ec   :  { %1400 = vadd.xlane.f32.xlu0 %v1399_v62  ;;  %v1906_v62 = vcombine.low %v1844_v55, %v1858_v60 }
 0xa02   :  { %1406 = vrot.lane.b32.xlu0 %v4655_v38, %s4483_s30  ;;  %v1595_v38 = vld [vmem:[%s5328_s24 + $0x18] sm:$0xff]  ;;  %s5334_s30 = smov 24  }
 0xa06   :  { %1570 = vrot.lane.b32.xlu0 %v1143_v36, %s5306_s0  ;;  %s5329_s0 = sld [smem:[#allocation8_spill]] }
 0xa0c   :  { %v3947_v19 = vld [vmem:[%s5329_s0] ss:$0 sm:$0xff] }
 0xa71   :  { %v1398_v63 = vpop.xlane.xlu0 %1397 }
 0xa72   :  { %4422 = vrcp.f32 %v1398_v63  ;;  %v3954_v63 = vcombine.high %v1844_v55, %v1858_v60 }
 0xa75   :  { %v1401_v2 = vpop.xlane.xlu0 %1400 }
 0xa76   :  { %4424 = vrcp.f32 %v1401_v2  ;;  %v1908_v2 = vcombine.low %v1851_v58, %v1883_v48 }
 0xa79   :  { %v1407_v3 = vpop.permute.xlu0 %1406 }
 0xa7a   :  { %4191 = vmatpush3.msk.msra.mxu0 %vm402_vm6, %v1407_v3 }
 0xa7d   :  { %v1571_v18 = vpop.permute.xlu0 %1570 }
 0xa7e   :  { %v1587_v26 = vsel %vm1586_vm8, %v1584_v23, %v1571_v18 }
 0xa7f   :  { %v4423_v4 = vpop.eup %4422 }
 0xa80   :  { %v1404_v5 = vmul.f32 %v4423_v4, %v4419_v40  ;;  %v1897_v40 = vrot.slane %v1876_v56, %v4862_v43 }
 0xa82   :  { %4193 = vmatmul.mubr.msk.f32.vlgmr.msra.gmra.mxu0 %vm398_vm7, %v1404_v5  ;;  %v1899_v3 = vcombine.high %v1897_v40, %v1897_v40  ;;  %v1909_v4 = vcombine.low %v1897_v40, %v1898_v59  ;;  %v1916_v5 = vrot.slane %v1906_v62, %v4862_v43 }
 0xa83   :  { %v4425_v6 = vpop.eup %4424 }
 0xa84   :  { %v1405_v7 = vmul.f32 %v4425_v6, %v4421_v61  ;;  %v1890_v61 = vrot.slane %v1875_v57, %v4862_v43  ;;  %v1923_v6 = vrot.slane %v3954_v63, %v4862_v43 }
 0xa86   :  { %4198 = vmatmul.mubr.msk.f32.vlgmr.msra.gmra.mxu1 %vm398_vm7, %v1405_v7  ;;  %v1930_v7 = vrot.slane %v1908_v2, %v4862_v43 }
 0xa87   :  { %4208 = vmatprep.mubr.msk.f32.mxu1 %vm4471_vm1, %v4470_v14  ;;  %4201 = vmatpush3.msra.mxu1 %v1595_v38  ;;  %v1955_v38 = vcombine.low %v1899_v3, %v1890_v61 }
 0xa88   :  { %4202 = vmatprep.subr.mxu1 %v4470_v14 }
 0xa89   :  { %4203 = vmatpush3.msra.mxu1 %v1594_v8  ;;  %v1937_v8 = vrot.slane %v1909_v4, %v4862_v43 }
 0xa8a   :  { %4204 = vmatprep.subr.mxu1 %v4470_v14 }
 0xa8b   :  { %4205 = vmatpush3.msra.mxu1 %v1593_v9  ;;  %v1938_v9 = vcombine.low %v1916_v5, %v1923_v6 }
 0xa8c   :  { %4206 = vmatprep.subr.mxu1 %v4470_v14 }
 0xa8d   :  { %4207 = vmatpush3.msra.mxu1 %v1592_v10  ;;  %v1962_v10 = vrot.slane %v1955_v38, %v4862_v43 }
 0xa8e   :  { %4211 = vmatprep.subr.mxu1 %v4470_v14 }
 0xb42   :  { %v1479_v11 = vpop.f32.mrf.mxu0 }
 0xb43   :  { %1578 = vrot.lane.b32.xlu0 %v1479_v11, %s5312_s23  ;;  %v1939_v11 = vcombine.low %v1930_v7, %v1937_v8 }
 0xb44   :  { %v4194_v12 = vpop.f32.mrf.mxu0 }
 0xb45   :  { %v1946_v12 = vrot.slane %v1938_v9, %v4862_v43 }
 0xb46   :  { %v1556_v13 = vpop.f32.mrf.mxu1 }
 0xb47   :  { %1580 = vrot.lane.b32.xlu1 %v1556_v13, %s5312_s23  ;;  %v1953_v13 = vrot.slane %v1939_v11, %v4862_v43  ;;  %v3949_v11 = vld [vmem:[%s5291_s8] ss:$0 sm:$0xff] }
 0xb48   :  { %v4199_v15 = vpop.f32.mrf.mxu1 }
 0xb49   :  { %v1969_v15 = vrot.slane %v1962_v10, %v4862_v43  ;;  %v1954_v16 = vcombine.low %v1946_v12, %v1953_v13 }
 0xb4b   :  { %4230 = vmatprep.mubr.msk.f32.mxu0 %vm135_vm2, %v1954_v16 }
 0xbb5   :  { %v1579_v22 = vpop.permute.xlu0 %1578 }
 0xbb6   :  { %v1590_v28 = vsel %vm1589_vm9, %v1587_v26, %v1579_v22 }
 0xbb9   :  { %v1581_v27 = vpop.permute.xlu1 %1580 }
 0xbba   :  { %v1591_v29 = vsel %vm1589_vm9, %v1588_v25, %v1581_v27 }
 0xbbb   :  { %v1605_v30 = vcombine.low %v1590_v28, %v1591_v29  ;;  %v1730_v29 = vld [vmem:[%s5289_s10 + $0x18] sm:$0xff] }
 0xbbd   :  { %4209 = vmatmul.mubr.msk.f32.vlgmr.msra.gmra.mxu1 %vm135_vm2, %v1605_v30  ;;  %v1729_v30 = vld [vmem:[%s5289_s10 + $0x10] sm:$0xff] }
 0xbbe   :  { %4219 = vmatprep.mubr.msk.f32.mxu1 %vm4471_vm1, %v4470_v14  ;;  %4212 = vmatpush3.msra.mxu1 %v1730_v29 }
 0xbbf   :  { %4213 = vmatprep.subr.mxu1 %v4470_v14 }
 0xbc0   :  { %4214 = vmatpush3.msra.mxu1 %v1729_v30 }
 0xbc1   :  { %4215 = vmatprep.subr.mxu1 %v4470_v14 }
 0xc7d   :  { %v1674_v21 = vpop.f32.mrf.mxu1 }
 0xc7e   :  { %v1675_v31 = vadd.f32 %v3947_v19, %v1674_v21  ;;  %v1728_v19 = vld [vmem:[%s5289_s10 + $0x8] sm:$0xff]  ;;  %v1727_v21 = vld [vmem:[%s5289_s10] sm:$0xff] }
 0xc7f   :  { %v4210_v32 = vpop.f32.mrf.mxu1  ;;  %4216 = vmatpush3.msra.mxu1 %v1728_v19 }
 0xc80   :  { %v1679_v33 = vcombine.high %v1675_v31, %v1675_v31  ;;  %v4852_v34 = vadd.f32 %v1675_v31, %v4606_v0  ;;  %v1818_v0 = vld [vmem:[%s5287_s12 + $0x18] sm:$0xff]  ;;  %4217 = vmatprep.subr.mxu1 %v4470_v14  ;;  %v3953_v32 = vld [vmem:[%s5290_s13] ss:$0 sm:$0xff] }
 0xc81   :  { %4222 = vmatprep.subr.mxu0 %v1818_v0  ;;  %4218 = vmatpush3.msra.mxu1 %v1727_v21 }
 0xc82   :  { %v4855_v35 = vadd.f32 %v1679_v33, %v4611_v1  ;;  %v1685_v36 = vsel %vm77_vm0, %v4852_v34, 0.0  ;;  %v1817_v1 = vld [vmem:[%s5287_s12 + $0x10] sm:$0xff]  ;;  %4223 = vmatpush3.msra.mxu0 %v1818_v0  ;;  %4233 = vmatprep.subr.mxu1 %v4470_v14 }
 0xc83   :  { %1686 = vadd.xlane.f32.xlu0 %v1685_v36  ;;  %4224 = vmatprep.subr.mxu0 %v1817_v1 }
 0xc84   :  { %v1688_v37 = vsel %vm77_vm0, %v4855_v35, 0.0  ;;  %4225 = vmatpush3.msra.mxu0 %v1817_v1 }
 0xc85   :  { %1689 = vadd.xlane.f32.xlu1 %v1688_v37  ;;  %4226 = vmatprep.subr.mxu0 %v1816_v44 }
 0xc86   :  { %4227 = vmatpush3.msra.mxu0 %v1816_v44 }
 0xc87   :  { %4228 = vmatprep.subr.mxu0 %v1815_v52 }
 0xc88   :  { %4229 = vmatpush3.msra.mxu0 %v1815_v52 }
 0xc89   :  { %4243 = vmatprep.subr.mxu0 %v4470_v14  ;;  %4231 = vmatmul.mubr.msk.f32.vlgmr.msra.gmra.mxu0 %vm135_vm2, %v1969_v15 }
 0xc8a   :  { %4245 = vmatprep.mubr.msk.f32.mxu0 %vm4471_vm1, %v4470_v14 }
 0xd0c   :  { %v1687_v17 = vpop.xlane.xlu0 %1686 }
 0xd0d   :  { %v1691_v18 = vmul.f32 0.03125, %v1687_v17 }
 0xd0e   :  { %v1690_v20 = vpop.xlane.xlu1 %1689 }
 0xd0f   :  { %v4906_v22 = vsub.f32 %v4852_v34, %v1691_v18  ;;  %v1692_v23 = vmul.f32 0.03125, %v1690_v20  ;;  %v3950_v18 = vld [vmem:[%s5292_s9] ss:$0 sm:$0xff] }
 0xd11   :  { %v4909_v24 = vsub.f32 %v4855_v35, %v1692_v23  ;;  %v1695_v25 = vmul.f32 %v4906_v22, %v4906_v22 }
 0xd13   :  { %v1697_v26 = vsel %vm77_vm0, %v1695_v25, 0.0  ;;  %v1696_v27 = vmul.f32 %v4909_v24, %v4909_v24 }
 0xd14   :  { %1698 = vadd.xlane.f32.xlu0 %v1697_v26 }
 0xd15   :  { %v1700_v28 = vsel %vm77_vm0, %v1696_v27, 0.0 }
 0xd18   :  { %1701 = vadd.xlane.f32.xlu0 %v1700_v28 }
 0xd49   :  { %v4232_v31 = vpop.f32.mrf.mxu0 }
 0xd4a   :  { %v2046_v33 = vadd.f32 %v4232_v31, %v3953_v32 }
 0xd4b   :  { %v2040_v36 = vpop.f32.mrf.mxu0 }
 0xd4c   :  { %v2041_v37 = vadd.f32 %v3953_v32, %v2040_v36  ;;  %v2106_v39 = vrot.slane %v2046_v33, %v4862_v43 }
 0xd4e   :  { %v2051_v41 = vcombine.high %v2041_v37, %v2041_v37  ;;  %v2107_v42 = vcombine.high %v2106_v39, %v2106_v39  ;;  %v2114_v46 = vrot.slane %v2106_v39, %v4862_v43  ;;  %v2058_v40 = vrot.slane %v2041_v37, %v4862_v43 }
 0xd50   :  { %v2065_v0 = vrot.slane %v2051_v41, %v4862_v43  ;;  %v2121_v44 = vrot.slane %v2107_v42, %v4862_v43  ;;  %v2066_v63 = vcombine.high %v2058_v40, %v2058_v40  ;;  %v2074_v4 = vrot.slane %v2058_v40, %v4862_v43 }
 0xd52   :  { %v2067_v1 = vcombine.high %v2065_v0, %v2065_v0  ;;  %v2081_v45 = vrot.slane %v2065_v0, %v4862_v43  ;;  %v2257_v52 = vrot.slane %v2121_v44, %v4862_v43  ;;  %v2088_v5 = vrot.slane %v2066_v63, %v4862_v43 }
 0xd54   :  { %v2095_v47 = vrot.slane %v2067_v1, %v4862_v43  ;;  %v2097_v49 = vcombine.high %v2081_v45, %v2081_v45  ;;  %v2272_v56 = vrot.slane %v2257_v52, %v4862_v43  ;;  %v2122_v6 = vcombine.low %v2074_v4, %v2088_v5 }
 0xd55   :  { %v3957_v7 = vcombine.high %v2074_v4, %v2088_v5  ;;  %v2144_v12 = vrot.slane %v2081_v45, %v4862_v43 }
 0xd56   :  { %v2099_v50 = vcombine.high %v2095_v47, %v2095_v47  ;;  %v2235_v51 = vcombine.low %v2095_v47, %v2097_v49  ;;  %v2130_v38 = vrot.slane %v2122_v6, %v4862_v43 }
 0xd57   :  { %v2137_v8 = vrot.slane %v3957_v7, %v4862_v43  ;;  %v2159_v23 = vrot.slane %v2144_v12, %v4862_v43 }
 0xd58   :  { %v2236_v53 = vcombine.low %v2099_v50, %v2114_v46  ;;  %v2243_v54 = vrot.slane %v2235_v51, %v4862_v43 }
 0xd59   :  { %v2145_v13 = vcombine.low %v2130_v38, %v2137_v8 }
 0xd5a   :  { %v2250_v55 = vrot.slane %v2236_v53, %v4862_v43 }
 0xd5b   :  { %v2152_v20 = vrot.slane %v2145_v13, %v4862_v43 }
 0xd5c   :  { %v2258_v48 = vcombine.low %v2243_v54, %v2250_v55 }
 0xd5d   :  { %v4965_v27 = vcombine.low %v2152_v20, %v2159_v23 }
 0xd5e   :  { %v2265_v57 = vrot.slane %v2258_v48, %v4862_v43  ;;  %v3951_v43 = vld [vmem:[%s5293_s11] ss:$0 sm:$0xff]  ;;  %s5330_s11 = smov 104  }
 0xd60   :  { %v4947_v58 = vcombine.low %v2265_v57, %v2272_v56 }
 0xd9d   :  { %v1699_v60 = vpop.xlane.xlu0 %1698 }
 0xd9e   :  { %v1703_v59 = vmul.f32 0.03125, %v1699_v60 }
 0xda0   :  { %v1705_v61 = vadd.f32 1e-06, %v1703_v59 }
 0xda1   :  { %v1702_v62 = vpop.xlane.xlu0 %1701 }
 0xda2   :  { %4426 = vrsqrt.f32 %v1705_v61  ;;  %v1704_v2 = vmul.f32 0.03125, %v1702_v62 }
 0xda4   :  { %v1706_v3 = vadd.f32 1e-06, %v1704_v2 }
 0xda6   :  { %4428 = vrsqrt.f32 %v1706_v3 }
 0xdaf   :  { %v4427_v9 = vpop.eup %4426 }
 0xdb0   :  { %v1709_v10 = vmul.f32 %v4427_v9, %v4906_v22 }
 0xdb2   :  { %v1717_v17 = vmul.f32 %v3949_v11, %v1709_v10 }
 0xdb3   :  { %v4429_v15 = vpop.eup %4428 }
 0xdb4   :  { %v1710_v16 = vmul.f32 %v4429_v15, %v4909_v24  ;;  %v1725_v25 = vadd.f32 %v3950_v18, %v1717_v17 }
 0xdb6   :  { %v1718_v22 = vmul.f32 %v3949_v11, %v1710_v16 }
 0xdb8   :  { %v1726_v26 = vadd.f32 %v3950_v18, %v1718_v22 }
 0xdba   :  { %v1740_v28 = vcombine.low %v1725_v25, %v1726_v26 }
 0xdbc   :  { %4220 = vmatmul.mubr.msk.f32.vlgmr.msra.gmra.mxu1 %vm135_vm2, %v1740_v28 }
 0xdbd   :  { %4234 = vmatpush3.xpose.msk.msra.mxu1 %vm218_vm3, %v4965_v27  ;;  %4235 = vmatprep.mubr.msk.f32.mxu1 %vm4471_vm1, %v4470_v14 }
 0xdbe   :  { %4238 = vmatprep.subr.mxu1 %v4470_v14 }
 0xe7c   :  { %v1809_v24 = vpop.f32.mrf.mxu1 }
 0xe7d   :  { %v4976_v29 = vadd.f32 %v3951_v43, %v1809_v24 }
 0xe7e   :  { %v4221_v30 = vpop.f32.mrf.mxu1 }
 0xe7f   :  { %4236 = vmatmul.mubr.msk.f32.vlgmr.msra.gmra.mxu1 %vm218_vm3, %v4976_v29  ;;  %v4986_v19 = vcombine.high %v4976_v29, %v4976_v29 }
 0xe80   :  { %4239 = vmatpush3.xpose.msk.msra.mxu1 %vm218_vm3, %v4947_v58  ;;  %4240 = vmatprep.mubr.msk.f32.mxu1 %vm4471_vm1, %v4470_v14 }
 0xe81   :  { %4248 = vmatprep.subr.mxu1 %v4470_v14 }
 0xe83   :  { %4241 = vmatmul.mubr.msk.f32.vlgmr.msra.gmra.mxu1 %vm218_vm3, %v4986_v19 }
 0xe84   :  { %4250 = vmatprep.mubr.msk.f32.mxu1 %vm4471_vm1, %v4470_v14 }
 0xf3f   :  { %v2231_v21 = vpop.f32.mrf.mxu1 }
 0xf40   :  { %v2348_v31 = vmul.f32 0.35355338, %v2231_v21 }
 0xf41   :  { %v4237_v32 = vpop.f32.mrf.mxu1 }
 0xf42   :  { %v2351_v33 = vsel %vm2350_vm10, %v2348_v31, -inf }
 0xf43   :  { %2352 = vmax.xlane.f32.xlu0 %v2351_v33  ;;  %v2344_v36 = vpop.f32.mrf.mxu1 }
 0xf44   :  { %v2349_v37 = vmul.f32 0.35355338, %v2344_v36 }
 0xf45   :  { %v4242_v39 = vpop.f32.mrf.mxu1 }
 0xf46   :  { %v2354_v41 = vsel %vm2350_vm10, %v2349_v37, -inf }
 0xf47   :  { %2355 = vmax.xlane.f32.xlu1 %v2354_v41 }
 0xf58   :  { %2452 = vrot.lane.b32.xlu1 %v4947_v58, %s4472_s6 }
 0xf5c   :  { %2531 = vrot.lane.b32.xlu1 %v4965_v27, %s4476_s25 }
 0xf60   :  { %2609 = vrot.lane.b32.xlu1 %v4947_v58, %s4476_s25 }
 0xfcc   :  { %v2353_v42 = vpop.xlane.xlu0 %2352 }
 0xfcd   :  { %v2357_v0 = vsub.f32 %v2348_v31, %v2353_v42 }
 0xfcf   :  { %v2359_v1 = vmul.f32 1.442695, %v2357_v0 }
 0xfd0   :  { %v2356_v45 = vpop.xlane.xlu1 %2355 }
 0xfd1   :  { %4430 = vpow2.f32 %v2359_v1  ;;  %v2358_v46 = vsub.f32 %v2349_v37, %v2356_v45 }
 0xfd3   :  { %v2361_v44 = vmul.f32 1.442695, %v2358_v46 }
 0xfd4   :  { %v2453_v47 = vpop.permute.xlu1 %2452 }
 0xfd5   :  { %4432 = vpow2.f32 %v2361_v44  ;;  %4249 = vmatpush3.msk.msra.mxu1 %vm2379_vm11, %v2453_v47 }
 0xfd6   :  { %4258 = vmatprep.subr.mxu1 %v4470_v14 }
 0xfd8   :  { %v2532_v53 = vpop.permute.xlu1 %2531 }
 0xfdc   :  { %v2610_v54 = vpop.permute.xlu1 %2609 }
 0xfde   :  { %v4431_v49 = vpop.eup %4430 }
 0xfdf   :  { %v2363_v50 = vsel %vm2350_vm10, %v4431_v49, 0.0 }
 0xfe0   :  { %2364 = vadd.xlane.f32.xlu0 %v2363_v50 }
 0xfe2   :  { %v4433_v51 = vpop.eup %4432 }
 0xfe3   :  { %v2366_v52 = vsel %vm2350_vm10, %v4433_v51, 0.0 }
 0xfe4   :  { %2367 = vadd.xlane.f32.xlu1 %v2366_v52 }
 0xff5   :  { %2607 = vrot.lane.b32.xlu1 %v4986_v19, %s4476_s25 }
 0xff6   :  { %2373 = vrot.lane.b32.xlu0 %v4965_v27, %s4472_s6  ;;  %s5331_s6 = smov 72  }
 0xffa   :  { %2529 = vrot.lane.b32.xlu0 %v4976_v29, %s4476_s25  ;;  %s5333_s25 = smov 16  }
0x1069   :  { %v2365_v55 = vpop.xlane.xlu0 %2364 }
0x106a   :  { %4434 = vrcp.f32 %v2365_v55 }
0x106d   :  { %v2374_v56 = vpop.permute.xlu0 %2373  ;;  %v2368_v48 = vpop.xlane.xlu1 %2367 }
0x106e   :  { %4436 = vrcp.f32 %v2368_v48  ;;  %4244 = vmatpush3.msk.msra.mxu0 %vm2379_vm11, %v2374_v56 }
0x106f   :  { %4253 = vmatprep.subr.mxu0 %v4470_v14 }
0x1071   :  { %v2530_v61 = vpop.permute.xlu0 %2529  ;;  %v2608_v62 = vpop.permute.xlu1 %2607 }
0x1077   :  { %v4435_v57 = vpop.eup %4434 }
0x1078   :  { %v2371_v60 = vmul.f32 %v4435_v57, %v4431_v49 }
0x107a   :  { %4246 = vmatmul.mubr.msk.f32.vlgmr.msra.gmra.mxu0 %vm2375_vm12, %v2371_v60 }
0x107b   :  { %v4437_v40 = vpop.eup %4436  ;;  %4254 = vmatpush3.xpose.msk.msra.mxu0 %vm218_vm3, %v2532_v53  ;;  %4255 = vmatprep.mubr.msk.f32.mxu0 %vm4471_vm1, %v4470_v14 }
0x107c   :  { %v2372_v59 = vmul.f32 %v4437_v40, %v4433_v51  ;;  %4263 = vmatprep.subr.mxu0 %v4470_v14 }
0x107e   :  { %4251 = vmatmul.mubr.msk.f32.vlgmr.msra.gmra.mxu1 %vm2375_vm12, %v2372_v59  ;;  %4256 = vmatmul.mubr.msk.f32.vlgmr.msra.gmra.mxu0 %vm218_vm3, %v2530_v61 }
0x107f   :  { %4259 = vmatpush3.xpose.msk.msra.mxu1 %vm218_vm3, %v2610_v54  ;;  %4260 = vmatprep.mubr.msk.f32.mxu1 %vm4471_vm1, %v4470_v14 }
0x1080   :  { %4268 = vmatprep.subr.mxu1 %v4470_v14  ;;  %4265 = vmatprep.mubr.msk.f32.mxu0 %vm4471_vm1, %v4470_v14 }
0x1082   :  { %4261 = vmatmul.mubr.msk.f32.vlgmr.msra.gmra.mxu1 %vm218_vm3, %v2608_v62 }
0x1083   :  { %4270 = vmatprep.mubr.msk.f32.mxu1 %vm4471_vm1, %v4470_v14 }
0x113a   :  { %v5029_v63 = vpop.f32.mrf.mxu0 }
0x113c   :  { %v4247_v2 = vpop.f32.mrf.mxu0 }
0x113e   :  { %v5031_v3 = vpop.f32.mrf.mxu1  ;;  %v2603_v4 = vpop.f32.mrf.mxu0 }
0x113f   :  { %v2685_v5 = vmul.f32 0.35355338, %v2603_v4 }
0x1140   :  { %v4252_v6 = vpop.f32.mrf.mxu1  ;;  %v4257_v7 = vpop.f32.mrf.mxu0 }
0x1141   :  { %v2687_v38 = vsel %vm2350_vm10, %v2685_v5, -inf }
0x1142   :  { %2688 = vmax.xlane.f32.xlu0 %v2687_v38  ;;  %v2681_v8 = vpop.f32.mrf.mxu1 }
0x1143   :  { %v2686_v9 = vmul.f32 0.35355338, %v2681_v8 }
0x1144   :  { %v4262_v10 = vpop.f32.mrf.mxu1 }
0x1145   :  { %v2690_v11 = vsel %vm2350_vm10, %v2686_v9, -inf }
0x1146   :  { %2691 = vmax.xlane.f32.xlu1 %v2690_v11 }
0x1157   :  { %2786 = vrot.lane.b32.xlu1 %v4947_v58, %s4475_s7 }
0x115b   :  { %2865 = vrot.lane.b32.xlu1 %v4965_v27, %s4479_s27 }
0x115f   :  { %2943 = vrot.lane.b32.xlu1 %v4947_v58, %s4479_s27 }
0x1163   :  { %2941 = vrot.lane.b32.xlu1 %v4986_v19, %s4479_s27 }
0x11cb   :  { %v2689_v12 = vpop.xlane.xlu0 %2688 }
0x11cc   :  { %v2693_v13 = vsub.f32 %v2685_v5, %v2689_v12 }
0x11ce   :  { %v2695_v15 = vmul.f32 1.442695, %v2693_v13 }
0x11cf   :  { %v2692_v16 = vpop.xlane.xlu1 %2691 }
0x11d0   :  { %4438 = vpow2.f32 %v2695_v15  ;;  %v2694_v17 = vsub.f32 %v2686_v9, %v2692_v16 }
0x11d2   :  { %v2697_v18 = vmul.f32 1.442695, %v2694_v17 }
0x11d3   :  { %v2787_v20 = vpop.permute.xlu1 %2786 }
0x11d4   :  { %4440 = vpow2.f32 %v2697_v18  ;;  %4269 = vmatpush3.msk.msra.mxu1 %vm2379_vm11, %v2787_v20 }
0x11d5   :  { %4278 = vmatprep.subr.mxu1 %v4470_v14 }
0x11d7   :  { %v2866_v30 = vpop.permute.xlu1 %2865 }
0x11db   :  { %v2944_v33 = vpop.permute.xlu1 %2943 }
0x11dd   :  { %v4439_v23 = vpop.eup %4438 }
0x11de   :  { %v2699_v22 = vsel %vm2350_vm10, %v4439_v23, 0.0 }
0x11df   :  { %2700 = vadd.xlane.f32.xlu0 %v2699_v22  ;;  %v2942_v39 = vpop.permute.xlu1 %2941 }
0x11e1   :  { %v4441_v25 = vpop.eup %4440 }
0x11e2   :  { %v2702_v26 = vsel %vm2350_vm10, %v4441_v25, 0.0 }
0x11e3   :  { %2703 = vadd.xlane.f32.xlu0 %v2702_v26 }
0x11f9   :  { %2709 = vrot.lane.b32.xlu0 %v4965_v27, %s4475_s7  ;;  %s5332_s7 = smov 8  }
0x11fd   :  { %2863 = vrot.lane.b32.xlu0 %v4976_v29, %s4479_s27 }
0x1268   :  { %v2701_v28 = vpop.xlane.xlu0 %2700 }
0x1269   :  { %4442 = vrcp.f32 %v2701_v28 }
0x126c   :  { %v2704_v43 = vpop.xlane.xlu0 %2703 }
0x126d   :  { %4444 = vrcp.f32 %v2704_v43 }
0x1270   :  { %v2710_v24 = vpop.permute.xlu0 %2709 }
0x1271   :  { %4264 = vmatpush3.msk.msra.mxu0 %vm2379_vm11, %v2710_v24 }
0x1272   :  { %4273 = vmatprep.subr.mxu0 %v4470_v14 }
0x1274   :  { %v2864_v37 = vpop.permute.xlu0 %2863 }
0x1276   :  { %v4443_v21 = vpop.eup %4442 }
0x1277   :  { %v2707_v31 = vmul.f32 %v4443_v21, %v4439_v23 }
0x1279   :  { %4266 = vmatmul.mubr.msk.f32.vlgmr.msra.gmra.mxu0 %vm2375_vm12, %v2707_v31 }
0x127a   :  { %v4445_v32 = vpop.eup %4444  ;;  %4274 = vmatpush3.xpose.msk.msra.mxu0 %vm218_vm3, %v2866_v30  ;;  %4275 = vmatprep.mubr.msk.f32.mxu0 %vm4471_vm1, %v4470_v14 }
0x127b   :  { %v2708_v36 = vmul.f32 %v4445_v32, %v4441_v25  ;;  %4283 = vmatprep.subr.mxu0 %v4470_v14 }
0x127d   :  { %4271 = vmatmul.mubr.msk.f32.vlgmr.msra.gmra.mxu1 %vm2375_vm12, %v2708_v36  ;;  %4276 = vmatmul.mubr.msk.f32.vlgmr.msra.gmra.mxu0 %vm218_vm3, %v2864_v37 }
0x127e   :  { %4279 = vmatpush3.xpose.msk.msra.mxu1 %vm218_vm3, %v2944_v33  ;;  %4280 = vmatprep.mubr.msk.f32.mxu1 %vm4471_vm1, %v4470_v14 }
0x127f   :  { %4288 = vmatprep.subr.mxu1 %v4470_v14  ;;  %4285 = vmatprep.mubr.msk.f32.mxu0 %vm4471_vm1, %v4470_v14 }
0x1281   :  { %4281 = vmatmul.mubr.msk.f32.vlgmr.msra.gmra.mxu1 %vm218_vm3, %v2942_v39 }
0x1282   :  { %4290 = vmatprep.mubr.msk.f32.mxu1 %vm4471_vm1, %v4470_v14 }
0x1339   :  { %v5069_v41 = vpop.f32.mrf.mxu0 }
0x133b   :  { %v4267_v42 = vpop.f32.mrf.mxu0 }
0x133d   :  { %v5071_v0 = vpop.f32.mrf.mxu1  ;;  %v2937_v1 = vpop.f32.mrf.mxu0 }
0x133e   :  { %v3019_v45 = vmul.f32 0.35355338, %v2937_v1 }
0x133f   :  { %v4272_v46 = vpop.f32.mrf.mxu1  ;;  %v4277_v44 = vpop.f32.mrf.mxu0 }
0x1340   :  { %v3021_v47 = vsel %vm2350_vm10, %v3019_v45, -inf  ;;  %v3564_v46 = vld [vmem:[%s5294_s14 + $0x18] sm:$0xff]  ;;  %v3563_v44 = vld [vmem:[%s5294_s14 + $0x10] sm:$0xff] }
0x1341   :  { %3022 = vmax.xlane.f32.xlu0 %v3021_v47  ;;  %v3015_v49 = vpop.f32.mrf.mxu1  ;;  %v3562_v47 = vld [vmem:[%s5294_s14 + $0x8] sm:$0xff] }
0x1342   :  { %v3020_v50 = vmul.f32 0.35355338, %v3015_v49  ;;  %v3561_v49 = vld [vmem:[%s5294_s14] sm:$0xff] }
0x1343   :  { %v4282_v51 = vpop.f32.mrf.mxu1 }
0x1344   :  { %v3024_v52 = vsel %vm2350_vm10, %v3020_v50, -inf }
0x1345   :  { %3025 = vmax.xlane.f32.xlu1 %v3024_v52 }
0x1356   :  { %3120 = vrot.lane.b32.xlu1 %v4947_v58, %s4478_s2 }
0x135a   :  { %3199 = vrot.lane.b32.xlu1 %v4965_v27, %s5330_s11 }
0x135e   :  { %3277 = vrot.lane.b32.xlu1 %v4947_v58, %s5330_s11 }
0x1362   :  { %3275 = vrot.lane.b32.xlu1 %v4986_v19, %s5330_s11 }
0x13ca   :  { %v3023_v53 = vpop.xlane.xlu0 %3022 }
0x13cb   :  { %v3027_v54 = vsub.f32 %v3019_v45, %v3023_v53 }
0x13cd   :  { %v3029_v55 = vmul.f32 1.442695, %v3027_v54 }
0x13ce   :  { %v3026_v56 = vpop.xlane.xlu1 %3025 }
0x13cf   :  { %4446 = vpow2.f32 %v3029_v55  ;;  %v3028_v48 = vsub.f32 %v3020_v50, %v3026_v56 }
0x13d1   :  { %v3031_v57 = vmul.f32 1.442695, %v3028_v48 }
0x13d2   :  { %v3121_v60 = vpop.permute.xlu1 %3120 }
0x13d3   :  { %4448 = vpow2.f32 %v3031_v57  ;;  %4289 = vmatpush3.msk.msra.mxu1 %vm2379_vm11, %v3121_v60 }
0x13d4   :  { %4298 = vmatprep.subr.mxu1 %v4470_v14 }
0x13d6   :  { %v3200_v5 = vpop.permute.xlu1 %3199 }
0x13da   :  { %v3278_v8 = vpop.permute.xlu1 %3277 }
0x13dc   :  { %v4447_v40 = vpop.eup %4446 }
0x13dd   :  { %v3033_v59 = vsel %vm2350_vm10, %v4447_v40, 0.0 }
0x13de   :  { %3034 = vadd.xlane.f32.xlu0 %v3033_v59  ;;  %v3276_v10 = vpop.permute.xlu1 %3275 }
0x13e0   :  { %v4449_v61 = vpop.eup %4448 }
0x13e1   :  { %v3036_v19 = vsel %vm2350_vm10, %v4449_v61, 0.0 }
0x13e2   :  { %3037 = vadd.xlane.f32.xlu0 %v3036_v19 }
0x13f8   :  { %3043 = vrot.lane.b32.xlu0 %v4965_v27, %s4478_s2 }
0x13fc   :  { %3197 = vrot.lane.b32.xlu0 %v4976_v29, %s5330_s11 }
0x1467   :  { %v3035_v62 = vpop.xlane.xlu0 %3034 }
0x1468   :  { %4450 = vrcp.f32 %v3035_v62 }
0x146b   :  { %v3038_v2 = vpop.xlane.xlu0 %3037 }
0x146c   :  { %4452 = vrcp.f32 %v3038_v2 }
0x146f   :  { %v3044_v4 = vpop.permute.xlu0 %3043 }
0x1470   :  { %4284 = vmatpush3.msk.msra.mxu0 %vm2379_vm11, %v3044_v4 }
0x1471   :  { %4293 = vmatprep.subr.mxu0 %v4470_v14 }
0x1473   :  { %v3198_v9 = vpop.permute.xlu0 %3197 }
0x1475   :  { %v4451_v6 = vpop.eup %4450 }
0x1476   :  { %v3041_v7 = vmul.f32 %v4451_v6, %v4447_v40 }
0x1478   :  { %4286 = vmatmul.mubr.msk.f32.vlgmr.msra.gmra.mxu0 %vm2375_vm12, %v3041_v7 }
0x1479   :  { %v4453_v38 = vpop.eup %4452  ;;  %4294 = vmatpush3.xpose.msk.msra.mxu0 %vm218_vm3, %v3200_v5  ;;  %4295 = vmatprep.mubr.msk.f32.mxu0 %vm4471_vm1, %v4470_v14 }
0x147a   :  { %v3042_v29 = vmul.f32 %v4453_v38, %v4449_v61  ;;  %4303 = vmatprep.subr.mxu0 %v4470_v14 }
0x147c   :  { %4291 = vmatmul.mubr.msk.f32.vlgmr.msra.gmra.mxu1 %vm2375_vm12, %v3042_v29  ;;  %4296 = vmatmul.mubr.msk.f32.vlgmr.msra.gmra.mxu0 %vm218_vm3, %v3198_v9 }
0x147d   :  { %4299 = vmatpush3.xpose.msk.msra.mxu1 %vm218_vm3, %v3278_v8  ;;  %4300 = vmatprep.mubr.msk.f32.mxu1 %vm4471_vm1, %v4470_v14 }
0x147e   :  { %4308 = vmatprep.subr.mxu1 %v4470_v14  ;;  %4305 = vmatprep.mubr.msk.f32.mxu0 %vm4471_vm1, %v4470_v14 }
0x1480   :  { %4301 = vmatmul.mubr.msk.f32.vlgmr.msra.gmra.mxu1 %vm218_vm3, %v3276_v10 }
0x1481   :  { %4310 = vmatprep.mubr.msk.f32.mxu1 %vm4471_vm1, %v4470_v14 }
0x1538   :  { %v3116_v11 = vpop.f32.mrf.mxu0 }
0x153a   :  { %v4287_v12 = vpop.f32.mrf.mxu0 }
0x153c   :  { %v3193_v13 = vpop.f32.mrf.mxu1  ;;  %v3271_v15 = vpop.f32.mrf.mxu0 }
0x153d   :  { %v3353_v16 = vmul.f32 0.35355338, %v3271_v15 }
0x153e   :  { %v4292_v17 = vpop.f32.mrf.mxu1  ;;  %v4297_v18 = vpop.f32.mrf.mxu0 }
0x153f   :  { %v3355_v20 = vsel %vm2350_vm10, %v3353_v16, -inf }
0x1540   :  { %3356 = vmax.xlane.f32.xlu0 %v3355_v20  ;;  %v3349_v23 = vpop.f32.mrf.mxu1  ;;  %v3699_v20 = vld [vmem:[%s5296_s18 + $0x18] sm:$0xff] }
0x1541   :  { %v3354_v22 = vmul.f32 0.35355338, %v3349_v23  ;;  %v3698_v23 = vld [vmem:[%s5296_s18 + $0x10] sm:$0xff] }
0x1542   :  { %v4302_v25 = vpop.f32.mrf.mxu1 }
0x1543   :  { %v3358_v26 = vsel %vm2350_vm10, %v3354_v22, -inf  ;;  %v3696_v25 = vld [vmem:[%s5296_s18] sm:$0xff] }
0x1544   :  { %3359 = vmax.xlane.f32.xlu1 %v3358_v26 }
0x1555   :  { %3454 = vrot.lane.b32.xlu1 %v4947_v58, %s5331_s6 }
0x1559   :  { %3533 = vrot.lane.b32.xlu1 %v5069_v41, %s5332_s7 }
0x155d   :  { %3535 = vrot.lane.b32.xlu1 %v5071_v0, %s5332_s7 }
0x1561   :  { %3543 = vrot.lane.b32.xlu1 %v3193_v13, %s5333_s25 }
0x15c9   :  { %v3357_v28 = vpop.xlane.xlu0 %3356 }
0x15ca   :  { %v3361_v43 = vsub.f32 %v3353_v16, %v3357_v28 }
0x15cc   :  { %v3363_v24 = vmul.f32 1.442695, %v3361_v43 }
0x15cd   :  { %v3360_v30 = vpop.xlane.xlu1 %3359 }
0x15ce   :  { %4454 = vpow2.f32 %v3363_v24  ;;  %v3362_v21 = vsub.f32 %v3354_v22, %v3360_v30  ;;  %v3697_v22 = vld [vmem:[%s5296_s18 + $0x8] sm:$0xff] }
0x15d0   :  { %v3365_v31 = vmul.f32 1.442695, %v3362_v21 }
0x15d1   :  { %v3455_v32 = vpop.permute.xlu1 %3454 }
0x15d2   :  { %4456 = vpow2.f32 %v3365_v31  ;;  %4309 = vmatpush3.msk.msra.mxu1 %vm2379_vm11, %v3455_v32 }
0x15d3   :  { %4324 = vmatprep.subr.mxu1 %v4470_v14 }
0x15d5   :  { %v3534_v54 = vpop.permute.xlu1 %3533 }
0x15d6   :  { %v3555_v60 = vsel %vm218_vm3, %v5029_v63, %v3534_v54  ;;  %v3990_v63 = vld [vmem:[%s5295_s15] ss:$0 sm:$0xff]  ;;  %v3808_v54 = vld [vmem:[%s5299_s20 + $0x28] sm:$0xff] }
0x15d9   :  { %v3536_v55 = vpop.permute.xlu1 %3535 }
0x15da   :  { %v3556_v40 = vsel %vm218_vm3, %v5031_v3, %v3536_v55  ;;  %v3807_v55 = vld [vmem:[%s5299_s20 + $0x20] sm:$0xff] }
0x15db   :  { %v4455_v58 = vpop.eup %4454 }
0x15dc   :  { %v3367_v33 = vsel %vm2350_vm10, %v4455_v58, 0.0 }
0x15dd   :  { %3368 = vadd.xlane.f32.xlu0 %v3367_v33  ;;  %v3544_v48 = vpop.permute.xlu1 %3543 }
0x15de   :  { %v3558_v59 = vsel %vm1586_vm8, %v3556_v40, %v3544_v48  ;;  %v3805_v48 = vld [vmem:[%s5299_s20 + $0x10] sm:$0xff]  ;;  %v3994_v40 = vld [vmem:[%s5300_s19] ss:$0 sm:$0xff] }
0x15df   :  { %v4457_v36 = vpop.eup %4456 }
0x15e0   :  { %v3370_v37 = vsel %vm2350_vm10, %v4457_v36, 0.0 }
0x15e1   :  { %3371 = vadd.xlane.f32.xlu0 %v3370_v37 }
0x15f7   :  { %3377 = vrot.lane.b32.xlu0 %v4965_v27, %s5331_s6 }
0x15fb   :  { %3541 = vrot.lane.b32.xlu0 %v3116_v11, %s5333_s25 }
0x1666   :  { %v3369_v39 = vpop.xlane.xlu0 %3368 }
0x1667   :  { %4458 = vrcp.f32 %v3369_v39  ;;  %v3993_v39 = vld [vmem:[%s5298_s17] ss:$0 sm:$0xff] }
0x166a   :  { %v3372_v41 = vpop.xlane.xlu0 %3371 }
0x166b   :  { %4460 = vrcp.f32 %v3372_v41 }
0x166e   :  { %v3378_v42 = vpop.permute.xlu0 %3377 }
0x166f   :  { %4304 = vmatpush3.msk.msra.mxu0 %vm2379_vm11, %v3378_v42 }
0x1670   :  { %4313 = vmatprep.subr.mxu0 %v4470_v14 }
0x1672   :  { %v3542_v56 = vpop.permute.xlu0 %3541 }
0x1673   :  { %v3557_v61 = vsel %vm1586_vm8, %v3555_v60, %v3542_v56  ;;  %v3806_v56 = vld [vmem:[%s5299_s20 + $0x18] sm:$0xff]  ;;  %v3803_v60 = vld [vmem:[%s5299_s20] sm:$0xff] }
0x1674   :  { %v4459_v0 = vpop.eup %4458 }
0x1675   :  { %v3375_v1 = vmul.f32 %v4459_v0, %v4455_v58  ;;  %v3992_v58 = vld [vmem:[%s5297_s16] ss:$0 sm:$0xff] }
0x1677   :  { %4306 = vmatmul.mubr.msk.f32.vlgmr.msra.gmra.mxu0 %vm2375_vm12, %v3375_v1 }
0x1678   :  { %v4461_v45 = vpop.eup %4460  ;;  %4321 = vmatprep.mubr.msk.f32.mxu0 %vm4471_vm1, %v4470_v14  ;;  %4314 = vmatpush3.msra.mxu0 %v3564_v46  ;;  %v3816_v46 = vld [vmem:[%s5299_s20 + $0x68] sm:$0xff] }
0x1679   :  { %v3376_v27 = vmul.f32 %v4461_v45, %v4457_v36  ;;  %4315 = vmatprep.subr.mxu0 %v4470_v14  ;;  %v3818_v45 = vld [vmem:[%s5299_s20 + $0x78] sm:$0xff] }
0x167a   :  { %4316 = vmatpush3.msra.mxu0 %v3563_v44  ;;  %v3815_v44 = vld [vmem:[%s5299_s20 + $0x60] sm:$0xff] }
0x167b   :  { %4311 = vmatmul.mubr.msk.f32.vlgmr.msra.gmra.mxu1 %vm2375_vm12, %v3376_v27  ;;  %4317 = vmatprep.subr.mxu0 %v4470_v14  ;;  %v3817_v27 = vld [vmem:[%s5299_s20 + $0x70] sm:$0xff] }
0x167c   :  { %4332 = vmatprep.mubr.msk.f32.mxu1 %vm4471_vm1, %v4470_v14  ;;  %4318 = vmatpush3.msra.mxu0 %v3562_v47  ;;  %v3814_v47 = vld [vmem:[%s5299_s20 + $0x58] sm:$0xff] }
0x167d   :  { %4319 = vmatprep.subr.mxu0 %v4470_v14  ;;  %4325 = vmatpush3.msra.mxu1 %v3699_v20 }
0x167e   :  { %4320 = vmatpush3.msra.mxu0 %v3561_v49  ;;  %4326 = vmatprep.subr.mxu1 %v4470_v14  ;;  %v3813_v49 = vld [vmem:[%s5299_s20 + $0x50] sm:$0xff] }
0x167f   :  { %4335 = vmatprep.subr.mxu0 %v4470_v14  ;;  %4327 = vmatpush3.msra.mxu1 %v3698_v23 }
0x1680   :  { %4328 = vmatprep.subr.mxu1 %v4470_v14 }
0x1681   :  { %4329 = vmatpush3.msra.mxu1 %v3697_v22 }
0x1682   :  { %4330 = vmatprep.subr.mxu1 %v4470_v14 }
0x1683   :  { %4331 = vmatpush3.msra.mxu1 %v3696_v25 }
0x1737   :  { %v3450_v50 = vpop.f32.mrf.mxu0 }
0x1738   :  { %3549 = vrot.lane.b32.xlu0 %v3450_v50, %s5334_s30  ;;  %v3812_v50 = vld [vmem:[%s5299_s20 + $0x48] sm:$0xff] }
0x1739   :  { %v4307_v51 = vpop.f32.mrf.mxu0 }
0x173a   :  { %v3811_v51 = vld [vmem:[%s5299_s20 + $0x40] sm:$0xff] }
0x173b   :  { %v3527_v52 = vpop.f32.mrf.mxu1 }
0x173c   :  { %3551 = vrot.lane.b32.xlu1 %v3527_v52, %s5334_s30  ;;  %v3810_v52 = vld [vmem:[%s5299_s20 + $0x38] sm:$0xff] }
0x173d   :  { %v4312_v53 = vpop.f32.mrf.mxu1 }
0x173e   :  { %v3809_v53 = vld [vmem:[%s5299_s20 + $0x30] sm:$0xff] }
0x17aa   :  { %v3550_v57 = vpop.permute.xlu0 %3549 }
0x17ab   :  { %v3559_v62 = vsel %vm1589_vm9, %v3557_v61, %v3550_v57  ;;  %v3804_v57 = vld [vmem:[%s5299_s20 + $0x8] sm:$0xff] }
0x17ae   :  { %v3552_v19 = vpop.permute.xlu1 %3551 }
0x17af   :  { %v3560_v2 = vsel %vm1589_vm9, %v3558_v59, %v3552_v19 }
0x17b0   :  { %v3574_v4 = vcombine.low %v3559_v62, %v3560_v2 }
0x17b2   :  { %4322 = vmatmul.mubr.msk.f32.vlgmr.msra.gmra.mxu0 %vm135_vm2, %v3574_v4 }
0x17b3   :  { %4367 = vmatprep.mubr.msk.f32.mxu0 %vm4471_vm1, %v4470_v14  ;;  %4336 = vmatpush3.msra.mxu0 %v3818_v45 }
0x17b4   :  { %4337 = vmatprep.subr.mxu0 %v4470_v14 }
0x17b5   :  { %4338 = vmatpush3.msra.mxu0 %v3817_v27 }
0x17b6   :  { %4339 = vmatprep.subr.mxu0 %v4470_v14 }
0x17b7   :  { %4340 = vmatpush3.msra.mxu0 %v3816_v46 }
0x17b8   :  { %4341 = vmatprep.subr.mxu0 %v4470_v14 }
0x17b9   :  { %4342 = vmatpush3.msra.mxu0 %v3815_v44 }
0x17ba   :  { %4343 = vmatprep.subr.mxu0 %v4470_v14 }
0x17bb   :  { %4344 = vmatpush3.msra.mxu0 %v3814_v47 }
0x17bc   :  { %4345 = vmatprep.subr.mxu0 %v4470_v14 }
0x17bd   :  { %4346 = vmatpush3.msra.mxu0 %v3813_v49 }
0x17be   :  { %4347 = vmatprep.subr.mxu0 %v4470_v14 }
0x17bf   :  { %4348 = vmatpush3.msra.mxu0 %v3812_v50 }
0x17c0   :  { %4349 = vmatprep.subr.mxu0 %v4470_v14 }
0x17c1   :  { %4350 = vmatpush3.msra.mxu0 %v3811_v51 }
0x17c2   :  { %4351 = vmatprep.subr.mxu0 %v4470_v14 }
0x17c3   :  { %4352 = vmatpush3.msra.mxu0 %v3810_v52 }
0x17c4   :  { %4353 = vmatprep.subr.mxu0 %v4470_v14 }
0x17c5   :  { %4354 = vmatpush3.msra.mxu0 %v3809_v53 }
0x17c6   :  { %4355 = vmatprep.subr.mxu0 %v4470_v14 }
0x17c7   :  { %4356 = vmatpush3.msra.mxu0 %v3808_v54 }
0x17c8   :  { %4357 = vmatprep.subr.mxu0 %v4470_v14 }
0x17c9   :  { %4358 = vmatpush3.msra.mxu0 %v3807_v55 }
0x17ca   :  { %4359 = vmatprep.subr.mxu0 %v4470_v14 }
0x17cb   :  { %4360 = vmatpush3.msra.mxu0 %v3806_v56 }
0x17cc   :  { %4361 = vmatprep.subr.mxu0 %v4470_v14 }
0x17cd   :  { %4362 = vmatpush3.msra.mxu0 %v3805_v48 }
0x17ce   :  { %4363 = vmatprep.subr.mxu0 %v4470_v14 }
0x17cf   :  { %4364 = vmatpush3.msra.mxu0 %v3804_v57 }
0x17d0   :  { %4365 = vmatprep.subr.mxu0 %v4470_v14 }
0x17d1   :  { %4366 = vmatpush3.msra.mxu0 %v3803_v60 }
0x1872   :  { %v3643_v3 = vpop.f32.mrf.mxu0 }
0x1873   :  { %v3644_v5 = vadd.f32 %v3990_v63, %v3643_v3 }
0x1874   :  { %v4323_v6 = vpop.f32.mrf.mxu0 }
0x1875   :  { %v3648_v7 = vcombine.high %v3644_v5, %v3644_v5  ;;  %v5166_v38 = vadd.f32 %v3644_v5, %v4852_v34 }
0x1877   :  { %v5169_v8 = vadd.f32 %v3648_v7, %v4855_v35  ;;  %v3654_v29 = vsel %vm77_vm0, %v5166_v38, 0.0 }
0x1878   :  { %3655 = vadd.xlane.f32.xlu0 %v3654_v29 }
0x1879   :  { %v3657_v9 = vsel %vm77_vm0, %v5169_v8, 0.0 }
0x187a   :  { %3658 = vadd.xlane.f32.xlu1 %v3657_v9 }
0x1901   :  { %v3656_v10 = vpop.xlane.xlu0 %3655 }
0x1902   :  { %v3660_v11 = vmul.f32 0.03125, %v3656_v10 }
0x1903   :  { %v3659_v12 = vpop.xlane.xlu1 %3658 }
0x1904   :  { %v3662_v13 = vsub.f32 %v5166_v38, %v3660_v11  ;;  %v3661_v15 = vmul.f32 0.03125, %v3659_v12 }
0x1906   :  { %v3663_v34 = vsub.f32 %v5169_v8, %v3661_v15  ;;  %v3664_v16 = vmul.f32 %v3662_v13, %v3662_v13 }
0x1908   :  { %v3666_v35 = vsel %vm77_vm0, %v3664_v16, 0.0  ;;  %v3665_v17 = vmul.f32 %v3663_v34, %v3663_v34 }
0x1909   :  { %3667 = vadd.xlane.f32.xlu0 %v3666_v35 }
0x190a   :  { %v3669_v18 = vsel %vm77_vm0, %v3665_v17, 0.0 }
0x190d   :  { %3670 = vadd.xlane.f32.xlu0 %v3669_v18  ;;  %v3996_v18 = vld [vmem:[%s5301_s21] ss:$0 sm:$0xff] }
0x1992   :  { %v3668_v26 = vpop.xlane.xlu0 %3667 }
0x1993   :  { %v3672_v28 = vmul.f32 0.03125, %v3668_v26 }
0x1995   :  { %v3674_v43 = vadd.f32 1e-06, %v3672_v28 }
0x1996   :  { %v3671_v24 = vpop.xlane.xlu0 %3670 }
0x1997   :  { %4462 = vrsqrt.f32 %v3674_v43  ;;  %v3673_v30 = vmul.f32 0.03125, %v3671_v24 }
0x1999   :  { %v3675_v21 = vadd.f32 1e-06, %v3673_v30 }
0x199b   :  { %4464 = vrsqrt.f32 %v3675_v21 }
0x19a4   :  { %v4463_v31 = vpop.eup %4462 }
0x19a5   :  { %v3678_v32 = vmul.f32 %v4463_v31, %v3662_v13 }
0x19a7   :  { %v3686_v37 = vmul.f32 %v3992_v58, %v3678_v32 }
0x19a8   :  { %v4465_v33 = vpop.eup %4464 }
0x19a9   :  { %v3679_v36 = vmul.f32 %v4465_v33, %v3663_v34  ;;  %v3694_v42 = vadd.f32 %v3993_v39, %v3686_v37 }
0x19ab   :  { %v3687_v41 = vmul.f32 %v3992_v58, %v3679_v36 }
0x19ad   :  { %v3695_v0 = vadd.f32 %v3993_v39, %v3687_v41 }
0x19af   :  { %v3709_v1 = vcombine.low %v3694_v42, %v3695_v0 }
0x19b1   :  { %4333 = vmatmul.mubr.msk.f32.vlgmr.msra.gmra.mxu1 %vm135_vm2, %v3709_v1 }
0x1a71   :  { %v3778_v59 = vpop.f32.mrf.mxu1 }
0x1a72   :  { %v3779_v61 = vadd.f32 %v3994_v40, %v3778_v59 }
0x1a73   :  { %v4334_v19 = vpop.f32.mrf.mxu1 }
0x1a74   :  { %v3783_v62 = vcombine.high %v3779_v61, %v3779_v61  ;;  %v3785_v2 = vmul.f32 %v3779_v61, %v3779_v61 }
0x1a76   :  { %v3787_v4 = vmul.f32 %v3785_v2, %v3779_v61  ;;  %v3786_v63 = vmul.f32 %v3783_v62, %v3783_v62 }
0x1a78   :  { %v3789_v3 = vmul.f32 0.044715, %v3787_v4  ;;  %v3788_v5 = vmul.f32 %v3786_v63, %v3783_v62 }
0x1a7a   :  { %v3791_v6 = vadd.f32 %v3789_v3, %v3779_v61  ;;  %v3790_v7 = vmul.f32 0.044715, %v3788_v5 }
0x1a7c   :  { %v3793_v29 = vmul.f32 0.7978846, %v3791_v6  ;;  %v3792_v9 = vadd.f32 %v3790_v7, %v3783_v62 }
0x1a7e   :  { %4466 = vtanh.f32 %v3793_v29  ;;  %v3794_v14 = vmul.f32 0.7978846, %v3792_v9 }
0x1a80   :  { %4468 = vtanh.f32 %v3794_v14 }
0x1a8b   :  { %v4467_v10 = vpop.eup %4466 }
0x1a8c   :  { %v3797_v11 = vadd.f32 1.0, %v4467_v10 }
0x1a8d   :  { %v4469_v12 = vpop.eup %4468 }
0x1a8e   :  { %v3798_v13 = vadd.f32 1.0, %v4469_v12  ;;  %v3799_v15 = vmul.f32 0.5, %v3797_v11 }
0x1a90   :  { %v3800_v34 = vmul.f32 0.5, %v3798_v13  ;;  %v3801_v16 = vmul.f32 %v3799_v15, %v3779_v61 }
0x1a92   :  { %v3802_v35 = vmul.f32 %v3800_v34, %v3783_v62 }
0x1a94   :  { %v3828_v17 = vcombine.low %v3801_v16, %v3802_v35 }
0x1a96   :  { %4368 = vmatmul.mubr.f32.vlgmr.msra.gmra.mxu0 %v3828_v17 }
0x1b56   :  { %v3896_v20 = vpop.f32.mrf.mxu0 }
0x1b57   :  { %v3897_v23 = vadd.f32 %v3996_v18, %v3896_v20 }
0x1b58   :  { %v4369_v22 = vpop.f32.mrf.mxu0 }
0x1b59   :  { %v3901_v25 = vcombine.high %v3897_v23, %v3897_v23  ;;  %v3903_v26 = vadd.f32 %v3897_v23, %v5166_v38 }
0x1b5b   :  { %v3904_v28 = vadd.f32 %v3901_v25, %v5169_v8  ;;  %3905 = vst.msk [vmem:[%s5302_s22] sm:$0xf] %vm77_vm0, %v3903_v26 }
0x1b5d   :  { %3906 = vst.msk [vmem:[%s5302_s22 + $0x4] sm:$0xf] %vm77_vm0, %v3904_v28 }

// kernel: emu_forward.15
= control target key start
LH: loop header
LB: loop body
LE: loop exit
PB: predicated region body
PF: predicated region fallthrough
CT: control target
= control target key end

     0   :  { %vm44_vm0 = vcmask 261120   ;;  %vm48_vm1 = vcmask 257024   ;;  %v2922_v12 = vmov 0.0   ;;  %vm2923_vm2 = vmmov 0   ;;  %s2924_s11 = smov 96   ;;  %s2926_s12 = smov 88   ;;  %s3517_s0 = inlined_call_operand.vmem [shape: f32[2,12,32], index: 0, kind: input, shape index: {}]   ;;  %s3518_s3 = inlined_call_operand.vmem [shape: f32[32,96], index: 3, kind: input, shape index: {}]   ;;  %s3519_s2 = inlined_call_operand.vmem [shape: f32[1,32], index: 2, kind: input, shape index: {}]   ;;  %s3520_s4 = inlined_call_operand.vmem [shape: f32[1,96], index: 4, kind: input, shape index: {}]   ;;  %s3521_s1 = inlined_call_operand.vmem [shape: f32[2,12], index: 1, kind: input, shape index: {}]   ;;  %s3522_s5 = inlined_call_operand.vmem [shape: f32[32,32], index: 5, kind: input, shape index: {}]   ;;  %s3523_s6 = inlined_call_operand.vmem [shape: f32[1,32], index: 6, kind: input, shape index: {}]   ;;  %s3524_s8 = inlined_call_operand.vmem [shape: f32[32,256], index: 8, kind: input, shape index: {}]   ;;  %s3525_s7 = inlined_call_operand.vmem [shape: f32[1,32], index: 7, kind: input, shape index: {}]   ;;  %s3526_s9 = inlined_call_operand.vmem [shape: f32[128,32], index: 9, kind: input, shape index: {}]   ;;  %s3527_s10 = inlined_call_operand.vmem [shape: f32[2,12,32], index: 10, kind: output, shape index: {}]  }
   0x1   :  { %v35_v0 = vld [vmem:[%s3517_s0] sm:$0xff]  ;;  %v37_v1 = vld [vmem:[%s3517_s0 + $0x10] sm:$0xff]  ;;  %v36_v2 = vld [vmem:[%s3517_s0 + $0x8] sm:$0xf]  ;;  %2608 = vmatprep.subr.mxu1 %v2922_v12  ;;  %2616 = vmatprep.mubr.msk.f32.mxu1 %vm2923_vm2, %v2922_v12  ;;  %vm261_vm3 = vcmask 64512   ;;  %vm498_vm4 = vcmask 1043456  }
   0x2   :  { %v40_v3 = vmul.f32 %v35_v0, %v35_v0  ;;  %v42_v4 = vmul.f32 %v37_v1, %v37_v1  ;;  %v41_v5 = vmul.f32 %v36_v2, %v36_v2  ;;  %v38_v6 = vld [vmem:[%s3517_s0 + $0x18] sm:$0xf]  ;;  %v87_v14 = vld [vmem:[%s3518_s3 + $0x10] sm:$0xff]  ;;  %v86_v15 = vld [vmem:[%s3518_s3 + $0x8] sm:$0xff]  ;;  %vm445_vm12 = vcmask 93184   ;;  %s2931_s15 = smov 56  }
   0x3   :  { %v43_v7 = vmul.f32 %v38_v6, %v38_v6  ;;  %v88_v13 = vld [vmem:[%s3518_s3 + $0x18] sm:$0xff]  ;;  %v85_v16 = vld [vmem:[%s3518_s3] sm:$0xff]  ;;  %vm441_vm14 = vcmask 97280   ;;  %s2932_s16 = smov 80   ;;  %s2933_s17 = smov 112  }
   0x4   :  { %v45_v8 = vsel %vm44_vm0, %v40_v3, 0.0  ;;  %v52_v9 = vsel %vm44_vm0, %v42_v4, 0.0  ;;  %v49_v10 = vsel %vm48_vm1, %v41_v5, 0.0  ;;  %2609 = vmatpush3.msra.mxu1 %v88_v13  ;;  %v2435_v30 = vld [vmem:[%s3519_s2] ss:$0 sm:$0xff]  ;;  %s2934_s18 = smov 48  }
   0x5   :  { %46 = vadd.xlane.f32.xlu0 %v45_v8  ;;  %53 = vadd.xlane.f32.xlu1 %v52_v9  ;;  %v55_v11 = vsel %vm48_vm1, %v43_v7, 0.0  ;;  %v2436_v47 = vld [vmem:[%s3520_s4] ss:$0 sm:$0xff]  ;;  %s2925_s4 = smov 64   ;;  %v2927_v7 = vmov 1966171168  }
   0x6   :  { %2610 = vmatprep.subr.mxu1 %v2922_v12  ;;  %v215_v8 = vunpack.c.l.s4 %v2927_v7  ;;  %v2440_v13 = vld.sshfl [vmem:[%s3521_s1] sm:$0x11 pattern:$0x75316420]  ;;  %s2930_s1 = smov 120   ;;  %s2935_s19 = smov 72  }
   0x7   :  { %2611 = vmatpush3.msra.mxu1 %v87_v14  ;;  %s2936_s20 = smov 104   ;;  %s2937_s21 = smov 40  }
   0x8   :  { %2612 = vmatprep.subr.mxu1 %v2922_v12  ;;  %s2938_s22 = smov 8   ;;  %s2939_s23 = smov 16  }
   0x9   :  { %50 = vadd.xlane.f32.xlu0 %v49_v10  ;;  %56 = vadd.xlane.f32.xlu1 %v55_v11  ;;  %v216_v10 = vunpack.c.0.s8 %v215_v8  ;;  %s2940_s30 = smov 24  }
   0xa   :  { %2613 = vmatpush3.msra.mxu1 %v86_v15  ;;  %v213_v15 = vcombine.high %v2440_v13, %v2440_v13 }
   0xb   :  { %2614 = vmatprep.subr.mxu1 %v2922_v12 }
   0xc   :  { %2615 = vmatpush3.msra.mxu1 %v85_v16 }
  0x8e   :  { %v47_v17 = vpop.xlane.xlu0 %46  ;;  %v54_v18 = vpop.xlane.xlu1 %53 }
  0x8f   :  { %v59_v19 = vmul.f32 0.03125, %v47_v17  ;;  %v61_v20 = vmul.f32 0.03125, %v54_v18  ;;  %v2928_v17 = vmov 0  }
  0x91   :  { %v63_v21 = vadd.f32 1e-06, %v59_v19  ;;  %v65_v22 = vadd.f32 1e-06, %v61_v20 }
  0x92   :  { %v51_v23 = vpop.xlane.xlu0 %50  ;;  %v57_v24 = vpop.xlane.xlu1 %56 }
  0x93   :  { %2814 = vrsqrt.f32 %v63_v21  ;;  %v60_v25 = vmul.f32 0.03125, %v51_v23  ;;  %v62_v26 = vmul.f32 0.03125, %v57_v24 }
  0x94   :  { %2816 = vrsqrt.f32 %v65_v22 }
  0x95   :  { %v64_v27 = vadd.f32 1e-06, %v60_v25  ;;  %v66_v28 = vadd.f32 1e-06, %v62_v26  ;;  %v2929_v26 = vmov -1e+09  }
  0x97   :  { %2818 = vrsqrt.f32 %v64_v27 }
  0x98   :  { %2820 = vrsqrt.f32 %v66_v28 }
  0xa0   :  { %v2815_v29 = vpop.eup %2814 }
  0xa1   :  { %v2817_v31 = vpop.eup %2816  ;;  %v71_v32 = vmul.f32 %v2815_v29, %v35_v0 }
  0xa2   :  { %v73_v33 = vmul.f32 %v2817_v31, %v37_v1 }
  0xa3   :  { %v81_v34 = vmul.f32 %v2435_v30, %v71_v32 }
  0xa4   :  { %v2819_v35 = vpop.eup %2818  ;;  %v83_v39 = vmul.f32 %v2435_v30, %v73_v33 }
  0xa5   :  { %v2821_v36 = vpop.eup %2820  ;;  %v94_v37 = vcombine.high %v81_v34, %v81_v34  ;;  %v72_v38 = vmul.f32 %v2819_v35, %v36_v2 }
  0xa6   :  { %v74_v42 = vmul.f32 %v2821_v36, %v38_v6  ;;  %v95_v45 = vcombine.high %v83_v39, %v83_v39  ;;  %v197_v6 = vlaneseq }
  0xa7   :  { %v102_v40 = vcombine.low %v81_v34, %v94_v37  ;;  %v82_v41 = vmul.f32 %v2435_v30, %v72_v38 }
  0xa8   :  { %v84_v44 = vmul.f32 %v2435_v30, %v74_v42  ;;  %v198_v9 = vshrl.u32 %v197_v6, 7  ;;  %v201_v21 = vand.u32 127, %v197_v6 }
  0xa9   :  { %2617 = vmatmul.mubr.msk.f32.vlgmr.msra.gmra.mxu1 %vm44_vm0, %v102_v40  ;;  %v103_v43 = vcombine.low %v82_v41, %v83_v39 }
  0xaa   :  { %2619 = vmatprep.mubr.msk.f32.mxu1 %vm2923_vm2, %v2922_v12  ;;  %v104_v46 = vcombine.low %v95_v45, %v84_v44  ;;  %v219_v11 = vsub.s32 %v216_v10, %v198_v9  ;;  %v240_v16 = vsub.s32 0, %v198_v9  ;;  %v199_v20 = vadd.s32 8, %v198_v9 }
  0xab   :  { %vm203_vm9 = vcmp.le.s32.totalorder %v201_v21, %v198_v9 }
  0xac   :  { %v220_v14 = vrot.slane %v2440_v13, %v219_v11  ;;  %v227_v19 = vrot.slane %v213_v15, %v219_v11  ;;  %vm204_vm7 = vcmp.le.s32.totalorder %v201_v21, %v199_v20 }
  0xad   :  { %2620 = vmatmul.mubr.msk.f32.gmra.mxu1 %vm44_vm0, %v103_v43 }
  0xae   :  { %2622 = vmatprep.mubr.msk.f32.mxu1 %vm2923_vm2, %v2922_v12  ;;  %vm230_vm5 = vcmp.gt.f32.partialorder %v220_v14, 0.5  ;;  %vm231_vm6 = vcmp.gt.f32.partialorder %v227_v19, 0.5 }
  0xaf   :  { %v236_v18 = vsel %vm230_vm5, 1, %v2928_v17  ;;  %v237_v23 = vsel %vm231_vm6, 1, %v2928_v17  ;;  %vm1951_vm6 = vcmask 195584  }
  0xb0   :  { %v241_v22 = vrot.slane %v236_v18, %v240_v16  ;;  %v245_v24 = vrot.slane %v237_v23, %v240_v16 }
  0xb1   :  { %2623 = vmatmul.mubr.msk.f32.gmra.mxu1 %vm44_vm0, %v104_v46 }
  0xb2   :  { %vm246_vm8 = vcmp.eq.s32.totalorder %v241_v22, 1  ;;  %vm247_vm13 = vcmp.eq.s32.totalorder %v245_v24, 1 }
  0xb3   :  { %vm249_vm10 = vmand %vm204_vm7, %vm246_vm8 }
  0xb4   :  { %vm248_vm11 = vmand %vm203_vm9, %vm246_vm8  ;;  %v3094_v27 = vsel %vm249_vm10, 0.0, %v2929_v26 }
  0xb5   :  { %v3096_v30 = vsel %vm248_vm11, 0.0, %v2929_v26  ;;  %vm251_vm15 = vmand %vm204_vm7, %vm247_vm13 }
  0xb6   :  { %vm250_vm5 = vmand %vm203_vm9, %vm247_vm13  ;;  %v3104_v37 = vsel %vm251_vm15, 0.0, %v2929_v26 }
  0xb7   :  { %v3106_v40 = vsel %vm250_vm5, 0.0, %v2929_v26 }
 0x169   :  { %v177_v48 = vpop.f32.mrf.mxu1 }
 0x16a   :  { %v178_v49 = vadd.f32 %v2436_v47, %v177_v48 }
 0x16b   :  { %v2618_v50 = vpop.f32.mrf.mxu1 }
 0x16c   :  { %v194_v51 = vcombine.high %v178_v49, %v178_v49 }
 0x16d   :  { %v182_v52 = vpop.f32.mrf.mxu1 }
 0x16e   :  { %v3043_v53 = vcombine.low %v178_v49, %v194_v51  ;;  %v3045_v54 = vadd.f32 %v2436_v47, %v182_v52 }
 0x16f   :  { %v2621_v55 = vpop.f32.mrf.mxu1 }
 0x170   :  { %257 = vrot.lane.b32.xlu1 %v3043_v53, %s2924_s11  ;;  %2629 = vmatprep.mubr.msk.f32.mxu1 %vm261_vm3, %v3043_v53  ;;  %v195_v60 = vcombine.high %v3045_v54, %v3045_v54 }
 0x171   :  { %259 = vrot.lane.b32.xlu0 %v3045_v54, %s2924_s11  ;;  %v187_v56 = vpop.f32.mrf.mxu1 }
 0x172   :  { %v188_v57 = vadd.f32 %v2436_v47, %v187_v56 }
 0x173   :  { %v2624_v58 = vpop.f32.mrf.mxu1 }
 0x174   :  { %v3051_v59 = vcombine.high %v188_v57, %v188_v57  ;;  %v3058_v61 = vcombine.low %v195_v60, %v188_v57 }
 0x175   :  { %489 = vrot.lane.b32.xlu0 %v3045_v54, %s2925_s4 }
 0x176   :  { %348 = vrot.lane.b32.xlu1 %v3051_v59, %s2924_s11 }
 0x17a   :  { %346 = vrot.lane.b32.xlu1 %v3058_v61, %s2924_s11 }
 0x17e   :  { %487 = vrot.lane.b32.xlu1 %v3043_v53, %s2925_s4 }
 0x182   :  { %670 = vrot.lane.b32.xlu1 %v3045_v54, %s2926_s12 }
 0x186   :  { %578 = vrot.lane.b32.xlu1 %v3051_v59, %s2925_s4 }
 0x1e2   :  { %v258_v63 = vpop.permute.xlu1 %257 }
 0x1e3   :  { %v260_v62 = vpop.permute.xlu0 %259 }
 0x1e4   :  { %2625 = vmatprep.subr.msk.mxu1 %vm261_vm3, %v260_v62 }
 0x1e5   :  { %2626 = vmatpush3.xpose.msk.msra.mxu1 %vm261_vm3, %v260_v62 }
 0x1e6   :  { %2627 = vmatprep.subr.msk.mxu1 %vm261_vm3, %v258_v63 }
 0x1e7   :  { %v490_v0 = vpop.permute.xlu0 %489 }
 0x1e8   :  { %2639 = vmatprep.subr.msk.mxu0 %vm498_vm4, %v490_v0  ;;  %v349_v1 = vpop.permute.xlu1 %348 }
 0x1e9   :  { %2628 = vmatpush3.xpose.msk.msra.mxu1 %vm261_vm3, %v258_v63  ;;  %2640 = vmatpush3.msk.msra.mxu0 %vm498_vm4, %v490_v0 }
 0x1ea   :  { %2632 = vmatprep.subr.msk.mxu1 %vm261_vm3, %v349_v1 }
 0x1ec   :  { %2630 = vmatmul.mubr.msk.f32.vlgmr.msra.gmra.mxu1 %vm261_vm3, %v3045_v54  ;;  %v347_v2 = vpop.permute.xlu1 %346 }
 0x1ed   :  { %2633 = vmatpush3.xpose.msk.msra.mxu1 %vm261_vm3, %v349_v1  ;;  %2636 = vmatprep.mubr.msk.f32.mxu1 %vm261_vm3, %v3058_v61 }
 0x1ee   :  { %2634 = vmatprep.subr.msk.mxu1 %vm261_vm3, %v347_v2 }
 0x1f0   :  { %v488_v3 = vpop.permute.xlu1 %487 }
 0x1f1   :  { %2635 = vmatpush3.xpose.msk.msra.mxu1 %vm261_vm3, %v347_v2  ;;  %2641 = vmatprep.subr.mxu0 %v488_v3 }
 0x1f2   :  { %2642 = vmatpush3.msra.mxu0 %v488_v3 }
 0x1f4   :  { %2637 = vmatmul.mubr.msk.f32.vlgmr.msra.gmra.mxu1 %vm261_vm3, %v3051_v59  ;;  %v3083_v4 = vpop.permute.xlu1 %670 }
 0x1f5   :  { %2653 = vmatprep.subr.msk.mxu0 %vm261_vm3, %v3083_v4 }
 0x1f8   :  { %v579_v5 = vpop.permute.xlu1 %578 }
 0x1f9   :  { %2646 = vmatprep.subr.msk.mxu1 %vm498_vm4, %v579_v5 }
 0x1fa   :  { %2647 = vmatpush3.msk.msra.mxu1 %vm498_vm4, %v579_v5 }
 0x2ac   :  { %v2631_v25 = vpop.f32.mrf.mxu1 }
 0x2ad   :  { %v434_v28 = vmul.f32 0.35355338, %v2631_v25 }
 0x2ae   :  { %v336_v29 = vpop.f32.mrf.mxu1 }
 0x2af   :  { %v433_v31 = vmul.f32 0.35355338, %v336_v29  ;;  %v438_v32 = vadd.f32 %v434_v28, %v3094_v27 }
 0x2b1   :  { %v446_v33 = vsel %vm445_vm12, %v438_v32, -inf  ;;  %v437_v34 = vadd.f32 %v433_v31, %v3096_v30 }
 0x2b2   :  { %447 = vmax.xlane.f32.xlu1 %v446_v33 }
 0x2b3   :  { %v442_v35 = vsel %vm441_vm14, %v437_v34, -inf }
 0x2b4   :  { %443 = vmax.xlane.f32.xlu0 %v442_v35  ;;  %v2638_v36 = vpop.f32.mrf.mxu1 }
 0x2b5   :  { %v436_v38 = vmul.f32 0.35355338, %v2638_v36 }
 0x2b6   :  { %v424_v39 = vpop.f32.mrf.mxu1 }
 0x2b7   :  { %v435_v41 = vmul.f32 0.35355338, %v424_v39  ;;  %v440_v42 = vadd.f32 %v436_v38, %v3104_v37 }
 0x2b9   :  { %v452_v43 = vsel %vm445_vm12, %v440_v42, -inf  ;;  %v439_v44 = vadd.f32 %v435_v41, %v3106_v40 }
 0x2ba   :  { %453 = vmax.xlane.f32.xlu0 %v452_v43 }
 0x2bb   :  { %v449_v45 = vsel %vm441_vm14, %v439_v44, -inf }
 0x2be   :  { %450 = vmax.xlane.f32.xlu0 %v449_v45 }
 0x2c3   :  { %668 = vrot.lane.b32.xlu1 %v3043_v53, %s2926_s12 }
 0x2d4   :  { %576 = vrot.lane.b32.xlu0 %v3058_v61, %s2925_s4 }
 0x33b   :  { %v448_v46 = vpop.xlane.xlu1 %447 }
 0x33c   :  { %v456_v47 = vsub.f32 %v438_v32, %v448_v46 }
 0x33d   :  { %v444_v48 = vpop.xlane.xlu0 %443 }
 0x33e   :  { %v461_v49 = vmul.f32 1.442695, %v456_v47  ;;  %v455_v50 = vsub.f32 %v437_v34, %v444_v48 }
 0x33f   :  { %v669_v8 = vpop.permute.xlu1 %668 }
 0x340   :  { %2822 = vpow2.f32 %v461_v49  ;;  %v459_v51 = vmul.f32 1.442695, %v455_v50 }
 0x342   :  { %2824 = vpow2.f32 %v459_v51 }
 0x343   :  { %v454_v52 = vpop.xlane.xlu0 %453 }
 0x344   :  { %v458_v63 = vsub.f32 %v440_v42, %v454_v52 }
 0x346   :  { %v465_v1 = vmul.f32 1.442695, %v458_v63 }
 0x347   :  { %v451_v55 = vpop.xlane.xlu0 %450 }
 0x348   :  { %v457_v0 = vsub.f32 %v439_v44, %v451_v55  ;;  %2826 = vpow2.f32 %v465_v1 }
 0x34a   :  { %v463_v2 = vmul.f32 1.442695, %v457_v0 }
 0x34b   :  { %v577_v56 = vpop.permute.xlu0 %576 }
 0x34c   :  { %2648 = vmatprep.subr.mxu1 %v577_v56  ;;  %2828 = vpow2.f32 %v463_v2 }
 0x34d   :  { %v2823_v57 = vpop.eup %2822  ;;  %2649 = vmatpush3.msra.mxu1 %v577_v56 }
 0x34e   :  { %v470_v58 = vsel %vm445_vm12, %v2823_v57, 0.0 }
 0x34f   :  { %v2825_v60 = vpop.eup %2824  ;;  %471 = vadd.xlane.f32.xlu1 %v470_v58 }
 0x350   :  { %v467_v62 = vsel %vm441_vm14, %v2825_v60, 0.0 }
 0x351   :  { %468 = vadd.xlane.f32.xlu0 %v467_v62 }
 0x355   :  { %v2827_v3 = vpop.eup %2826 }
 0x356   :  { %v476_v6 = vsel %vm445_vm12, %v2827_v3, 0.0 }
 0x359   :  { %v2829_v5 = vpop.eup %2828 }
 0x35a   :  { %v473_v7 = vsel %vm441_vm14, %v2829_v5, 0.0 }
 0x360   :  { %664 = vrot.lane.b32.xlu1 %v3043_v53, %s2930_s1 }
 0x367   :  { %761 = vrot.lane.b32.xlu0 %v3051_v59, %s2926_s12 }
 0x384   :  { %477 = vadd.xlane.f32.xlu1 %v476_v6 }
 0x386   :  { %474 = vadd.xlane.f32.xlu0 %v473_v7 }
 0x395   :  { %759 = vrot.lane.b32.xlu1 %v3058_v61, %s2926_s12 }
 0x399   :  { %757 = vrot.lane.b32.xlu1 %v3051_v59, %s2930_s1 }
 0x39c   :  { %666 = vrot.lane.b32.xlu0 %v3045_v54, %s2930_s1 }
 0x39d   :  { %898 = vrot.lane.b32.xlu1 %v3043_v53, %s2931_s15 }
 0x3a0   :  { %755 = vrot.lane.b32.xlu0 %v3058_v61, %s2930_s1 }
 0x3a1   :  { %1080 = vrot.lane.b32.xlu1 %v3045_v54, %s2932_s16 }
 0x3a4   :  { %900 = vrot.lane.b32.xlu0 %v3045_v54, %s2931_s15 }
 0x3a5   :  { %988 = vrot.lane.b32.xlu1 %v3051_v59, %s2931_s15 }
 0x3d8   :  { %v472_v9 = vpop.xlane.xlu1 %471 }
 0x3d9   :  { %2830 = vrcp.f32 %v472_v9 }
 0x3da   :  { %v469_v10 = vpop.xlane.xlu0 %468 }
 0x3db   :  { %2832 = vrcp.f32 %v469_v10 }
 0x3dc   :  { %v665_v17 = vpop.permute.xlu1 %664 }
 0x3de   :  { %v762_v11 = vpop.permute.xlu0 %761 }
 0x3df   :  { %2660 = vmatprep.subr.msk.mxu1 %vm261_vm3, %v762_v11 }
 0x3e6   :  { %v2831_v13 = vpop.eup %2830 }
 0x3e7   :  { %v484_v16 = vmul.f32 %v2831_v13, %v2823_v57 }
 0x3e8   :  { %v2833_v14 = vpop.eup %2832 }
 0x3e9   :  { %v483_v15 = vmul.f32 %v2833_v14, %v2825_v60 }
 0x3eb   :  { %2643 = vmatprep.mubr.msk.f32.mxu0 %vm441_vm14, %v483_v15 }
 0x3ec   :  { %2644 = vmatmul.mubr.msk.f32.vlgmr.msra.gmra.mxu0 %vm441_vm14, %v484_v16 }
 0x3ed   :  { %2654 = vmatpush3.xpose.msk.msra.mxu0 %vm261_vm3, %v3083_v4  ;;  %2657 = vmatprep.mubr.msk.f32.mxu0 %vm261_vm3, %v665_v17 }
 0x3ee   :  { %2655 = vmatprep.subr.msk.mxu0 %vm261_vm3, %v669_v8 }
 0x3f1   :  { %2656 = vmatpush3.xpose.msk.msra.mxu0 %vm261_vm3, %v669_v8 }
 0x40d   :  { %v478_v18 = vpop.xlane.xlu1 %477 }
 0x40e   :  { %2834 = vrcp.f32 %v478_v18 }
 0x40f   :  { %v475_v19 = vpop.xlane.xlu0 %474 }
 0x410   :  { %2836 = vrcp.f32 %v475_v19 }
 0x411   :  { %v760_v20 = vpop.permute.xlu1 %759 }
 0x413   :  { %v667_v21 = vpop.permute.xlu0 %666 }
 0x414   :  { %2658 = vmatmul.mubr.msk.f32.vlgmr.msra.gmra.mxu0 %vm261_vm3, %v667_v21 }
 0x415   :  { %v758_v22 = vpop.permute.xlu1 %757 }
 0x417   :  { %v756_v23 = vpop.permute.xlu0 %755 }
 0x419   :  { %v899_v24 = vpop.permute.xlu1 %898 }
 0x41b   :  { %v901_v25 = vpop.permute.xlu0 %900  ;;  %v2835_v26 = vpop.eup %2834 }
 0x41c   :  { %2667 = vmatprep.subr.msk.mxu0 %vm498_vm4, %v901_v25  ;;  %v486_v31 = vmul.f32 %v2835_v26, %v2827_v3 }
 0x41d   :  { %v2837_v4 = vpop.eup %2836  ;;  %2668 = vmatpush3.msk.msra.mxu0 %vm498_vm4, %v901_v25  ;;  %v3147_v29 = vpop.permute.xlu1 %1080 }
 0x41e   :  { %2669 = vmatprep.subr.mxu0 %v899_v24  ;;  %v485_v28 = vmul.f32 %v2837_v4, %v2829_v5 }
 0x41f   :  { %2670 = vmatpush3.msra.mxu0 %v899_v24 }
 0x420   :  { %2650 = vmatprep.mubr.msk.f32.mxu1 %vm441_vm14, %v485_v28  ;;  %2681 = vmatprep.subr.msk.mxu0 %vm261_vm3, %v3147_v29 }
 0x421   :  { %2651 = vmatmul.mubr.msk.f32.vlgmr.msra.gmra.mxu1 %vm441_vm14, %v486_v31  ;;  %v989_v32 = vpop.permute.xlu1 %988 }
 0x422   :  { %2661 = vmatpush3.xpose.msk.msra.mxu1 %vm261_vm3, %v762_v11  ;;  %2664 = vmatprep.mubr.msk.f32.mxu1 %vm261_vm3, %v756_v23 }
 0x423   :  { %2662 = vmatprep.subr.msk.mxu1 %vm261_vm3, %v760_v20 }
 0x426   :  { %2663 = vmatpush3.xpose.msk.msra.mxu1 %vm261_vm3, %v760_v20 }
 0x427   :  { %2674 = vmatprep.subr.msk.mxu1 %vm498_vm4, %v989_v32 }
 0x429   :  { %2665 = vmatmul.mubr.msk.f32.vlgmr.msra.gmra.mxu1 %vm261_vm3, %v758_v22 }
 0x42a   :  { %2675 = vmatpush3.msk.msra.mxu1 %vm498_vm4, %v989_v32 }
 0x4ac   :  { %v3160_v33 = vpop.f32.mrf.mxu0 }
 0x4ae   :  { %v3162_v34 = vpop.f32.mrf.mxu0 }
 0x4d4   :  { %v2659_v35 = vpop.f32.mrf.mxu0 }
 0x4d5   :  { %v847_v36 = vmul.f32 0.35355338, %v2659_v35 }
 0x4d6   :  { %v746_v38 = vpop.f32.mrf.mxu0 }
 0x4d7   :  { %v846_v39 = vmul.f32 0.35355338, %v746_v38  ;;  %v851_v41 = vadd.f32 %v847_v36, %v3094_v27 }
 0x4d9   :  { %v857_v42 = vsel %vm445_vm12, %v851_v41, -inf  ;;  %v850_v43 = vadd.f32 %v846_v39, %v3096_v30 }
 0x4da   :  { %858 = vmax.xlane.f32.xlu1 %v857_v42 }
 0x4db   :  { %v854_v44 = vsel %vm441_vm14, %v850_v43, -inf }
 0x4dc   :  { %855 = vmax.xlane.f32.xlu0 %v854_v44 }
 0x4e1   :  { %v3168_v45 = vpop.f32.mrf.mxu1 }
 0x4e3   :  { %v3170_v46 = vpop.f32.mrf.mxu1 }
 0x4e9   :  { %v2666_v47 = vpop.f32.mrf.mxu1 }
 0x4ea   :  { %v849_v48 = vmul.f32 0.35355338, %v2666_v47 }
 0x4eb   :  { %v837_v49 = vpop.f32.mrf.mxu1  ;;  %1078 = vrot.lane.b32.xlu1 %v3043_v53, %s2932_s16 }
 0x4ec   :  { %v848_v50 = vmul.f32 0.35355338, %v837_v49  ;;  %v853_v51 = vadd.f32 %v849_v48, %v3104_v37 }
 0x4ee   :  { %v863_v52 = vsel %vm445_vm12, %v853_v51, -inf  ;;  %v852_v55 = vadd.f32 %v848_v50, %v3106_v40 }
 0x4ef   :  { %864 = vmax.xlane.f32.xlu0 %v863_v52 }
 0x4f0   :  { %v860_v56 = vsel %vm441_vm14, %v852_v55, -inf }
 0x4f3   :  { %861 = vmax.xlane.f32.xlu0 %v860_v56 }
 0x509   :  { %986 = vrot.lane.b32.xlu0 %v3058_v61, %s2931_s15 }
 0x563   :  { %v859_v57 = vpop.xlane.xlu1 %858 }
 0x564   :  { %v867_v58 = vsub.f32 %v851_v41, %v859_v57 }
 0x565   :  { %v856_v60 = vpop.xlane.xlu0 %855 }
 0x566   :  { %v872_v62 = vmul.f32 1.442695, %v867_v58  ;;  %v866_v63 = vsub.f32 %v850_v43, %v856_v60 }
 0x567   :  { %v1079_v18 = vpop.permute.xlu1 %1078 }
 0x568   :  { %2838 = vpow2.f32 %v872_v62  ;;  %v870_v0 = vmul.f32 1.442695, %v866_v63 }
 0x56a   :  { %2840 = vpow2.f32 %v870_v0 }
 0x575   :  { %v2839_v1 = vpop.eup %2838 }
 0x576   :  { %v881_v2 = vsel %vm445_vm12, %v2839_v1, 0.0 }
 0x577   :  { %v2841_v3 = vpop.eup %2840  ;;  %882 = vadd.xlane.f32.xlu1 %v881_v2 }
 0x578   :  { %v865_v5 = vpop.xlane.xlu0 %864  ;;  %v878_v6 = vsel %vm441_vm14, %v2841_v3, 0.0 }
 0x579   :  { %879 = vadd.xlane.f32.xlu0 %v878_v6  ;;  %v869_v9 = vsub.f32 %v853_v51, %v865_v5 }
 0x57b   :  { %v876_v11 = vmul.f32 1.442695, %v869_v9 }
 0x57c   :  { %v862_v7 = vpop.xlane.xlu0 %861 }
 0x57d   :  { %v868_v10 = vsub.f32 %v852_v55, %v862_v7  ;;  %2842 = vpow2.f32 %v876_v11 }
 0x57f   :  { %v874_v13 = vmul.f32 1.442695, %v868_v10 }
 0x580   :  { %v987_v8 = vpop.permute.xlu0 %986 }
 0x581   :  { %2676 = vmatprep.subr.mxu1 %v987_v8  ;;  %2844 = vpow2.f32 %v874_v13 }
 0x582   :  { %2677 = vmatpush3.msra.mxu1 %v987_v8 }
 0x588   :  { %1074 = vrot.lane.b32.xlu1 %v3043_v53, %s2933_s17 }
 0x58a   :  { %v2843_v14 = vpop.eup %2842 }
 0x58b   :  { %v887_v16 = vsel %vm445_vm12, %v2843_v14, 0.0 }
 0x58e   :  { %v2845_v15 = vpop.eup %2844 }
 0x58f   :  { %1171 = vrot.lane.b32.xlu0 %v3051_v59, %s2932_s16  ;;  %v884_v17 = vsel %vm441_vm14, %v2845_v15, 0.0 }
 0x5ac   :  { %888 = vadd.xlane.f32.xlu1 %v887_v16 }
 0x5ae   :  { %885 = vadd.xlane.f32.xlu0 %v884_v17 }
 0x5bd   :  { %1169 = vrot.lane.b32.xlu1 %v3058_v61, %s2932_s16 }
 0x5c1   :  { %1167 = vrot.lane.b32.xlu1 %v3051_v59, %s2933_s17 }
 0x5c4   :  { %1076 = vrot.lane.b32.xlu0 %v3045_v54, %s2933_s17 }
 0x5c5   :  { %1308 = vrot.lane.b32.xlu1 %v3043_v53, %s2934_s18 }
 0x5c8   :  { %1165 = vrot.lane.b32.xlu0 %v3058_v61, %s2933_s17 }
 0x5c9   :  { %1490 = vrot.lane.b32.xlu1 %v3045_v54, %s2935_s19 }
 0x5cc   :  { %1310 = vrot.lane.b32.xlu0 %v3045_v54, %s2934_s18 }
 0x5cd   :  { %1398 = vrot.lane.b32.xlu1 %v3051_v59, %s2934_s18 }
 0x600   :  { %v883_v19 = vpop.xlane.xlu1 %882 }
 0x601   :  { %2846 = vrcp.f32 %v883_v19 }
 0x602   :  { %v880_v20 = vpop.xlane.xlu0 %879 }
 0x603   :  { %2848 = vrcp.f32 %v880_v20 }
 0x604   :  { %v1075_v26 = vpop.permute.xlu1 %1074 }
 0x606   :  { %v1172_v21 = vpop.permute.xlu0 %1171 }
 0x607   :  { %2688 = vmatprep.subr.msk.mxu1 %vm261_vm3, %v1172_v21 }
 0x60e   :  { %v2847_v22 = vpop.eup %2846 }
 0x60f   :  { %v895_v25 = vmul.f32 %v2847_v22, %v2839_v1 }
 0x610   :  { %v2849_v23 = vpop.eup %2848 }
 0x611   :  { %v894_v24 = vmul.f32 %v2849_v23, %v2841_v3 }
 0x613   :  { %2671 = vmatprep.mubr.msk.f32.mxu0 %vm441_vm14, %v894_v24 }
 0x614   :  { %2672 = vmatmul.mubr.msk.f32.vlgmr.msra.gmra.mxu0 %vm441_vm14, %v895_v25 }
 0x615   :  { %2682 = vmatpush3.xpose.msk.msra.mxu0 %vm261_vm3, %v3147_v29  ;;  %2685 = vmatprep.mubr.msk.f32.mxu0 %vm261_vm3, %v1075_v26 }
 0x616   :  { %2683 = vmatprep.subr.msk.mxu0 %vm261_vm3, %v1079_v18 }
 0x619   :  { %2684 = vmatpush3.xpose.msk.msra.mxu0 %vm261_vm3, %v1079_v18 }
 0x635   :  { %v889_v4 = vpop.xlane.xlu1 %888 }
 0x636   :  { %2850 = vrcp.f32 %v889_v4 }
 0x637   :  { %v886_v28 = vpop.xlane.xlu0 %885 }
 0x638   :  { %2852 = vrcp.f32 %v886_v28 }
 0x639   :  { %v1170_v31 = vpop.permute.xlu1 %1169 }
 0x63b   :  { %v1077_v32 = vpop.permute.xlu0 %1076 }
 0x63c   :  { %2686 = vmatmul.mubr.msk.f32.vlgmr.msra.gmra.mxu0 %vm261_vm3, %v1077_v32 }
 0x63d   :  { %v1168_v35 = vpop.permute.xlu1 %1167 }
 0x63f   :  { %v1166_v36 = vpop.permute.xlu0 %1165 }
 0x641   :  { %v1309_v38 = vpop.permute.xlu1 %1308 }
 0x643   :  { %v1311_v39 = vpop.permute.xlu0 %1310  ;;  %v2851_v41 = vpop.eup %2850 }
 0x644   :  { %2695 = vmatprep.subr.msk.mxu0 %vm498_vm4, %v1311_v39  ;;  %v897_v44 = vmul.f32 %v2851_v41, %v2843_v14 }
 0x645   :  { %v2853_v29 = vpop.eup %2852  ;;  %2696 = vmatpush3.msk.msra.mxu0 %vm498_vm4, %v1311_v39  ;;  %v3211_v43 = vpop.permute.xlu1 %1490 }
 0x646   :  { %2697 = vmatprep.subr.mxu0 %v1309_v38  ;;  %v896_v42 = vmul.f32 %v2853_v29, %v2845_v15 }
 0x647   :  { %2698 = vmatpush3.msra.mxu0 %v1309_v38 }
 0x648   :  { %2678 = vmatprep.mubr.msk.f32.mxu1 %vm441_vm14, %v896_v42  ;;  %2709 = vmatprep.subr.msk.mxu0 %vm261_vm3, %v3211_v43 }
 0x649   :  { %2679 = vmatmul.mubr.msk.f32.vlgmr.msra.gmra.mxu1 %vm441_vm14, %v897_v44  ;;  %v1399_v47 = vpop.permute.xlu1 %1398 }
 0x64a   :  { %2689 = vmatpush3.xpose.msk.msra.mxu1 %vm261_vm3, %v1172_v21  ;;  %2692 = vmatprep.mubr.msk.f32.mxu1 %vm261_vm3, %v1166_v36 }
 0x64b   :  { %2690 = vmatprep.subr.msk.mxu1 %vm261_vm3, %v1170_v31 }
 0x64e   :  { %2691 = vmatpush3.xpose.msk.msra.mxu1 %vm261_vm3, %v1170_v31 }
 0x64f   :  { %2702 = vmatprep.subr.msk.mxu1 %vm498_vm4, %v1399_v47 }
 0x651   :  { %2693 = vmatmul.mubr.msk.f32.vlgmr.msra.gmra.mxu1 %vm261_vm3, %v1168_v35 }
 0x652   :  { %2703 = vmatpush3.msk.msra.mxu1 %vm498_vm4, %v1399_v47 }
 0x6d4   :  { %v3224_v48 = vpop.f32.mrf.mxu0 }
 0x6d6   :  { %v3226_v49 = vpop.f32.mrf.mxu0 }
 0x6fc   :  { %v2687_v50 = vpop.f32.mrf.mxu0 }
 0x6fd   :  { %v1257_v51 = vmul.f32 0.35355338, %v2687_v50 }
 0x6fe   :  { %v1156_v52 = vpop.f32.mrf.mxu0 }
 0x6ff   :  { %v1256_v55 = vmul.f32 0.35355338, %v1156_v52  ;;  %v1261_v56 = vadd.f32 %v1257_v51, %v3094_v27 }
 0x701   :  { %v1267_v57 = vsel %vm445_vm12, %v1261_v56, -inf  ;;  %v1260_v58 = vadd.f32 %v1256_v55, %v3096_v30 }
 0x702   :  { %1268 = vmax.xlane.f32.xlu1 %v1267_v57 }
 0x703   :  { %v1264_v60 = vsel %vm441_vm14, %v1260_v58, -inf }
 0x704   :  { %1265 = vmax.xlane.f32.xlu0 %v1264_v60 }
 0x709   :  { %v3232_v62 = vpop.f32.mrf.mxu1 }
 0x70b   :  { %v3234_v63 = vpop.f32.mrf.mxu1 }
 0x711   :  { %v2694_v0 = vpop.f32.mrf.mxu1 }
 0x712   :  { %v1259_v1 = vmul.f32 0.35355338, %v2694_v0 }
 0x713   :  { %v1247_v2 = vpop.f32.mrf.mxu1  ;;  %1488 = vrot.lane.b32.xlu1 %v3043_v53, %s2935_s19 }
 0x714   :  { %v1258_v3 = vmul.f32 0.35355338, %v1247_v2  ;;  %v1263_v5 = vadd.f32 %v1259_v1, %v3104_v37 }
 0x716   :  { %v1273_v6 = vsel %vm445_vm12, %v1263_v5, -inf  ;;  %v1262_v7 = vadd.f32 %v1258_v3, %v3106_v40 }
 0x717   :  { %1274 = vmax.xlane.f32.xlu0 %v1273_v6 }
 0x718   :  { %v1270_v8 = vsel %vm441_vm14, %v1262_v7, -inf }
 0x71b   :  { %1271 = vmax.xlane.f32.xlu0 %v1270_v8 }
 0x731   :  { %1396 = vrot.lane.b32.xlu0 %v3058_v61, %s2934_s18 }
 0x78b   :  { %v1269_v9 = vpop.xlane.xlu1 %1268 }
 0x78c   :  { %v1277_v10 = vsub.f32 %v1261_v56, %v1269_v9 }
 0x78d   :  { %v1266_v11 = vpop.xlane.xlu0 %1265 }
 0x78e   :  { %v1282_v13 = vmul.f32 1.442695, %v1277_v10  ;;  %v1276_v14 = vsub.f32 %v1260_v58, %v1266_v11 }
 0x78f   :  { %v1489_v35 = vpop.permute.xlu1 %1488 }
 0x790   :  { %2854 = vpow2.f32 %v1282_v13  ;;  %v1280_v15 = vmul.f32 1.442695, %v1276_v14 }
 0x792   :  { %2856 = vpow2.f32 %v1280_v15 }
 0x79d   :  { %v2855_v16 = vpop.eup %2854 }
 0x79e   :  { %v1291_v17 = vsel %vm445_vm12, %v2855_v16, 0.0 }
 0x79f   :  { %v2857_v18 = vpop.eup %2856  ;;  %1292 = vadd.xlane.f32.xlu1 %v1291_v17 }
 0x7a0   :  { %v1275_v19 = vpop.xlane.xlu0 %1274  ;;  %v1288_v20 = vsel %vm441_vm14, %v2857_v18, 0.0 }
 0x7a1   :  { %1289 = vadd.xlane.f32.xlu0 %v1288_v20  ;;  %v1279_v23 = vsub.f32 %v1263_v5, %v1275_v19 }
 0x7a3   :  { %v1286_v25 = vmul.f32 1.442695, %v1279_v23 }
 0x7a4   :  { %v1272_v21 = vpop.xlane.xlu0 %1271 }
 0x7a5   :  { %v1278_v24 = vsub.f32 %v1262_v7, %v1272_v21  ;;  %2858 = vpow2.f32 %v1286_v25 }
 0x7a7   :  { %v1284_v26 = vmul.f32 1.442695, %v1278_v24 }
 0x7a8   :  { %v1397_v22 = vpop.permute.xlu0 %1396 }
 0x7a9   :  { %2704 = vmatprep.subr.mxu1 %v1397_v22  ;;  %2860 = vpow2.f32 %v1284_v26 }
 0x7aa   :  { %2705 = vmatpush3.msra.mxu1 %v1397_v22 }
 0x7b0   :  { %1484 = vrot.lane.b32.xlu1 %v3043_v53, %s2936_s20 }
 0x7b2   :  { %v2859_v4 = vpop.eup %2858 }
 0x7b3   :  { %v1297_v31 = vsel %vm445_vm12, %v2859_v4, 0.0 }
 0x7b6   :  { %v2861_v28 = vpop.eup %2860 }
 0x7b7   :  { %1581 = vrot.lane.b32.xlu0 %v3051_v59, %s2935_s19  ;;  %v1294_v32 = vsel %vm441_vm14, %v2861_v28, 0.0 }
 0x7d4   :  { %1298 = vadd.xlane.f32.xlu1 %v1297_v31 }
 0x7d6   :  { %1295 = vadd.xlane.f32.xlu0 %v1294_v32 }
 0x7e5   :  { %1579 = vrot.lane.b32.xlu1 %v3058_v61, %s2935_s19 }
 0x7e9   :  { %1577 = vrot.lane.b32.xlu1 %v3051_v59, %s2936_s20 }
 0x7ec   :  { %1486 = vrot.lane.b32.xlu0 %v3045_v54, %s2936_s20 }
 0x7f0   :  { %1575 = vrot.lane.b32.xlu0 %v3058_v61, %s2936_s20 }
 0x828   :  { %v1293_v36 = vpop.xlane.xlu1 %1292 }
 0x829   :  { %2862 = vrcp.f32 %v1293_v36 }
 0x82a   :  { %v1290_v38 = vpop.xlane.xlu0 %1289 }
 0x82b   :  { %2864 = vrcp.f32 %v1290_v38 }
 0x82c   :  { %v1485_v47 = vpop.permute.xlu1 %1484 }
 0x82e   :  { %v1582_v39 = vpop.permute.xlu0 %1581 }
 0x82f   :  { %2716 = vmatprep.subr.msk.mxu1 %vm261_vm3, %v1582_v39 }
 0x836   :  { %v2863_v41 = vpop.eup %2862 }
 0x837   :  { %v1305_v44 = vmul.f32 %v2863_v41, %v2855_v16 }
 0x838   :  { %v2865_v29 = vpop.eup %2864 }
 0x839   :  { %v1304_v42 = vmul.f32 %v2865_v29, %v2857_v18 }
 0x83b   :  { %2699 = vmatprep.mubr.msk.f32.mxu0 %vm441_vm14, %v1304_v42 }
 0x83c   :  { %2700 = vmatmul.mubr.msk.f32.vlgmr.msra.gmra.mxu0 %vm441_vm14, %v1305_v44 }
 0x83d   :  { %2710 = vmatpush3.xpose.msk.msra.mxu0 %vm261_vm3, %v3211_v43  ;;  %2713 = vmatprep.mubr.msk.f32.mxu0 %vm261_vm3, %v1485_v47 }
 0x83e   :  { %2711 = vmatprep.subr.msk.mxu0 %vm261_vm3, %v1489_v35 }
 0x841   :  { %2712 = vmatpush3.xpose.msk.msra.mxu0 %vm261_vm3, %v1489_v35 }
 0x85d   :  { %v1299_v50 = vpop.xlane.xlu1 %1298 }
 0x85e   :  { %2866 = vrcp.f32 %v1299_v50 }
 0x85f   :  { %v1296_v51 = vpop.xlane.xlu0 %1295 }
 0x860   :  { %2868 = vrcp.f32 %v1296_v51 }
 0x861   :  { %v1580_v60 = vpop.permute.xlu1 %1579 }
 0x863   :  { %v1487_v52 = vpop.permute.xlu0 %1486 }
 0x864   :  { %2714 = vmatmul.mubr.msk.f32.vlgmr.msra.gmra.mxu0 %vm261_vm3, %v1487_v52 }
 0x865   :  { %v1578_v0 = vpop.permute.xlu1 %1577 }
 0x867   :  { %v1576_v43 = vpop.permute.xlu0 %1575 }
 0x86b   :  { %v2867_v55 = vpop.eup %2866 }
 0x86c   :  { %v1307_v58 = vmul.f32 %v2867_v55, %v2859_v4 }
 0x86d   :  { %v2869_v56 = vpop.eup %2868 }
 0x86e   :  { %v1306_v57 = vmul.f32 %v2869_v56, %v2861_v28 }
 0x870   :  { %2706 = vmatprep.mubr.msk.f32.mxu1 %vm441_vm14, %v1306_v57 }
 0x871   :  { %2707 = vmatmul.mubr.msk.f32.vlgmr.msra.gmra.mxu1 %vm441_vm14, %v1307_v58 }
 0x872   :  { %2717 = vmatpush3.xpose.msk.msra.mxu1 %vm261_vm3, %v1582_v39  ;;  %2720 = vmatprep.mubr.msk.f32.mxu1 %vm261_vm3, %v1576_v43 }
 0x873   :  { %2718 = vmatprep.subr.msk.mxu1 %vm261_vm3, %v1580_v60 }
 0x876   :  { %2719 = vmatpush3.xpose.msk.msra.mxu1 %vm261_vm3, %v1580_v60  ;;  %v1959_v60 = vld [vmem:[%s3522_s5 + $0x18] sm:$0xff] }
 0x879   :  { %2721 = vmatmul.mubr.msk.f32.vlgmr.msra.gmra.mxu1 %vm261_vm3, %v1578_v0  ;;  %v1958_v0 = vld [vmem:[%s3522_s5 + $0x10] sm:$0xff] }
 0x8fc   :  { %v2701_v1 = vpop.f32.mrf.mxu0 }
 0x8fe   :  { %v1387_v2 = vpop.f32.mrf.mxu0 }
 0x924   :  { %v2715_v3 = vpop.f32.mrf.mxu0 }
 0x925   :  { %v1667_v5 = vmul.f32 0.35355338, %v2715_v3 }
 0x926   :  { %v1566_v6 = vpop.f32.mrf.mxu0 }
 0x927   :  { %v1666_v7 = vmul.f32 0.35355338, %v1566_v6  ;;  %v1671_v8 = vadd.f32 %v1667_v5, %v3094_v27 }
 0x929   :  { %v1677_v9 = vsel %vm445_vm12, %v1671_v8, -inf  ;;  %v1670_v10 = vadd.f32 %v1666_v7, %v3096_v30 }
 0x92a   :  { %1678 = vmax.xlane.f32.xlu1 %v1677_v9 }
 0x92b   :  { %v1674_v11 = vsel %vm441_vm14, %v1670_v10, -inf }
 0x92c   :  { %1675 = vmax.xlane.f32.xlu0 %v1674_v11 }
 0x931   :  { %v3276_v13 = vpop.f32.mrf.mxu1 }
 0x933   :  { %v3278_v14 = vpop.f32.mrf.mxu1 }
 0x939   :  { %v2722_v15 = vpop.f32.mrf.mxu1 }
 0x93a   :  { %v1669_v17 = vmul.f32 0.35355338, %v2722_v15 }
 0x93b   :  { %v1657_v16 = vpop.f32.mrf.mxu1 }
 0x93c   :  { %v1668_v18 = vmul.f32 0.35355338, %v1657_v16  ;;  %v1673_v20 = vadd.f32 %v1669_v17, %v3104_v37 }
 0x93e   :  { %v1672_v19 = vadd.f32 %v1668_v18, %v3106_v40  ;;  %v1683_v30 = vsel %vm445_vm12, %v1673_v20, -inf }
 0x940   :  { %v1680_v27 = vsel %vm441_vm14, %v1672_v19, -inf }
 0x941   :  { %1681 = vmax.xlane.f32.xlu0 %v1680_v27 }
 0x945   :  { %1684 = vmax.xlane.f32.xlu0 %v1683_v30 }
 0x9b3   :  { %v1679_v21 = vpop.xlane.xlu1 %1678 }
 0x9b4   :  { %v1687_v22 = vsub.f32 %v1671_v8, %v1679_v21 }
 0x9b5   :  { %v1676_v23 = vpop.xlane.xlu0 %1675 }
 0x9b6   :  { %v1692_v24 = vmul.f32 1.442695, %v1687_v22  ;;  %v1686_v25 = vsub.f32 %v1670_v10, %v1676_v23 }
 0x9b8   :  { %2870 = vpow2.f32 %v1692_v24  ;;  %v1690_v26 = vmul.f32 1.442695, %v1686_v25 }
 0x9ba   :  { %2872 = vpow2.f32 %v1690_v26 }
 0x9c5   :  { %v2871_v4 = vpop.eup %2870 }
 0x9c6   :  { %v1701_v28 = vsel %vm445_vm12, %v2871_v4, 0.0 }
 0x9c7   :  { %v2873_v40 = vpop.eup %2872  ;;  %1702 = vadd.xlane.f32.xlu1 %v1701_v28 }
 0x9c8   :  { %v1698_v31 = vsel %vm441_vm14, %v2873_v40, 0.0 }
 0x9c9   :  { %1699 = vadd.xlane.f32.xlu0 %v1698_v31 }
 0x9ca   :  { %v1682_v37 = vpop.xlane.xlu0 %1681 }
 0x9cb   :  { %v1688_v32 = vsub.f32 %v1672_v19, %v1682_v37 }
 0x9cd   :  { %v1694_v35 = vmul.f32 1.442695, %v1688_v32 }
 0x9ce   :  { %v1685_v36 = vpop.xlane.xlu0 %1684 }
 0x9cf   :  { %2874 = vpow2.f32 %v1694_v35  ;;  %v1689_v38 = vsub.f32 %v1673_v20, %v1685_v36 }
 0x9d1   :  { %v1696_v39 = vmul.f32 1.442695, %v1689_v38 }
 0x9d3   :  { %2876 = vpow2.f32 %v1696_v39 }
 0x9dc   :  { %v2875_v41 = vpop.eup %2874 }
 0x9dd   :  { %v1704_v29 = vsel %vm441_vm14, %v2875_v41, 0.0 }
 0x9de   :  { %1705 = vadd.xlane.f32.xlu0 %v1704_v29 }
 0x9e0   :  { %v2877_v42 = vpop.eup %2876 }
 0x9e1   :  { %v1707_v44 = vsel %vm445_vm12, %v2877_v42, 0.0 }
 0x9e2   :  { %1708 = vadd.xlane.f32.xlu1 %v1707_v44 }
 0x9f3   :  { %1718 = vrot.lane.b32.xlu1 %v3043_v53, %s2937_s21 }
 0x9f4   :  { %1720 = vrot.lane.b32.xlu0 %v3045_v54, %s2937_s21 }
 0x9f7   :  { %1808 = vrot.lane.b32.xlu1 %v3051_v59, %s2937_s21 }
 0x9f8   :  { %1898 = vrot.lane.b32.xlu0 %v3226_v49, %s2938_s22 }
 0x9fb   :  { %1806 = vrot.lane.b32.xlu1 %v3058_v61, %s2937_s21 }
 0x9fc   :  { %1902 = vrot.lane.b32.xlu0 %v3234_v63, %s2938_s22 }
 0x9ff   :  { %1914 = vrot.lane.b32.xlu1 %v1387_v2, %s2939_s23  ;;  %v1956_v2 = vld [vmem:[%s3522_s5] sm:$0xff] }
 0xa03   :  { %1900 = vrot.lane.b32.xlu1 %v3224_v48, %s2938_s22 }
 0xa07   :  { %1916 = vrot.lane.b32.xlu1 %v2701_v1, %s2939_s23  ;;  %v1957_v1 = vld [vmem:[%s3522_s5 + $0x8] sm:$0xff] }
 0xa50   :  { %v1703_v54 = vpop.xlane.xlu1 %1702 }
 0xa52   :  { %v1700_v53 = vpop.xlane.xlu0 %1699 }
 0xa53   :  { %2878 = vrcp.f32 %v1700_v53 }
 0xa54   :  { %2880 = vrcp.f32 %v1703_v54 }
 0xa60   :  { %v2879_v59 = vpop.eup %2878 }
 0xa61   :  { %v1714_v47 = vmul.f32 %v2879_v59, %v2873_v40  ;;  %v2881_v50 = vpop.eup %2880  ;;  %v2919_v59 = vld [vmem:[%s3517_s0 + $0x8] sm:$0xf] }
 0xa62   :  { %v1715_v51 = vmul.f32 %v2881_v50, %v2871_v4 }
 0xa63   :  { %2727 = vmatprep.mubr.msk.f32.mxu0 %vm441_vm14, %v1714_v47 }
 0xa67   :  { %v1706_v61 = vpop.xlane.xlu0 %1705 }
 0xa68   :  { %2882 = vrcp.f32 %v1706_v61 }
 0xa6b   :  { %v1709_v49 = vpop.xlane.xlu1 %1708  ;;  %v1721_v63 = vpop.permute.xlu0 %1720 }
 0xa6c   :  { %2884 = vrcp.f32 %v1709_v49  ;;  %2723 = vmatprep.subr.msk.mxu0 %vm498_vm4, %v1721_v63 }
 0xa6d   :  { %2724 = vmatpush3.msk.msra.mxu0 %vm498_vm4, %v1721_v63 }
 0xa6f   :  { %v1719_v48 = vpop.permute.xlu1 %1718  ;;  %v1899_v9 = vpop.permute.xlu0 %1898 }
 0xa70   :  { %2725 = vmatprep.subr.mxu0 %v1719_v48  ;;  %v1942_v15 = vsel %vm261_vm3, %v3162_v34, %v1899_v9  ;;  %v2123_v9 = vld [vmem:[%s3524_s8 + $0x18] sm:$0xff] }
 0xa71   :  { %2726 = vmatpush3.msra.mxu0 %v1719_v48 }
 0xa72   :  { %2728 = vmatmul.mubr.msk.f32.vlgmr.msra.gmra.mxu0 %vm441_vm14, %v1715_v51  ;;  %2737 = vmatprep.subr.mxu0 %v2922_v12 }
 0xa73   :  { %v1809_v52 = vpop.permute.xlu1 %1808  ;;  %2745 = vmatprep.mubr.msk.f32.mxu0 %vm2923_vm2, %v2922_v12  ;;  %2738 = vmatpush3.msra.mxu0 %v1959_v60  ;;  %v1903_v11 = vpop.permute.xlu0 %1902 }
 0xa74   :  { %2730 = vmatprep.subr.msk.mxu1 %vm498_vm4, %v1809_v52  ;;  %2739 = vmatprep.subr.mxu0 %v2922_v12 }
 0xa75   :  { %v2883_v55 = vpop.eup %2882  ;;  %2731 = vmatpush3.msk.msra.mxu1 %vm498_vm4, %v1809_v52  ;;  %2740 = vmatpush3.msra.mxu0 %v1958_v0  ;;  %vm1946_vm4 = vcmask 130048  }
 0xa76   :  { %v1716_v56 = vmul.f32 %v2883_v55, %v2875_v41  ;;  %2741 = vmatprep.subr.mxu0 %v2922_v12  ;;  %v2918_v41 = vld [vmem:[%s3517_s0] sm:$0xff] }
 0xa77   :  { %v1807_v57 = vpop.permute.xlu1 %1806  ;;  %2742 = vmatpush3.msra.mxu0 %v1957_v1 }
 0xa78   :  { %2732 = vmatprep.subr.mxu1 %v1807_v57  ;;  %2734 = vmatprep.mubr.msk.f32.mxu1 %vm441_vm14, %v1716_v56 }
 0xa79   :  { %v2885_v58 = vpop.eup %2884  ;;  %2733 = vmatpush3.msra.mxu1 %v1807_v57  ;;  %2743 = vmatprep.subr.mxu0 %v2922_v12  ;;  %v2920_v57 = vld [vmem:[%s3517_s0 + $0x10] sm:$0xff] }
 0xa7a   :  { %v1717_v43 = vmul.f32 %v2885_v58, %v2877_v42  ;;  %2744 = vmatpush3.msra.mxu0 %v1956_v2 }
 0xa7b   :  { %2754 = vmatprep.subr.mxu0 %v2922_v12  ;;  %v1915_v8 = vpop.permute.xlu1 %1914 }
 0xa7c   :  { %2735 = vmatmul.mubr.msk.f32.vlgmr.msra.gmra.mxu1 %vm441_vm14, %v1717_v43  ;;  %v2921_v43 = vld [vmem:[%s3517_s0 + $0x18] sm:$0xf] }
 0xa7d   :  { %2207 = vmatprep.mubr.f32.mxu1 %v2922_v12 }
 0xa7f   :  { %v1901_v10 = vpop.permute.xlu1 %1900 }
 0xa80   :  { %v1943_v34 = vsel %vm261_vm3, %v3160_v33, %v1901_v10  ;;  %v2122_v10 = vld [vmem:[%s3524_s8 + $0x10] sm:$0xff] }
 0xb32   :  { %v2729_v3 = vpop.f32.mrf.mxu0 }
 0xb33   :  { %1932 = vrot.lane.b32.xlu1 %v2729_v3, %s2940_s30 }
 0xb34   :  { %v1797_v5 = vpop.f32.mrf.mxu0 }
 0xb35   :  { %1930 = vrot.lane.b32.xlu0 %v1797_v5, %s2940_s30  ;;  %v2127_v5 = vld [vmem:[%s3524_s8 + $0x38] sm:$0xff] }
 0xb36   :  { %2167 = vmatprep.subr.mxu1 %v2127_v5 }
 0xb37   :  { %1904 = vrot.lane.b32.xlu1 %v3232_v62, %s2938_s22  ;;  %v1947_v62 = vsel %vm1946_vm4, %v1942_v15, %v1915_v8  ;;  %v2124_v8 = vld [vmem:[%s3524_s8 + $0x20] sm:$0xff] }
 0xb38   :  { %v2120_v15 = vld [vmem:[%s3524_s8] sm:$0xff] }
 0xb39   :  { %1918 = vrot.lane.b32.xlu0 %v3278_v14, %s2939_s23  ;;  %v1917_v14 = vpop.permute.xlu1 %1916 }
 0xb3a   :  { %v1948_v30 = vsel %vm1946_vm4, %v1943_v34, %v1917_v14 }
 0xb3c   :  { %v2736_v6 = vpop.f32.mrf.mxu1 }
 0xb3d   :  { %1936 = vrot.lane.b32.xlu1 %v2736_v6, %s2940_s30  ;;  %v2126_v6 = vld [vmem:[%s3524_s8 + $0x30] sm:$0xff] }
 0xb3e   :  { %v1885_v7 = vpop.f32.mrf.mxu1  ;;  %2168 = vmatpush1.msra.mxu1 %v2126_v6 }
 0xb3f   :  { %1934 = vrot.lane.b32.xlu0 %v1885_v7, %s2940_s30  ;;  %v2125_v7 = vld [vmem:[%s3524_s8 + $0x28] sm:$0xff] }
 0xb40   :  { %2169 = vmatprep.subr.mxu1 %v2125_v7 }
 0xb41   :  { %2170 = vmatpush1.msra.mxu1 %v2124_v8 }
 0xb42   :  { %2171 = vmatprep.subr.mxu1 %v2123_v9 }
 0xb43   :  { %1920 = vrot.lane.b32.xlu0 %v3276_v13, %s2939_s23  ;;  %v1944_v13 = vsel %vm261_vm3, %v3170_v46, %v1903_v11  ;;  %v2121_v11 = vld [vmem:[%s3524_s8 + $0x8] sm:$0xff]  ;;  %2172 = vmatpush1.msra.mxu1 %v2122_v10 }
 0xb44   :  { %2173 = vmatprep.subr.mxu1 %v2121_v11 }
 0xb45   :  { %2174 = vmatpush1.msra.mxu1 %v2120_v15 }
 0xba5   :  { %v1933_v27 = vpop.permute.xlu1 %1932 }
 0xba6   :  { %v1953_v23 = vsel %vm1951_vm6, %v1948_v30, %v1933_v27 }
 0xba7   :  { %v1931_v16 = vpop.permute.xlu0 %1930 }
 0xba8   :  { %v1952_v17 = vsel %vm1951_vm6, %v1947_v62, %v1931_v16 }
 0xba9   :  { %v1965_v18 = vcombine.high %v1952_v17, %v1952_v17  ;;  %v1905_v24 = vpop.permute.xlu1 %1904 }
 0xbaa   :  { %v1945_v4 = vsel %vm261_vm3, %v3168_v45, %v1905_v24  ;;  %v2497_v45 = vld [vmem:[%s3523_s6] ss:$0 sm:$0xff] }
 0xbab   :  { %v1973_v19 = vcombine.low %v1952_v17, %v1965_v18  ;;  %v1919_v20 = vpop.permute.xlu0 %1918 }
 0xbac   :  { %v1949_v21 = vsel %vm1946_vm4, %v1944_v13, %v1919_v20 }
 0xbad   :  { %2746 = vmatmul.mubr.msk.f32.vlgmr.msra.gmra.mxu0 %vm44_vm0, %v1973_v19 }
 0xbae   :  { %2748 = vmatprep.mubr.msk.f32.mxu0 %vm2923_vm2, %v2922_v12 }
 0xbaf   :  { %v1937_v28 = vpop.permute.xlu1 %1936 }
 0xbb1   :  { %v1935_v22 = vpop.permute.xlu0 %1934 }
 0xbb2   :  { %v1954_v25 = vsel %vm1951_vm6, %v1949_v21, %v1935_v22 }
 0xbb3   :  { %v1974_v26 = vcombine.low %v1953_v23, %v1954_v25  ;;  %v1966_v40 = vcombine.high %v1954_v25, %v1954_v25  ;;  %v2501_v23 = vld [vmem:[%s3525_s7] ss:$0 sm:$0xff] }
 0xbb5   :  { %2749 = vmatmul.mubr.msk.f32.gmra.mxu0 %vm44_vm0, %v1974_v26  ;;  %v1921_v46 = vpop.permute.xlu0 %1920 }
 0xbb6   :  { %v1950_v33 = vsel %vm1946_vm4, %v1945_v4, %v1921_v46  ;;  %2751 = vmatprep.mubr.msk.f32.mxu0 %vm2923_vm2, %v2922_v12 }
 0xbb7   :  { %v1955_v31 = vsel %vm1951_vm6, %v1950_v33, %v1937_v28 }
 0xbb8   :  { %v1975_v37 = vcombine.low %v1966_v40, %v1955_v31 }
 0xbba   :  { %2752 = vmatmul.mubr.msk.f32.gmra.mxu0 %vm44_vm0, %v1975_v37 }
 0xbbb   :  { %2786 = vmatprep.mubr.msk.f32.mxu0 %vm2923_vm2, %v2922_v12 }
 0xc6d   :  { %v2048_v32 = vpop.f32.mrf.mxu0 }
 0xc6e   :  { %v2049_v35 = vadd.f32 %v2497_v45, %v2048_v32 }
 0xc6f   :  { %v2747_v36 = vpop.f32.mrf.mxu0 }
 0xc70   :  { %v2065_v38 = vcombine.high %v2049_v35, %v2049_v35 }
 0xc72   :  { %v2069_v39 = vcombine.low %v2049_v35, %v2065_v38 }
 0xc74   :  { %v3365_v29 = vadd.f32 %v2918_v41, %v2069_v39  ;;  %v2319_v41 = vld [vmem:[%s3526_s9 + $0x78] sm:$0xff] }
 0xc75   :  { %v2053_v42 = vpop.f32.mrf.mxu0  ;;  %2755 = vmatpush3.msra.mxu0 %v2319_v41 }
 0xc76   :  { %v2054_v44 = vadd.f32 %v2497_v45, %v2053_v42  ;;  %v2078_v53 = vmul.f32 %v3365_v29, %v3365_v29  ;;  %2756 = vmatprep.subr.mxu0 %v2922_v12  ;;  %v2318_v42 = vld [vmem:[%s3526_s9 + $0x70] sm:$0xff] }
 0xc77   :  { %v2750_v54 = vpop.f32.mrf.mxu0  ;;  %2757 = vmatpush3.msra.mxu0 %v2318_v42 }
 0xc78   :  { %v3372_v47 = vadd.f32 %v2919_v59, %v2054_v44  ;;  %v2082_v61 = vsel %vm44_vm0, %v2078_v53, 0.0  ;;  %v2066_v50 = vcombine.high %v2054_v44, %v2054_v44  ;;  %2758 = vmatprep.subr.mxu0 %v2922_v12  ;;  %v2317_v44 = vld [vmem:[%s3526_s9 + $0x68] sm:$0xff]  ;;  %v2316_v53 = vld [vmem:[%s3526_s9 + $0x60] sm:$0xff]  ;;  %v2315_v54 = vld [vmem:[%s3526_s9 + $0x58] sm:$0xff] }
 0xc79   :  { %2083 = vadd.xlane.f32.xlu0 %v2082_v61  ;;  %2759 = vmatpush3.msra.mxu0 %v2317_v44  ;;  %v2314_v59 = vld [vmem:[%s3526_s9 + $0x50] sm:$0xff]  ;;  %v2313_v61 = vld [vmem:[%s3526_s9 + $0x48] sm:$0xff] }
 0xc7a   :  { %v2058_v49 = vpop.f32.mrf.mxu0  ;;  %v2079_v63 = vmul.f32 %v3372_v47, %v3372_v47  ;;  %2760 = vmatprep.subr.mxu0 %v2922_v12 }
 0xc7b   :  { %v2059_v48 = vadd.f32 %v2497_v45, %v2058_v49  ;;  %2761 = vmatpush3.msra.mxu0 %v2316_v53  ;;  %v2312_v49 = vld [vmem:[%s3526_s9 + $0x40] sm:$0xff] }
 0xc7c   :  { %v2753_v51 = vpop.f32.mrf.mxu0  ;;  %v2085_v52 = vsel %vm48_vm1, %v2079_v63, 0.0  ;;  %2762 = vmatprep.subr.mxu0 %v2922_v12  ;;  %v2311_v63 = vld [vmem:[%s3526_s9 + $0x38] sm:$0xff] }
 0xc7d   :  { %v2067_v55 = vcombine.high %v2059_v48, %v2059_v48  ;;  %v2070_v56 = vcombine.low %v2066_v50, %v2059_v48  ;;  %2086 = vadd.xlane.f32.xlu1 %v2085_v52  ;;  %2763 = vmatpush3.msra.mxu0 %v2315_v54  ;;  %v2310_v50 = vld [vmem:[%s3526_s9 + $0x30] sm:$0xff]  ;;  %v2309_v48 = vld [vmem:[%s3526_s9 + $0x28] sm:$0xff]  ;;  %v2308_v51 = vld [vmem:[%s3526_s9 + $0x20] sm:$0xff] }
 0xc7e   :  { %2764 = vmatprep.subr.mxu0 %v2922_v12  ;;  %v2307_v52 = vld [vmem:[%s3526_s9 + $0x18] sm:$0xff] }
 0xc7f   :  { %v3381_v58 = vadd.f32 %v2920_v57, %v2070_v56  ;;  %v3386_v60 = vadd.f32 %v2921_v43, %v2067_v55  ;;  %2765 = vmatpush3.msra.mxu0 %v2314_v59  ;;  %v2306_v55 = vld [vmem:[%s3526_s9 + $0x10] sm:$0xff]  ;;  %v2305_v56 = vld [vmem:[%s3526_s9 + $0x8] sm:$0xff]  ;;  %v2304_v57 = vld [vmem:[%s3526_s9] sm:$0xff] }
 0xc80   :  { %2766 = vmatprep.subr.mxu0 %v2922_v12 }
 0xc81   :  { %v2080_v0 = vmul.f32 %v3381_v58, %v3381_v58  ;;  %v2081_v2 = vmul.f32 %v3386_v60, %v3386_v60  ;;  %2767 = vmatpush3.msra.mxu0 %v2313_v61 }
 0xc82   :  { %2768 = vmatprep.subr.mxu0 %v2922_v12 }
 0xc83   :  { %v2088_v1 = vsel %vm44_vm0, %v2080_v0, 0.0  ;;  %v2091_v3 = vsel %vm48_vm1, %v2081_v2, 0.0  ;;  %2769 = vmatpush3.msra.mxu0 %v2312_v49 }
 0xc84   :  { %2089 = vadd.xlane.f32.xlu0 %v2088_v1  ;;  %2770 = vmatprep.subr.mxu0 %v2922_v12 }
 0xc85   :  { %2771 = vmatpush3.msra.mxu0 %v2311_v63 }
 0xc86   :  { %2772 = vmatprep.subr.mxu0 %v2922_v12 }
 0xc87   :  { %2773 = vmatpush3.msra.mxu0 %v2310_v50 }
 0xc88   :  { %2092 = vadd.xlane.f32.xlu0 %v2091_v3  ;;  %2774 = vmatprep.subr.mxu0 %v2922_v12 }
 0xc89   :  { %2775 = vmatpush3.msra.mxu0 %v2309_v48 }
 0xc8a   :  { %2776 = vmatprep.subr.mxu0 %v2922_v12 }
 0xc8b   :  { %2777 = vmatpush3.msra.mxu0 %v2308_v51 }
 0xc8c   :  { %2778 = vmatprep.subr.mxu0 %v2922_v12 }
 0xc8d   :  { %2779 = vmatpush3.msra.mxu0 %v2307_v52 }
 0xc8e   :  { %2780 = vmatprep.subr.mxu0 %v2922_v12 }
 0xc8f   :  { %2781 = vmatpush3.msra.mxu0 %v2306_v55 }
 0xc90   :  { %2782 = vmatprep.subr.mxu0 %v2922_v12 }
 0xc91   :  { %2783 = vmatpush3.msra.mxu0 %v2305_v56 }
 0xc92   :  { %2784 = vmatprep.subr.mxu0 %v2922_v12 }
 0xc93   :  { %2785 = vmatpush3.msra.mxu0 %v2304_v57 }
 0xd02   :  { %v2084_v62 = vpop.xlane.xlu0 %2083 }
 0xd03   :  { %v2094_v16 = vmul.f32 0.03125, %v2084_v62 }
 0xd05   :  { %v2098_v14 = vadd.f32 1e-06, %v2094_v16 }
 0xd06   :  { %v2087_v17 = vpop.xlane.xlu1 %2086 }
 0xd07   :  { %2886 = vrsqrt.f32 %v2098_v14  ;;  %v2095_v18 = vmul.f32 0.03125, %v2087_v17 }
 0xd09   :  { %v2099_v19 = vadd.f32 1e-06, %v2095_v18 }
 0xd0b   :  { %2888 = vrsqrt.f32 %v2099_v19 }
 0xd0d   :  { %v2090_v27 = vpop.xlane.xlu0 %2089 }
 0xd0e   :  { %v2096_v20 = vmul.f32 0.03125, %v2090_v27 }
 0xd10   :  { %v2100_v13 = vadd.f32 1e-06, %v2096_v20 }
 0xd11   :  { %v2093_v34 = vpop.xlane.xlu0 %2092 }
 0xd12   :  { %2890 = vrsqrt.f32 %v2100_v13  ;;  %v2097_v30 = vmul.f32 0.03125, %v2093_v34 }
 0xd14   :  { %v2887_v21 = vpop.eup %2886  ;;  %v2101_v22 = vadd.f32 1e-06, %v2097_v30 }
 0xd15   :  { %v2106_v24 = vmul.f32 %v2887_v21, %v3365_v29 }
 0xd16   :  { %2892 = vrsqrt.f32 %v2101_v22 }
 0xd17   :  { %v2116_v25 = vmul.f32 %v2501_v23, %v2106_v24 }
 0xd18   :  { %v2889_v4 = vpop.eup %2888 }
 0xd19   :  { %v2132_v26 = vcombine.high %v2116_v25, %v2116_v25  ;;  %v2107_v28 = vmul.f32 %v2889_v4, %v3372_v47 }
 0xd1b   :  { %v2134_v46 = vcombine.low %v2116_v25, %v2132_v26  ;;  %v2117_v31 = vmul.f32 %v2501_v23, %v2107_v28 }
 0xd1d   :  { %2502 = vmatmul.mubr.msk.f32.vlgmr.msra.gmra.mxu1 %vm44_vm0, %v2134_v46 }
 0xd1e   :  { %2213 = vmatprep.mubr.f32.mxu1 %v2922_v12 }
 0xd1f   :  { %v2891_v40 = vpop.eup %2890 }
 0xd20   :  { %v2108_v33 = vmul.f32 %v2891_v40, %v3381_v58 }
 0xd22   :  { %v2118_v37 = vmul.f32 %v2501_v23, %v2108_v33 }
 0xd23   :  { %v2893_v45 = vpop.eup %2892 }
 0xd24   :  { %v2135_v32 = vcombine.low %v2117_v31, %v2118_v37  ;;  %v2109_v35 = vmul.f32 %v2893_v45, %v3386_v60  ;;  %v2133_v38 = vcombine.high %v2118_v37, %v2118_v37 }
 0xd26   :  { %2503 = vmatmul.mubr.msk.f32.gmra.mxu1 %vm44_vm0, %v2135_v32  ;;  %v2119_v36 = vmul.f32 %v2501_v23, %v2109_v35 }
 0xd27   :  { %2219 = vmatprep.mubr.f32.mxu1 %v2922_v12 }
 0xd28   :  { %v2136_v39 = vcombine.low %v2133_v38, %v2119_v36 }
 0xd2a   :  { %2504 = vmatmul.mubr.msk.f32.gmra.mxu1 %vm44_vm0, %v2136_v39 }
 0xddd   :  { %v2209_v43 = vpop.f32.mrf.mxu1 }
 0xddf   :  { %v2211_v0 = vpop.f32.mrf.mxu1 }
 0xde0   :  { %v2232_v1 = vcombine.low %v2209_v43, %v2211_v0  ;;  %v2233_v2 = vcombine.high %v2209_v43, %v2211_v0 }
 0xde2   :  { %v2505_v3 = vmul.f32 -1.442695, %v2232_v1  ;;  %v2506_v5 = vmul.f32 -1.442695, %v2233_v2  ;;  %v2286_v40 = vrot.slane %v2232_v1, 4  ;;  %v2287_v31 = vrot.slane %v2233_v2, 4 }
 0xde4   :  { %2894 = vpow2.f32 %v2505_v3 }
 0xde5   :  { %2896 = vpow2.f32 %v2506_v5 }
 0xde6   :  { %v2215_v6 = vpop.f32.mrf.mxu1 }
 0xde8   :  { %v2217_v7 = vpop.f32.mrf.mxu1 }
 0xde9   :  { %v2234_v8 = vcombine.low %v2215_v6, %v2217_v7  ;;  %v2235_v9 = vcombine.high %v2215_v6, %v2217_v7 }
 0xdea   :  { %v2221_v10 = vpop.f32.mrf.mxu1 }
 0xdeb   :  { %v2507_v11 = vmul.f32 -1.442695, %v2234_v8  ;;  %v2508_v15 = vmul.f32 -1.442695, %v2235_v9  ;;  %v2288_v39 = vrot.slane %v2234_v8, 4  ;;  %v2289_v42 = vrot.slane %v2235_v9, 4 }
 0xdec   :  { %v2223_v62 = vpop.f32.mrf.mxu1 }
 0xded   :  { %2898 = vpow2.f32 %v2507_v11  ;;  %v2236_v16 = vcombine.low %v2221_v10, %v2223_v62  ;;  %v2237_v14 = vcombine.high %v2221_v10, %v2223_v62 }
 0xdee   :  { %2900 = vpow2.f32 %v2508_v15 }
 0xdef   :  { %v2509_v17 = vmul.f32 -1.442695, %v2236_v16  ;;  %v2510_v18 = vmul.f32 -1.442695, %v2237_v14  ;;  %v2290_v49 = vrot.slane %v2236_v16, 4  ;;  %v2291_v50 = vrot.slane %v2237_v14, 4 }
 0xdf1   :  { %v2895_v19 = vpop.eup %2894  ;;  %2902 = vpow2.f32 %v2509_v17 }
 0xdf2   :  { %v2897_v27 = vpop.eup %2896  ;;  %v2262_v20 = vadd.f32 1.0, %v2895_v19  ;;  %2904 = vpow2.f32 %v2510_v18 }
 0xdf3   :  { %v2263_v13 = vadd.f32 1.0, %v2897_v27 }
 0xdf4   :  { %2906 = vrcp.f32 %v2262_v20 }
 0xdf5   :  { %2908 = vrcp.f32 %v2263_v13 }
 0xdfa   :  { %v2899_v34 = vpop.eup %2898 }
 0xdfb   :  { %v2901_v30 = vpop.eup %2900  ;;  %v2264_v21 = vadd.f32 1.0, %v2899_v34 }
 0xdfc   :  { %v2265_v22 = vadd.f32 1.0, %v2901_v30 }
 0xdfd   :  { %2910 = vrcp.f32 %v2264_v21 }
 0xdfe   :  { %v2903_v23 = vpop.eup %2902  ;;  %2912 = vrcp.f32 %v2265_v22 }
 0xdff   :  { %v2905_v24 = vpop.eup %2904  ;;  %v2266_v25 = vadd.f32 1.0, %v2903_v23 }
 0xe00   :  { %v2267_v26 = vadd.f32 1.0, %v2905_v24 }
 0xe01   :  { %v2907_v4 = vpop.eup %2906  ;;  %2914 = vrcp.f32 %v2266_v25 }
 0xe02   :  { %v2909_v46 = vpop.eup %2908  ;;  %v2280_v28 = vmul.f32 %v2907_v4, %v2232_v1  ;;  %2916 = vrcp.f32 %v2267_v26 }
 0xe03   :  { %v2281_v33 = vmul.f32 %v2909_v46, %v2233_v2 }
 0xe04   :  { %v2298_v37 = vmul.f32 %v2286_v40, %v2280_v28 }
 0xe05   :  { %v2299_v45 = vmul.f32 %v2287_v31, %v2281_v33 }
 0xe07   :  { %v2326_v32 = vcombine.low %v2298_v37, %v2299_v45 }
 0xe09   :  { %2787 = vmatmul.mubr.f32.vlgmr.msra.gmra.mxu0 %v2326_v32 }
 0xe0a   :  { %v2911_v35 = vpop.eup %2910  ;;  %2789 = vmatprep.mubr.msk.f32.mxu0 %vm2923_vm2, %v2922_v12 }
 0xe0b   :  { %v2913_v36 = vpop.eup %2912  ;;  %v2282_v38 = vmul.f32 %v2911_v35, %v2234_v8 }
 0xe0c   :  { %v2283_v41 = vmul.f32 %v2913_v36, %v2235_v9 }
 0xe0d   :  { %v2300_v44 = vmul.f32 %v2288_v39, %v2282_v38 }
 0xe0e   :  { %v2915_v53 = vpop.eup %2914  ;;  %v2301_v54 = vmul.f32 %v2289_v42, %v2283_v41 }
 0xe0f   :  { %v2917_v59 = vpop.eup %2916  ;;  %v2284_v61 = vmul.f32 %v2915_v53, %v2236_v16 }
 0xe10   :  { %v2285_v63 = vmul.f32 %v2917_v59, %v2237_v14  ;;  %v2327_v48 = vcombine.low %v2300_v44, %v2301_v54 }
 0xe11   :  { %v2302_v51 = vmul.f32 %v2290_v49, %v2284_v61 }
 0xe12   :  { %2790 = vmatmul.mubr.f32.gmra.mxu0 %v2327_v48  ;;  %v2303_v52 = vmul.f32 %v2291_v50, %v2285_v63 }
 0xe13   :  { %2792 = vmatprep.mubr.msk.f32.mxu0 %vm2923_vm2, %v2922_v12 }
 0xe14   :  { %v2328_v55 = vcombine.low %v2302_v51, %v2303_v52 }
 0xe16   :  { %2793 = vmatmul.mubr.f32.gmra.mxu0 %v2328_v55 }
 0xec9   :  { %v2398_v56 = vpop.f32.mrf.mxu0 }
 0xeca   :  { %v2415_v57 = vcombine.high %v2398_v56, %v2398_v56 }
 0xecb   :  { %v2788_v43 = vpop.f32.mrf.mxu0 }
 0xecc   :  { %v2419_v0 = vcombine.low %v2398_v56, %v2415_v57 }
 0xece   :  { %v2423_v1 = vadd.f32 %v2419_v0, %v3365_v29 }
 0xed0   :  { %2427 = vst.msk [vmem:[%s3527_s10] sm:$0xff] %vm44_vm0, %v2423_v1 }
 0xed2   :  { %v2403_v2 = vpop.f32.mrf.mxu0 }
 0xed3   :  { %v2424_v3 = vadd.f32 %v2403_v2, %v3372_v47  ;;  %v2416_v6 = vcombine.high %v2403_v2, %v2403_v2 }
 0xed4   :  { %v2791_v5 = vpop.f32.mrf.mxu0 }
 0xed5   :  { %2428 = vst.msk [vmem:[%s3527_s10 + $0x8] sm:$0xf] %vm48_vm1, %v2424_v3 }
 0xed6   :  { %v2408_v12 = vpop.f32.mrf.mxu0 }
 0xed7   :  { %v2417_v7 = vcombine.high %v2408_v12, %v2408_v12  ;;  %v2420_v8 = vcombine.low %v2416_v6, %v2408_v12 }
 0xed8   :  { %v2794_v9 = vpop.f32.mrf.mxu0 }
 0xed9   :  { %v2425_v29 = vadd.f32 %v2420_v8, %v3381_v58  ;;  %v2426_v10 = vadd.f32 %v2417_v7, %v3386_v60 }
 0xedb   :  { %2429 = vst.msk [vmem:[%s3527_s10 + $0x10] sm:$0xff] %vm44_vm0, %v2425_v29 }
 0xedc   :  { %2430 = vst.msk [vmem:[%s3527_s10 + $0x18] sm:$0xf] %vm48_vm1, %v2426_v10 }

</bundles_post_ra>
